<compile_context>
chip_gen: v5e
topology: v5e:2x2
jax: 0.10.0
libtpu: 0.0.40
codegen_flags: <defaults>
</compile_context>

<pallas_src>
import functools

import jax
import jax.numpy as jnp
import numpy as np
from jax import lax
from jax.experimental import pallas as pl
from jax.experimental.pallas import tpu as pltpu

N_ODE_STEPS = 8  # fixed RK4 steps per unit interval [0, 1]


def _ode_block_kernel(s_ref,      # VMEM (1, G, N, PD)       packed initial states (resident)
                      phi_ref,    # VMEM (1, G, d, PD)       compact Phi, P matrices concat on lanes
                      b_ref,      # VMEM (1, G, 1, PD)       packed biases (resident)
                      delta_ref,  # VMEM (1, 1, G, 1, PD)    per-lane delta for this block step
                      out_ref,    # VMEM (1, 1, G, N, PD)    packed outputs for this block step
                      x_sc,       # VMEM scratch (G, N, PD)  carried state across block steps
                      phi_sc,     # VMEM scratch (G, PD, PD) block-diagonal Phi (built per tile)
                      *, G, P, d, n_steps):
    # NOTE: the recurrence over block steps relies on `bi` being the TRAILING
    # ("arbitrary") grid axis: the scratch carries (x_sc, phi_sc) are re-initialised at
    # bi == 0 for every tile. Do not reorder the grid or mark this axis "parallel".
    bi = pl.program_id(1)

    @pl.when(bi == 0)
    def _init():
        x_sc[...] = s_ref[0]                         # already float32 (packed on host)
        # Build the block-diagonal Phi once per tile from the compact (d, P*d) slab.
        # Avoids shipping a P-times-inflated Phi through HBM; lane offsets of source
        # and destination match, so no cross-lane shuffles are generated.
        phi_sc[...] = jnp.zeros_like(phi_sc)
        for g in range(G):
            for p in range(P):
                phi_sc[g, pl.ds(p * d, d), pl.ds(p * d, d)] = \
                    phi_ref[0, g, :, pl.ds(p * d, d)]

    h = jnp.float32(1.0 / n_steps)
    half_h = jnp.float32(0.5 / n_steps)
    c6 = jnp.float32(1.0 / (6.0 * n_steps))

    # Static loop over packed groups. Each group's 4*n_steps matmuls share the same
    # (PD, PD) weight and stay contiguous, so the MXU weight latch is reused; the G
    # independent chains give the scheduler work to hide the matmul->tanh latency.
    for g in range(G):
        phi = phi_sc[g]                              # (PD, PD)
        bias = b_ref[0, g]                           # (1, PD) row — broadcast on use
        scale = delta_ref[0, 0, g]                   # (1, PD) per-lane delta
        # Fold the RK4 stage constants into the delta scale: dyn() returns the raw
        # tanh and hs / hf / cs carry both the step size and delta.
        hs = half_h * scale
        hf = h * scale
        cs = c6 * scale

        def dyn(y, phi=phi, bias=bias):
            # Unscaled dynamics: f(t, x, Phi, b) = tanh(x @ Phi + b).
            return jnp.tanh(
                jnp.dot(y, phi, preferred_element_type=jnp.float32) + bias)

        def rk4_step(_, y, dyn=dyn, hs=hs, hf=hf, cs=cs):
            k1 = dyn(y)
            k2 = dyn(y + hs * k1)
            k3 = dyn(y + hs * k2)
            k4 = dyn(y + hf * k3)
            return y + cs * (k1 + 2.0 * k2 + 2.0 * k3 + k4)

        xg = lax.fori_loop(0, n_steps, rk4_step, x_sc[g], unroll=True)
        x_sc[g] = xg
        out_ref[0, 0, g] = xg.astype(out_ref.dtype)


def ode_transition_forward(s, t, Phi, b, *, n_steps=N_ODE_STEPS, groups_per_tile=8):
    """Pallas implementation of ODETransitionFunction.forward (non-adjoint path)."""
    S, B, N, d = s.shape
    block_size = t.shape[2] - 1
    out_dtype = s.dtype
    f32 = jnp.float32

    # ---- lane packing: P samples per 128-lane vreg row --------------------------------
    P = 128 // d if (d <= 128 and 128 % d == 0) else 1
    PD = P * d
    M = S * B
    groups = -(-M // P)                         # packed groups needed
    G = max(1, min(groups_per_tile, groups))    # interleaved chains per grid point
    # Megacore friendliness: prefer >= 2 entries on the "parallel" tiles axis, but never
    # drop below 4 interleaved chains per tile (the latency-hiding lever).
    if (groups + G - 1) // G < 2 and groups >= 8:
        G = (groups + 1) // 2
    tiles = (groups + G - 1) // G
    M_pad = tiles * G * P

    delta = jnp.diff(t, axis=2).astype(f32)     # (S, B, block_size)

    def flat_pad(x, tail):
        x = x.reshape((M,) + tail)
        if M_pad > M:                            # zero-pad: tanh(0)*0 dynamics => inert
            x = jnp.pad(x, ((0, M_pad - M),) + ((0, 0),) * len(tail))
        return x

    s_f = flat_pad(s.astype(f32), (N, d))                     # (M_pad, N, d)
    phi_f = flat_pad(Phi.astype(f32), (d, d))                 # (M_pad, d, d)
    b_f = flat_pad(b.astype(f32), (1, d))                     # (M_pad, 1, d)
    delta_f = flat_pad(delta, (block_size,))                  # (M_pad, block_size)

    # states: lanes [p*d:(p+1)*d] of each row hold sample p of the group
    s_p = (s_f.reshape(tiles, G, P, N, d)
               .transpose(0, 1, 3, 2, 4)
               .reshape(tiles, G, N, PD))
    # compact Phi: per group, the P (d, d) matrices concatenated along the lane axis;
    # the (PD, PD) block-diagonal is assembled in-kernel once per tile.
    phi_c = (phi_f.reshape(tiles, G, P, d, d)
                  .transpose(0, 1, 3, 2, 4)
                  .reshape(tiles, G, d, PD))
    # packed bias / per-lane delta scale (delta broadcast over each sample's d lanes)
    b_p = b_f.reshape(tiles, G, P, d).reshape(tiles, G, 1, PD)
    d_p = delta_f.reshape(tiles, G, P, block_size).transpose(0, 3, 1, 2)[..., None]
    d_p = jnp.broadcast_to(d_p, (tiles, block_size, G, P, d)).reshape(
        tiles, block_size, G, 1, PD)

    kernel = functools.partial(_ode_block_kernel, G=G, P=P, d=d, n_steps=n_steps)

    n_evals = tiles * G * block_size * n_steps * 4            # dynamics evaluations
    cost = pl.CostEstimate(
        flops=2 * n_evals * N * PD * PD + 8 * n_evals * N * PD,
        transcendentals=n_evals * N * PD,
        bytes_accessed=4 * (s_p.size + phi_c.size + b_p.size + d_p.size
                            + tiles * block_size * G * N * PD))

    out_p = pl.pallas_call(
        kernel,
        out_shape=jax.ShapeDtypeStruct((tiles, block_size, G, N, PD), out_dtype),
        grid=(tiles, block_size),
        in_specs=[
            pl.BlockSpec((1, G, N, PD), lambda ti, bi: (ti, 0, 0, 0)),       # s (resident)
            pl.BlockSpec((1, G, d, PD), lambda ti, bi: (ti, 0, 0, 0)),       # Phi (compact, resident)
            pl.BlockSpec((1, G, 1, PD), lambda ti, bi: (ti, 0, 0, 0)),       # b (resident)
            pl.BlockSpec((1, 1, G, 1, PD), lambda ti, bi: (ti, bi, 0, 0, 0)),  # delta per step
        ],
        out_specs=pl.BlockSpec((1, 1, G, N, PD),
                               lambda ti, bi: (ti, bi, 0, 0, 0)),
        scratch_shapes=[pltpu.VMEM((G, N, PD), jnp.float32),
                        pltpu.VMEM((G, PD, PD), jnp.float32)],
        compiler_params=pltpu.CompilerParams(
            dimension_semantics=("parallel", "arbitrary"),
            vmem_limit_bytes=32 * 1024 * 1024),
        cost_estimate=cost,
    )(s_p, phi_c, b_p, d_p)

    # Unpack: (tiles, blk, G, N, P, d) -> (tiles, G, P, blk, N, d) -> samples -> output
    out = (out_p.reshape(tiles, block_size, G, N, P, d)
                 .transpose(0, 2, 4, 1, 3, 5)
                 .reshape(M_pad, block_size, N, d)[:M]
                 .reshape(S, B, block_size, N, d)
                 .reshape(S, B * block_size, N, d))
    return out


def reference_forward(s, t, Phi, b, *, n_steps=N_ODE_STEPS):
    """Pure-JAX reference with identical math (same f, same fixed-step RK4)."""
    S, B, N, d = s.shape
    block_size = t.shape[2] - 1
    delta = jnp.diff(t, axis=2).astype(jnp.float32)           # (S, B, block_size)
    h = 1.0 / n_steps

    Phi32 = Phi.astype(jnp.float32)
    b32 = b.astype(jnp.float32)

    def f(x, scale):
        return jnp.tanh(jnp.einsum('sbnd,sbde->sbne', x, Phi32) + b32) * scale

    x = s.astype(jnp.float32)
    outs = []
    for i in range(block_size):
        scale = delta[:, :, i][:, :, None, None]

        def rk4_step(_, y):
            k1 = f(y, scale)
            k2 = f(y + 0.5 * h * k1, scale)
            k3 = f(y + 0.5 * h * k2, scale)
            k4 = f(y + h * k3, scale)
            return y + (h / 6.0) * (k1 + 2.0 * k2 + 2.0 * k3 + k4)

        x = lax.fori_loop(0, n_steps, rk4_step, x)
        outs.append(x)

    out = jnp.stack(outs, axis=2).astype(s.dtype)             # (S, B, block, N, d)
    return out.reshape(S, B * block_size, N, d)


if __name__ == "__main__":
    def make_inputs(S, B, N, d, block_size, key):
        k1, k2, k3, k4 = jax.random.split(key, 4)
        s = jax.random.normal(k1, (S, B, N, d), dtype=jnp.float32)
        # strictly increasing time grid per (S, B)
        t_grid = jnp.cumsum(
            jax.random.uniform(k2, (S, B, block_size + 1), dtype=jnp.float32,
                               minval=0.05, maxval=0.15), axis=2)
        Phi = 0.1 * jax.random.normal(k3, (S, B, d, d), dtype=jnp.float32)
        b = 0.1 * jax.random.normal(k4, (S, B, 1, d), dtype=jnp.float32)
        return s, t_grid, Phi, b

    # Case 1: M = S*B divisible by the lane-pack width (no padding).
    S, B, N, d, block_size = 2, 8, 16, 32, 4
    s, t_grid, Phi, b = make_inputs(S, B, N, d, block_size, jax.random.PRNGKey(0))
    out = jax.block_until_ready(ode_transition_forward(s, t_grid, Phi, b))
    assert out.shape == (S, B * block_size, N, d), out.shape
    ref = jax.block_until_ready(reference_forward(s, t_grid, Phi, b))
    np.testing.assert_allclose(np.asarray(out), np.asarray(ref), rtol=3e-3, atol=3e-3)

    # Case 2: ragged sample count (exercises the zero-padding path).
    S2, B2 = 2, 3
    s2, t2, Phi2, b2 = make_inputs(S2, B2, N, d, block_size, jax.random.PRNGKey(1))
    out2 = jax.block_until_ready(ode_transition_forward(s2, t2, Phi2, b2))
    assert out2.shape == (S2, B2 * block_size, N, d), out2.shape
    ref2 = jax.block_until_ready(reference_forward(s2, t2, Phi2, b2))
    np.testing.assert_allclose(np.asarray(out2), np.asarray(ref2), rtol=3e-3, atol=3e-3)

    print("KERNEL_OK")
</pallas_src>

<mosaic_0001>
module attributes {stable_mosaic.version = 11 : i64} {
  func.func @_ode_block_kernel(%arg0: i32, %arg1: i32, %arg2: memref<1x4x16x128xf32, #tpu.memory_space<vmem>>, %arg3: memref<1x4x32x128xf32, #tpu.memory_space<vmem>>, %arg4: memref<1x4x1x128xf32, #tpu.memory_space<vmem>>, %arg5: memref<1x1x4x1x128xf32, #tpu.memory_space<vmem>>, %arg6: memref<1x1x4x16x128xf32, #tpu.memory_space<vmem>>, %arg7: memref<4x16x128xf32, #tpu.memory_space<vmem>>, %arg8: memref<4x128x128xf32, #tpu.memory_space<vmem>>) attributes {dimension_semantics = [#tpu.dimension_semantics<parallel>, #tpu.dimension_semantics<arbitrary>], iteration_bounds = array<i64: 1, 4>, scalar_prefetch = 0 : i64, scratch_operands = 2 : i64, tpu.core_type = #tpu.core_type<tc>, window_params = [{transform_indices = @transform_0, window_bounds = array<i64: 1, 4, 16, 128>}, {transform_indices = @transform_1, window_bounds = array<i64: 1, 4, 32, 128>}, {transform_indices = @transform_2, window_bounds = array<i64: 1, 4, 1, 128>}, {transform_indices = @transform_3, window_bounds = array<i64: 1, 1, 4, 1, 128>}, {transform_indices = @transform_4, window_bounds = array<i64: 1, 1, 4, 16, 128>}]} {
    %c0_i32 = arith.constant 0 : i32
    %0 = arith.cmpi eq, %arg1, %c0_i32 : i32
    %1 = arith.extui %0 : i1 to i32
    %c0_i32_0 = arith.constant 0 : i32
    %2 = arith.cmpi ne, %1, %c0_i32_0 : i32
    scf.if %2 {
      %c0_317 = arith.constant 0 : index
      %c0_318 = arith.constant 0 : index
      %c0_319 = arith.constant 0 : index
      %c0_320 = arith.constant 0 : index
      %1203 = vector.load %arg2[%c0_317, %c0_318, %c0_319, %c0_320] : memref<1x4x16x128xf32, #tpu.memory_space<vmem>>, vector<1x4x16x128xf32>
      %1204 = vector.shape_cast %1203 : vector<1x4x16x128xf32> to vector<4x16x128xf32>
      %c0_321 = arith.constant 0 : index
      %c0_322 = arith.constant 0 : index
      %c0_323 = arith.constant 0 : index
      %1205 = vector.load %arg7[%c0_321, %c0_322, %c0_323] : memref<4x16x128xf32, #tpu.memory_space<vmem>>, vector<4x16x128xf32>
      tpu.vector_store %arg7[%c0_321, %c0_322, %c0_323], %1204 {strides = array<i32>} : memref<4x16x128xf32, #tpu.memory_space<vmem>>, vector<4x16x128xf32>,
      %cst_324 = arith.constant 0.000000e+00 : f32
      %1206 = vector.broadcast %cst_324 : f32 to vector<4x128x128xf32>
      %c0_325 = arith.constant 0 : index
      %c0_326 = arith.constant 0 : index
      %c0_327 = arith.constant 0 : index
      %1207 = vector.load %arg8[%c0_325, %c0_326, %c0_327] : memref<4x128x128xf32, #tpu.memory_space<vmem>>, vector<4x128x128xf32>
      tpu.vector_store %arg8[%c0_325, %c0_326, %c0_327], %1206 {strides = array<i32>} : memref<4x128x128xf32, #tpu.memory_space<vmem>>, vector<4x128x128xf32>,
      %c0_328 = arith.constant 0 : index
      %c0_329 = arith.constant 0 : index
      %c0_330 = arith.constant 0 : index
      %c0_331 = arith.constant 0 : index
      %1208 = vector.load %arg3[%c0_328, %c0_329, %c0_330, %c0_331] : memref<1x4x32x128xf32, #tpu.memory_space<vmem>>, vector<1x1x32x32xf32>
      %1209 = vector.shape_cast %1208 : vector<1x1x32x32xf32> to vector<32x32xf32>
      %c0_332 = arith.constant 0 : index
      %c0_333 = arith.constant 0 : index
      %c0_334 = arith.constant 0 : index
      %1210 = vector.load %arg8[%c0_332, %c0_333, %c0_334] : memref<4x128x128xf32, #tpu.memory_space<vmem>>, vector<1x32x32xf32>
      %1211 = vector.shape_cast %1210 : vector<1x32x32xf32> to vector<32x32xf32>
      %1212 = vector.shape_cast %1209 : vector<32x32xf32> to vector<1x32x32xf32>
      tpu.vector_store %arg8[%c0_332, %c0_333, %c0_334], %1212 {strides = array<i32>} : memref<4x128x128xf32, #tpu.memory_space<vmem>>, vector<1x32x32xf32>,
      %c0_335 = arith.constant 0 : index
      %c0_336 = arith.constant 0 : index
      %c0_337 = arith.constant 0 : index
      %c32 = arith.constant 32 : index
      %1213 = vector.load %arg3[%c0_335, %c0_336, %c0_337, %c32] : memref<1x4x32x128xf32, #tpu.memory_space<vmem>>, vector<1x1x32x32xf32>
      %1214 = vector.shape_cast %1213 : vector<1x1x32x32xf32> to vector<32x32xf32>
      %c0_338 = arith.constant 0 : index
      %c32_339 = arith.constant 32 : index
      %c32_340 = arith.constant 32 : index
      %1215 = vector.load %arg8[%c0_338, %c32_339, %c32_340] : memref<4x128x128xf32, #tpu.memory_space<vmem>>, vector<1x32x32xf32>
      %1216 = vector.shape_cast %1215 : vector<1x32x32xf32> to vector<32x32xf32>
      %1217 = vector.shape_cast %1214 : vector<32x32xf32> to vector<1x32x32xf32>
      tpu.vector_store %arg8[%c0_338, %c32_339, %c32_340], %1217 {strides = array<i32>} : memref<4x128x128xf32, #tpu.memory_space<vmem>>, vector<1x32x32xf32>,
      %c0_341 = arith.constant 0 : index
      %c0_342 = arith.constant 0 : index
      %c0_343 = arith.constant 0 : index
      %c64 = arith.constant 64 : index
      %1218 = vector.load %arg3[%c0_341, %c0_342, %c0_343, %c64] : memref<1x4x32x128xf32, #tpu.memory_space<vmem>>, vector<1x1x32x32xf32>
      %1219 = vector.shape_cast %1218 : vector<1x1x32x32xf32> to vector<32x32xf32>
      %c0_344 = arith.constant 0 : index
      %c64_345 = arith.constant 64 : index
      %c64_346 = arith.constant 64 : index
      %1220 = vector.load %arg8[%c0_344, %c64_345, %c64_346] : memref<4x128x128xf32, #tpu.memory_space<vmem>>, vector<1x32x32xf32>
      %1221 = vector.shape_cast %1220 : vector<1x32x32xf32> to vector<32x32xf32>
      %1222 = vector.shape_cast %1219 : vector<32x32xf32> to vector<1x32x32xf32>
      tpu.vector_store %arg8[%c0_344, %c64_345, %c64_346], %1222 {strides = array<i32>} : memref<4x128x128xf32, #tpu.memory_space<vmem>>, vector<1x32x32xf32>,
      %c0_347 = arith.constant 0 : index
      %c0_348 = arith.constant 0 : index
      %c0_349 = arith.constant 0 : index
      %c96 = arith.constant 96 : index
      %1223 = vector.load %arg3[%c0_347, %c0_348, %c0_349, %c96] : memref<1x4x32x128xf32, #tpu.memory_space<vmem>>, vector<1x1x32x32xf32>
      %1224 = vector.shape_cast %1223 : vector<1x1x32x32xf32> to vector<32x32xf32>
      %c0_350 = arith.constant 0 : index
      %c96_351 = arith.constant 96 : index
      %c96_352 = arith.constant 96 : index
      %1225 = vector.load %arg8[%c0_350, %c96_351, %c96_352] : memref<4x128x128xf32, #tpu.memory_space<vmem>>, vector<1x32x32xf32>
      %1226 = vector.shape_cast %1225 : vector<1x32x32xf32> to vector<32x32xf32>
      %1227 = vector.shape_cast %1224 : vector<32x32xf32> to vector<1x32x32xf32>
      tpu.vector_store %arg8[%c0_350, %c96_351, %c96_352], %1227 {strides = array<i32>} : memref<4x128x128xf32, #tpu.memory_space<vmem>>, vector<1x32x32xf32>,
      %c0_353 = arith.constant 0 : index
      %c1_354 = arith.constant 1 : index
      %c0_355 = arith.constant 0 : index
      %c0_356 = arith.constant 0 : index
      %1228 = vector.load %arg3[%c0_353, %c1_354, %c0_355, %c0_356] : memref<1x4x32x128xf32, #tpu.memory_space<vmem>>, vector<1x1x32x32xf32>
      %1229 = vector.shape_cast %1228 : vector<1x1x32x32xf32> to vector<32x32xf32>
      %c1_357 = arith.constant 1 : index
      %c0_358 = arith.constant 0 : index
      %c0_359 = arith.constant 0 : index
      %1230 = vector.load %arg8[%c1_357, %c0_358, %c0_359] : memref<4x128x128xf32, #tpu.memory_space<vmem>>, vector<1x32x32xf32>
      %1231 = vector.shape_cast %1230 : vector<1x32x32xf32> to vector<32x32xf32>
      %1232 = vector.shape_cast %1229 : vector<32x32xf32> to vector<1x32x32xf32>
      tpu.vector_store %arg8[%c1_357, %c0_358, %c0_359], %1232 {strides = array<i32>} : memref<4x128x128xf32, #tpu.memory_space<vmem>>, vector<1x32x32xf32>,
      %c0_360 = arith.constant 0 : index
      %c1_361 = arith.constant 1 : index
      %c0_362 = arith.constant 0 : index
      %c32_363 = arith.constant 32 : index
      %1233 = vector.load %arg3[%c0_360, %c1_361, %c0_362, %c32_363] : memref<1x4x32x128xf32, #tpu.memory_space<vmem>>, vector<1x1x32x32xf32>
      %1234 = vector.shape_cast %1233 : vector<1x1x32x32xf32> to vector<32x32xf32>
      %c1_364 = arith.constant 1 : index
      %c32_365 = arith.constant 32 : index
      %c32_366 = arith.constant 32 : index
      %1235 = vector.load %arg8[%c1_364, %c32_365, %c32_366] : memref<4x128x128xf32, #tpu.memory_space<vmem>>, vector<1x32x32xf32>
      %1236 = vector.shape_cast %1235 : vector<1x32x32xf32> to vector<32x32xf32>
      %1237 = vector.shape_cast %1234 : vector<32x32xf32> to vector<1x32x32xf32>
      tpu.vector_store %arg8[%c1_364, %c32_365, %c32_366], %1237 {strides = array<i32>} : memref<4x128x128xf32, #tpu.memory_space<vmem>>, vector<1x32x32xf32>,
      %c0_367 = arith.constant 0 : index
      %c1_368 = arith.constant 1 : index
      %c0_369 = arith.constant 0 : index
      %c64_370 = arith.constant 64 : index
      %1238 = vector.load %arg3[%c0_367, %c1_368, %c0_369, %c64_370] : memref<1x4x32x128xf32, #tpu.memory_space<vmem>>, vector<1x1x32x32xf32>
      %1239 = vector.shape_cast %1238 : vector<1x1x32x32xf32> to vector<32x32xf32>
      %c1_371 = arith.constant 1 : index
      %c64_372 = arith.constant 64 : index
      %c64_373 = arith.constant 64 : index
      %1240 = vector.load %arg8[%c1_371, %c64_372, %c64_373] : memref<4x128x128xf32, #tpu.memory_space<vmem>>, vector<1x32x32xf32>
      %1241 = vector.shape_cast %1240 : vector<1x32x32xf32> to vector<32x32xf32>
      %1242 = vector.shape_cast %1239 : vector<32x32xf32> to vector<1x32x32xf32>
      tpu.vector_store %arg8[%c1_371, %c64_372, %c64_373], %1242 {strides = array<i32>} : memref<4x128x128xf32, #tpu.memory_space<vmem>>, vector<1x32x32xf32>,
      %c0_374 = arith.constant 0 : index
      %c1_375 = arith.constant 1 : index
      %c0_376 = arith.constant 0 : index
      %c96_377 = arith.constant 96 : index
      %1243 = vector.load %arg3[%c0_374, %c1_375, %c0_376, %c96_377] : memref<1x4x32x128xf32, #tpu.memory_space<vmem>>, vector<1x1x32x32xf32>
      %1244 = vector.shape_cast %1243 : vector<1x1x32x32xf32> to vector<32x32xf32>
      %c1_378 = arith.constant 1 : index
      %c96_379 = arith.constant 96 : index
      %c96_380 = arith.constant 96 : index
      %1245 = vector.load %arg8[%c1_378, %c96_379, %c96_380] : memref<4x128x128xf32, #tpu.memory_space<vmem>>, vector<1x32x32xf32>
      %1246 = vector.shape_cast %1245 : vector<1x32x32xf32> to vector<32x32xf32>
      %1247 = vector.shape_cast %1244 : vector<32x32xf32> to vector<1x32x32xf32>
      tpu.vector_store %arg8[%c1_378, %c96_379, %c96_380], %1247 {strides = array<i32>} : memref<4x128x128xf32, #tpu.memory_space<vmem>>, vector<1x32x32xf32>,
      %c0_381 = arith.constant 0 : index
      %c2_382 = arith.constant 2 : index
      %c0_383 = arith.constant 0 : index
      %c0_384 = arith.constant 0 : index
      %1248 = vector.load %arg3[%c0_381, %c2_382, %c0_383, %c0_384] : memref<1x4x32x128xf32, #tpu.memory_space<vmem>>, vector<1x1x32x32xf32>
      %1249 = vector.shape_cast %1248 : vector<1x1x32x32xf32> to vector<32x32xf32>
      %c2_385 = arith.constant 2 : index
      %c0_386 = arith.constant 0 : index
      %c0_387 = arith.constant 0 : index
      %1250 = vector.load %arg8[%c2_385, %c0_386, %c0_387] : memref<4x128x128xf32, #tpu.memory_space<vmem>>, vector<1x32x32xf32>
      %1251 = vector.shape_cast %1250 : vector<1x32x32xf32> to vector<32x32xf32>
      %1252 = vector.shape_cast %1249 : vector<32x32xf32> to vector<1x32x32xf32>
      tpu.vector_store %arg8[%c2_385, %c0_386, %c0_387], %1252 {strides = array<i32>} : memref<4x128x128xf32, #tpu.memory_space<vmem>>, vector<1x32x32xf32>,
      %c0_388 = arith.constant 0 : index
      %c2_389 = arith.constant 2 : index
      %c0_390 = arith.constant 0 : index
      %c32_391 = arith.constant 32 : index
      %1253 = vector.load %arg3[%c0_388, %c2_389, %c0_390, %c32_391] : memref<1x4x32x128xf32, #tpu.memory_space<vmem>>, vector<1x1x32x32xf32>
      %1254 = vector.shape_cast %1253 : vector<1x1x32x32xf32> to vector<32x32xf32>
      %c2_392 = arith.constant 2 : index
      %c32_393 = arith.constant 32 : index
      %c32_394 = arith.constant 32 : index
      %1255 = vector.load %arg8[%c2_392, %c32_393, %c32_394] : memref<4x128x128xf32, #tpu.memory_space<vmem>>, vector<1x32x32xf32>
      %1256 = vector.shape_cast %1255 : vector<1x32x32xf32> to vector<32x32xf32>
      %1257 = vector.shape_cast %1254 : vector<32x32xf32> to vector<1x32x32xf32>
      tpu.vector_store %arg8[%c2_392, %c32_393, %c32_394], %1257 {strides = array<i32>} : memref<4x128x128xf32, #tpu.memory_space<vmem>>, vector<1x32x32xf32>,
      %c0_395 = arith.constant 0 : index
      %c2_396 = arith.constant 2 : index
      %c0_397 = arith.constant 0 : index
      %c64_398 = arith.constant 64 : index
      %1258 = vector.load %arg3[%c0_395, %c2_396, %c0_397, %c64_398] : memref<1x4x32x128xf32, #tpu.memory_space<vmem>>, vector<1x1x32x32xf32>
      %1259 = vector.shape_cast %1258 : vector<1x1x32x32xf32> to vector<32x32xf32>
      %c2_399 = arith.constant 2 : index
      %c64_400 = arith.constant 64 : index
      %c64_401 = arith.constant 64 : index
      %1260 = vector.load %arg8[%c2_399, %c64_400, %c64_401] : memref<4x128x128xf32, #tpu.memory_space<vmem>>, vector<1x32x32xf32>
      %1261 = vector.shape_cast %1260 : vector<1x32x32xf32> to vector<32x32xf32>
      %1262 = vector.shape_cast %1259 : vector<32x32xf32> to vector<1x32x32xf32>
      tpu.vector_store %arg8[%c2_399, %c64_400, %c64_401], %1262 {strides = array<i32>} : memref<4x128x128xf32, #tpu.memory_space<vmem>>, vector<1x32x32xf32>,
      %c0_402 = arith.constant 0 : index
      %c2_403 = arith.constant 2 : index
      %c0_404 = arith.constant 0 : index
      %c96_405 = arith.constant 96 : index
      %1263 = vector.load %arg3[%c0_402, %c2_403, %c0_404, %c96_405] : memref<1x4x32x128xf32, #tpu.memory_space<vmem>>, vector<1x1x32x32xf32>
      %1264 = vector.shape_cast %1263 : vector<1x1x32x32xf32> to vector<32x32xf32>
      %c2_406 = arith.constant 2 : index
      %c96_407 = arith.constant 96 : index
      %c96_408 = arith.constant 96 : index
      %1265 = vector.load %arg8[%c2_406, %c96_407, %c96_408] : memref<4x128x128xf32, #tpu.memory_space<vmem>>, vector<1x32x32xf32>
      %1266 = vector.shape_cast %1265 : vector<1x32x32xf32> to vector<32x32xf32>
      %1267 = vector.shape_cast %1264 : vector<32x32xf32> to vector<1x32x32xf32>
      tpu.vector_store %arg8[%c2_406, %c96_407, %c96_408], %1267 {strides = array<i32>} : memref<4x128x128xf32, #tpu.memory_space<vmem>>, vector<1x32x32xf32>,
      %c0_409 = arith.constant 0 : index
      %c3_410 = arith.constant 3 : index
      %c0_411 = arith.constant 0 : index
      %c0_412 = arith.constant 0 : index
      %1268 = vector.load %arg3[%c0_409, %c3_410, %c0_411, %c0_412] : memref<1x4x32x128xf32, #tpu.memory_space<vmem>>, vector<1x1x32x32xf32>
      %1269 = vector.shape_cast %1268 : vector<1x1x32x32xf32> to vector<32x32xf32>
      %c3_413 = arith.constant 3 : index
      %c0_414 = arith.constant 0 : index
      %c0_415 = arith.constant 0 : index
      %1270 = vector.load %arg8[%c3_413, %c0_414, %c0_415] : memref<4x128x128xf32, #tpu.memory_space<vmem>>, vector<1x32x32xf32>
      %1271 = vector.shape_cast %1270 : vector<1x32x32xf32> to vector<32x32xf32>
      %1272 = vector.shape_cast %1269 : vector<32x32xf32> to vector<1x32x32xf32>
      tpu.vector_store %arg8[%c3_413, %c0_414, %c0_415], %1272 {strides = array<i32>} : memref<4x128x128xf32, #tpu.memory_space<vmem>>, vector<1x32x32xf32>,
      %c0_416 = arith.constant 0 : index
      %c3_417 = arith.constant 3 : index
      %c0_418 = arith.constant 0 : index
      %c32_419 = arith.constant 32 : index
      %1273 = vector.load %arg3[%c0_416, %c3_417, %c0_418, %c32_419] : memref<1x4x32x128xf32, #tpu.memory_space<vmem>>, vector<1x1x32x32xf32>
      %1274 = vector.shape_cast %1273 : vector<1x1x32x32xf32> to vector<32x32xf32>
      %c3_420 = arith.constant 3 : index
      %c32_421 = arith.constant 32 : index
      %c32_422 = arith.constant 32 : index
      %1275 = vector.load %arg8[%c3_420, %c32_421, %c32_422] : memref<4x128x128xf32, #tpu.memory_space<vmem>>, vector<1x32x32xf32>
      %1276 = vector.shape_cast %1275 : vector<1x32x32xf32> to vector<32x32xf32>
      %1277 = vector.shape_cast %1274 : vector<32x32xf32> to vector<1x32x32xf32>
      tpu.vector_store %arg8[%c3_420, %c32_421, %c32_422], %1277 {strides = array<i32>} : memref<4x128x128xf32, #tpu.memory_space<vmem>>, vector<1x32x32xf32>,
      %c0_423 = arith.constant 0 : index
      %c3_424 = arith.constant 3 : index
      %c0_425 = arith.constant 0 : index
      %c64_426 = arith.constant 64 : index
      %1278 = vector.load %arg3[%c0_423, %c3_424, %c0_425, %c64_426] : memref<1x4x32x128xf32, #tpu.memory_space<vmem>>, vector<1x1x32x32xf32>
      %1279 = vector.shape_cast %1278 : vector<1x1x32x32xf32> to vector<32x32xf32>
      %c3_427 = arith.constant 3 : index
      %c64_428 = arith.constant 64 : index
      %c64_429 = arith.constant 64 : index
      %1280 = vector.load %arg8[%c3_427, %c64_428, %c64_429] : memref<4x128x128xf32, #tpu.memory_space<vmem>>, vector<1x32x32xf32>
      %1281 = vector.shape_cast %1280 : vector<1x32x32xf32> to vector<32x32xf32>
      %1282 = vector.shape_cast %1279 : vector<32x32xf32> to vector<1x32x32xf32>
      tpu.vector_store %arg8[%c3_427, %c64_428, %c64_429], %1282 {strides = array<i32>} : memref<4x128x128xf32, #tpu.memory_space<vmem>>, vector<1x32x32xf32>,
      %c0_430 = arith.constant 0 : index
      %c3_431 = arith.constant 3 : index
      %c0_432 = arith.constant 0 : index
      %c96_433 = arith.constant 96 : index
      %1283 = vector.load %arg3[%c0_430, %c3_431, %c0_432, %c96_433] : memref<1x4x32x128xf32, #tpu.memory_space<vmem>>, vector<1x1x32x32xf32>
      %1284 = vector.shape_cast %1283 : vector<1x1x32x32xf32> to vector<32x32xf32>
      %c3_434 = arith.constant 3 : index
      %c96_435 = arith.constant 96 : index
      %c96_436 = arith.constant 96 : index
      %1285 = vector.load %arg8[%c3_434, %c96_435, %c96_436] : memref<4x128x128xf32, #tpu.memory_space<vmem>>, vector<1x32x32xf32>
      %1286 = vector.shape_cast %1285 : vector<1x32x32xf32> to vector<32x32xf32>
      %1287 = vector.shape_cast %1284 : vector<32x32xf32> to vector<1x32x32xf32>
      tpu.vector_store %arg8[%c3_434, %c96_435, %c96_436], %1287 {strides = array<i32>} : memref<4x128x128xf32, #tpu.memory_space<vmem>>, vector<1x32x32xf32>,
    } else {
    }
    %c0 = arith.constant 0 : index
    %c0_1 = arith.constant 0 : index
    %c0_2 = arith.constant 0 : index
    %3 = vector.load %arg8[%c0, %c0_1, %c0_2] : memref<4x128x128xf32, #tpu.memory_space<vmem>>, vector<1x128x128xf32>
    %4 = vector.shape_cast %3 : vector<1x128x128xf32> to vector<128x128xf32>
    %c0_3 = arith.constant 0 : index
    %c0_4 = arith.constant 0 : index
    %c0_5 = arith.constant 0 : index
    %c0_6 = arith.constant 0 : index
    %5 = vector.load %arg4[%c0_3, %c0_4, %c0_5, %c0_6] : memref<1x4x1x128xf32, #tpu.memory_space<vmem>>, vector<1x1x1x128xf32>
    %6 = vector.shape_cast %5 : vector<1x1x1x128xf32> to vector<1x128xf32>
    %c0_7 = arith.constant 0 : index
    %c0_8 = arith.constant 0 : index
    %c0_9 = arith.constant 0 : index
    %c0_10 = arith.constant 0 : index
    %c0_11 = arith.constant 0 : index
    %7 = vector.load %arg5[%c0_7, %c0_8, %c0_9, %c0_10, %c0_11] : memref<1x1x4x1x128xf32, #tpu.memory_space<vmem>>, vector<1x1x1x1x128xf32>
    %8 = vector.shape_cast %7 : vector<1x1x1x1x128xf32> to vector<1x128xf32>
    %cst = arith.constant 6.250000e-02 : f32
    %9 = vector.broadcast %cst : f32 to vector<1x128xf32>
    %10 = arith.mulf %9, %8 : vector<1x128xf32>
    %cst_12 = arith.constant 1.250000e-01 : f32
    %11 = vector.broadcast %cst_12 : f32 to vector<1x128xf32>
    %12 = arith.mulf %11, %8 : vector<1x128xf32>
    %cst_13 = arith.constant 0.020833334 : f32
    %13 = vector.broadcast %cst_13 : f32 to vector<1x128xf32>
    %14 = arith.mulf %13, %8 : vector<1x128xf32>
    %c0_14 = arith.constant 0 : index
    %c0_15 = arith.constant 0 : index
    %c0_16 = arith.constant 0 : index
    %15 = vector.load %arg7[%c0_14, %c0_15, %c0_16] : memref<4x16x128xf32, #tpu.memory_space<vmem>>, vector<1x16x128xf32>
    %16 = vector.shape_cast %15 : vector<1x16x128xf32> to vector<16x128xf32>
    %c0_i32_17 = arith.constant 0 : i32
    %cst_18 = arith.constant dense<0.000000e+00> : vector<16x128xf32>
    %17 = tpu.matmul %16, %4, %cst_18 {dimension_numbers = #tpu.dot_dimension_numbers<[1], [0], [0], [1], [0, 0, 1, 1], [], []>} : vector<16x128xf32>, vector<128x128xf32>, vector<16x128xf32> -> vector<16x128xf32>
    %18 = vector.broadcast %6 : vector<1x128xf32> to vector<16x128xf32>
    %19 = arith.addf %17, %18 : vector<16x128xf32>
    %20 = math.tanh %19 : vector<16x128xf32>
    %21 = vector.broadcast %10 : vector<1x128xf32> to vector<16x128xf32>
    %22 = arith.mulf %21, %20 : vector<16x128xf32>
    %23 = arith.addf %16, %22 : vector<16x128xf32>
    %cst_19 = arith.constant dense<0.000000e+00> : vector<16x128xf32>
    %24 = tpu.matmul %23, %4, %cst_19 {dimension_numbers = #tpu.dot_dimension_numbers<[1], [0], [0], [1], [0, 0, 1, 1], [], []>} : vector<16x128xf32>, vector<128x128xf32>, vector<16x128xf32> -> vector<16x128xf32>
    %25 = vector.broadcast %6 : vector<1x128xf32> to vector<16x128xf32>
    %26 = arith.addf %24, %25 : vector<16x128xf32>
    %27 = math.tanh %26 : vector<16x128xf32>
    %28 = vector.broadcast %10 : vector<1x128xf32> to vector<16x128xf32>
    %29 = arith.mulf %28, %27 : vector<16x128xf32>
    %30 = arith.addf %16, %29 : vector<16x128xf32>
    %cst_20 = arith.constant dense<0.000000e+00> : vector<16x128xf32>
    %31 = tpu.matmul %30, %4, %cst_20 {dimension_numbers = #tpu.dot_dimension_numbers<[1], [0], [0], [1], [0, 0, 1, 1], [], []>} : vector<16x128xf32>, vector<128x128xf32>, vector<16x128xf32> -> vector<16x128xf32>
    %32 = vector.broadcast %6 : vector<1x128xf32> to vector<16x128xf32>
    %33 = arith.addf %31, %32 : vector<16x128xf32>
    %34 = math.tanh %33 : vector<16x128xf32>
    %35 = vector.broadcast %12 : vector<1x128xf32> to vector<16x128xf32>
    %36 = arith.mulf %35, %34 : vector<16x128xf32>
    %37 = arith.addf %16, %36 : vector<16x128xf32>
    %cst_21 = arith.constant dense<0.000000e+00> : vector<16x128xf32>
    %38 = tpu.matmul %37, %4, %cst_21 {dimension_numbers = #tpu.dot_dimension_numbers<[1], [0], [0], [1], [0, 0, 1, 1], [], []>} : vector<16x128xf32>, vector<128x128xf32>, vector<16x128xf32> -> vector<16x128xf32>
    %39 = vector.broadcast %6 : vector<1x128xf32> to vector<16x128xf32>
    %40 = arith.addf %38, %39 : vector<16x128xf32>
    %41 = math.tanh %40 : vector<16x128xf32>
    %cst_22 = arith.constant 2.000000e+00 : f32
    %42 = vector.broadcast %cst_22 : f32 to vector<16x128xf32>
    %43 = arith.mulf %42, %27 : vector<16x128xf32>
    %44 = arith.addf %20, %43 : vector<16x128xf32>
    %cst_23 = arith.constant 2.000000e+00 : f32
    %45 = vector.broadcast %cst_23 : f32 to vector<16x128xf32>
    %46 = arith.mulf %45, %34 : vector<16x128xf32>
    %47 = arith.addf %44, %46 : vector<16x128xf32>
    %48 = arith.addf %47, %41 : vector<16x128xf32>
    %49 = vector.broadcast %14 : vector<1x128xf32> to vector<16x128xf32>
    %50 = arith.mulf %49, %48 : vector<16x128xf32>
    %51 = arith.addf %16, %50 : vector<16x128xf32>
    %c1_i32 = arith.constant 1 : i32
    %cst_24 = arith.constant dense<0.000000e+00> : vector<16x128xf32>
    %52 = tpu.matmul %51, %4, %cst_24 {dimension_numbers = #tpu.dot_dimension_numbers<[1], [0], [0], [1], [0, 0, 1, 1], [], []>} : vector<16x128xf32>, vector<128x128xf32>, vector<16x128xf32> -> vector<16x128xf32>
    %53 = vector.broadcast %6 : vector<1x128xf32> to vector<16x128xf32>
    %54 = arith.addf %52, %53 : vector<16x128xf32>
    %55 = math.tanh %54 : vector<16x128xf32>
    %56 = vector.broadcast %10 : vector<1x128xf32> to vector<16x128xf32>
    %57 = arith.mulf %56, %55 : vector<16x128xf32>
    %58 = arith.addf %51, %57 : vector<16x128xf32>
    %cst_25 = arith.constant dense<0.000000e+00> : vector<16x128xf32>
    %59 = tpu.matmul %58, %4, %cst_25 {dimension_numbers = #tpu.dot_dimension_numbers<[1], [0], [0], [1], [0, 0, 1, 1], [], []>} : vector<16x128xf32>, vector<128x128xf32>, vector<16x128xf32> -> vector<16x128xf32>
    %60 = vector.broadcast %6 : vector<1x128xf32> to vector<16x128xf32>
    %61 = arith.addf %59, %60 : vector<16x128xf32>
    %62 = math.tanh %61 : vector<16x128xf32>
    %63 = vector.broadcast %10 : vector<1x128xf32> to vector<16x128xf32>
    %64 = arith.mulf %63, %62 : vector<16x128xf32>
    %65 = arith.addf %51, %64 : vector<16x128xf32>
    %cst_26 = arith.constant dense<0.000000e+00> : vector<16x128xf32>
    %66 = tpu.matmul %65, %4, %cst_26 {dimension_numbers = #tpu.dot_dimension_numbers<[1], [0], [0], [1], [0, 0, 1, 1], [], []>} : vector<16x128xf32>, vector<128x128xf32>, vector<16x128xf32> -> vector<16x128xf32>
    %67 = vector.broadcast %6 : vector<1x128xf32> to vector<16x128xf32>
    %68 = arith.addf %66, %67 : vector<16x128xf32>
    %69 = math.tanh %68 : vector<16x128xf32>
    %70 = vector.broadcast %12 : vector<1x128xf32> to vector<16x128xf32>
    %71 = arith.mulf %70, %69 : vector<16x128xf32>
    %72 = arith.addf %51, %71 : vector<16x128xf32>
    %cst_27 = arith.constant dense<0.000000e+00> : vector<16x128xf32>
    %73 = tpu.matmul %72, %4, %cst_27 {dimension_numbers = #tpu.dot_dimension_numbers<[1], [0], [0], [1], [0, 0, 1, 1], [], []>} : vector<16x128xf32>, vector<128x128xf32>, vector<16x128xf32> -> vector<16x128xf32>
    %74 = vector.broadcast %6 : vector<1x128xf32> to vector<16x128xf32>
    %75 = arith.addf %73, %74 : vector<16x128xf32>
    %76 = math.tanh %75 : vector<16x128xf32>
    %cst_28 = arith.constant 2.000000e+00 : f32
    %77 = vector.broadcast %cst_28 : f32 to vector<16x128xf32>
    %78 = arith.mulf %77, %62 : vector<16x128xf32>
    %79 = arith.addf %55, %78 : vector<16x128xf32>
    %cst_29 = arith.constant 2.000000e+00 : f32
    %80 = vector.broadcast %cst_29 : f32 to vector<16x128xf32>
    %81 = arith.mulf %80, %69 : vector<16x128xf32>
    %82 = arith.addf %79, %81 : vector<16x128xf32>
    %83 = arith.addf %82, %76 : vector<16x128xf32>
    %84 = vector.broadcast %14 : vector<1x128xf32> to vector<16x128xf32>
    %85 = arith.mulf %84, %83 : vector<16x128xf32>
    %86 = arith.addf %51, %85 : vector<16x128xf32>
    %c2_i32 = arith.constant 2 : i32
    %cst_30 = arith.constant dense<0.000000e+00> : vector<16x128xf32>
    %87 = tpu.matmul %86, %4, %cst_30 {dimension_numbers = #tpu.dot_dimension_numbers<[1], [0], [0], [1], [0, 0, 1, 1], [], []>} : vector<16x128xf32>, vector<128x128xf32>, vector<16x128xf32> -> vector<16x128xf32>
    %88 = vector.broadcast %6 : vector<1x128xf32> to vector<16x128xf32>
    %89 = arith.addf %87, %88 : vector<16x128xf32>
    %90 = math.tanh %89 : vector<16x128xf32>
    %91 = vector.broadcast %10 : vector<1x128xf32> to vector<16x128xf32>
    %92 = arith.mulf %91, %90 : vector<16x128xf32>
    %93 = arith.addf %86, %92 : vector<16x128xf32>
    %cst_31 = arith.constant dense<0.000000e+00> : vector<16x128xf32>
    %94 = tpu.matmul %93, %4, %cst_31 {dimension_numbers = #tpu.dot_dimension_numbers<[1], [0], [0], [1], [0, 0, 1, 1], [], []>} : vector<16x128xf32>, vector<128x128xf32>, vector<16x128xf32> -> vector<16x128xf32>
    %95 = vector.broadcast %6 : vector<1x128xf32> to vector<16x128xf32>
    %96 = arith.addf %94, %95 : vector<16x128xf32>
    %97 = math.tanh %96 : vector<16x128xf32>
    %98 = vector.broadcast %10 : vector<1x128xf32> to vector<16x128xf32>
    %99 = arith.mulf %98, %97 : vector<16x128xf32>
    %100 = arith.addf %86, %99 : vector<16x128xf32>
    %cst_32 = arith.constant dense<0.000000e+00> : vector<16x128xf32>
    %101 = tpu.matmul %100, %4, %cst_32 {dimension_numbers = #tpu.dot_dimension_numbers<[1], [0], [0], [1], [0, 0, 1, 1], [], []>} : vector<16x128xf32>, vector<128x128xf32>, vector<16x128xf32> -> vector<16x128xf32>
    %102 = vector.broadcast %6 : vector<1x128xf32> to vector<16x128xf32>
    %103 = arith.addf %101, %102 : vector<16x128xf32>
    %104 = math.tanh %103 : vector<16x128xf32>
    %105 = vector.broadcast %12 : vector<1x128xf32> to vector<16x128xf32>
    %106 = arith.mulf %105, %104 : vector<16x128xf32>
    %107 = arith.addf %86, %106 : vector<16x128xf32>
    %cst_33 = arith.constant dense<0.000000e+00> : vector<16x128xf32>
    %108 = tpu.matmul %107, %4, %cst_33 {dimension_numbers = #tpu.dot_dimension_numbers<[1], [0], [0], [1], [0, 0, 1, 1], [], []>} : vector<16x128xf32>, vector<128x128xf32>, vector<16x128xf32> -> vector<16x128xf32>
    %109 = vector.broadcast %6 : vector<1x128xf32> to vector<16x128xf32>
    %110 = arith.addf %108, %109 : vector<16x128xf32>
    %111 = math.tanh %110 : vector<16x128xf32>
    %cst_34 = arith.constant 2.000000e+00 : f32
    %112 = vector.broadcast %cst_34 : f32 to vector<16x128xf32>
    %113 = arith.mulf %112, %97 : vector<16x128xf32>
    %114 = arith.addf %90, %113 : vector<16x128xf32>
    %cst_35 = arith.constant 2.000000e+00 : f32
    %115 = vector.broadcast %cst_35 : f32 to vector<16x128xf32>
    %116 = arith.mulf %115, %104 : vector<16x128xf32>
    %117 = arith.addf %114, %116 : vector<16x128xf32>
    %118 = arith.addf %117, %111 : vector<16x128xf32>
    %119 = vector.broadcast %14 : vector<1x128xf32> to vector<16x128xf32>
    %120 = arith.mulf %119, %118 : vector<16x128xf32>
    %121 = arith.addf %86, %120 : vector<16x128xf32>
    %c3_i32 = arith.constant 3 : i32
    %cst_36 = arith.constant dense<0.000000e+00> : vector<16x128xf32>
    %122 = tpu.matmul %121, %4, %cst_36 {dimension_numbers = #tpu.dot_dimension_numbers<[1], [0], [0], [1], [0, 0, 1, 1], [], []>} : vector<16x128xf32>, vector<128x128xf32>, vector<16x128xf32> -> vector<16x128xf32>
    %123 = vector.broadcast %6 : vector<1x128xf32> to vector<16x128xf32>
    %124 = arith.addf %122, %123 : vector<16x128xf32>
    %125 = math.tanh %124 : vector<16x128xf32>
    %126 = vector.broadcast %10 : vector<1x128xf32> to vector<16x128xf32>
    %127 = arith.mulf %126, %125 : vector<16x128xf32>
    %128 = arith.addf %121, %127 : vector<16x128xf32>
    %cst_37 = arith.constant dense<0.000000e+00> : vector<16x128xf32>
    %129 = tpu.matmul %128, %4, %cst_37 {dimension_numbers = #tpu.dot_dimension_numbers<[1], [0], [0], [1], [0, 0, 1, 1], [], []>} : vector<16x128xf32>, vector<128x128xf32>, vector<16x128xf32> -> vector<16x128xf32>
    %130 = vector.broadcast %6 : vector<1x128xf32> to vector<16x128xf32>
    %131 = arith.addf %129, %130 : vector<16x128xf32>
    %132 = math.tanh %131 : vector<16x128xf32>
    %133 = vector.broadcast %10 : vector<1x128xf32> to vector<16x128xf32>
    %134 = arith.mulf %133, %132 : vector<16x128xf32>
    %135 = arith.addf %121, %134 : vector<16x128xf32>
    %cst_38 = arith.constant dense<0.000000e+00> : vector<16x128xf32>
    %136 = tpu.matmul %135, %4, %cst_38 {dimension_numbers = #tpu.dot_dimension_numbers<[1], [0], [0], [1], [0, 0, 1, 1], [], []>} : vector<16x128xf32>, vector<128x128xf32>, vector<16x128xf32> -> vector<16x128xf32>
    %137 = vector.broadcast %6 : vector<1x128xf32> to vector<16x128xf32>
    %138 = arith.addf %136, %137 : vector<16x128xf32>
    %139 = math.tanh %138 : vector<16x128xf32>
    %140 = vector.broadcast %12 : vector<1x128xf32> to vector<16x128xf32>
    %141 = arith.mulf %140, %139 : vector<16x128xf32>
    %142 = arith.addf %121, %141 : vector<16x128xf32>
    %cst_39 = arith.constant dense<0.000000e+00> : vector<16x128xf32>
    %143 = tpu.matmul %142, %4, %cst_39 {dimension_numbers = #tpu.dot_dimension_numbers<[1], [0], [0], [1], [0, 0, 1, 1], [], []>} : vector<16x128xf32>, vector<128x128xf32>, vector<16x128xf32> -> vector<16x128xf32>
    %144 = vector.broadcast %6 : vector<1x128xf32> to vector<16x128xf32>
    %145 = arith.addf %143, %144 : vector<16x128xf32>
    %146 = math.tanh %145 : vector<16x128xf32>
    %cst_40 = arith.constant 2.000000e+00 : f32
    %147 = vector.broadcast %cst_40 : f32 to vector<16x128xf32>
    %148 = arith.mulf %147, %132 : vector<16x128xf32>
    %149 = arith.addf %125, %148 : vector<16x128xf32>
    %cst_41 = arith.constant 2.000000e+00 : f32
    %150 = vector.broadcast %cst_41 : f32 to vector<16x128xf32>
    %151 = arith.mulf %150, %139 : vector<16x128xf32>
    %152 = arith.addf %149, %151 : vector<16x128xf32>
    %153 = arith.addf %152, %146 : vector<16x128xf32>
    %154 = vector.broadcast %14 : vector<1x128xf32> to vector<16x128xf32>
    %155 = arith.mulf %154, %153 : vector<16x128xf32>
    %156 = arith.addf %121, %155 : vector<16x128xf32>
    %c4_i32 = arith.constant 4 : i32
    %cst_42 = arith.constant dense<0.000000e+00> : vector<16x128xf32>
    %157 = tpu.matmul %156, %4, %cst_42 {dimension_numbers = #tpu.dot_dimension_numbers<[1], [0], [0], [1], [0, 0, 1, 1], [], []>} : vector<16x128xf32>, vector<128x128xf32>, vector<16x128xf32> -> vector<16x128xf32>
    %158 = vector.broadcast %6 : vector<1x128xf32> to vector<16x128xf32>
    %159 = arith.addf %157, %158 : vector<16x128xf32>
    %160 = math.tanh %159 : vector<16x128xf32>
    %161 = vector.broadcast %10 : vector<1x128xf32> to vector<16x128xf32>
    %162 = arith.mulf %161, %160 : vector<16x128xf32>
    %163 = arith.addf %156, %162 : vector<16x128xf32>
    %cst_43 = arith.constant dense<0.000000e+00> : vector<16x128xf32>
    %164 = tpu.matmul %163, %4, %cst_43 {dimension_numbers = #tpu.dot_dimension_numbers<[1], [0], [0], [1], [0, 0, 1, 1], [], []>} : vector<16x128xf32>, vector<128x128xf32>, vector<16x128xf32> -> vector<16x128xf32>
    %165 = vector.broadcast %6 : vector<1x128xf32> to vector<16x128xf32>
    %166 = arith.addf %164, %165 : vector<16x128xf32>
    %167 = math.tanh %166 : vector<16x128xf32>
    %168 = vector.broadcast %10 : vector<1x128xf32> to vector<16x128xf32>
    %169 = arith.mulf %168, %167 : vector<16x128xf32>
    %170 = arith.addf %156, %169 : vector<16x128xf32>
    %cst_44 = arith.constant dense<0.000000e+00> : vector<16x128xf32>
    %171 = tpu.matmul %170, %4, %cst_44 {dimension_numbers = #tpu.dot_dimension_numbers<[1], [0], [0], [1], [0, 0, 1, 1], [], []>} : vector<16x128xf32>, vector<128x128xf32>, vector<16x128xf32> -> vector<16x128xf32>
    %172 = vector.broadcast %6 : vector<1x128xf32> to vector<16x128xf32>
    %173 = arith.addf %171, %172 : vector<16x128xf32>
    %174 = math.tanh %173 : vector<16x128xf32>
    %175 = vector.broadcast %12 : vector<1x128xf32> to vector<16x128xf32>
    %176 = arith.mulf %175, %174 : vector<16x128xf32>
    %177 = arith.addf %156, %176 : vector<16x128xf32>
    %cst_45 = arith.constant dense<0.000000e+00> : vector<16x128xf32>
    %178 = tpu.matmul %177, %4, %cst_45 {dimension_numbers = #tpu.dot_dimension_numbers<[1], [0], [0], [1], [0, 0, 1, 1], [], []>} : vector<16x128xf32>, vector<128x128xf32>, vector<16x128xf32> -> vector<16x128xf32>
    %179 = vector.broadcast %6 : vector<1x128xf32> to vector<16x128xf32>
    %180 = arith.addf %178, %179 : vector<16x128xf32>
    %181 = math.tanh %180 : vector<16x128xf32>
    %cst_46 = arith.constant 2.000000e+00 : f32
    %182 = vector.broadcast %cst_46 : f32 to vector<16x128xf32>
    %183 = arith.mulf %182, %167 : vector<16x128xf32>
    %184 = arith.addf %160, %183 : vector<16x128xf32>
    %cst_47 = arith.constant 2.000000e+00 : f32
    %185 = vector.broadcast %cst_47 : f32 to vector<16x128xf32>
    %186 = arith.mulf %185, %174 : vector<16x128xf32>
    %187 = arith.addf %184, %186 : vector<16x128xf32>
    %188 = arith.addf %187, %181 : vector<16x128xf32>
    %189 = vector.broadcast %14 : vector<1x128xf32> to vector<16x128xf32>
    %190 = arith.mulf %189, %188 : vector<16x128xf32>
    %191 = arith.addf %156, %190 : vector<16x128xf32>
    %c5_i32 = arith.constant 5 : i32
    %cst_48 = arith.constant dense<0.000000e+00> : vector<16x128xf32>
    %192 = tpu.matmul %191, %4, %cst_48 {dimension_numbers = #tpu.dot_dimension_numbers<[1], [0], [0], [1], [0, 0, 1, 1], [], []>} : vector<16x128xf32>, vector<128x128xf32>, vector<16x128xf32> -> vector<16x128xf32>
    %193 = vector.broadcast %6 : vector<1x128xf32> to vector<16x128xf32>
    %194 = arith.addf %192, %193 : vector<16x128xf32>
    %195 = math.tanh %194 : vector<16x128xf32>
    %196 = vector.broadcast %10 : vector<1x128xf32> to vector<16x128xf32>
    %197 = arith.mulf %196, %195 : vector<16x128xf32>
    %198 = arith.addf %191, %197 : vector<16x128xf32>
    %cst_49 = arith.constant dense<0.000000e+00> : vector<16x128xf32>
    %199 = tpu.matmul %198, %4, %cst_49 {dimension_numbers = #tpu.dot_dimension_numbers<[1], [0], [0], [1], [0, 0, 1, 1], [], []>} : vector<16x128xf32>, vector<128x128xf32>, vector<16x128xf32> -> vector<16x128xf32>
    %200 = vector.broadcast %6 : vector<1x128xf32> to vector<16x128xf32>
    %201 = arith.addf %199, %200 : vector<16x128xf32>
    %202 = math.tanh %201 : vector<16x128xf32>
    %203 = vector.broadcast %10 : vector<1x128xf32> to vector<16x128xf32>
    %204 = arith.mulf %203, %202 : vector<16x128xf32>
    %205 = arith.addf %191, %204 : vector<16x128xf32>
    %cst_50 = arith.constant dense<0.000000e+00> : vector<16x128xf32>
    %206 = tpu.matmul %205, %4, %cst_50 {dimension_numbers = #tpu.dot_dimension_numbers<[1], [0], [0], [1], [0, 0, 1, 1], [], []>} : vector<16x128xf32>, vector<128x128xf32>, vector<16x128xf32> -> vector<16x128xf32>
    %207 = vector.broadcast %6 : vector<1x128xf32> to vector<16x128xf32>
    %208 = arith.addf %206, %207 : vector<16x128xf32>
    %209 = math.tanh %208 : vector<16x128xf32>
    %210 = vector.broadcast %12 : vector<1x128xf32> to vector<16x128xf32>
    %211 = arith.mulf %210, %209 : vector<16x128xf32>
    %212 = arith.addf %191, %211 : vector<16x128xf32>
    %cst_51 = arith.constant dense<0.000000e+00> : vector<16x128xf32>
    %213 = tpu.matmul %212, %4, %cst_51 {dimension_numbers = #tpu.dot_dimension_numbers<[1], [0], [0], [1], [0, 0, 1, 1], [], []>} : vector<16x128xf32>, vector<128x128xf32>, vector<16x128xf32> -> vector<16x128xf32>
    %214 = vector.broadcast %6 : vector<1x128xf32> to vector<16x128xf32>
    %215 = arith.addf %213, %214 : vector<16x128xf32>
    %216 = math.tanh %215 : vector<16x128xf32>
    %cst_52 = arith.constant 2.000000e+00 : f32
    %217 = vector.broadcast %cst_52 : f32 to vector<16x128xf32>
    %218 = arith.mulf %217, %202 : vector<16x128xf32>
    %219 = arith.addf %195, %218 : vector<16x128xf32>
    %cst_53 = arith.constant 2.000000e+00 : f32
    %220 = vector.broadcast %cst_53 : f32 to vector<16x128xf32>
    %221 = arith.mulf %220, %209 : vector<16x128xf32>
    %222 = arith.addf %219, %221 : vector<16x128xf32>
    %223 = arith.addf %222, %216 : vector<16x128xf32>
    %224 = vector.broadcast %14 : vector<1x128xf32> to vector<16x128xf32>
    %225 = arith.mulf %224, %223 : vector<16x128xf32>
    %226 = arith.addf %191, %225 : vector<16x128xf32>
    %c6_i32 = arith.constant 6 : i32
    %cst_54 = arith.constant dense<0.000000e+00> : vector<16x128xf32>
    %227 = tpu.matmul %226, %4, %cst_54 {dimension_numbers = #tpu.dot_dimension_numbers<[1], [0], [0], [1], [0, 0, 1, 1], [], []>} : vector<16x128xf32>, vector<128x128xf32>, vector<16x128xf32> -> vector<16x128xf32>
    %228 = vector.broadcast %6 : vector<1x128xf32> to vector<16x128xf32>
    %229 = arith.addf %227, %228 : vector<16x128xf32>
    %230 = math.tanh %229 : vector<16x128xf32>
    %231 = vector.broadcast %10 : vector<1x128xf32> to vector<16x128xf32>
    %232 = arith.mulf %231, %230 : vector<16x128xf32>
    %233 = arith.addf %226, %232 : vector<16x128xf32>
    %cst_55 = arith.constant dense<0.000000e+00> : vector<16x128xf32>
    %234 = tpu.matmul %233, %4, %cst_55 {dimension_numbers = #tpu.dot_dimension_numbers<[1], [0], [0], [1], [0, 0, 1, 1], [], []>} : vector<16x128xf32>, vector<128x128xf32>, vector<16x128xf32> -> vector<16x128xf32>
    %235 = vector.broadcast %6 : vector<1x128xf32> to vector<16x128xf32>
    %236 = arith.addf %234, %235 : vector<16x128xf32>
    %237 = math.tanh %236 : vector<16x128xf32>
    %238 = vector.broadcast %10 : vector<1x128xf32> to vector<16x128xf32>
    %239 = arith.mulf %238, %237 : vector<16x128xf32>
    %240 = arith.addf %226, %239 : vector<16x128xf32>
    %cst_56 = arith.constant dense<0.000000e+00> : vector<16x128xf32>
    %241 = tpu.matmul %240, %4, %cst_56 {dimension_numbers = #tpu.dot_dimension_numbers<[1], [0], [0], [1], [0, 0, 1, 1], [], []>} : vector<16x128xf32>, vector<128x128xf32>, vector<16x128xf32> -> vector<16x128xf32>
    %242 = vector.broadcast %6 : vector<1x128xf32> to vector<16x128xf32>
    %243 = arith.addf %241, %242 : vector<16x128xf32>
    %244 = math.tanh %243 : vector<16x128xf32>
    %245 = vector.broadcast %12 : vector<1x128xf32> to vector<16x128xf32>
    %246 = arith.mulf %245, %244 : vector<16x128xf32>
    %247 = arith.addf %226, %246 : vector<16x128xf32>
    %cst_57 = arith.constant dense<0.000000e+00> : vector<16x128xf32>
    %248 = tpu.matmul %247, %4, %cst_57 {dimension_numbers = #tpu.dot_dimension_numbers<[1], [0], [0], [1], [0, 0, 1, 1], [], []>} : vector<16x128xf32>, vector<128x128xf32>, vector<16x128xf32> -> vector<16x128xf32>
    %249 = vector.broadcast %6 : vector<1x128xf32> to vector<16x128xf32>
    %250 = arith.addf %248, %249 : vector<16x128xf32>
    %251 = math.tanh %250 : vector<16x128xf32>
    %cst_58 = arith.constant 2.000000e+00 : f32
    %252 = vector.broadcast %cst_58 : f32 to vector<16x128xf32>
    %253 = arith.mulf %252, %237 : vector<16x128xf32>
    %254 = arith.addf %230, %253 : vector<16x128xf32>
    %cst_59 = arith.constant 2.000000e+00 : f32
    %255 = vector.broadcast %cst_59 : f32 to vector<16x128xf32>
    %256 = arith.mulf %255, %244 : vector<16x128xf32>
    %257 = arith.addf %254, %256 : vector<16x128xf32>
    %258 = arith.addf %257, %251 : vector<16x128xf32>
    %259 = vector.broadcast %14 : vector<1x128xf32> to vector<16x128xf32>
    %260 = arith.mulf %259, %258 : vector<16x128xf32>
    %261 = arith.addf %226, %260 : vector<16x128xf32>
    %c7_i32 = arith.constant 7 : i32
    %cst_60 = arith.constant dense<0.000000e+00> : vector<16x128xf32>
    %262 = tpu.matmul %261, %4, %cst_60 {dimension_numbers = #tpu.dot_dimension_numbers<[1], [0], [0], [1], [0, 0, 1, 1], [], []>} : vector<16x128xf32>, vector<128x128xf32>, vector<16x128xf32> -> vector<16x128xf32>
    %263 = vector.broadcast %6 : vector<1x128xf32> to vector<16x128xf32>
    %264 = arith.addf %262, %263 : vector<16x128xf32>
    %265 = math.tanh %264 : vector<16x128xf32>
    %266 = vector.broadcast %10 : vector<1x128xf32> to vector<16x128xf32>
    %267 = arith.mulf %266, %265 : vector<16x128xf32>
    %268 = arith.addf %261, %267 : vector<16x128xf32>
    %cst_61 = arith.constant dense<0.000000e+00> : vector<16x128xf32>
    %269 = tpu.matmul %268, %4, %cst_61 {dimension_numbers = #tpu.dot_dimension_numbers<[1], [0], [0], [1], [0, 0, 1, 1], [], []>} : vector<16x128xf32>, vector<128x128xf32>, vector<16x128xf32> -> vector<16x128xf32>
    %270 = vector.broadcast %6 : vector<1x128xf32> to vector<16x128xf32>
    %271 = arith.addf %269, %270 : vector<16x128xf32>
    %272 = math.tanh %271 : vector<16x128xf32>
    %273 = vector.broadcast %10 : vector<1x128xf32> to vector<16x128xf32>
    %274 = arith.mulf %273, %272 : vector<16x128xf32>
    %275 = arith.addf %261, %274 : vector<16x128xf32>
    %cst_62 = arith.constant dense<0.000000e+00> : vector<16x128xf32>
    %276 = tpu.matmul %275, %4, %cst_62 {dimension_numbers = #tpu.dot_dimension_numbers<[1], [0], [0], [1], [0, 0, 1, 1], [], []>} : vector<16x128xf32>, vector<128x128xf32>, vector<16x128xf32> -> vector<16x128xf32>
    %277 = vector.broadcast %6 : vector<1x128xf32> to vector<16x128xf32>
    %278 = arith.addf %276, %277 : vector<16x128xf32>
    %279 = math.tanh %278 : vector<16x128xf32>
    %280 = vector.broadcast %12 : vector<1x128xf32> to vector<16x128xf32>
    %281 = arith.mulf %280, %279 : vector<16x128xf32>
    %282 = arith.addf %261, %281 : vector<16x128xf32>
    %cst_63 = arith.constant dense<0.000000e+00> : vector<16x128xf32>
    %283 = tpu.matmul %282, %4, %cst_63 {dimension_numbers = #tpu.dot_dimension_numbers<[1], [0], [0], [1], [0, 0, 1, 1], [], []>} : vector<16x128xf32>, vector<128x128xf32>, vector<16x128xf32> -> vector<16x128xf32>
    %284 = vector.broadcast %6 : vector<1x128xf32> to vector<16x128xf32>
    %285 = arith.addf %283, %284 : vector<16x128xf32>
    %286 = math.tanh %285 : vector<16x128xf32>
    %cst_64 = arith.constant 2.000000e+00 : f32
    %287 = vector.broadcast %cst_64 : f32 to vector<16x128xf32>
    %288 = arith.mulf %287, %272 : vector<16x128xf32>
    %289 = arith.addf %265, %288 : vector<16x128xf32>
    %cst_65 = arith.constant 2.000000e+00 : f32
    %290 = vector.broadcast %cst_65 : f32 to vector<16x128xf32>
    %291 = arith.mulf %290, %279 : vector<16x128xf32>
    %292 = arith.addf %289, %291 : vector<16x128xf32>
    %293 = arith.addf %292, %286 : vector<16x128xf32>
    %294 = vector.broadcast %14 : vector<1x128xf32> to vector<16x128xf32>
    %295 = arith.mulf %294, %293 : vector<16x128xf32>
    %296 = arith.addf %261, %295 : vector<16x128xf32>
    %c0_66 = arith.constant 0 : index
    %c0_67 = arith.constant 0 : index
    %c0_68 = arith.constant 0 : index
    %297 = vector.load %arg7[%c0_66, %c0_67, %c0_68] : memref<4x16x128xf32, #tpu.memory_space<vmem>>, vector<1x16x128xf32>
    %298 = vector.shape_cast %297 : vector<1x16x128xf32> to vector<16x128xf32>
    %299 = vector.shape_cast %296 : vector<16x128xf32> to vector<1x16x128xf32>
    tpu.vector_store %arg7[%c0_66, %c0_67, %c0_68], %299 {strides = array<i32>} : memref<4x16x128xf32, #tpu.memory_space<vmem>>, vector<1x16x128xf32>,
    %c0_69 = arith.constant 0 : index
    %c0_70 = arith.constant 0 : index
    %c0_71 = arith.constant 0 : index
    %c0_72 = arith.constant 0 : index
    %c0_73 = arith.constant 0 : index
    %300 = vector.load %arg6[%c0_69, %c0_70, %c0_71, %c0_72, %c0_73] : memref<1x1x4x16x128xf32, #tpu.memory_space<vmem>>, vector<1x1x1x16x128xf32>
    %301 = vector.shape_cast %300 : vector<1x1x1x16x128xf32> to vector<16x128xf32>
    %302 = vector.shape_cast %296 : vector<16x128xf32> to vector<1x1x1x16x128xf32>
    tpu.vector_store %arg6[%c0_69, %c0_70, %c0_71, %c0_72, %c0_73], %302 {strides = array<i32>} : memref<1x1x4x16x128xf32, #tpu.memory_space<vmem>>, vector<1x1x1x16x128xf32>,
    %c1 = arith.constant 1 : index
    %c0_74 = arith.constant 0 : index
    %c0_75 = arith.constant 0 : index
    %303 = vector.load %arg8[%c1, %c0_74, %c0_75] : memref<4x128x128xf32, #tpu.memory_space<vmem>>, vector<1x128x128xf32>
    %304 = vector.shape_cast %303 : vector<1x128x128xf32> to vector<128x128xf32>
    %c0_76 = arith.constant 0 : index
    %c1_77 = arith.constant 1 : index
    %c0_78 = arith.constant 0 : index
    %c0_79 = arith.constant 0 : index
    %305 = vector.load %arg4[%c0_76, %c1_77, %c0_78, %c0_79] : memref<1x4x1x128xf32, #tpu.memory_space<vmem>>, vector<1x1x1x128xf32>
    %306 = vector.shape_cast %305 : vector<1x1x1x128xf32> to vector<1x128xf32>
    %c0_80 = arith.constant 0 : index
    %c0_81 = arith.constant 0 : index
    %c1_82 = arith.constant 1 : index
    %c0_83 = arith.constant 0 : index
    %c0_84 = arith.constant 0 : index
    %307 = vector.load %arg5[%c0_80, %c0_81, %c1_82, %c0_83, %c0_84] : memref<1x1x4x1x128xf32, #tpu.memory_space<vmem>>, vector<1x1x1x1x128xf32>
    %308 = vector.shape_cast %307 : vector<1x1x1x1x128xf32> to vector<1x128xf32>
    %cst_85 = arith.constant 6.250000e-02 : f32
    %309 = vector.broadcast %cst_85 : f32 to vector<1x128xf32>
    %310 = arith.mulf %309, %308 : vector<1x128xf32>
    %cst_86 = arith.constant 1.250000e-01 : f32
    %311 = vector.broadcast %cst_86 : f32 to vector<1x128xf32>
    %312 = arith.mulf %311, %308 : vector<1x128xf32>
    %cst_87 = arith.constant 0.020833334 : f32
    %313 = vector.broadcast %cst_87 : f32 to vector<1x128xf32>
    %314 = arith.mulf %313, %308 : vector<1x128xf32>
    %c1_88 = arith.constant 1 : index
    %c0_89 = arith.constant 0 : index
    %c0_90 = arith.constant 0 : index
    %315 = vector.load %arg7[%c1_88, %c0_89, %c0_90] : memref<4x16x128xf32, #tpu.memory_space<vmem>>, vector<1x16x128xf32>
    %316 = vector.shape_cast %315 : vector<1x16x128xf32> to vector<16x128xf32>
    %c0_i32_91 = arith.constant 0 : i32
    %cst_92 = arith.constant dense<0.000000e+00> : vector<16x128xf32>
    %317 = tpu.matmul %316, %304, %cst_92 {dimension_numbers = #tpu.dot_dimension_numbers<[1], [0], [0], [1], [0, 0, 1, 1], [], []>} : vector<16x128xf32>, vector<128x128xf32>, vector<16x128xf32> -> vector<16x128xf32>
    %318 = vector.broadcast %306 : vector<1x128xf32> to vector<16x128xf32>
    %319 = arith.addf %317, %318 : vector<16x128xf32>
    %320 = math.tanh %319 : vector<16x128xf32>
    %321 = vector.broadcast %310 : vector<1x128xf32> to vector<16x128xf32>
    %322 = arith.mulf %321, %320 : vector<16x128xf32>
    %323 = arith.addf %316, %322 : vector<16x128xf32>
    %cst_93 = arith.constant dense<0.000000e+00> : vector<16x128xf32>
    %324 = tpu.matmul %323, %304, %cst_93 {dimension_numbers = #tpu.dot_dimension_numbers<[1], [0], [0], [1], [0, 0, 1, 1], [], []>} : vector<16x128xf32>, vector<128x128xf32>, vector<16x128xf32> -> vector<16x128xf32>
    %325 = vector.broadcast %306 : vector<1x128xf32> to vector<16x128xf32>
    %326 = arith.addf %324, %325 : vector<16x128xf32>
    %327 = math.tanh %326 : vector<16x128xf32>
    %328 = vector.broadcast %310 : vector<1x128xf32> to vector<16x128xf32>
    %329 = arith.mulf %328, %327 : vector<16x128xf32>
    %330 = arith.addf %316, %329 : vector<16x128xf32>
    %cst_94 = arith.constant dense<0.000000e+00> : vector<16x128xf32>
    %331 = tpu.matmul %330, %304, %cst_94 {dimension_numbers = #tpu.dot_dimension_numbers<[1], [0], [0], [1], [0, 0, 1, 1], [], []>} : vector<16x128xf32>, vector<128x128xf32>, vector<16x128xf32> -> vector<16x128xf32>
    %332 = vector.broadcast %306 : vector<1x128xf32> to vector<16x128xf32>
    %333 = arith.addf %331, %332 : vector<16x128xf32>
    %334 = math.tanh %333 : vector<16x128xf32>
    %335 = vector.broadcast %312 : vector<1x128xf32> to vector<16x128xf32>
    %336 = arith.mulf %335, %334 : vector<16x128xf32>
    %337 = arith.addf %316, %336 : vector<16x128xf32>
    %cst_95 = arith.constant dense<0.000000e+00> : vector<16x128xf32>
    %338 = tpu.matmul %337, %304, %cst_95 {dimension_numbers = #tpu.dot_dimension_numbers<[1], [0], [0], [1], [0, 0, 1, 1], [], []>} : vector<16x128xf32>, vector<128x128xf32>, vector<16x128xf32> -> vector<16x128xf32>
    %339 = vector.broadcast %306 : vector<1x128xf32> to vector<16x128xf32>
    %340 = arith.addf %338, %339 : vector<16x128xf32>
    %341 = math.tanh %340 : vector<16x128xf32>
    %cst_96 = arith.constant 2.000000e+00 : f32
    %342 = vector.broadcast %cst_96 : f32 to vector<16x128xf32>
    %343 = arith.mulf %342, %327 : vector<16x128xf32>
    %344 = arith.addf %320, %343 : vector<16x128xf32>
    %cst_97 = arith.constant 2.000000e+00 : f32
    %345 = vector.broadcast %cst_97 : f32 to vector<16x128xf32>
    %346 = arith.mulf %345, %334 : vector<16x128xf32>
    %347 = arith.addf %344, %346 : vector<16x128xf32>
    %348 = arith.addf %347, %341 : vector<16x128xf32>
    %349 = vector.broadcast %314 : vector<1x128xf32> to vector<16x128xf32>
    %350 = arith.mulf %349, %348 : vector<16x128xf32>
    %351 = arith.addf %316, %350 : vector<16x128xf32>
    %c1_i32_98 = arith.constant 1 : i32
    %cst_99 = arith.constant dense<0.000000e+00> : vector<16x128xf32>
    %352 = tpu.matmul %351, %304, %cst_99 {dimension_numbers = #tpu.dot_dimension_numbers<[1], [0], [0], [1], [0, 0, 1, 1], [], []>} : vector<16x128xf32>, vector<128x128xf32>, vector<16x128xf32> -> vector<16x128xf32>
    %353 = vector.broadcast %306 : vector<1x128xf32> to vector<16x128xf32>
    %354 = arith.addf %352, %353 : vector<16x128xf32>
    %355 = math.tanh %354 : vector<16x128xf32>
    %356 = vector.broadcast %310 : vector<1x128xf32> to vector<16x128xf32>
    %357 = arith.mulf %356, %355 : vector<16x128xf32>
    %358 = arith.addf %351, %357 : vector<16x128xf32>
    %cst_100 = arith.constant dense<0.000000e+00> : vector<16x128xf32>
    %359 = tpu.matmul %358, %304, %cst_100 {dimension_numbers = #tpu.dot_dimension_numbers<[1], [0], [0], [1], [0, 0, 1, 1], [], []>} : vector<16x128xf32>, vector<128x128xf32>, vector<16x128xf32> -> vector<16x128xf32>
    %360 = vector.broadcast %306 : vector<1x128xf32> to vector<16x128xf32>
    %361 = arith.addf %359, %360 : vector<16x128xf32>
    %362 = math.tanh %361 : vector<16x128xf32>
    %363 = vector.broadcast %310 : vector<1x128xf32> to vector<16x128xf32>
    %364 = arith.mulf %363, %362 : vector<16x128xf32>
    %365 = arith.addf %351, %364 : vector<16x128xf32>
    %cst_101 = arith.constant dense<0.000000e+00> : vector<16x128xf32>
    %366 = tpu.matmul %365, %304, %cst_101 {dimension_numbers = #tpu.dot_dimension_numbers<[1], [0], [0], [1], [0, 0, 1, 1], [], []>} : vector<16x128xf32>, vector<128x128xf32>, vector<16x128xf32> -> vector<16x128xf32>
    %367 = vector.broadcast %306 : vector<1x128xf32> to vector<16x128xf32>
    %368 = arith.addf %366, %367 : vector<16x128xf32>
    %369 = math.tanh %368 : vector<16x128xf32>
    %370 = vector.broadcast %312 : vector<1x128xf32> to vector<16x128xf32>
    %371 = arith.mulf %370, %369 : vector<16x128xf32>
    %372 = arith.addf %351, %371 : vector<16x128xf32>
    %cst_102 = arith.constant dense<0.000000e+00> : vector<16x128xf32>
    %373 = tpu.matmul %372, %304, %cst_102 {dimension_numbers = #tpu.dot_dimension_numbers<[1], [0], [0], [1], [0, 0, 1, 1], [], []>} : vector<16x128xf32>, vector<128x128xf32>, vector<16x128xf32> -> vector<16x128xf32>
    %374 = vector.broadcast %306 : vector<1x128xf32> to vector<16x128xf32>
    %375 = arith.addf %373, %374 : vector<16x128xf32>
    %376 = math.tanh %375 : vector<16x128xf32>
    %cst_103 = arith.constant 2.000000e+00 : f32
    %377 = vector.broadcast %cst_103 : f32 to vector<16x128xf32>
    %378 = arith.mulf %377, %362 : vector<16x128xf32>
    %379 = arith.addf %355, %378 : vector<16x128xf32>
    %cst_104 = arith.constant 2.000000e+00 : f32
    %380 = vector.broadcast %cst_104 : f32 to vector<16x128xf32>
    %381 = arith.mulf %380, %369 : vector<16x128xf32>
    %382 = arith.addf %379, %381 : vector<16x128xf32>
    %383 = arith.addf %382, %376 : vector<16x128xf32>
    %384 = vector.broadcast %314 : vector<1x128xf32> to vector<16x128xf32>
    %385 = arith.mulf %384, %383 : vector<16x128xf32>
    %386 = arith.addf %351, %385 : vector<16x128xf32>
    %c2_i32_105 = arith.constant 2 : i32
    %cst_106 = arith.constant dense<0.000000e+00> : vector<16x128xf32>
    %387 = tpu.matmul %386, %304, %cst_106 {dimension_numbers = #tpu.dot_dimension_numbers<[1], [0], [0], [1], [0, 0, 1, 1], [], []>} : vector<16x128xf32>, vector<128x128xf32>, vector<16x128xf32> -> vector<16x128xf32>
    %388 = vector.broadcast %306 : vector<1x128xf32> to vector<16x128xf32>
    %389 = arith.addf %387, %388 : vector<16x128xf32>
    %390 = math.tanh %389 : vector<16x128xf32>
    %391 = vector.broadcast %310 : vector<1x128xf32> to vector<16x128xf32>
    %392 = arith.mulf %391, %390 : vector<16x128xf32>
    %393 = arith.addf %386, %392 : vector<16x128xf32>
    %cst_107 = arith.constant dense<0.000000e+00> : vector<16x128xf32>
    %394 = tpu.matmul %393, %304, %cst_107 {dimension_numbers = #tpu.dot_dimension_numbers<[1], [0], [0], [1], [0, 0, 1, 1], [], []>} : vector<16x128xf32>, vector<128x128xf32>, vector<16x128xf32> -> vector<16x128xf32>
    %395 = vector.broadcast %306 : vector<1x128xf32> to vector<16x128xf32>
    %396 = arith.addf %394, %395 : vector<16x128xf32>
    %397 = math.tanh %396 : vector<16x128xf32>
    %398 = vector.broadcast %310 : vector<1x128xf32> to vector<16x128xf32>
    %399 = arith.mulf %398, %397 : vector<16x128xf32>
    %400 = arith.addf %386, %399 : vector<16x128xf32>
    %cst_108 = arith.constant dense<0.000000e+00> : vector<16x128xf32>
    %401 = tpu.matmul %400, %304, %cst_108 {dimension_numbers = #tpu.dot_dimension_numbers<[1], [0], [0], [1], [0, 0, 1, 1], [], []>} : vector<16x128xf32>, vector<128x128xf32>, vector<16x128xf32> -> vector<16x128xf32>
    %402 = vector.broadcast %306 : vector<1x128xf32> to vector<16x128xf32>
    %403 = arith.addf %401, %402 : vector<16x128xf32>
    %404 = math.tanh %403 : vector<16x128xf32>
    %405 = vector.broadcast %312 : vector<1x128xf32> to vector<16x128xf32>
    %406 = arith.mulf %405, %404 : vector<16x128xf32>
    %407 = arith.addf %386, %406 : vector<16x128xf32>
    %cst_109 = arith.constant dense<0.000000e+00> : vector<16x128xf32>
    %408 = tpu.matmul %407, %304, %cst_109 {dimension_numbers = #tpu.dot_dimension_numbers<[1], [0], [0], [1], [0, 0, 1, 1], [], []>} : vector<16x128xf32>, vector<128x128xf32>, vector<16x128xf32> -> vector<16x128xf32>
    %409 = vector.broadcast %306 : vector<1x128xf32> to vector<16x128xf32>
    %410 = arith.addf %408, %409 : vector<16x128xf32>
    %411 = math.tanh %410 : vector<16x128xf32>
    %cst_110 = arith.constant 2.000000e+00 : f32
    %412 = vector.broadcast %cst_110 : f32 to vector<16x128xf32>
    %413 = arith.mulf %412, %397 : vector<16x128xf32>
    %414 = arith.addf %390, %413 : vector<16x128xf32>
    %cst_111 = arith.constant 2.000000e+00 : f32
    %415 = vector.broadcast %cst_111 : f32 to vector<16x128xf32>
    %416 = arith.mulf %415, %404 : vector<16x128xf32>
    %417 = arith.addf %414, %416 : vector<16x128xf32>
    %418 = arith.addf %417, %411 : vector<16x128xf32>
    %419 = vector.broadcast %314 : vector<1x128xf32> to vector<16x128xf32>
    %420 = arith.mulf %419, %418 : vector<16x128xf32>
    %421 = arith.addf %386, %420 : vector<16x128xf32>
    %c3_i32_112 = arith.constant 3 : i32
    %cst_113 = arith.constant dense<0.000000e+00> : vector<16x128xf32>
    %422 = tpu.matmul %421, %304, %cst_113 {dimension_numbers = #tpu.dot_dimension_numbers<[1], [0], [0], [1], [0, 0, 1, 1], [], []>} : vector<16x128xf32>, vector<128x128xf32>, vector<16x128xf32> -> vector<16x128xf32>
    %423 = vector.broadcast %306 : vector<1x128xf32> to vector<16x128xf32>
    %424 = arith.addf %422, %423 : vector<16x128xf32>
    %425 = math.tanh %424 : vector<16x128xf32>
    %426 = vector.broadcast %310 : vector<1x128xf32> to vector<16x128xf32>
    %427 = arith.mulf %426, %425 : vector<16x128xf32>
    %428 = arith.addf %421, %427 : vector<16x128xf32>
    %cst_114 = arith.constant dense<0.000000e+00> : vector<16x128xf32>
    %429 = tpu.matmul %428, %304, %cst_114 {dimension_numbers = #tpu.dot_dimension_numbers<[1], [0], [0], [1], [0, 0, 1, 1], [], []>} : vector<16x128xf32>, vector<128x128xf32>, vector<16x128xf32> -> vector<16x128xf32>
    %430 = vector.broadcast %306 : vector<1x128xf32> to vector<16x128xf32>
    %431 = arith.addf %429, %430 : vector<16x128xf32>
    %432 = math.tanh %431 : vector<16x128xf32>
    %433 = vector.broadcast %310 : vector<1x128xf32> to vector<16x128xf32>
    %434 = arith.mulf %433, %432 : vector<16x128xf32>
    %435 = arith.addf %421, %434 : vector<16x128xf32>
    %cst_115 = arith.constant dense<0.000000e+00> : vector<16x128xf32>
    %436 = tpu.matmul %435, %304, %cst_115 {dimension_numbers = #tpu.dot_dimension_numbers<[1], [0], [0], [1], [0, 0, 1, 1], [], []>} : vector<16x128xf32>, vector<128x128xf32>, vector<16x128xf32> -> vector<16x128xf32>
    %437 = vector.broadcast %306 : vector<1x128xf32> to vector<16x128xf32>
    %438 = arith.addf %436, %437 : vector<16x128xf32>
    %439 = math.tanh %438 : vector<16x128xf32>
    %440 = vector.broadcast %312 : vector<1x128xf32> to vector<16x128xf32>
    %441 = arith.mulf %440, %439 : vector<16x128xf32>
    %442 = arith.addf %421, %441 : vector<16x128xf32>
    %cst_116 = arith.constant dense<0.000000e+00> : vector<16x128xf32>
    %443 = tpu.matmul %442, %304, %cst_116 {dimension_numbers = #tpu.dot_dimension_numbers<[1], [0], [0], [1], [0, 0, 1, 1], [], []>} : vector<16x128xf32>, vector<128x128xf32>, vector<16x128xf32> -> vector<16x128xf32>
    %444 = vector.broadcast %306 : vector<1x128xf32> to vector<16x128xf32>
    %445 = arith.addf %443, %444 : vector<16x128xf32>
    %446 = math.tanh %445 : vector<16x128xf32>
    %cst_117 = arith.constant 2.000000e+00 : f32
    %447 = vector.broadcast %cst_117 : f32 to vector<16x128xf32>
    %448 = arith.mulf %447, %432 : vector<16x128xf32>
    %449 = arith.addf %425, %448 : vector<16x128xf32>
    %cst_118 = arith.constant 2.000000e+00 : f32
    %450 = vector.broadcast %cst_118 : f32 to vector<16x128xf32>
    %451 = arith.mulf %450, %439 : vector<16x128xf32>
    %452 = arith.addf %449, %451 : vector<16x128xf32>
    %453 = arith.addf %452, %446 : vector<16x128xf32>
    %454 = vector.broadcast %314 : vector<1x128xf32> to vector<16x128xf32>
    %455 = arith.mulf %454, %453 : vector<16x128xf32>
    %456 = arith.addf %421, %455 : vector<16x128xf32>
    %c4_i32_119 = arith.constant 4 : i32
    %cst_120 = arith.constant dense<0.000000e+00> : vector<16x128xf32>
    %457 = tpu.matmul %456, %304, %cst_120 {dimension_numbers = #tpu.dot_dimension_numbers<[1], [0], [0], [1], [0, 0, 1, 1], [], []>} : vector<16x128xf32>, vector<128x128xf32>, vector<16x128xf32> -> vector<16x128xf32>
    %458 = vector.broadcast %306 : vector<1x128xf32> to vector<16x128xf32>
    %459 = arith.addf %457, %458 : vector<16x128xf32>
    %460 = math.tanh %459 : vector<16x128xf32>
    %461 = vector.broadcast %310 : vector<1x128xf32> to vector<16x128xf32>
    %462 = arith.mulf %461, %460 : vector<16x128xf32>
    %463 = arith.addf %456, %462 : vector<16x128xf32>
    %cst_121 = arith.constant dense<0.000000e+00> : vector<16x128xf32>
    %464 = tpu.matmul %463, %304, %cst_121 {dimension_numbers = #tpu.dot_dimension_numbers<[1], [0], [0], [1], [0, 0, 1, 1], [], []>} : vector<16x128xf32>, vector<128x128xf32>, vector<16x128xf32> -> vector<16x128xf32>
    %465 = vector.broadcast %306 : vector<1x128xf32> to vector<16x128xf32>
    %466 = arith.addf %464, %465 : vector<16x128xf32>
    %467 = math.tanh %466 : vector<16x128xf32>
    %468 = vector.broadcast %310 : vector<1x128xf32> to vector<16x128xf32>
    %469 = arith.mulf %468, %467 : vector<16x128xf32>
    %470 = arith.addf %456, %469 : vector<16x128xf32>
    %cst_122 = arith.constant dense<0.000000e+00> : vector<16x128xf32>
    %471 = tpu.matmul %470, %304, %cst_122 {dimension_numbers = #tpu.dot_dimension_numbers<[1], [0], [0], [1], [0, 0, 1, 1], [], []>} : vector<16x128xf32>, vector<128x128xf32>, vector<16x128xf32> -> vector<16x128xf32>
    %472 = vector.broadcast %306 : vector<1x128xf32> to vector<16x128xf32>
    %473 = arith.addf %471, %472 : vector<16x128xf32>
    %474 = math.tanh %473 : vector<16x128xf32>
    %475 = vector.broadcast %312 : vector<1x128xf32> to vector<16x128xf32>
    %476 = arith.mulf %475, %474 : vector<16x128xf32>
    %477 = arith.addf %456, %476 : vector<16x128xf32>
    %cst_123 = arith.constant dense<0.000000e+00> : vector<16x128xf32>
    %478 = tpu.matmul %477, %304, %cst_123 {dimension_numbers = #tpu.dot_dimension_numbers<[1], [0], [0], [1], [0, 0, 1, 1], [], []>} : vector<16x128xf32>, vector<128x128xf32>, vector<16x128xf32> -> vector<16x128xf32>
    %479 = vector.broadcast %306 : vector<1x128xf32> to vector<16x128xf32>
    %480 = arith.addf %478, %479 : vector<16x128xf32>
    %481 = math.tanh %480 : vector<16x128xf32>
    %cst_124 = arith.constant 2.000000e+00 : f32
    %482 = vector.broadcast %cst_124 : f32 to vector<16x128xf32>
    %483 = arith.mulf %482, %467 : vector<16x128xf32>
    %484 = arith.addf %460, %483 : vector<16x128xf32>
    %cst_125 = arith.constant 2.000000e+00 : f32
    %485 = vector.broadcast %cst_125 : f32 to vector<16x128xf32>
    %486 = arith.mulf %485, %474 : vector<16x128xf32>
    %487 = arith.addf %484, %486 : vector<16x128xf32>
    %488 = arith.addf %487, %481 : vector<16x128xf32>
    %489 = vector.broadcast %314 : vector<1x128xf32> to vector<16x128xf32>
    %490 = arith.mulf %489, %488 : vector<16x128xf32>
    %491 = arith.addf %456, %490 : vector<16x128xf32>
    %c5_i32_126 = arith.constant 5 : i32
    %cst_127 = arith.constant dense<0.000000e+00> : vector<16x128xf32>
    %492 = tpu.matmul %491, %304, %cst_127 {dimension_numbers = #tpu.dot_dimension_numbers<[1], [0], [0], [1], [0, 0, 1, 1], [], []>} : vector<16x128xf32>, vector<128x128xf32>, vector<16x128xf32> -> vector<16x128xf32>
    %493 = vector.broadcast %306 : vector<1x128xf32> to vector<16x128xf32>
    %494 = arith.addf %492, %493 : vector<16x128xf32>
    %495 = math.tanh %494 : vector<16x128xf32>
    %496 = vector.broadcast %310 : vector<1x128xf32> to vector<16x128xf32>
    %497 = arith.mulf %496, %495 : vector<16x128xf32>
    %498 = arith.addf %491, %497 : vector<16x128xf32>
    %cst_128 = arith.constant dense<0.000000e+00> : vector<16x128xf32>
    %499 = tpu.matmul %498, %304, %cst_128 {dimension_numbers = #tpu.dot_dimension_numbers<[1], [0], [0], [1], [0, 0, 1, 1], [], []>} : vector<16x128xf32>, vector<128x128xf32>, vector<16x128xf32> -> vector<16x128xf32>
    %500 = vector.broadcast %306 : vector<1x128xf32> to vector<16x128xf32>
    %501 = arith.addf %499, %500 : vector<16x128xf32>
    %502 = math.tanh %501 : vector<16x128xf32>
    %503 = vector.broadcast %310 : vector<1x128xf32> to vector<16x128xf32>
    %504 = arith.mulf %503, %502 : vector<16x128xf32>
    %505 = arith.addf %491, %504 : vector<16x128xf32>
    %cst_129 = arith.constant dense<0.000000e+00> : vector<16x128xf32>
    %506 = tpu.matmul %505, %304, %cst_129 {dimension_numbers = #tpu.dot_dimension_numbers<[1], [0], [0], [1], [0, 0, 1, 1], [], []>} : vector<16x128xf32>, vector<128x128xf32>, vector<16x128xf32> -> vector<16x128xf32>
    %507 = vector.broadcast %306 : vector<1x128xf32> to vector<16x128xf32>
    %508 = arith.addf %506, %507 : vector<16x128xf32>
    %509 = math.tanh %508 : vector<16x128xf32>
    %510 = vector.broadcast %312 : vector<1x128xf32> to vector<16x128xf32>
    %511 = arith.mulf %510, %509 : vector<16x128xf32>
    %512 = arith.addf %491, %511 : vector<16x128xf32>
    %cst_130 = arith.constant dense<0.000000e+00> : vector<16x128xf32>
    %513 = tpu.matmul %512, %304, %cst_130 {dimension_numbers = #tpu.dot_dimension_numbers<[1], [0], [0], [1], [0, 0, 1, 1], [], []>} : vector<16x128xf32>, vector<128x128xf32>, vector<16x128xf32> -> vector<16x128xf32>
    %514 = vector.broadcast %306 : vector<1x128xf32> to vector<16x128xf32>
    %515 = arith.addf %513, %514 : vector<16x128xf32>
    %516 = math.tanh %515 : vector<16x128xf32>
    %cst_131 = arith.constant 2.000000e+00 : f32
    %517 = vector.broadcast %cst_131 : f32 to vector<16x128xf32>
    %518 = arith.mulf %517, %502 : vector<16x128xf32>
    %519 = arith.addf %495, %518 : vector<16x128xf32>
    %cst_132 = arith.constant 2.000000e+00 : f32
    %520 = vector.broadcast %cst_132 : f32 to vector<16x128xf32>
    %521 = arith.mulf %520, %509 : vector<16x128xf32>
    %522 = arith.addf %519, %521 : vector<16x128xf32>
    %523 = arith.addf %522, %516 : vector<16x128xf32>
    %524 = vector.broadcast %314 : vector<1x128xf32> to vector<16x128xf32>
    %525 = arith.mulf %524, %523 : vector<16x128xf32>
    %526 = arith.addf %491, %525 : vector<16x128xf32>
    %c6_i32_133 = arith.constant 6 : i32
    %cst_134 = arith.constant dense<0.000000e+00> : vector<16x128xf32>
    %527 = tpu.matmul %526, %304, %cst_134 {dimension_numbers = #tpu.dot_dimension_numbers<[1], [0], [0], [1], [0, 0, 1, 1], [], []>} : vector<16x128xf32>, vector<128x128xf32>, vector<16x128xf32> -> vector<16x128xf32>
    %528 = vector.broadcast %306 : vector<1x128xf32> to vector<16x128xf32>
    %529 = arith.addf %527, %528 : vector<16x128xf32>
    %530 = math.tanh %529 : vector<16x128xf32>
    %531 = vector.broadcast %310 : vector<1x128xf32> to vector<16x128xf32>
    %532 = arith.mulf %531, %530 : vector<16x128xf32>
    %533 = arith.addf %526, %532 : vector<16x128xf32>
    %cst_135 = arith.constant dense<0.000000e+00> : vector<16x128xf32>
    %534 = tpu.matmul %533, %304, %cst_135 {dimension_numbers = #tpu.dot_dimension_numbers<[1], [0], [0], [1], [0, 0, 1, 1], [], []>} : vector<16x128xf32>, vector<128x128xf32>, vector<16x128xf32> -> vector<16x128xf32>
    %535 = vector.broadcast %306 : vector<1x128xf32> to vector<16x128xf32>
    %536 = arith.addf %534, %535 : vector<16x128xf32>
    %537 = math.tanh %536 : vector<16x128xf32>
    %538 = vector.broadcast %310 : vector<1x128xf32> to vector<16x128xf32>
    %539 = arith.mulf %538, %537 : vector<16x128xf32>
    %540 = arith.addf %526, %539 : vector<16x128xf32>
    %cst_136 = arith.constant dense<0.000000e+00> : vector<16x128xf32>
    %541 = tpu.matmul %540, %304, %cst_136 {dimension_numbers = #tpu.dot_dimension_numbers<[1], [0], [0], [1], [0, 0, 1, 1], [], []>} : vector<16x128xf32>, vector<128x128xf32>, vector<16x128xf32> -> vector<16x128xf32>
    %542 = vector.broadcast %306 : vector<1x128xf32> to vector<16x128xf32>
    %543 = arith.addf %541, %542 : vector<16x128xf32>
    %544 = math.tanh %543 : vector<16x128xf32>
    %545 = vector.broadcast %312 : vector<1x128xf32> to vector<16x128xf32>
    %546 = arith.mulf %545, %544 : vector<16x128xf32>
    %547 = arith.addf %526, %546 : vector<16x128xf32>
    %cst_137 = arith.constant dense<0.000000e+00> : vector<16x128xf32>
    %548 = tpu.matmul %547, %304, %cst_137 {dimension_numbers = #tpu.dot_dimension_numbers<[1], [0], [0], [1], [0, 0, 1, 1], [], []>} : vector<16x128xf32>, vector<128x128xf32>, vector<16x128xf32> -> vector<16x128xf32>
    %549 = vector.broadcast %306 : vector<1x128xf32> to vector<16x128xf32>
    %550 = arith.addf %548, %549 : vector<16x128xf32>
    %551 = math.tanh %550 : vector<16x128xf32>
    %cst_138 = arith.constant 2.000000e+00 : f32
    %552 = vector.broadcast %cst_138 : f32 to vector<16x128xf32>
    %553 = arith.mulf %552, %537 : vector<16x128xf32>
    %554 = arith.addf %530, %553 : vector<16x128xf32>
    %cst_139 = arith.constant 2.000000e+00 : f32
    %555 = vector.broadcast %cst_139 : f32 to vector<16x128xf32>
    %556 = arith.mulf %555, %544 : vector<16x128xf32>
    %557 = arith.addf %554, %556 : vector<16x128xf32>
    %558 = arith.addf %557, %551 : vector<16x128xf32>
    %559 = vector.broadcast %314 : vector<1x128xf32> to vector<16x128xf32>
    %560 = arith.mulf %559, %558 : vector<16x128xf32>
    %561 = arith.addf %526, %560 : vector<16x128xf32>
    %c7_i32_140 = arith.constant 7 : i32
    %cst_141 = arith.constant dense<0.000000e+00> : vector<16x128xf32>
    %562 = tpu.matmul %561, %304, %cst_141 {dimension_numbers = #tpu.dot_dimension_numbers<[1], [0], [0], [1], [0, 0, 1, 1], [], []>} : vector<16x128xf32>, vector<128x128xf32>, vector<16x128xf32> -> vector<16x128xf32>
    %563 = vector.broadcast %306 : vector<1x128xf32> to vector<16x128xf32>
    %564 = arith.addf %562, %563 : vector<16x128xf32>
    %565 = math.tanh %564 : vector<16x128xf32>
    %566 = vector.broadcast %310 : vector<1x128xf32> to vector<16x128xf32>
    %567 = arith.mulf %566, %565 : vector<16x128xf32>
    %568 = arith.addf %561, %567 : vector<16x128xf32>
    %cst_142 = arith.constant dense<0.000000e+00> : vector<16x128xf32>
    %569 = tpu.matmul %568, %304, %cst_142 {dimension_numbers = #tpu.dot_dimension_numbers<[1], [0], [0], [1], [0, 0, 1, 1], [], []>} : vector<16x128xf32>, vector<128x128xf32>, vector<16x128xf32> -> vector<16x128xf32>
    %570 = vector.broadcast %306 : vector<1x128xf32> to vector<16x128xf32>
    %571 = arith.addf %569, %570 : vector<16x128xf32>
    %572 = math.tanh %571 : vector<16x128xf32>
    %573 = vector.broadcast %310 : vector<1x128xf32> to vector<16x128xf32>
    %574 = arith.mulf %573, %572 : vector<16x128xf32>
    %575 = arith.addf %561, %574 : vector<16x128xf32>
    %cst_143 = arith.constant dense<0.000000e+00> : vector<16x128xf32>
    %576 = tpu.matmul %575, %304, %cst_143 {dimension_numbers = #tpu.dot_dimension_numbers<[1], [0], [0], [1], [0, 0, 1, 1], [], []>} : vector<16x128xf32>, vector<128x128xf32>, vector<16x128xf32> -> vector<16x128xf32>
    %577 = vector.broadcast %306 : vector<1x128xf32> to vector<16x128xf32>
    %578 = arith.addf %576, %577 : vector<16x128xf32>
    %579 = math.tanh %578 : vector<16x128xf32>
    %580 = vector.broadcast %312 : vector<1x128xf32> to vector<16x128xf32>
    %581 = arith.mulf %580, %579 : vector<16x128xf32>
    %582 = arith.addf %561, %581 : vector<16x128xf32>
    %cst_144 = arith.constant dense<0.000000e+00> : vector<16x128xf32>
    %583 = tpu.matmul %582, %304, %cst_144 {dimension_numbers = #tpu.dot_dimension_numbers<[1], [0], [0], [1], [0, 0, 1, 1], [], []>} : vector<16x128xf32>, vector<128x128xf32>, vector<16x128xf32> -> vector<16x128xf32>
    %584 = vector.broadcast %306 : vector<1x128xf32> to vector<16x128xf32>
    %585 = arith.addf %583, %584 : vector<16x128xf32>
    %586 = math.tanh %585 : vector<16x128xf32>
    %cst_145 = arith.constant 2.000000e+00 : f32
    %587 = vector.broadcast %cst_145 : f32 to vector<16x128xf32>
    %588 = arith.mulf %587, %572 : vector<16x128xf32>
    %589 = arith.addf %565, %588 : vector<16x128xf32>
    %cst_146 = arith.constant 2.000000e+00 : f32
    %590 = vector.broadcast %cst_146 : f32 to vector<16x128xf32>
    %591 = arith.mulf %590, %579 : vector<16x128xf32>
    %592 = arith.addf %589, %591 : vector<16x128xf32>
    %593 = arith.addf %592, %586 : vector<16x128xf32>
    %594 = vector.broadcast %314 : vector<1x128xf32> to vector<16x128xf32>
    %595 = arith.mulf %594, %593 : vector<16x128xf32>
    %596 = arith.addf %561, %595 : vector<16x128xf32>
    %c1_147 = arith.constant 1 : index
    %c0_148 = arith.constant 0 : index
    %c0_149 = arith.constant 0 : index
    %597 = vector.load %arg7[%c1_147, %c0_148, %c0_149] : memref<4x16x128xf32, #tpu.memory_space<vmem>>, vector<1x16x128xf32>
    %598 = vector.shape_cast %597 : vector<1x16x128xf32> to vector<16x128xf32>
    %599 = vector.shape_cast %596 : vector<16x128xf32> to vector<1x16x128xf32>
    tpu.vector_store %arg7[%c1_147, %c0_148, %c0_149], %599 {strides = array<i32>} : memref<4x16x128xf32, #tpu.memory_space<vmem>>, vector<1x16x128xf32>,
    %c0_150 = arith.constant 0 : index
    %c0_151 = arith.constant 0 : index
    %c1_152 = arith.constant 1 : index
    %c0_153 = arith.constant 0 : index
    %c0_154 = arith.constant 0 : index
    %600 = vector.load %arg6[%c0_150, %c0_151, %c1_152, %c0_153, %c0_154] : memref<1x1x4x16x128xf32, #tpu.memory_space<vmem>>, vector<1x1x1x16x128xf32>
    %601 = vector.shape_cast %600 : vector<1x1x1x16x128xf32> to vector<16x128xf32>
    %602 = vector.shape_cast %596 : vector<16x128xf32> to vector<1x1x1x16x128xf32>
    tpu.vector_store %arg6[%c0_150, %c0_151, %c1_152, %c0_153, %c0_154], %602 {strides = array<i32>} : memref<1x1x4x16x128xf32, #tpu.memory_space<vmem>>, vector<1x1x1x16x128xf32>,
    %c2 = arith.constant 2 : index
    %c0_155 = arith.constant 0 : index
    %c0_156 = arith.constant 0 : index
    %603 = vector.load %arg8[%c2, %c0_155, %c0_156] : memref<4x128x128xf32, #tpu.memory_space<vmem>>, vector<1x128x128xf32>
    %604 = vector.shape_cast %603 : vector<1x128x128xf32> to vector<128x128xf32>
    %c0_157 = arith.constant 0 : index
    %c2_158 = arith.constant 2 : index
    %c0_159 = arith.constant 0 : index
    %c0_160 = arith.constant 0 : index
    %605 = vector.load %arg4[%c0_157, %c2_158, %c0_159, %c0_160] : memref<1x4x1x128xf32, #tpu.memory_space<vmem>>, vector<1x1x1x128xf32>
    %606 = vector.shape_cast %605 : vector<1x1x1x128xf32> to vector<1x128xf32>
    %c0_161 = arith.constant 0 : index
    %c0_162 = arith.constant 0 : index
    %c2_163 = arith.constant 2 : index
    %c0_164 = arith.constant 0 : index
    %c0_165 = arith.constant 0 : index
    %607 = vector.load %arg5[%c0_161, %c0_162, %c2_163, %c0_164, %c0_165] : memref<1x1x4x1x128xf32, #tpu.memory_space<vmem>>, vector<1x1x1x1x128xf32>
    %608 = vector.shape_cast %607 : vector<1x1x1x1x128xf32> to vector<1x128xf32>
    %cst_166 = arith.constant 6.250000e-02 : f32
    %609 = vector.broadcast %cst_166 : f32 to vector<1x128xf32>
    %610 = arith.mulf %609, %608 : vector<1x128xf32>
    %cst_167 = arith.constant 1.250000e-01 : f32
    %611 = vector.broadcast %cst_167 : f32 to vector<1x128xf32>
    %612 = arith.mulf %611, %608 : vector<1x128xf32>
    %cst_168 = arith.constant 0.020833334 : f32
    %613 = vector.broadcast %cst_168 : f32 to vector<1x128xf32>
    %614 = arith.mulf %613, %608 : vector<1x128xf32>
    %c2_169 = arith.constant 2 : index
    %c0_170 = arith.constant 0 : index
    %c0_171 = arith.constant 0 : index
    %615 = vector.load %arg7[%c2_169, %c0_170, %c0_171] : memref<4x16x128xf32, #tpu.memory_space<vmem>>, vector<1x16x128xf32>
    %616 = vector.shape_cast %615 : vector<1x16x128xf32> to vector<16x128xf32>
    %c0_i32_172 = arith.constant 0 : i32
    %cst_173 = arith.constant dense<0.000000e+00> : vector<16x128xf32>
    %617 = tpu.matmul %616, %604, %cst_173 {dimension_numbers = #tpu.dot_dimension_numbers<[1], [0], [0], [1], [0, 0, 1, 1], [], []>} : vector<16x128xf32>, vector<128x128xf32>, vector<16x128xf32> -> vector<16x128xf32>
    %618 = vector.broadcast %606 : vector<1x128xf32> to vector<16x128xf32>
    %619 = arith.addf %617, %618 : vector<16x128xf32>
    %620 = math.tanh %619 : vector<16x128xf32>
    %621 = vector.broadcast %610 : vector<1x128xf32> to vector<16x128xf32>
    %622 = arith.mulf %621, %620 : vector<16x128xf32>
    %623 = arith.addf %616, %622 : vector<16x128xf32>
    %cst_174 = arith.constant dense<0.000000e+00> : vector<16x128xf32>
    %624 = tpu.matmul %623, %604, %cst_174 {dimension_numbers = #tpu.dot_dimension_numbers<[1], [0], [0], [1], [0, 0, 1, 1], [], []>} : vector<16x128xf32>, vector<128x128xf32>, vector<16x128xf32> -> vector<16x128xf32>
    %625 = vector.broadcast %606 : vector<1x128xf32> to vector<16x128xf32>
    %626 = arith.addf %624, %625 : vector<16x128xf32>
    %627 = math.tanh %626 : vector<16x128xf32>
    %628 = vector.broadcast %610 : vector<1x128xf32> to vector<16x128xf32>
    %629 = arith.mulf %628, %627 : vector<16x128xf32>
    %630 = arith.addf %616, %629 : vector<16x128xf32>
    %cst_175 = arith.constant dense<0.000000e+00> : vector<16x128xf32>
    %631 = tpu.matmul %630, %604, %cst_175 {dimension_numbers = #tpu.dot_dimension_numbers<[1], [0], [0], [1], [0, 0, 1, 1], [], []>} : vector<16x128xf32>, vector<128x128xf32>, vector<16x128xf32> -> vector<16x128xf32>
    %632 = vector.broadcast %606 : vector<1x128xf32> to vector<16x128xf32>
    %633 = arith.addf %631, %632 : vector<16x128xf32>
    %634 = math.tanh %633 : vector<16x128xf32>
    %635 = vector.broadcast %612 : vector<1x128xf32> to vector<16x128xf32>
    %636 = arith.mulf %635, %634 : vector<16x128xf32>
    %637 = arith.addf %616, %636 : vector<16x128xf32>
    %cst_176 = arith.constant dense<0.000000e+00> : vector<16x128xf32>
    %638 = tpu.matmul %637, %604, %cst_176 {dimension_numbers = #tpu.dot_dimension_numbers<[1], [0], [0], [1], [0, 0, 1, 1], [], []>} : vector<16x128xf32>, vector<128x128xf32>, vector<16x128xf32> -> vector<16x128xf32>
    %639 = vector.broadcast %606 : vector<1x128xf32> to vector<16x128xf32>
    %640 = arith.addf %638, %639 : vector<16x128xf32>
    %641 = math.tanh %640 : vector<16x128xf32>
    %cst_177 = arith.constant 2.000000e+00 : f32
    %642 = vector.broadcast %cst_177 : f32 to vector<16x128xf32>
    %643 = arith.mulf %642, %627 : vector<16x128xf32>
    %644 = arith.addf %620, %643 : vector<16x128xf32>
    %cst_178 = arith.constant 2.000000e+00 : f32
    %645 = vector.broadcast %cst_178 : f32 to vector<16x128xf32>
    %646 = arith.mulf %645, %634 : vector<16x128xf32>
    %647 = arith.addf %644, %646 : vector<16x128xf32>
    %648 = arith.addf %647, %641 : vector<16x128xf32>
    %649 = vector.broadcast %614 : vector<1x128xf32> to vector<16x128xf32>
    %650 = arith.mulf %649, %648 : vector<16x128xf32>
    %651 = arith.addf %616, %650 : vector<16x128xf32>
    %c1_i32_179 = arith.constant 1 : i32
    %cst_180 = arith.constant dense<0.000000e+00> : vector<16x128xf32>
    %652 = tpu.matmul %651, %604, %cst_180 {dimension_numbers = #tpu.dot_dimension_numbers<[1], [0], [0], [1], [0, 0, 1, 1], [], []>} : vector<16x128xf32>, vector<128x128xf32>, vector<16x128xf32> -> vector<16x128xf32>
    %653 = vector.broadcast %606 : vector<1x128xf32> to vector<16x128xf32>
    %654 = arith.addf %652, %653 : vector<16x128xf32>
    %655 = math.tanh %654 : vector<16x128xf32>
    %656 = vector.broadcast %610 : vector<1x128xf32> to vector<16x128xf32>
    %657 = arith.mulf %656, %655 : vector<16x128xf32>
    %658 = arith.addf %651, %657 : vector<16x128xf32>
    %cst_181 = arith.constant dense<0.000000e+00> : vector<16x128xf32>
    %659 = tpu.matmul %658, %604, %cst_181 {dimension_numbers = #tpu.dot_dimension_numbers<[1], [0], [0], [1], [0, 0, 1, 1], [], []>} : vector<16x128xf32>, vector<128x128xf32>, vector<16x128xf32> -> vector<16x128xf32>
    %660 = vector.broadcast %606 : vector<1x128xf32> to vector<16x128xf32>
    %661 = arith.addf %659, %660 : vector<16x128xf32>
    %662 = math.tanh %661 : vector<16x128xf32>
    %663 = vector.broadcast %610 : vector<1x128xf32> to vector<16x128xf32>
    %664 = arith.mulf %663, %662 : vector<16x128xf32>
    %665 = arith.addf %651, %664 : vector<16x128xf32>
    %cst_182 = arith.constant dense<0.000000e+00> : vector<16x128xf32>
    %666 = tpu.matmul %665, %604, %cst_182 {dimension_numbers = #tpu.dot_dimension_numbers<[1], [0], [0], [1], [0, 0, 1, 1], [], []>} : vector<16x128xf32>, vector<128x128xf32>, vector<16x128xf32> -> vector<16x128xf32>
    %667 = vector.broadcast %606 : vector<1x128xf32> to vector<16x128xf32>
    %668 = arith.addf %666, %667 : vector<16x128xf32>
    %669 = math.tanh %668 : vector<16x128xf32>
    %670 = vector.broadcast %612 : vector<1x128xf32> to vector<16x128xf32>
    %671 = arith.mulf %670, %669 : vector<16x128xf32>
    %672 = arith.addf %651, %671 : vector<16x128xf32>
    %cst_183 = arith.constant dense<0.000000e+00> : vector<16x128xf32>
    %673 = tpu.matmul %672, %604, %cst_183 {dimension_numbers = #tpu.dot_dimension_numbers<[1], [0], [0], [1], [0, 0, 1, 1], [], []>} : vector<16x128xf32>, vector<128x128xf32>, vector<16x128xf32> -> vector<16x128xf32>
    %674 = vector.broadcast %606 : vector<1x128xf32> to vector<16x128xf32>
    %675 = arith.addf %673, %674 : vector<16x128xf32>
    %676 = math.tanh %675 : vector<16x128xf32>
    %cst_184 = arith.constant 2.000000e+00 : f32
    %677 = vector.broadcast %cst_184 : f32 to vector<16x128xf32>
    %678 = arith.mulf %677, %662 : vector<16x128xf32>
    %679 = arith.addf %655, %678 : vector<16x128xf32>
    %cst_185 = arith.constant 2.000000e+00 : f32
    %680 = vector.broadcast %cst_185 : f32 to vector<16x128xf32>
    %681 = arith.mulf %680, %669 : vector<16x128xf32>
    %682 = arith.addf %679, %681 : vector<16x128xf32>
    %683 = arith.addf %682, %676 : vector<16x128xf32>
    %684 = vector.broadcast %614 : vector<1x128xf32> to vector<16x128xf32>
    %685 = arith.mulf %684, %683 : vector<16x128xf32>
    %686 = arith.addf %651, %685 : vector<16x128xf32>
    %c2_i32_186 = arith.constant 2 : i32
    %cst_187 = arith.constant dense<0.000000e+00> : vector<16x128xf32>
    %687 = tpu.matmul %686, %604, %cst_187 {dimension_numbers = #tpu.dot_dimension_numbers<[1], [0], [0], [1], [0, 0, 1, 1], [], []>} : vector<16x128xf32>, vector<128x128xf32>, vector<16x128xf32> -> vector<16x128xf32>
    %688 = vector.broadcast %606 : vector<1x128xf32> to vector<16x128xf32>
    %689 = arith.addf %687, %688 : vector<16x128xf32>
    %690 = math.tanh %689 : vector<16x128xf32>
    %691 = vector.broadcast %610 : vector<1x128xf32> to vector<16x128xf32>
    %692 = arith.mulf %691, %690 : vector<16x128xf32>
    %693 = arith.addf %686, %692 : vector<16x128xf32>
    %cst_188 = arith.constant dense<0.000000e+00> : vector<16x128xf32>
    %694 = tpu.matmul %693, %604, %cst_188 {dimension_numbers = #tpu.dot_dimension_numbers<[1], [0], [0], [1], [0, 0, 1, 1], [], []>} : vector<16x128xf32>, vector<128x128xf32>, vector<16x128xf32> -> vector<16x128xf32>
    %695 = vector.broadcast %606 : vector<1x128xf32> to vector<16x128xf32>
    %696 = arith.addf %694, %695 : vector<16x128xf32>
    %697 = math.tanh %696 : vector<16x128xf32>
    %698 = vector.broadcast %610 : vector<1x128xf32> to vector<16x128xf32>
    %699 = arith.mulf %698, %697 : vector<16x128xf32>
    %700 = arith.addf %686, %699 : vector<16x128xf32>
    %cst_189 = arith.constant dense<0.000000e+00> : vector<16x128xf32>
    %701 = tpu.matmul %700, %604, %cst_189 {dimension_numbers = #tpu.dot_dimension_numbers<[1], [0], [0], [1], [0, 0, 1, 1], [], []>} : vector<16x128xf32>, vector<128x128xf32>, vector<16x128xf32> -> vector<16x128xf32>
    %702 = vector.broadcast %606 : vector<1x128xf32> to vector<16x128xf32>
    %703 = arith.addf %701, %702 : vector<16x128xf32>
    %704 = math.tanh %703 : vector<16x128xf32>
    %705 = vector.broadcast %612 : vector<1x128xf32> to vector<16x128xf32>
    %706 = arith.mulf %705, %704 : vector<16x128xf32>
    %707 = arith.addf %686, %706 : vector<16x128xf32>
    %cst_190 = arith.constant dense<0.000000e+00> : vector<16x128xf32>
    %708 = tpu.matmul %707, %604, %cst_190 {dimension_numbers = #tpu.dot_dimension_numbers<[1], [0], [0], [1], [0, 0, 1, 1], [], []>} : vector<16x128xf32>, vector<128x128xf32>, vector<16x128xf32> -> vector<16x128xf32>
    %709 = vector.broadcast %606 : vector<1x128xf32> to vector<16x128xf32>
    %710 = arith.addf %708, %709 : vector<16x128xf32>
    %711 = math.tanh %710 : vector<16x128xf32>
    %cst_191 = arith.constant 2.000000e+00 : f32
    %712 = vector.broadcast %cst_191 : f32 to vector<16x128xf32>
    %713 = arith.mulf %712, %697 : vector<16x128xf32>
    %714 = arith.addf %690, %713 : vector<16x128xf32>
    %cst_192 = arith.constant 2.000000e+00 : f32
    %715 = vector.broadcast %cst_192 : f32 to vector<16x128xf32>
    %716 = arith.mulf %715, %704 : vector<16x128xf32>
    %717 = arith.addf %714, %716 : vector<16x128xf32>
    %718 = arith.addf %717, %711 : vector<16x128xf32>
    %719 = vector.broadcast %614 : vector<1x128xf32> to vector<16x128xf32>
    %720 = arith.mulf %719, %718 : vector<16x128xf32>
    %721 = arith.addf %686, %720 : vector<16x128xf32>
    %c3_i32_193 = arith.constant 3 : i32
    %cst_194 = arith.constant dense<0.000000e+00> : vector<16x128xf32>
    %722 = tpu.matmul %721, %604, %cst_194 {dimension_numbers = #tpu.dot_dimension_numbers<[1], [0], [0], [1], [0, 0, 1, 1], [], []>} : vector<16x128xf32>, vector<128x128xf32>, vector<16x128xf32> -> vector<16x128xf32>
    %723 = vector.broadcast %606 : vector<1x128xf32> to vector<16x128xf32>
    %724 = arith.addf %722, %723 : vector<16x128xf32>
    %725 = math.tanh %724 : vector<16x128xf32>
    %726 = vector.broadcast %610 : vector<1x128xf32> to vector<16x128xf32>
    %727 = arith.mulf %726, %725 : vector<16x128xf32>
    %728 = arith.addf %721, %727 : vector<16x128xf32>
    %cst_195 = arith.constant dense<0.000000e+00> : vector<16x128xf32>
    %729 = tpu.matmul %728, %604, %cst_195 {dimension_numbers = #tpu.dot_dimension_numbers<[1], [0], [0], [1], [0, 0, 1, 1], [], []>} : vector<16x128xf32>, vector<128x128xf32>, vector<16x128xf32> -> vector<16x128xf32>
    %730 = vector.broadcast %606 : vector<1x128xf32> to vector<16x128xf32>
    %731 = arith.addf %729, %730 : vector<16x128xf32>
    %732 = math.tanh %731 : vector<16x128xf32>
    %733 = vector.broadcast %610 : vector<1x128xf32> to vector<16x128xf32>
    %734 = arith.mulf %733, %732 : vector<16x128xf32>
    %735 = arith.addf %721, %734 : vector<16x128xf32>
    %cst_196 = arith.constant dense<0.000000e+00> : vector<16x128xf32>
    %736 = tpu.matmul %735, %604, %cst_196 {dimension_numbers = #tpu.dot_dimension_numbers<[1], [0], [0], [1], [0, 0, 1, 1], [], []>} : vector<16x128xf32>, vector<128x128xf32>, vector<16x128xf32> -> vector<16x128xf32>
    %737 = vector.broadcast %606 : vector<1x128xf32> to vector<16x128xf32>
    %738 = arith.addf %736, %737 : vector<16x128xf32>
    %739 = math.tanh %738 : vector<16x128xf32>
    %740 = vector.broadcast %612 : vector<1x128xf32> to vector<16x128xf32>
    %741 = arith.mulf %740, %739 : vector<16x128xf32>
    %742 = arith.addf %721, %741 : vector<16x128xf32>
    %cst_197 = arith.constant dense<0.000000e+00> : vector<16x128xf32>
    %743 = tpu.matmul %742, %604, %cst_197 {dimension_numbers = #tpu.dot_dimension_numbers<[1], [0], [0], [1], [0, 0, 1, 1], [], []>} : vector<16x128xf32>, vector<128x128xf32>, vector<16x128xf32> -> vector<16x128xf32>
    %744 = vector.broadcast %606 : vector<1x128xf32> to vector<16x128xf32>
    %745 = arith.addf %743, %744 : vector<16x128xf32>
    %746 = math.tanh %745 : vector<16x128xf32>
    %cst_198 = arith.constant 2.000000e+00 : f32
    %747 = vector.broadcast %cst_198 : f32 to vector<16x128xf32>
    %748 = arith.mulf %747, %732 : vector<16x128xf32>
    %749 = arith.addf %725, %748 : vector<16x128xf32>
    %cst_199 = arith.constant 2.000000e+00 : f32
    %750 = vector.broadcast %cst_199 : f32 to vector<16x128xf32>
    %751 = arith.mulf %750, %739 : vector<16x128xf32>
    %752 = arith.addf %749, %751 : vector<16x128xf32>
    %753 = arith.addf %752, %746 : vector<16x128xf32>
    %754 = vector.broadcast %614 : vector<1x128xf32> to vector<16x128xf32>
    %755 = arith.mulf %754, %753 : vector<16x128xf32>
    %756 = arith.addf %721, %755 : vector<16x128xf32>
    %c4_i32_200 = arith.constant 4 : i32
    %cst_201 = arith.constant dense<0.000000e+00> : vector<16x128xf32>
    %757 = tpu.matmul %756, %604, %cst_201 {dimension_numbers = #tpu.dot_dimension_numbers<[1], [0], [0], [1], [0, 0, 1, 1], [], []>} : vector<16x128xf32>, vector<128x128xf32>, vector<16x128xf32> -> vector<16x128xf32>
    %758 = vector.broadcast %606 : vector<1x128xf32> to vector<16x128xf32>
    %759 = arith.addf %757, %758 : vector<16x128xf32>
    %760 = math.tanh %759 : vector<16x128xf32>
    %761 = vector.broadcast %610 : vector<1x128xf32> to vector<16x128xf32>
    %762 = arith.mulf %761, %760 : vector<16x128xf32>
    %763 = arith.addf %756, %762 : vector<16x128xf32>
    %cst_202 = arith.constant dense<0.000000e+00> : vector<16x128xf32>
    %764 = tpu.matmul %763, %604, %cst_202 {dimension_numbers = #tpu.dot_dimension_numbers<[1], [0], [0], [1], [0, 0, 1, 1], [], []>} : vector<16x128xf32>, vector<128x128xf32>, vector<16x128xf32> -> vector<16x128xf32>
    %765 = vector.broadcast %606 : vector<1x128xf32> to vector<16x128xf32>
    %766 = arith.addf %764, %765 : vector<16x128xf32>
    %767 = math.tanh %766 : vector<16x128xf32>
    %768 = vector.broadcast %610 : vector<1x128xf32> to vector<16x128xf32>
    %769 = arith.mulf %768, %767 : vector<16x128xf32>
    %770 = arith.addf %756, %769 : vector<16x128xf32>
    %cst_203 = arith.constant dense<0.000000e+00> : vector<16x128xf32>
    %771 = tpu.matmul %770, %604, %cst_203 {dimension_numbers = #tpu.dot_dimension_numbers<[1], [0], [0], [1], [0, 0, 1, 1], [], []>} : vector<16x128xf32>, vector<128x128xf32>, vector<16x128xf32> -> vector<16x128xf32>
    %772 = vector.broadcast %606 : vector<1x128xf32> to vector<16x128xf32>
    %773 = arith.addf %771, %772 : vector<16x128xf32>
    %774 = math.tanh %773 : vector<16x128xf32>
    %775 = vector.broadcast %612 : vector<1x128xf32> to vector<16x128xf32>
    %776 = arith.mulf %775, %774 : vector<16x128xf32>
    %777 = arith.addf %756, %776 : vector<16x128xf32>
    %cst_204 = arith.constant dense<0.000000e+00> : vector<16x128xf32>
    %778 = tpu.matmul %777, %604, %cst_204 {dimension_numbers = #tpu.dot_dimension_numbers<[1], [0], [0], [1], [0, 0, 1, 1], [], []>} : vector<16x128xf32>, vector<128x128xf32>, vector<16x128xf32> -> vector<16x128xf32>
    %779 = vector.broadcast %606 : vector<1x128xf32> to vector<16x128xf32>
    %780 = arith.addf %778, %779 : vector<16x128xf32>
    %781 = math.tanh %780 : vector<16x128xf32>
    %cst_205 = arith.constant 2.000000e+00 : f32
    %782 = vector.broadcast %cst_205 : f32 to vector<16x128xf32>
    %783 = arith.mulf %782, %767 : vector<16x128xf32>
    %784 = arith.addf %760, %783 : vector<16x128xf32>
    %cst_206 = arith.constant 2.000000e+00 : f32
    %785 = vector.broadcast %cst_206 : f32 to vector<16x128xf32>
    %786 = arith.mulf %785, %774 : vector<16x128xf32>
    %787 = arith.addf %784, %786 : vector<16x128xf32>
    %788 = arith.addf %787, %781 : vector<16x128xf32>
    %789 = vector.broadcast %614 : vector<1x128xf32> to vector<16x128xf32>
    %790 = arith.mulf %789, %788 : vector<16x128xf32>
    %791 = arith.addf %756, %790 : vector<16x128xf32>
    %c5_i32_207 = arith.constant 5 : i32
    %cst_208 = arith.constant dense<0.000000e+00> : vector<16x128xf32>
    %792 = tpu.matmul %791, %604, %cst_208 {dimension_numbers = #tpu.dot_dimension_numbers<[1], [0], [0], [1], [0, 0, 1, 1], [], []>} : vector<16x128xf32>, vector<128x128xf32>, vector<16x128xf32> -> vector<16x128xf32>
    %793 = vector.broadcast %606 : vector<1x128xf32> to vector<16x128xf32>
    %794 = arith.addf %792, %793 : vector<16x128xf32>
    %795 = math.tanh %794 : vector<16x128xf32>
    %796 = vector.broadcast %610 : vector<1x128xf32> to vector<16x128xf32>
    %797 = arith.mulf %796, %795 : vector<16x128xf32>
    %798 = arith.addf %791, %797 : vector<16x128xf32>
    %cst_209 = arith.constant dense<0.000000e+00> : vector<16x128xf32>
    %799 = tpu.matmul %798, %604, %cst_209 {dimension_numbers = #tpu.dot_dimension_numbers<[1], [0], [0], [1], [0, 0, 1, 1], [], []>} : vector<16x128xf32>, vector<128x128xf32>, vector<16x128xf32> -> vector<16x128xf32>
    %800 = vector.broadcast %606 : vector<1x128xf32> to vector<16x128xf32>
    %801 = arith.addf %799, %800 : vector<16x128xf32>
    %802 = math.tanh %801 : vector<16x128xf32>
    %803 = vector.broadcast %610 : vector<1x128xf32> to vector<16x128xf32>
    %804 = arith.mulf %803, %802 : vector<16x128xf32>
    %805 = arith.addf %791, %804 : vector<16x128xf32>
    %cst_210 = arith.constant dense<0.000000e+00> : vector<16x128xf32>
    %806 = tpu.matmul %805, %604, %cst_210 {dimension_numbers = #tpu.dot_dimension_numbers<[1], [0], [0], [1], [0, 0, 1, 1], [], []>} : vector<16x128xf32>, vector<128x128xf32>, vector<16x128xf32> -> vector<16x128xf32>
    %807 = vector.broadcast %606 : vector<1x128xf32> to vector<16x128xf32>
    %808 = arith.addf %806, %807 : vector<16x128xf32>
    %809 = math.tanh %808 : vector<16x128xf32>
    %810 = vector.broadcast %612 : vector<1x128xf32> to vector<16x128xf32>
    %811 = arith.mulf %810, %809 : vector<16x128xf32>
    %812 = arith.addf %791, %811 : vector<16x128xf32>
    %cst_211 = arith.constant dense<0.000000e+00> : vector<16x128xf32>
    %813 = tpu.matmul %812, %604, %cst_211 {dimension_numbers = #tpu.dot_dimension_numbers<[1], [0], [0], [1], [0, 0, 1, 1], [], []>} : vector<16x128xf32>, vector<128x128xf32>, vector<16x128xf32> -> vector<16x128xf32>
    %814 = vector.broadcast %606 : vector<1x128xf32> to vector<16x128xf32>
    %815 = arith.addf %813, %814 : vector<16x128xf32>
    %816 = math.tanh %815 : vector<16x128xf32>
    %cst_212 = arith.constant 2.000000e+00 : f32
    %817 = vector.broadcast %cst_212 : f32 to vector<16x128xf32>
    %818 = arith.mulf %817, %802 : vector<16x128xf32>
    %819 = arith.addf %795, %818 : vector<16x128xf32>
    %cst_213 = arith.constant 2.000000e+00 : f32
    %820 = vector.broadcast %cst_213 : f32 to vector<16x128xf32>
    %821 = arith.mulf %820, %809 : vector<16x128xf32>
    %822 = arith.addf %819, %821 : vector<16x128xf32>
    %823 = arith.addf %822, %816 : vector<16x128xf32>
    %824 = vector.broadcast %614 : vector<1x128xf32> to vector<16x128xf32>
    %825 = arith.mulf %824, %823 : vector<16x128xf32>
    %826 = arith.addf %791, %825 : vector<16x128xf32>
    %c6_i32_214 = arith.constant 6 : i32
    %cst_215 = arith.constant dense<0.000000e+00> : vector<16x128xf32>
    %827 = tpu.matmul %826, %604, %cst_215 {dimension_numbers = #tpu.dot_dimension_numbers<[1], [0], [0], [1], [0, 0, 1, 1], [], []>} : vector<16x128xf32>, vector<128x128xf32>, vector<16x128xf32> -> vector<16x128xf32>
    %828 = vector.broadcast %606 : vector<1x128xf32> to vector<16x128xf32>
    %829 = arith.addf %827, %828 : vector<16x128xf32>
    %830 = math.tanh %829 : vector<16x128xf32>
    %831 = vector.broadcast %610 : vector<1x128xf32> to vector<16x128xf32>
    %832 = arith.mulf %831, %830 : vector<16x128xf32>
    %833 = arith.addf %826, %832 : vector<16x128xf32>
    %cst_216 = arith.constant dense<0.000000e+00> : vector<16x128xf32>
    %834 = tpu.matmul %833, %604, %cst_216 {dimension_numbers = #tpu.dot_dimension_numbers<[1], [0], [0], [1], [0, 0, 1, 1], [], []>} : vector<16x128xf32>, vector<128x128xf32>, vector<16x128xf32> -> vector<16x128xf32>
    %835 = vector.broadcast %606 : vector<1x128xf32> to vector<16x128xf32>
    %836 = arith.addf %834, %835 : vector<16x128xf32>
    %837 = math.tanh %836 : vector<16x128xf32>
    %838 = vector.broadcast %610 : vector<1x128xf32> to vector<16x128xf32>
    %839 = arith.mulf %838, %837 : vector<16x128xf32>
    %840 = arith.addf %826, %839 : vector<16x128xf32>
    %cst_217 = arith.constant dense<0.000000e+00> : vector<16x128xf32>
    %841 = tpu.matmul %840, %604, %cst_217 {dimension_numbers = #tpu.dot_dimension_numbers<[1], [0], [0], [1], [0, 0, 1, 1], [], []>} : vector<16x128xf32>, vector<128x128xf32>, vector<16x128xf32> -> vector<16x128xf32>
    %842 = vector.broadcast %606 : vector<1x128xf32> to vector<16x128xf32>
    %843 = arith.addf %841, %842 : vector<16x128xf32>
    %844 = math.tanh %843 : vector<16x128xf32>
    %845 = vector.broadcast %612 : vector<1x128xf32> to vector<16x128xf32>
    %846 = arith.mulf %845, %844 : vector<16x128xf32>
    %847 = arith.addf %826, %846 : vector<16x128xf32>
    %cst_218 = arith.constant dense<0.000000e+00> : vector<16x128xf32>
    %848 = tpu.matmul %847, %604, %cst_218 {dimension_numbers = #tpu.dot_dimension_numbers<[1], [0], [0], [1], [0, 0, 1, 1], [], []>} : vector<16x128xf32>, vector<128x128xf32>, vector<16x128xf32> -> vector<16x128xf32>
    %849 = vector.broadcast %606 : vector<1x128xf32> to vector<16x128xf32>
    %850 = arith.addf %848, %849 : vector<16x128xf32>
    %851 = math.tanh %850 : vector<16x128xf32>
    %cst_219 = arith.constant 2.000000e+00 : f32
    %852 = vector.broadcast %cst_219 : f32 to vector<16x128xf32>
    %853 = arith.mulf %852, %837 : vector<16x128xf32>
    %854 = arith.addf %830, %853 : vector<16x128xf32>
    %cst_220 = arith.constant 2.000000e+00 : f32
    %855 = vector.broadcast %cst_220 : f32 to vector<16x128xf32>
    %856 = arith.mulf %855, %844 : vector<16x128xf32>
    %857 = arith.addf %854, %856 : vector<16x128xf32>
    %858 = arith.addf %857, %851 : vector<16x128xf32>
    %859 = vector.broadcast %614 : vector<1x128xf32> to vector<16x128xf32>
    %860 = arith.mulf %859, %858 : vector<16x128xf32>
    %861 = arith.addf %826, %860 : vector<16x128xf32>
    %c7_i32_221 = arith.constant 7 : i32
    %cst_222 = arith.constant dense<0.000000e+00> : vector<16x128xf32>
    %862 = tpu.matmul %861, %604, %cst_222 {dimension_numbers = #tpu.dot_dimension_numbers<[1], [0], [0], [1], [0, 0, 1, 1], [], []>} : vector<16x128xf32>, vector<128x128xf32>, vector<16x128xf32> -> vector<16x128xf32>
    %863 = vector.broadcast %606 : vector<1x128xf32> to vector<16x128xf32>
    %864 = arith.addf %862, %863 : vector<16x128xf32>
    %865 = math.tanh %864 : vector<16x128xf32>
    %866 = vector.broadcast %610 : vector<1x128xf32> to vector<16x128xf32>
    %867 = arith.mulf %866, %865 : vector<16x128xf32>
    %868 = arith.addf %861, %867 : vector<16x128xf32>
    %cst_223 = arith.constant dense<0.000000e+00> : vector<16x128xf32>
    %869 = tpu.matmul %868, %604, %cst_223 {dimension_numbers = #tpu.dot_dimension_numbers<[1], [0], [0], [1], [0, 0, 1, 1], [], []>} : vector<16x128xf32>, vector<128x128xf32>, vector<16x128xf32> -> vector<16x128xf32>
    %870 = vector.broadcast %606 : vector<1x128xf32> to vector<16x128xf32>
    %871 = arith.addf %869, %870 : vector<16x128xf32>
    %872 = math.tanh %871 : vector<16x128xf32>
    %873 = vector.broadcast %610 : vector<1x128xf32> to vector<16x128xf32>
    %874 = arith.mulf %873, %872 : vector<16x128xf32>
    %875 = arith.addf %861, %874 : vector<16x128xf32>
    %cst_224 = arith.constant dense<0.000000e+00> : vector<16x128xf32>
    %876 = tpu.matmul %875, %604, %cst_224 {dimension_numbers = #tpu.dot_dimension_numbers<[1], [0], [0], [1], [0, 0, 1, 1], [], []>} : vector<16x128xf32>, vector<128x128xf32>, vector<16x128xf32> -> vector<16x128xf32>
    %877 = vector.broadcast %606 : vector<1x128xf32> to vector<16x128xf32>
    %878 = arith.addf %876, %877 : vector<16x128xf32>
    %879 = math.tanh %878 : vector<16x128xf32>
    %880 = vector.broadcast %612 : vector<1x128xf32> to vector<16x128xf32>
    %881 = arith.mulf %880, %879 : vector<16x128xf32>
    %882 = arith.addf %861, %881 : vector<16x128xf32>
    %cst_225 = arith.constant dense<0.000000e+00> : vector<16x128xf32>
    %883 = tpu.matmul %882, %604, %cst_225 {dimension_numbers = #tpu.dot_dimension_numbers<[1], [0], [0], [1], [0, 0, 1, 1], [], []>} : vector<16x128xf32>, vector<128x128xf32>, vector<16x128xf32> -> vector<16x128xf32>
    %884 = vector.broadcast %606 : vector<1x128xf32> to vector<16x128xf32>
    %885 = arith.addf %883, %884 : vector<16x128xf32>
    %886 = math.tanh %885 : vector<16x128xf32>
    %cst_226 = arith.constant 2.000000e+00 : f32
    %887 = vector.broadcast %cst_226 : f32 to vector<16x128xf32>
    %888 = arith.mulf %887, %872 : vector<16x128xf32>
    %889 = arith.addf %865, %888 : vector<16x128xf32>
    %cst_227 = arith.constant 2.000000e+00 : f32
    %890 = vector.broadcast %cst_227 : f32 to vector<16x128xf32>
    %891 = arith.mulf %890, %879 : vector<16x128xf32>
    %892 = arith.addf %889, %891 : vector<16x128xf32>
    %893 = arith.addf %892, %886 : vector<16x128xf32>
    %894 = vector.broadcast %614 : vector<1x128xf32> to vector<16x128xf32>
    %895 = arith.mulf %894, %893 : vector<16x128xf32>
    %896 = arith.addf %861, %895 : vector<16x128xf32>
    %c2_228 = arith.constant 2 : index
    %c0_229 = arith.constant 0 : index
    %c0_230 = arith.constant 0 : index
    %897 = vector.load %arg7[%c2_228, %c0_229, %c0_230] : memref<4x16x128xf32, #tpu.memory_space<vmem>>, vector<1x16x128xf32>
    %898 = vector.shape_cast %897 : vector<1x16x128xf32> to vector<16x128xf32>
    %899 = vector.shape_cast %896 : vector<16x128xf32> to vector<1x16x128xf32>
    tpu.vector_store %arg7[%c2_228, %c0_229, %c0_230], %899 {strides = array<i32>} : memref<4x16x128xf32, #tpu.memory_space<vmem>>, vector<1x16x128xf32>,
    %c0_231 = arith.constant 0 : index
    %c0_232 = arith.constant 0 : index
    %c2_233 = arith.constant 2 : index
    %c0_234 = arith.constant 0 : index
    %c0_235 = arith.constant 0 : index
    %900 = vector.load %arg6[%c0_231, %c0_232, %c2_233, %c0_234, %c0_235] : memref<1x1x4x16x128xf32, #tpu.memory_space<vmem>>, vector<1x1x1x16x128xf32>
    %901 = vector.shape_cast %900 : vector<1x1x1x16x128xf32> to vector<16x128xf32>
    %902 = vector.shape_cast %896 : vector<16x128xf32> to vector<1x1x1x16x128xf32>
    tpu.vector_store %arg6[%c0_231, %c0_232, %c2_233, %c0_234, %c0_235], %902 {strides = array<i32>} : memref<1x1x4x16x128xf32, #tpu.memory_space<vmem>>, vector<1x1x1x16x128xf32>,
    %c3 = arith.constant 3 : index
    %c0_236 = arith.constant 0 : index
    %c0_237 = arith.constant 0 : index
    %903 = vector.load %arg8[%c3, %c0_236, %c0_237] : memref<4x128x128xf32, #tpu.memory_space<vmem>>, vector<1x128x128xf32>
    %904 = vector.shape_cast %903 : vector<1x128x128xf32> to vector<128x128xf32>
    %c0_238 = arith.constant 0 : index
    %c3_239 = arith.constant 3 : index
    %c0_240 = arith.constant 0 : index
    %c0_241 = arith.constant 0 : index
    %905 = vector.load %arg4[%c0_238, %c3_239, %c0_240, %c0_241] : memref<1x4x1x128xf32, #tpu.memory_space<vmem>>, vector<1x1x1x128xf32>
    %906 = vector.shape_cast %905 : vector<1x1x1x128xf32> to vector<1x128xf32>
    %c0_242 = arith.constant 0 : index
    %c0_243 = arith.constant 0 : index
    %c3_244 = arith.constant 3 : index
    %c0_245 = arith.constant 0 : index
    %c0_246 = arith.constant 0 : index
    %907 = vector.load %arg5[%c0_242, %c0_243, %c3_244, %c0_245, %c0_246] : memref<1x1x4x1x128xf32, #tpu.memory_space<vmem>>, vector<1x1x1x1x128xf32>
    %908 = vector.shape_cast %907 : vector<1x1x1x1x128xf32> to vector<1x128xf32>
    %cst_247 = arith.constant 6.250000e-02 : f32
    %909 = vector.broadcast %cst_247 : f32 to vector<1x128xf32>
    %910 = arith.mulf %909, %908 : vector<1x128xf32>
    %cst_248 = arith.constant 1.250000e-01 : f32
    %911 = vector.broadcast %cst_248 : f32 to vector<1x128xf32>
    %912 = arith.mulf %911, %908 : vector<1x128xf32>
    %cst_249 = arith.constant 0.020833334 : f32
    %913 = vector.broadcast %cst_249 : f32 to vector<1x128xf32>
    %914 = arith.mulf %913, %908 : vector<1x128xf32>
    %c3_250 = arith.constant 3 : index
    %c0_251 = arith.constant 0 : index
    %c0_252 = arith.constant 0 : index
    %915 = vector.load %arg7[%c3_250, %c0_251, %c0_252] : memref<4x16x128xf32, #tpu.memory_space<vmem>>, vector<1x16x128xf32>
    %916 = vector.shape_cast %915 : vector<1x16x128xf32> to vector<16x128xf32>
    %c0_i32_253 = arith.constant 0 : i32
    %cst_254 = arith.constant dense<0.000000e+00> : vector<16x128xf32>
    %917 = tpu.matmul %916, %904, %cst_254 {dimension_numbers = #tpu.dot_dimension_numbers<[1], [0], [0], [1], [0, 0, 1, 1], [], []>} : vector<16x128xf32>, vector<128x128xf32>, vector<16x128xf32> -> vector<16x128xf32>
    %918 = vector.broadcast %906 : vector<1x128xf32> to vector<16x128xf32>
    %919 = arith.addf %917, %918 : vector<16x128xf32>
    %920 = math.tanh %919 : vector<16x128xf32>
    %921 = vector.broadcast %910 : vector<1x128xf32> to vector<16x128xf32>
    %922 = arith.mulf %921, %920 : vector<16x128xf32>
    %923 = arith.addf %916, %922 : vector<16x128xf32>
    %cst_255 = arith.constant dense<0.000000e+00> : vector<16x128xf32>
    %924 = tpu.matmul %923, %904, %cst_255 {dimension_numbers = #tpu.dot_dimension_numbers<[1], [0], [0], [1], [0, 0, 1, 1], [], []>} : vector<16x128xf32>, vector<128x128xf32>, vector<16x128xf32> -> vector<16x128xf32>
    %925 = vector.broadcast %906 : vector<1x128xf32> to vector<16x128xf32>
    %926 = arith.addf %924, %925 : vector<16x128xf32>
    %927 = math.tanh %926 : vector<16x128xf32>
    %928 = vector.broadcast %910 : vector<1x128xf32> to vector<16x128xf32>
    %929 = arith.mulf %928, %927 : vector<16x128xf32>
    %930 = arith.addf %916, %929 : vector<16x128xf32>
    %cst_256 = arith.constant dense<0.000000e+00> : vector<16x128xf32>
    %931 = tpu.matmul %930, %904, %cst_256 {dimension_numbers = #tpu.dot_dimension_numbers<[1], [0], [0], [1], [0, 0, 1, 1], [], []>} : vector<16x128xf32>, vector<128x128xf32>, vector<16x128xf32> -> vector<16x128xf32>
    %932 = vector.broadcast %906 : vector<1x128xf32> to vector<16x128xf32>
    %933 = arith.addf %931, %932 : vector<16x128xf32>
    %934 = math.tanh %933 : vector<16x128xf32>
    %935 = vector.broadcast %912 : vector<1x128xf32> to vector<16x128xf32>
    %936 = arith.mulf %935, %934 : vector<16x128xf32>
    %937 = arith.addf %916, %936 : vector<16x128xf32>
    %cst_257 = arith.constant dense<0.000000e+00> : vector<16x128xf32>
    %938 = tpu.matmul %937, %904, %cst_257 {dimension_numbers = #tpu.dot_dimension_numbers<[1], [0], [0], [1], [0, 0, 1, 1], [], []>} : vector<16x128xf32>, vector<128x128xf32>, vector<16x128xf32> -> vector<16x128xf32>
    %939 = vector.broadcast %906 : vector<1x128xf32> to vector<16x128xf32>
    %940 = arith.addf %938, %939 : vector<16x128xf32>
    %941 = math.tanh %940 : vector<16x128xf32>
    %cst_258 = arith.constant 2.000000e+00 : f32
    %942 = vector.broadcast %cst_258 : f32 to vector<16x128xf32>
    %943 = arith.mulf %942, %927 : vector<16x128xf32>
    %944 = arith.addf %920, %943 : vector<16x128xf32>
    %cst_259 = arith.constant 2.000000e+00 : f32
    %945 = vector.broadcast %cst_259 : f32 to vector<16x128xf32>
    %946 = arith.mulf %945, %934 : vector<16x128xf32>
    %947 = arith.addf %944, %946 : vector<16x128xf32>
    %948 = arith.addf %947, %941 : vector<16x128xf32>
    %949 = vector.broadcast %914 : vector<1x128xf32> to vector<16x128xf32>
    %950 = arith.mulf %949, %948 : vector<16x128xf32>
    %951 = arith.addf %916, %950 : vector<16x128xf32>
    %c1_i32_260 = arith.constant 1 : i32
    %cst_261 = arith.constant dense<0.000000e+00> : vector<16x128xf32>
    %952 = tpu.matmul %951, %904, %cst_261 {dimension_numbers = #tpu.dot_dimension_numbers<[1], [0], [0], [1], [0, 0, 1, 1], [], []>} : vector<16x128xf32>, vector<128x128xf32>, vector<16x128xf32> -> vector<16x128xf32>
    %953 = vector.broadcast %906 : vector<1x128xf32> to vector<16x128xf32>
    %954 = arith.addf %952, %953 : vector<16x128xf32>
    %955 = math.tanh %954 : vector<16x128xf32>
    %956 = vector.broadcast %910 : vector<1x128xf32> to vector<16x128xf32>
    %957 = arith.mulf %956, %955 : vector<16x128xf32>
    %958 = arith.addf %951, %957 : vector<16x128xf32>
    %cst_262 = arith.constant dense<0.000000e+00> : vector<16x128xf32>
    %959 = tpu.matmul %958, %904, %cst_262 {dimension_numbers = #tpu.dot_dimension_numbers<[1], [0], [0], [1], [0, 0, 1, 1], [], []>} : vector<16x128xf32>, vector<128x128xf32>, vector<16x128xf32> -> vector<16x128xf32>
    %960 = vector.broadcast %906 : vector<1x128xf32> to vector<16x128xf32>
    %961 = arith.addf %959, %960 : vector<16x128xf32>
    %962 = math.tanh %961 : vector<16x128xf32>
    %963 = vector.broadcast %910 : vector<1x128xf32> to vector<16x128xf32>
    %964 = arith.mulf %963, %962 : vector<16x128xf32>
    %965 = arith.addf %951, %964 : vector<16x128xf32>
    %cst_263 = arith.constant dense<0.000000e+00> : vector<16x128xf32>
    %966 = tpu.matmul %965, %904, %cst_263 {dimension_numbers = #tpu.dot_dimension_numbers<[1], [0], [0], [1], [0, 0, 1, 1], [], []>} : vector<16x128xf32>, vector<128x128xf32>, vector<16x128xf32> -> vector<16x128xf32>
    %967 = vector.broadcast %906 : vector<1x128xf32> to vector<16x128xf32>
    %968 = arith.addf %966, %967 : vector<16x128xf32>
    %969 = math.tanh %968 : vector<16x128xf32>
    %970 = vector.broadcast %912 : vector<1x128xf32> to vector<16x128xf32>
    %971 = arith.mulf %970, %969 : vector<16x128xf32>
    %972 = arith.addf %951, %971 : vector<16x128xf32>
    %cst_264 = arith.constant dense<0.000000e+00> : vector<16x128xf32>
    %973 = tpu.matmul %972, %904, %cst_264 {dimension_numbers = #tpu.dot_dimension_numbers<[1], [0], [0], [1], [0, 0, 1, 1], [], []>} : vector<16x128xf32>, vector<128x128xf32>, vector<16x128xf32> -> vector<16x128xf32>
    %974 = vector.broadcast %906 : vector<1x128xf32> to vector<16x128xf32>
    %975 = arith.addf %973, %974 : vector<16x128xf32>
    %976 = math.tanh %975 : vector<16x128xf32>
    %cst_265 = arith.constant 2.000000e+00 : f32
    %977 = vector.broadcast %cst_265 : f32 to vector<16x128xf32>
    %978 = arith.mulf %977, %962 : vector<16x128xf32>
    %979 = arith.addf %955, %978 : vector<16x128xf32>
    %cst_266 = arith.constant 2.000000e+00 : f32
    %980 = vector.broadcast %cst_266 : f32 to vector<16x128xf32>
    %981 = arith.mulf %980, %969 : vector<16x128xf32>
    %982 = arith.addf %979, %981 : vector<16x128xf32>
    %983 = arith.addf %982, %976 : vector<16x128xf32>
    %984 = vector.broadcast %914 : vector<1x128xf32> to vector<16x128xf32>
    %985 = arith.mulf %984, %983 : vector<16x128xf32>
    %986 = arith.addf %951, %985 : vector<16x128xf32>
    %c2_i32_267 = arith.constant 2 : i32
    %cst_268 = arith.constant dense<0.000000e+00> : vector<16x128xf32>
    %987 = tpu.matmul %986, %904, %cst_268 {dimension_numbers = #tpu.dot_dimension_numbers<[1], [0], [0], [1], [0, 0, 1, 1], [], []>} : vector<16x128xf32>, vector<128x128xf32>, vector<16x128xf32> -> vector<16x128xf32>
    %988 = vector.broadcast %906 : vector<1x128xf32> to vector<16x128xf32>
    %989 = arith.addf %987, %988 : vector<16x128xf32>
    %990 = math.tanh %989 : vector<16x128xf32>
    %991 = vector.broadcast %910 : vector<1x128xf32> to vector<16x128xf32>
    %992 = arith.mulf %991, %990 : vector<16x128xf32>
    %993 = arith.addf %986, %992 : vector<16x128xf32>
    %cst_269 = arith.constant dense<0.000000e+00> : vector<16x128xf32>
    %994 = tpu.matmul %993, %904, %cst_269 {dimension_numbers = #tpu.dot_dimension_numbers<[1], [0], [0], [1], [0, 0, 1, 1], [], []>} : vector<16x128xf32>, vector<128x128xf32>, vector<16x128xf32> -> vector<16x128xf32>
    %995 = vector.broadcast %906 : vector<1x128xf32> to vector<16x128xf32>
    %996 = arith.addf %994, %995 : vector<16x128xf32>
    %997 = math.tanh %996 : vector<16x128xf32>
    %998 = vector.broadcast %910 : vector<1x128xf32> to vector<16x128xf32>
    %999 = arith.mulf %998, %997 : vector<16x128xf32>
    %1000 = arith.addf %986, %999 : vector<16x128xf32>
    %cst_270 = arith.constant dense<0.000000e+00> : vector<16x128xf32>
    %1001 = tpu.matmul %1000, %904, %cst_270 {dimension_numbers = #tpu.dot_dimension_numbers<[1], [0], [0], [1], [0, 0, 1, 1], [], []>} : vector<16x128xf32>, vector<128x128xf32>, vector<16x128xf32> -> vector<16x128xf32>
    %1002 = vector.broadcast %906 : vector<1x128xf32> to vector<16x128xf32>
    %1003 = arith.addf %1001, %1002 : vector<16x128xf32>
    %1004 = math.tanh %1003 : vector<16x128xf32>
    %1005 = vector.broadcast %912 : vector<1x128xf32> to vector<16x128xf32>
    %1006 = arith.mulf %1005, %1004 : vector<16x128xf32>
    %1007 = arith.addf %986, %1006 : vector<16x128xf32>
    %cst_271 = arith.constant dense<0.000000e+00> : vector<16x128xf32>
    %1008 = tpu.matmul %1007, %904, %cst_271 {dimension_numbers = #tpu.dot_dimension_numbers<[1], [0], [0], [1], [0, 0, 1, 1], [], []>} : vector<16x128xf32>, vector<128x128xf32>, vector<16x128xf32> -> vector<16x128xf32>
    %1009 = vector.broadcast %906 : vector<1x128xf32> to vector<16x128xf32>
    %1010 = arith.addf %1008, %1009 : vector<16x128xf32>
    %1011 = math.tanh %1010 : vector<16x128xf32>
    %cst_272 = arith.constant 2.000000e+00 : f32
    %1012 = vector.broadcast %cst_272 : f32 to vector<16x128xf32>
    %1013 = arith.mulf %1012, %997 : vector<16x128xf32>
    %1014 = arith.addf %990, %1013 : vector<16x128xf32>
    %cst_273 = arith.constant 2.000000e+00 : f32
    %1015 = vector.broadcast %cst_273 : f32 to vector<16x128xf32>
    %1016 = arith.mulf %1015, %1004 : vector<16x128xf32>
    %1017 = arith.addf %1014, %1016 : vector<16x128xf32>
    %1018 = arith.addf %1017, %1011 : vector<16x128xf32>
    %1019 = vector.broadcast %914 : vector<1x128xf32> to vector<16x128xf32>
    %1020 = arith.mulf %1019, %1018 : vector<16x128xf32>
    %1021 = arith.addf %986, %1020 : vector<16x128xf32>
    %c3_i32_274 = arith.constant 3 : i32
    %cst_275 = arith.constant dense<0.000000e+00> : vector<16x128xf32>
    %1022 = tpu.matmul %1021, %904, %cst_275 {dimension_numbers = #tpu.dot_dimension_numbers<[1], [0], [0], [1], [0, 0, 1, 1], [], []>} : vector<16x128xf32>, vector<128x128xf32>, vector<16x128xf32> -> vector<16x128xf32>
    %1023 = vector.broadcast %906 : vector<1x128xf32> to vector<16x128xf32>
    %1024 = arith.addf %1022, %1023 : vector<16x128xf32>
    %1025 = math.tanh %1024 : vector<16x128xf32>
    %1026 = vector.broadcast %910 : vector<1x128xf32> to vector<16x128xf32>
    %1027 = arith.mulf %1026, %1025 : vector<16x128xf32>
    %1028 = arith.addf %1021, %1027 : vector<16x128xf32>
    %cst_276 = arith.constant dense<0.000000e+00> : vector<16x128xf32>
    %1029 = tpu.matmul %1028, %904, %cst_276 {dimension_numbers = #tpu.dot_dimension_numbers<[1], [0], [0], [1], [0, 0, 1, 1], [], []>} : vector<16x128xf32>, vector<128x128xf32>, vector<16x128xf32> -> vector<16x128xf32>
    %1030 = vector.broadcast %906 : vector<1x128xf32> to vector<16x128xf32>
    %1031 = arith.addf %1029, %1030 : vector<16x128xf32>
    %1032 = math.tanh %1031 : vector<16x128xf32>
    %1033 = vector.broadcast %910 : vector<1x128xf32> to vector<16x128xf32>
    %1034 = arith.mulf %1033, %1032 : vector<16x128xf32>
    %1035 = arith.addf %1021, %1034 : vector<16x128xf32>
    %cst_277 = arith.constant dense<0.000000e+00> : vector<16x128xf32>
    %1036 = tpu.matmul %1035, %904, %cst_277 {dimension_numbers = #tpu.dot_dimension_numbers<[1], [0], [0], [1], [0, 0, 1, 1], [], []>} : vector<16x128xf32>, vector<128x128xf32>, vector<16x128xf32> -> vector<16x128xf32>
    %1037 = vector.broadcast %906 : vector<1x128xf32> to vector<16x128xf32>
    %1038 = arith.addf %1036, %1037 : vector<16x128xf32>
    %1039 = math.tanh %1038 : vector<16x128xf32>
    %1040 = vector.broadcast %912 : vector<1x128xf32> to vector<16x128xf32>
    %1041 = arith.mulf %1040, %1039 : vector<16x128xf32>
    %1042 = arith.addf %1021, %1041 : vector<16x128xf32>
    %cst_278 = arith.constant dense<0.000000e+00> : vector<16x128xf32>
    %1043 = tpu.matmul %1042, %904, %cst_278 {dimension_numbers = #tpu.dot_dimension_numbers<[1], [0], [0], [1], [0, 0, 1, 1], [], []>} : vector<16x128xf32>, vector<128x128xf32>, vector<16x128xf32> -> vector<16x128xf32>
    %1044 = vector.broadcast %906 : vector<1x128xf32> to vector<16x128xf32>
    %1045 = arith.addf %1043, %1044 : vector<16x128xf32>
    %1046 = math.tanh %1045 : vector<16x128xf32>
    %cst_279 = arith.constant 2.000000e+00 : f32
    %1047 = vector.broadcast %cst_279 : f32 to vector<16x128xf32>
    %1048 = arith.mulf %1047, %1032 : vector<16x128xf32>
    %1049 = arith.addf %1025, %1048 : vector<16x128xf32>
    %cst_280 = arith.constant 2.000000e+00 : f32
    %1050 = vector.broadcast %cst_280 : f32 to vector<16x128xf32>
    %1051 = arith.mulf %1050, %1039 : vector<16x128xf32>
    %1052 = arith.addf %1049, %1051 : vector<16x128xf32>
    %1053 = arith.addf %1052, %1046 : vector<16x128xf32>
    %1054 = vector.broadcast %914 : vector<1x128xf32> to vector<16x128xf32>
    %1055 = arith.mulf %1054, %1053 : vector<16x128xf32>
    %1056 = arith.addf %1021, %1055 : vector<16x128xf32>
    %c4_i32_281 = arith.constant 4 : i32
    %cst_282 = arith.constant dense<0.000000e+00> : vector<16x128xf32>
    %1057 = tpu.matmul %1056, %904, %cst_282 {dimension_numbers = #tpu.dot_dimension_numbers<[1], [0], [0], [1], [0, 0, 1, 1], [], []>} : vector<16x128xf32>, vector<128x128xf32>, vector<16x128xf32> -> vector<16x128xf32>
    %1058 = vector.broadcast %906 : vector<1x128xf32> to vector<16x128xf32>
    %1059 = arith.addf %1057, %1058 : vector<16x128xf32>
    %1060 = math.tanh %1059 : vector<16x128xf32>
    %1061 = vector.broadcast %910 : vector<1x128xf32> to vector<16x128xf32>
    %1062 = arith.mulf %1061, %1060 : vector<16x128xf32>
    %1063 = arith.addf %1056, %1062 : vector<16x128xf32>
    %cst_283 = arith.constant dense<0.000000e+00> : vector<16x128xf32>
    %1064 = tpu.matmul %1063, %904, %cst_283 {dimension_numbers = #tpu.dot_dimension_numbers<[1], [0], [0], [1], [0, 0, 1, 1], [], []>} : vector<16x128xf32>, vector<128x128xf32>, vector<16x128xf32> -> vector<16x128xf32>
    %1065 = vector.broadcast %906 : vector<1x128xf32> to vector<16x128xf32>
    %1066 = arith.addf %1064, %1065 : vector<16x128xf32>
    %1067 = math.tanh %1066 : vector<16x128xf32>
    %1068 = vector.broadcast %910 : vector<1x128xf32> to vector<16x128xf32>
    %1069 = arith.mulf %1068, %1067 : vector<16x128xf32>
    %1070 = arith.addf %1056, %1069 : vector<16x128xf32>
    %cst_284 = arith.constant dense<0.000000e+00> : vector<16x128xf32>
    %1071 = tpu.matmul %1070, %904, %cst_284 {dimension_numbers = #tpu.dot_dimension_numbers<[1], [0], [0], [1], [0, 0, 1, 1], [], []>} : vector<16x128xf32>, vector<128x128xf32>, vector<16x128xf32> -> vector<16x128xf32>
    %1072 = vector.broadcast %906 : vector<1x128xf32> to vector<16x128xf32>
    %1073 = arith.addf %1071, %1072 : vector<16x128xf32>
    %1074 = math.tanh %1073 : vector<16x128xf32>
    %1075 = vector.broadcast %912 : vector<1x128xf32> to vector<16x128xf32>
    %1076 = arith.mulf %1075, %1074 : vector<16x128xf32>
    %1077 = arith.addf %1056, %1076 : vector<16x128xf32>
    %cst_285 = arith.constant dense<0.000000e+00> : vector<16x128xf32>
    %1078 = tpu.matmul %1077, %904, %cst_285 {dimension_numbers = #tpu.dot_dimension_numbers<[1], [0], [0], [1], [0, 0, 1, 1], [], []>} : vector<16x128xf32>, vector<128x128xf32>, vector<16x128xf32> -> vector<16x128xf32>
    %1079 = vector.broadcast %906 : vector<1x128xf32> to vector<16x128xf32>
    %1080 = arith.addf %1078, %1079 : vector<16x128xf32>
    %1081 = math.tanh %1080 : vector<16x128xf32>
    %cst_286 = arith.constant 2.000000e+00 : f32
    %1082 = vector.broadcast %cst_286 : f32 to vector<16x128xf32>
    %1083 = arith.mulf %1082, %1067 : vector<16x128xf32>
    %1084 = arith.addf %1060, %1083 : vector<16x128xf32>
    %cst_287 = arith.constant 2.000000e+00 : f32
    %1085 = vector.broadcast %cst_287 : f32 to vector<16x128xf32>
    %1086 = arith.mulf %1085, %1074 : vector<16x128xf32>
    %1087 = arith.addf %1084, %1086 : vector<16x128xf32>
    %1088 = arith.addf %1087, %1081 : vector<16x128xf32>
    %1089 = vector.broadcast %914 : vector<1x128xf32> to vector<16x128xf32>
    %1090 = arith.mulf %1089, %1088 : vector<16x128xf32>
    %1091 = arith.addf %1056, %1090 : vector<16x128xf32>
    %c5_i32_288 = arith.constant 5 : i32
    %cst_289 = arith.constant dense<0.000000e+00> : vector<16x128xf32>
    %1092 = tpu.matmul %1091, %904, %cst_289 {dimension_numbers = #tpu.dot_dimension_numbers<[1], [0], [0], [1], [0, 0, 1, 1], [], []>} : vector<16x128xf32>, vector<128x128xf32>, vector<16x128xf32> -> vector<16x128xf32>
    %1093 = vector.broadcast %906 : vector<1x128xf32> to vector<16x128xf32>
    %1094 = arith.addf %1092, %1093 : vector<16x128xf32>
    %1095 = math.tanh %1094 : vector<16x128xf32>
    %1096 = vector.broadcast %910 : vector<1x128xf32> to vector<16x128xf32>
    %1097 = arith.mulf %1096, %1095 : vector<16x128xf32>
    %1098 = arith.addf %1091, %1097 : vector<16x128xf32>
    %cst_290 = arith.constant dense<0.000000e+00> : vector<16x128xf32>
    %1099 = tpu.matmul %1098, %904, %cst_290 {dimension_numbers = #tpu.dot_dimension_numbers<[1], [0], [0], [1], [0, 0, 1, 1], [], []>} : vector<16x128xf32>, vector<128x128xf32>, vector<16x128xf32> -> vector<16x128xf32>
    %1100 = vector.broadcast %906 : vector<1x128xf32> to vector<16x128xf32>
    %1101 = arith.addf %1099, %1100 : vector<16x128xf32>
    %1102 = math.tanh %1101 : vector<16x128xf32>
    %1103 = vector.broadcast %910 : vector<1x128xf32> to vector<16x128xf32>
    %1104 = arith.mulf %1103, %1102 : vector<16x128xf32>
    %1105 = arith.addf %1091, %1104 : vector<16x128xf32>
    %cst_291 = arith.constant dense<0.000000e+00> : vector<16x128xf32>
    %1106 = tpu.matmul %1105, %904, %cst_291 {dimension_numbers = #tpu.dot_dimension_numbers<[1], [0], [0], [1], [0, 0, 1, 1], [], []>} : vector<16x128xf32>, vector<128x128xf32>, vector<16x128xf32> -> vector<16x128xf32>
    %1107 = vector.broadcast %906 : vector<1x128xf32> to vector<16x128xf32>
    %1108 = arith.addf %1106, %1107 : vector<16x128xf32>
    %1109 = math.tanh %1108 : vector<16x128xf32>
    %1110 = vector.broadcast %912 : vector<1x128xf32> to vector<16x128xf32>
    %1111 = arith.mulf %1110, %1109 : vector<16x128xf32>
    %1112 = arith.addf %1091, %1111 : vector<16x128xf32>
    %cst_292 = arith.constant dense<0.000000e+00> : vector<16x128xf32>
    %1113 = tpu.matmul %1112, %904, %cst_292 {dimension_numbers = #tpu.dot_dimension_numbers<[1], [0], [0], [1], [0, 0, 1, 1], [], []>} : vector<16x128xf32>, vector<128x128xf32>, vector<16x128xf32> -> vector<16x128xf32>
    %1114 = vector.broadcast %906 : vector<1x128xf32> to vector<16x128xf32>
    %1115 = arith.addf %1113, %1114 : vector<16x128xf32>
    %1116 = math.tanh %1115 : vector<16x128xf32>
    %cst_293 = arith.constant 2.000000e+00 : f32
    %1117 = vector.broadcast %cst_293 : f32 to vector<16x128xf32>
    %1118 = arith.mulf %1117, %1102 : vector<16x128xf32>
    %1119 = arith.addf %1095, %1118 : vector<16x128xf32>
    %cst_294 = arith.constant 2.000000e+00 : f32
    %1120 = vector.broadcast %cst_294 : f32 to vector<16x128xf32>
    %1121 = arith.mulf %1120, %1109 : vector<16x128xf32>
    %1122 = arith.addf %1119, %1121 : vector<16x128xf32>
    %1123 = arith.addf %1122, %1116 : vector<16x128xf32>
    %1124 = vector.broadcast %914 : vector<1x128xf32> to vector<16x128xf32>
    %1125 = arith.mulf %1124, %1123 : vector<16x128xf32>
    %1126 = arith.addf %1091, %1125 : vector<16x128xf32>
    %c6_i32_295 = arith.constant 6 : i32
    %cst_296 = arith.constant dense<0.000000e+00> : vector<16x128xf32>
    %1127 = tpu.matmul %1126, %904, %cst_296 {dimension_numbers = #tpu.dot_dimension_numbers<[1], [0], [0], [1], [0, 0, 1, 1], [], []>} : vector<16x128xf32>, vector<128x128xf32>, vector<16x128xf32> -> vector<16x128xf32>
    %1128 = vector.broadcast %906 : vector<1x128xf32> to vector<16x128xf32>
    %1129 = arith.addf %1127, %1128 : vector<16x128xf32>
    %1130 = math.tanh %1129 : vector<16x128xf32>
    %1131 = vector.broadcast %910 : vector<1x128xf32> to vector<16x128xf32>
    %1132 = arith.mulf %1131, %1130 : vector<16x128xf32>
    %1133 = arith.addf %1126, %1132 : vector<16x128xf32>
    %cst_297 = arith.constant dense<0.000000e+00> : vector<16x128xf32>
    %1134 = tpu.matmul %1133, %904, %cst_297 {dimension_numbers = #tpu.dot_dimension_numbers<[1], [0], [0], [1], [0, 0, 1, 1], [], []>} : vector<16x128xf32>, vector<128x128xf32>, vector<16x128xf32> -> vector<16x128xf32>
    %1135 = vector.broadcast %906 : vector<1x128xf32> to vector<16x128xf32>
    %1136 = arith.addf %1134, %1135 : vector<16x128xf32>
    %1137 = math.tanh %1136 : vector<16x128xf32>
    %1138 = vector.broadcast %910 : vector<1x128xf32> to vector<16x128xf32>
    %1139 = arith.mulf %1138, %1137 : vector<16x128xf32>
    %1140 = arith.addf %1126, %1139 : vector<16x128xf32>
    %cst_298 = arith.constant dense<0.000000e+00> : vector<16x128xf32>
    %1141 = tpu.matmul %1140, %904, %cst_298 {dimension_numbers = #tpu.dot_dimension_numbers<[1], [0], [0], [1], [0, 0, 1, 1], [], []>} : vector<16x128xf32>, vector<128x128xf32>, vector<16x128xf32> -> vector<16x128xf32>
    %1142 = vector.broadcast %906 : vector<1x128xf32> to vector<16x128xf32>
    %1143 = arith.addf %1141, %1142 : vector<16x128xf32>
    %1144 = math.tanh %1143 : vector<16x128xf32>
    %1145 = vector.broadcast %912 : vector<1x128xf32> to vector<16x128xf32>
    %1146 = arith.mulf %1145, %1144 : vector<16x128xf32>
    %1147 = arith.addf %1126, %1146 : vector<16x128xf32>
    %cst_299 = arith.constant dense<0.000000e+00> : vector<16x128xf32>
    %1148 = tpu.matmul %1147, %904, %cst_299 {dimension_numbers = #tpu.dot_dimension_numbers<[1], [0], [0], [1], [0, 0, 1, 1], [], []>} : vector<16x128xf32>, vector<128x128xf32>, vector<16x128xf32> -> vector<16x128xf32>
    %1149 = vector.broadcast %906 : vector<1x128xf32> to vector<16x128xf32>
    %1150 = arith.addf %1148, %1149 : vector<16x128xf32>
    %1151 = math.tanh %1150 : vector<16x128xf32>
    %cst_300 = arith.constant 2.000000e+00 : f32
    %1152 = vector.broadcast %cst_300 : f32 to vector<16x128xf32>
    %1153 = arith.mulf %1152, %1137 : vector<16x128xf32>
    %1154 = arith.addf %1130, %1153 : vector<16x128xf32>
    %cst_301 = arith.constant 2.000000e+00 : f32
    %1155 = vector.broadcast %cst_301 : f32 to vector<16x128xf32>
    %1156 = arith.mulf %1155, %1144 : vector<16x128xf32>
    %1157 = arith.addf %1154, %1156 : vector<16x128xf32>
    %1158 = arith.addf %1157, %1151 : vector<16x128xf32>
    %1159 = vector.broadcast %914 : vector<1x128xf32> to vector<16x128xf32>
    %1160 = arith.mulf %1159, %1158 : vector<16x128xf32>
    %1161 = arith.addf %1126, %1160 : vector<16x128xf32>
    %c7_i32_302 = arith.constant 7 : i32
    %cst_303 = arith.constant dense<0.000000e+00> : vector<16x128xf32>
    %1162 = tpu.matmul %1161, %904, %cst_303 {dimension_numbers = #tpu.dot_dimension_numbers<[1], [0], [0], [1], [0, 0, 1, 1], [], []>} : vector<16x128xf32>, vector<128x128xf32>, vector<16x128xf32> -> vector<16x128xf32>
    %1163 = vector.broadcast %906 : vector<1x128xf32> to vector<16x128xf32>
    %1164 = arith.addf %1162, %1163 : vector<16x128xf32>
    %1165 = math.tanh %1164 : vector<16x128xf32>
    %1166 = vector.broadcast %910 : vector<1x128xf32> to vector<16x128xf32>
    %1167 = arith.mulf %1166, %1165 : vector<16x128xf32>
    %1168 = arith.addf %1161, %1167 : vector<16x128xf32>
    %cst_304 = arith.constant dense<0.000000e+00> : vector<16x128xf32>
    %1169 = tpu.matmul %1168, %904, %cst_304 {dimension_numbers = #tpu.dot_dimension_numbers<[1], [0], [0], [1], [0, 0, 1, 1], [], []>} : vector<16x128xf32>, vector<128x128xf32>, vector<16x128xf32> -> vector<16x128xf32>
    %1170 = vector.broadcast %906 : vector<1x128xf32> to vector<16x128xf32>
    %1171 = arith.addf %1169, %1170 : vector<16x128xf32>
    %1172 = math.tanh %1171 : vector<16x128xf32>
    %1173 = vector.broadcast %910 : vector<1x128xf32> to vector<16x128xf32>
    %1174 = arith.mulf %1173, %1172 : vector<16x128xf32>
    %1175 = arith.addf %1161, %1174 : vector<16x128xf32>
    %cst_305 = arith.constant dense<0.000000e+00> : vector<16x128xf32>
    %1176 = tpu.matmul %1175, %904, %cst_305 {dimension_numbers = #tpu.dot_dimension_numbers<[1], [0], [0], [1], [0, 0, 1, 1], [], []>} : vector<16x128xf32>, vector<128x128xf32>, vector<16x128xf32> -> vector<16x128xf32>
    %1177 = vector.broadcast %906 : vector<1x128xf32> to vector<16x128xf32>
    %1178 = arith.addf %1176, %1177 : vector<16x128xf32>
    %1179 = math.tanh %1178 : vector<16x128xf32>
    %1180 = vector.broadcast %912 : vector<1x128xf32> to vector<16x128xf32>
    %1181 = arith.mulf %1180, %1179 : vector<16x128xf32>
    %1182 = arith.addf %1161, %1181 : vector<16x128xf32>
    %cst_306 = arith.constant dense<0.000000e+00> : vector<16x128xf32>
    %1183 = tpu.matmul %1182, %904, %cst_306 {dimension_numbers = #tpu.dot_dimension_numbers<[1], [0], [0], [1], [0, 0, 1, 1], [], []>} : vector<16x128xf32>, vector<128x128xf32>, vector<16x128xf32> -> vector<16x128xf32>
    %1184 = vector.broadcast %906 : vector<1x128xf32> to vector<16x128xf32>
    %1185 = arith.addf %1183, %1184 : vector<16x128xf32>
    %1186 = math.tanh %1185 : vector<16x128xf32>
    %cst_307 = arith.constant 2.000000e+00 : f32
    %1187 = vector.broadcast %cst_307 : f32 to vector<16x128xf32>
    %1188 = arith.mulf %1187, %1172 : vector<16x128xf32>
    %1189 = arith.addf %1165, %1188 : vector<16x128xf32>
    %cst_308 = arith.constant 2.000000e+00 : f32
    %1190 = vector.broadcast %cst_308 : f32 to vector<16x128xf32>
    %1191 = arith.mulf %1190, %1179 : vector<16x128xf32>
    %1192 = arith.addf %1189, %1191 : vector<16x128xf32>
    %1193 = arith.addf %1192, %1186 : vector<16x128xf32>
    %1194 = vector.broadcast %914 : vector<1x128xf32> to vector<16x128xf32>
    %1195 = arith.mulf %1194, %1193 : vector<16x128xf32>
    %1196 = arith.addf %1161, %1195 : vector<16x128xf32>
    %c3_309 = arith.constant 3 : index
    %c0_310 = arith.constant 0 : index
    %c0_311 = arith.constant 0 : index
    %1197 = vector.load %arg7[%c3_309, %c0_310, %c0_311] : memref<4x16x128xf32, #tpu.memory_space<vmem>>, vector<1x16x128xf32>
    %1198 = vector.shape_cast %1197 : vector<1x16x128xf32> to vector<16x128xf32>
    %1199 = vector.shape_cast %1196 : vector<16x128xf32> to vector<1x16x128xf32>
    tpu.vector_store %arg7[%c3_309, %c0_310, %c0_311], %1199 {strides = array<i32>} : memref<4x16x128xf32, #tpu.memory_space<vmem>>, vector<1x16x128xf32>,
    %c0_312 = arith.constant 0 : index
    %c0_313 = arith.constant 0 : index
    %c3_314 = arith.constant 3 : index
    %c0_315 = arith.constant 0 : index
    %c0_316 = arith.constant 0 : index
    %1200 = vector.load %arg6[%c0_312, %c0_313, %c3_314, %c0_315, %c0_316] : memref<1x1x4x16x128xf32, #tpu.memory_space<vmem>>, vector<1x1x1x16x128xf32>
    %1201 = vector.shape_cast %1200 : vector<1x1x1x16x128xf32> to vector<16x128xf32>
    %1202 = vector.shape_cast %1196 : vector<16x128xf32> to vector<1x1x1x16x128xf32>
    tpu.vector_store %arg6[%c0_312, %c0_313, %c3_314, %c0_315, %c0_316], %1202 {strides = array<i32>} : memref<1x1x4x16x128xf32, #tpu.memory_space<vmem>>, vector<1x1x1x16x128xf32>,
    return
  }
  func.func @transform_0(%arg0: i32, %arg1: i32) -> (i32, i32, i32, i32) {
    %c0_i32 = arith.constant 0 : i32
    %c0_i32_0 = arith.constant 0 : i32
    %c0_i32_1 = arith.constant 0 : i32
    %c0_i32_2 = arith.constant 0 : i32
    return %arg0, %c0_i32, %c0_i32_0, %c0_i32_1 : i32, i32, i32, i32
  }
  func.func @transform_1(%arg0: i32, %arg1: i32) -> (i32, i32, i32, i32) {
    %c0_i32 = arith.constant 0 : i32
    %c0_i32_0 = arith.constant 0 : i32
    %c0_i32_1 = arith.constant 0 : i32
    %c0_i32_2 = arith.constant 0 : i32
    return %arg0, %c0_i32, %c0_i32_0, %c0_i32_1 : i32, i32, i32, i32
  }
  func.func @transform_2(%arg0: i32, %arg1: i32) -> (i32, i32, i32, i32) {
    %c0_i32 = arith.constant 0 : i32
    %c0_i32_0 = arith.constant 0 : i32
    %c0_i32_1 = arith.constant 0 : i32
    %c0_i32_2 = arith.constant 0 : i32
    return %arg0, %c0_i32, %c0_i32_0, %c0_i32_1 : i32, i32, i32, i32
  }
  func.func @transform_3(%arg0: i32, %arg1: i32) -> (i32, i32, i32, i32, i32) {
    %c0_i32 = arith.constant 0 : i32
    %c0_i32_0 = arith.constant 0 : i32
    %c0_i32_1 = arith.constant 0 : i32
    %c0_i32_2 = arith.constant 0 : i32
    return %arg0, %arg1, %c0_i32, %c0_i32_0, %c0_i32_1 : i32, i32, i32, i32, i32
  }
  func.func @transform_4(%arg0: i32, %arg1: i32) -> (i32, i32, i32, i32, i32) {
    %c0_i32 = arith.constant 0 : i32
    %c0_i32_0 = arith.constant 0 : i32
    %c0_i32_1 = arith.constant 0 : i32
    %c0_i32_2 = arith.constant 0 : i32
    return %arg0, %arg1, %c0_i32, %c0_i32_0, %c0_i32_1 : i32, i32, i32, i32, i32
  }
}

</mosaic_0001>

<bundles_post_ra>
// kernel: tpu_custom_call.1
= control target key start
LH: loop header
LB: loop body
LE: loop exit
PB: predicated region body
PF: predicated region fallthrough
CT: control target
= control target key end

     0   :  { %s9767_s0 = inlined_call_operand.hbm [shape: f32[1,4,16,128], index: 0, kind: input, shape index: {}]   ;;  %s9768_s1 = inlined_call_operand.hbm [shape: f32[1,4,32,128], index: 1, kind: input, shape index: {}]   ;;  %s9769_s2 = inlined_call_operand.hbm [shape: f32[1,4,1,128], index: 2, kind: input, shape index: {}]   ;;  %s9770_s3 = inlined_call_operand.hbm [shape: f32[1,4,4,1,128], index: 3, kind: input, shape index: {}]   ;;  %s9771_s4 = inlined_call_operand.hbm [shape: f32[1,4,4,16,128], index: 4, kind: output, shape index: {}]  }
   0x1   :  { %9774 = sst [smem:[#allocation17_spill]] %s9767_s0 }
   0x2   :  { %9775 = sst [smem:[#allocation18_spill]] %s9768_s1 }
   0x3   :  { %9 = vsyncpa [#allocation5], 0 }
   0x4   :  { %10 = vsyncpa [#allocation8], 0 }
   0x5   :  { %11 = vsyncpa [#allocation11], 0 }
   0x6   :  { %13 = vsyncpa [#allocation11 + $0x1], 0 }
   0x7   :  { %14 = vsyncpa [#allocation6], 0 }
   0x8   :  { %16 = vsyncpa [#allocation6 + $0x1], 0  ;;  %s5839_s15 = smov 0   ;;  %s5841_s16 = smov 0  }
   0x9   :  { %s5843_s17 = smov 0   ;;  %s5845_s18 = smov 0  }
   0xa   :  { %s5847_s19 = smov 0   ;;  %s5849_s20 = smov 0  }
   0xb LB: > { %s4874_s21 = sadd.s32 4294967295, %s5802_s20   ;;  %s4875_s22 = sadd.s32 4294967294, %s5802_s20   ;;  %s5802_s20 = sphi %s5849_s20, %s22_s20   ;;  %s5798_s19 = sphi %s5847_s19, %s9792_s19   ;;  %s5794_s18 = sphi %s5845_s18, %s9791_s18   ;;  %s5790_s17 = sphi %s5843_s17, %s9790_s17   ;;  %s5786_s16 = sphi %s5841_s16, %s9789_s16   ;;  %s5782_s15 = sphi %s5839_s15, %s9788_s15  }
   0xc   : > { %p134_p0 = scmp.ne.s32.totalorder %s5786_s16, %s5782_s15  ;;  %p5873_p1 = scmp.eq.s32.totalorder %s4874_s21, 0 }
   0xd   : > { %p5877_p2 = scmp.eq.s32.totalorder %s4874_s21, 3  ;;  %p166_p3 = scmp.eq.s32.totalorder %s4875_s22, 3 }
   0xe   : > { %p5883_p4 = por %p5873_p1, %p134_p0  ;;  %p4876_p5 = scmp.ge.s32.totalorder %s5802_s20, 1 }
   0xf   : > { %p5888_p6 = por %p166_p3, %p134_p0  ;;  %p173_p7 = scmp.lt.s32.totalorder %s5802_s20, 5 }
  0x10   : > { %s9781_s1 = sld [smem:[#allocation18_spill]]  ;;  %s5804_s5 = smov [#allocation7]  }
  0x11   : > { %p5893_p8 = pnand %p4876_p5, %p173_p7  ;;  %s206_s6 = sshll.u32 %s5804_s5, 4  ;;  %s207_s6 = int_to_ptr.vmem [resolvable:$true] %s206_s6 }
  0x12   : > { %s9783_s0 = sld [smem:[#allocation17_spill]]  ;;  %s5805_s11 = smov 128  }
  0x13   : > { %p4921_p9 = pneg %p5893_p8  ;;  %s5806_s12 = smov 8  }
  0x14   : > { %s5807_s13 = smov [#allocation4]   ;;  %s220_s28 = sshll.u32 %s9769_s2, 4  ;;  %s221_s28 = int_to_ptr.hbm [resolvable:$true] %s220_s28 }
  0x15   : > { %p5904_p10 = pnand %p4921_p9, %p5873_p1  ;;  %s189_s14 = sshll.u32 %s5807_s13, 4  ;;  %s190_s14 = int_to_ptr.vmem [resolvable:$true] %s189_s14 }
  0x16   : > { %s204_s30 = sshll.u32 %s9781_s1, 4  ;;  %s5808_s29 = smov [#allocation9]   ;;  %s205_s30 = int_to_ptr.hbm [resolvable:$true] %s204_s30 }
  0x17   : > { %4927 = dma.hbm_to_vmem [thread:$0]  (!%p5904_p10), %s205_s30, 2048, %s207_s6, [#allocation8], %s5805_s11, %s5805_s11, %s5806_s12  }
  0x18   : > { %s187_s10 = sshll.u32 %s9783_s0, 4  ;;  %s222_s30 = sshll.u32 %s5808_s29, 4  ;;  %s188_s10 = int_to_ptr.hbm [resolvable:$true] %s187_s10  ;;  %s223_s30 = int_to_ptr.vmem [resolvable:$true] %s222_s30 }
  0x19   : > { %4924 = dma.hbm_to_vmem [thread:$0]  (!%p5904_p10), %s188_s10, 1024, %s190_s14, [#allocation5], %s5805_s11, %s5805_s11, %s5806_s12  }
  0x1a   : > { %s9772_s5 = smov 16   ;;  %s9773_s6 = smov 1  }
  0x1b   : > { %4930 = dma.hbm_to_vmem [thread:$0]  (!%p5904_p10), %s221_s28, 64, %s223_s30, [#allocation8], %s9772_s5, %s9772_s5, %s9773_s6  }
  0x1c   : > { %s121_s8 = sadd.s32 1, %s5790_s17  ;;  %s31_s9 = sadd.s32 1, %s5798_s19 }
  0x1d   : > { %p128_p11 = scmp.ne.s32.totalorder %s5790_s17, %s5786_s16  ;;  %p32_p12 = scmp.ge.s32.totalorder %s31_s9, 4 }
  0x1e   : > { %p129_p13 = scmp.eq.s32.totalorder %s5802_s20, 0  ;;  %p4942_p3 = scmp.lt.s32.totalorder %s5802_s20, 4 }
  0x1f   : > { %p5930_p0 = por %p5877_p2, %p128_p11  ;;  %s9794_s9 = smov (%p32_p12, %s31_s9), 0 }
  0x20   : > { %p5937_p5 = por %p129_p13, %p128_p11  ;;  %s236_s11 = sand.u32 1, %s5790_s17  }
  0x21   : > { %s117_s12 = ssub.s32 %s5798_s19, %s9794_s9  ;;  %s4881_s13 = sshll.u32 %s236_s11, 2 }
  0x22   : > { %p119_p7 = scmp.eq.s32.totalorder %s117_s12, 0  ;;  %s4882_s14 = sshll.u32 %s5798_s19, 2 }
  0x23   : > { %s246_s28 = scalar_lea.hbm %s9770_s3, %s4882_s14  ;;  %s240_s29 = scalar_lea.vmem [#allocation10], %s4881_s13 }
  0x24   : > { %s5946_s24 = scalar_select %p119_p7, %s5790_s17, %s121_s8  }
  0x25   : > { %s249_s30 = sshll.u32 %s240_s29, 4  ;;  %s247_s5 = sshll.u32 %s246_s28, 4  ;;  %s250_s30 = int_to_ptr.vmem [resolvable:$true] %s249_s30  ;;  %s248_s5 = int_to_ptr.hbm [resolvable:$true] %s247_s5 }
  0x26   : > { %p4932_p2 = pnand %p4942_p3, %p5937_p5  ;;  %s237_s6 = scalar_lea.sflag [#allocation11], %s236_s11 }
  0x27   : > { %s9786_s0 = smov 1   ;;  %s9787_s1 = smov 16  }
  0x28   : > { %4934 = dma.hbm_to_vmem [thread:$0]  (!%p4932_p2), %s248_s5, 64, %s250_s30, %s237_s6, %s9787_s1, %s9787_s1, %s9786_s0  }
  0x29   : > { %261 = sbr.rel (%p5893_p8) target bundleno = 16820 (0x41b4), region = 36 }
  0x2e   : > { %5765 = dma.done.wait (%p5873_p1), [#allocation5], 1024  }
  0x2f   : > { %5767 = vsyncadd (%p5873_p1), [#allocation5], 4294966272 }
  0x30   : > { %5769 = dma.done.wait (%p5873_p1), [#allocation8], 2112  }
  0x31   : > { %5771 = vsyncadd (%p5873_p1), [#allocation8], 4294965184  ;;  %s5969_s8 = sand.u32 1, %s5786_s16  }
  0x32   : > { %s4887_s0 = sshll.u32 %s5969_s8, 2  ;;  %s279_s1 = scalar_lea.sflag [#allocation11], %s5969_s8 }
  0x33   : > { %s5973_s27 = scalar_lea.vmem [#allocation10], %s4887_s0 }
  0x34   : > { %5773 = dma.done.wait (%p5883_p4), %s279_s1, 64  }
  0x35   : > { %5775 = vsyncadd (%p5883_p4), %s279_s1, 4294967232  ;;  %s4888_s5 = sshll.u32 %s5969_s8, 6  ;;  %p4889_p1 = scmp.ne.s32.totalorder %s5794_s18, 0 }
  0x36   : > { %s5980_s6 = scalar_lea.vmem [#allocation12], %s4888_s5 }
  0x37   : > { %311 = sbr.rel (%p4889_p1) target bundleno = 197 (0xc5), region = 56 }
  0x3c   : > { %v5811_v0 = vmov 0.0   ;;  %v312_v1 = vld [vmem:[#allocation4] sm:$0xff]  ;;  %v313_v2 = vld [vmem:[#allocation4 + $0x8] sm:$0xff]  ;;  %v314_v3 = vld [vmem:[#allocation4 + $0x10] sm:$0xff]  ;;  %vm396_vm0 = vcmask 261120   ;;  %vm405_vm1 = vcmask 523520  }
  0x3d   : > { %328 = vst [vmem:[#allocation3] sm:$0xff] %v5811_v0  ;;  %v315_v4 = vld [vmem:[#allocation4 + $0x18] sm:$0xff]  ;;  %v316_v5 = vld [vmem:[#allocation4 + $0x20] sm:$0xff]  ;;  %v317_v6 = vld [vmem:[#allocation4 + $0x28] sm:$0xff]  ;;  %vm414_vm2 = vcmask 785920   ;;  %vm423_vm3 = vcmask 1048320  }
  0x3e   : > { %329 = vst [vmem:[#allocation3 + $0x8] sm:$0xff] %v5811_v0  ;;  %v318_v7 = vld [vmem:[#allocation4 + $0x30] sm:$0xff]  ;;  %v319_v8 = vld [vmem:[#allocation4 + $0x38] sm:$0xff]  ;;  %v392_v9 = vld [vmem:[#allocation7] sm:$0xff] }
  0x3f   : > { %330 = vst [vmem:[#allocation3 + $0x10] sm:$0xff] %v5811_v0  ;;  %v393_v10 = vld [vmem:[#allocation7 + $0x8] sm:$0xff]  ;;  %v394_v11 = vld [vmem:[#allocation7 + $0x10] sm:$0xff]  ;;  %v395_v12 = vld [vmem:[#allocation7 + $0x18] sm:$0xff] }
  0x40   : > { %331 = vst [vmem:[#allocation3 + $0x18] sm:$0xff] %v5811_v0  ;;  %v429_v13 = vld [vmem:[#allocation7 + $0x20] sm:$0xff]  ;;  %v430_v14 = vld [vmem:[#allocation7 + $0x28] sm:$0xff]  ;;  %v431_v15 = vld [vmem:[#allocation7 + $0x30] sm:$0xff] }
  0x41   : > { %332 = vst [vmem:[#allocation3 + $0x20] sm:$0xff] %v5811_v0  ;;  %v432_v16 = vld [vmem:[#allocation7 + $0x38] sm:$0xff]  ;;  %v463_v17 = vld [vmem:[#allocation7 + $0x40] sm:$0xff]  ;;  %v464_v18 = vld [vmem:[#allocation7 + $0x48] sm:$0xff] }
  0x42   : > { %333 = vst [vmem:[#allocation3 + $0x28] sm:$0xff] %v5811_v0  ;;  %v465_v19 = vld [vmem:[#allocation7 + $0x50] sm:$0xff]  ;;  %v466_v20 = vld [vmem:[#allocation7 + $0x58] sm:$0xff]  ;;  %v497_v21 = vld [vmem:[#allocation7 + $0x60] sm:$0xff] }
  0x43   : > { %334 = vst [vmem:[#allocation3 + $0x30] sm:$0xff] %v5811_v0  ;;  %v498_v22 = vld [vmem:[#allocation7 + $0x68] sm:$0xff]  ;;  %v499_v23 = vld [vmem:[#allocation7 + $0x70] sm:$0xff]  ;;  %v500_v24 = vld [vmem:[#allocation7 + $0x78] sm:$0xff] }
  0x44   : > { %335 = vst [vmem:[#allocation3 + $0x38] sm:$0xff] %v5811_v0 }
  0x45   : > { %336 = vst [vmem:[#allocation3 + $0x40] sm:$0xff] %v5811_v0 }
  0x46   : > { %337 = vst [vmem:[#allocation3 + $0x48] sm:$0xff] %v5811_v0 }
  0x47   : > { %338 = vst [vmem:[#allocation3 + $0x50] sm:$0xff] %v5811_v0 }
  0x48   : > { %339 = vst [vmem:[#allocation3 + $0x58] sm:$0xff] %v5811_v0 }
  0x49   : > { %340 = vst [vmem:[#allocation3 + $0x60] sm:$0xff] %v5811_v0 }
  0x4a   : > { %341 = vst [vmem:[#allocation3 + $0x68] sm:$0xff] %v5811_v0 }
  0x4b   : > { %342 = vst [vmem:[#allocation3 + $0x70] sm:$0xff] %v5811_v0 }
  0x4c   : > { %343 = vst [vmem:[#allocation3 + $0x78] sm:$0xff] %v5811_v0 }
  0x4d   : > { %344 = vst [vmem:[#allocation3 + $0x80] sm:$0xff] %v5811_v0 }
  0x4e   : > { %345 = vst [vmem:[#allocation3 + $0x88] sm:$0xff] %v5811_v0 }
  0x4f   : > { %346 = vst [vmem:[#allocation3 + $0x90] sm:$0xff] %v5811_v0 }
  0x50   : > { %347 = vst [vmem:[#allocation3 + $0x98] sm:$0xff] %v5811_v0 }
  0x51   : > { %348 = vst [vmem:[#allocation3 + $0xa0] sm:$0xff] %v5811_v0 }
  0x52   : > { %349 = vst [vmem:[#allocation3 + $0xa8] sm:$0xff] %v5811_v0 }
  0x53   : > { %350 = vst [vmem:[#allocation3 + $0xb0] sm:$0xff] %v5811_v0 }
  0x54   : > { %351 = vst [vmem:[#allocation3 + $0xb8] sm:$0xff] %v5811_v0 }
  0x55   : > { %352 = vst [vmem:[#allocation3 + $0xc0] sm:$0xff] %v5811_v0 }
  0x56   : > { %353 = vst [vmem:[#allocation3 + $0xc8] sm:$0xff] %v5811_v0 }
  0x57   : > { %354 = vst [vmem:[#allocation3 + $0xd0] sm:$0xff] %v5811_v0 }
  0x58   : > { %355 = vst [vmem:[#allocation3 + $0xd8] sm:$0xff] %v5811_v0 }
  0x59   : > { %356 = vst [vmem:[#allocation3 + $0xe0] sm:$0xff] %v5811_v0 }
  0x5a   : > { %357 = vst [vmem:[#allocation3 + $0xe8] sm:$0xff] %v5811_v0 }
  0x5b   : > { %358 = vst [vmem:[#allocation3 + $0xf0] sm:$0xff] %v5811_v0 }
  0x5c   : > { %359 = vst [vmem:[#allocation3 + $0xf8] sm:$0xff] %v5811_v0 }
  0x5d   : > { %360 = vst [vmem:[#allocation3 + $0x100] sm:$0xff] %v5811_v0 }
  0x5e   : > { %361 = vst [vmem:[#allocation3 + $0x108] sm:$0xff] %v5811_v0 }
  0x5f   : > { %362 = vst [vmem:[#allocation3 + $0x110] sm:$0xff] %v5811_v0 }
  0x60   : > { %363 = vst [vmem:[#allocation3 + $0x118] sm:$0xff] %v5811_v0 }
  0x61   : > { %364 = vst [vmem:[#allocation3 + $0x120] sm:$0xff] %v5811_v0 }
  0x62   : > { %365 = vst [vmem:[#allocation3 + $0x128] sm:$0xff] %v5811_v0 }
  0x63   : > { %366 = vst [vmem:[#allocation3 + $0x130] sm:$0xff] %v5811_v0 }
  0x64   : > { %367 = vst [vmem:[#allocation3 + $0x138] sm:$0xff] %v5811_v0 }
  0x65   : > { %368 = vst [vmem:[#allocation3 + $0x140] sm:$0xff] %v5811_v0 }
  0x66   : > { %369 = vst [vmem:[#allocation3 + $0x148] sm:$0xff] %v5811_v0 }
  0x67   : > { %370 = vst [vmem:[#allocation3 + $0x150] sm:$0xff] %v5811_v0 }
  0x68   : > { %371 = vst [vmem:[#allocation3 + $0x158] sm:$0xff] %v5811_v0 }
  0x69   : > { %372 = vst [vmem:[#allocation3 + $0x160] sm:$0xff] %v5811_v0 }
  0x6a   : > { %373 = vst [vmem:[#allocation3 + $0x168] sm:$0xff] %v5811_v0 }
  0x6b   : > { %374 = vst [vmem:[#allocation3 + $0x170] sm:$0xff] %v5811_v0 }
  0x6c   : > { %375 = vst [vmem:[#allocation3 + $0x178] sm:$0xff] %v5811_v0 }
  0x6d   : > { %376 = vst [vmem:[#allocation3 + $0x180] sm:$0xff] %v5811_v0 }
  0x6e   : > { %377 = vst [vmem:[#allocation3 + $0x188] sm:$0xff] %v5811_v0 }
  0x6f   : > { %378 = vst [vmem:[#allocation3 + $0x190] sm:$0xff] %v5811_v0 }
  0x70   : > { %379 = vst [vmem:[#allocation3 + $0x198] sm:$0xff] %v5811_v0 }
  0x71   : > { %380 = vst [vmem:[#allocation3 + $0x1a0] sm:$0xff] %v5811_v0 }
  0x72   : > { %381 = vst [vmem:[#allocation3 + $0x1a8] sm:$0xff] %v5811_v0 }
  0x73   : > { %382 = vst [vmem:[#allocation3 + $0x1b0] sm:$0xff] %v5811_v0 }
  0x74   : > { %383 = vst [vmem:[#allocation3 + $0x1b8] sm:$0xff] %v5811_v0 }
  0x75   : > { %384 = vst [vmem:[#allocation3 + $0x1c0] sm:$0xff] %v5811_v0 }
  0x76   : > { %385 = vst [vmem:[#allocation3 + $0x1c8] sm:$0xff] %v5811_v0 }
  0x77   : > { %386 = vst [vmem:[#allocation3 + $0x1d0] sm:$0xff] %v5811_v0 }
  0x78   : > { %387 = vst [vmem:[#allocation3 + $0x1d8] sm:$0xff] %v5811_v0 }
  0x79   : > { %388 = vst [vmem:[#allocation3 + $0x1e0] sm:$0xff] %v5811_v0 }
  0x7a   : > { %389 = vst [vmem:[#allocation3 + $0x1e8] sm:$0xff] %v5811_v0 }
  0x7b   : > { %390 = vst [vmem:[#allocation3 + $0x1f0] sm:$0xff] %v5811_v0 }
  0x7c   : > { %391 = vst [vmem:[#allocation3 + $0x1f8] sm:$0xff] %v5811_v0 }
  0x7d   : > { %320 = vst [vmem:[#allocation2 + $0x30] sm:$0xff] %v312_v1 }
  0x7e   : > { %321 = vst [vmem:[#allocation2] sm:$0xff] %v313_v2 }
  0x7f   : > { %322 = vst [vmem:[#allocation2 + $0x18] sm:$0xff] %v314_v3 }
  0x80   : > { %323 = vst [vmem:[#allocation2 + $0x10] sm:$0xff] %v315_v4 }
  0x81   : > { %324 = vst [vmem:[#allocation2 + $0x8] sm:$0xff] %v316_v5 }
  0x82   : > { %325 = vst [vmem:[#allocation2 + $0x20] sm:$0xff] %v317_v6 }
  0x83   : > { %326 = vst [vmem:[#allocation2 + $0x28] sm:$0xff] %v318_v7 }
  0x84   : > { %327 = vst [vmem:[#allocation2 + $0x38] sm:$0xff] %v319_v8 }
  0x85   : > { %397 = vst.msk [vmem:[#allocation3] sm:$0xff] %vm396_vm0, %v392_v9 }
  0x86   : > { %398 = vst.msk [vmem:[#allocation3 + $0x8] sm:$0xff] %vm396_vm0, %v393_v10 }
  0x87   : > { %399 = vst.msk [vmem:[#allocation3 + $0x10] sm:$0xff] %vm396_vm0, %v394_v11 }
  0x88   : > { %400 = vst.msk [vmem:[#allocation3 + $0x18] sm:$0xff] %vm396_vm0, %v395_v12 }
  0x89   : > { %406 = vst.msk [vmem:[#allocation3 + $0x20] sm:$0xff] %vm405_vm1, %v392_v9 }
  0x8a   : > { %407 = vst.msk [vmem:[#allocation3 + $0x28] sm:$0xff] %vm405_vm1, %v393_v10 }
  0x8b   : > { %408 = vst.msk [vmem:[#allocation3 + $0x30] sm:$0xff] %vm405_vm1, %v394_v11 }
  0x8c   : > { %409 = vst.msk [vmem:[#allocation3 + $0x38] sm:$0xff] %vm405_vm1, %v395_v12 }
  0x8d   : > { %415 = vst.msk [vmem:[#allocation3 + $0x40] sm:$0xff] %vm414_vm2, %v392_v9 }
  0x8e   : > { %416 = vst.msk [vmem:[#allocation3 + $0x48] sm:$0xff] %vm414_vm2, %v393_v10 }
  0x8f   : > { %417 = vst.msk [vmem:[#allocation3 + $0x50] sm:$0xff] %vm414_vm2, %v394_v11 }
  0x90   : > { %418 = vst.msk [vmem:[#allocation3 + $0x58] sm:$0xff] %vm414_vm2, %v395_v12 }
  0x91   : > { %424 = vst.msk [vmem:[#allocation3 + $0x60] sm:$0xff] %vm423_vm3, %v392_v9 }
  0x92   : > { %425 = vst.msk [vmem:[#allocation3 + $0x68] sm:$0xff] %vm423_vm3, %v393_v10 }
  0x93   : > { %426 = vst.msk [vmem:[#allocation3 + $0x70] sm:$0xff] %vm423_vm3, %v394_v11 }
  0x94   : > { %427 = vst.msk [vmem:[#allocation3 + $0x78] sm:$0xff] %vm423_vm3, %v395_v12 }
  0x95   : > { %434 = vst.msk [vmem:[#allocation3 + $0x80] sm:$0xff] %vm396_vm0, %v429_v13 }
  0x96   : > { %435 = vst.msk [vmem:[#allocation3 + $0x88] sm:$0xff] %vm396_vm0, %v430_v14 }
  0x97   : > { %436 = vst.msk [vmem:[#allocation3 + $0x90] sm:$0xff] %vm396_vm0, %v431_v15 }
  0x98   : > { %437 = vst.msk [vmem:[#allocation3 + $0x98] sm:$0xff] %vm396_vm0, %v432_v16 }
  0x99   : > { %442 = vst.msk [vmem:[#allocation3 + $0xa0] sm:$0xff] %vm405_vm1, %v429_v13 }
  0x9a   : > { %443 = vst.msk [vmem:[#allocation3 + $0xa8] sm:$0xff] %vm405_vm1, %v430_v14 }
  0x9b   : > { %444 = vst.msk [vmem:[#allocation3 + $0xb0] sm:$0xff] %vm405_vm1, %v431_v15 }
  0x9c   : > { %445 = vst.msk [vmem:[#allocation3 + $0xb8] sm:$0xff] %vm405_vm1, %v432_v16 }
  0x9d   : > { %450 = vst.msk [vmem:[#allocation3 + $0xc0] sm:$0xff] %vm414_vm2, %v429_v13 }
  0x9e   : > { %451 = vst.msk [vmem:[#allocation3 + $0xc8] sm:$0xff] %vm414_vm2, %v430_v14 }
  0x9f   : > { %452 = vst.msk [vmem:[#allocation3 + $0xd0] sm:$0xff] %vm414_vm2, %v431_v15 }
  0xa0   : > { %453 = vst.msk [vmem:[#allocation3 + $0xd8] sm:$0xff] %vm414_vm2, %v432_v16 }
  0xa1   : > { %458 = vst.msk [vmem:[#allocation3 + $0xe0] sm:$0xff] %vm423_vm3, %v429_v13 }
  0xa2   : > { %459 = vst.msk [vmem:[#allocation3 + $0xe8] sm:$0xff] %vm423_vm3, %v430_v14 }
  0xa3   : > { %460 = vst.msk [vmem:[#allocation3 + $0xf0] sm:$0xff] %vm423_vm3, %v431_v15 }
  0xa4   : > { %461 = vst.msk [vmem:[#allocation3 + $0xf8] sm:$0xff] %vm423_vm3, %v432_v16 }
  0xa5   : > { %468 = vst.msk [vmem:[#allocation3 + $0x100] sm:$0xff] %vm396_vm0, %v463_v17 }
  0xa6   : > { %469 = vst.msk [vmem:[#allocation3 + $0x108] sm:$0xff] %vm396_vm0, %v464_v18 }
  0xa7   : > { %470 = vst.msk [vmem:[#allocation3 + $0x110] sm:$0xff] %vm396_vm0, %v465_v19 }
  0xa8   : > { %471 = vst.msk [vmem:[#allocation3 + $0x118] sm:$0xff] %vm396_vm0, %v466_v20 }
  0xa9   : > { %476 = vst.msk [vmem:[#allocation3 + $0x120] sm:$0xff] %vm405_vm1, %v463_v17 }
  0xaa   : > { %477 = vst.msk [vmem:[#allocation3 + $0x128] sm:$0xff] %vm405_vm1, %v464_v18 }
  0xab   : > { %478 = vst.msk [vmem:[#allocation3 + $0x130] sm:$0xff] %vm405_vm1, %v465_v19 }
  0xac   : > { %479 = vst.msk [vmem:[#allocation3 + $0x138] sm:$0xff] %vm405_vm1, %v466_v20 }
  0xad   : > { %484 = vst.msk [vmem:[#allocation3 + $0x140] sm:$0xff] %vm414_vm2, %v463_v17 }
  0xae   : > { %485 = vst.msk [vmem:[#allocation3 + $0x148] sm:$0xff] %vm414_vm2, %v464_v18 }
  0xaf   : > { %486 = vst.msk [vmem:[#allocation3 + $0x150] sm:$0xff] %vm414_vm2, %v465_v19 }
  0xb0   : > { %487 = vst.msk [vmem:[#allocation3 + $0x158] sm:$0xff] %vm414_vm2, %v466_v20 }
  0xb1   : > { %492 = vst.msk [vmem:[#allocation3 + $0x160] sm:$0xff] %vm423_vm3, %v463_v17 }
  0xb2   : > { %493 = vst.msk [vmem:[#allocation3 + $0x168] sm:$0xff] %vm423_vm3, %v464_v18 }
  0xb3   : > { %494 = vst.msk [vmem:[#allocation3 + $0x170] sm:$0xff] %vm423_vm3, %v465_v19 }
  0xb4   : > { %495 = vst.msk [vmem:[#allocation3 + $0x178] sm:$0xff] %vm423_vm3, %v466_v20 }
  0xb5   : > { %502 = vst.msk [vmem:[#allocation3 + $0x180] sm:$0xff] %vm396_vm0, %v497_v21 }
  0xb6   : > { %503 = vst.msk [vmem:[#allocation3 + $0x188] sm:$0xff] %vm396_vm0, %v498_v22 }
  0xb7   : > { %504 = vst.msk [vmem:[#allocation3 + $0x190] sm:$0xff] %vm396_vm0, %v499_v23 }
  0xb8   : > { %505 = vst.msk [vmem:[#allocation3 + $0x198] sm:$0xff] %vm396_vm0, %v500_v24 }
  0xb9   : > { %510 = vst.msk [vmem:[#allocation3 + $0x1a0] sm:$0xff] %vm405_vm1, %v497_v21 }
  0xba   : > { %511 = vst.msk [vmem:[#allocation3 + $0x1a8] sm:$0xff] %vm405_vm1, %v498_v22 }
  0xbb   : > { %512 = vst.msk [vmem:[#allocation3 + $0x1b0] sm:$0xff] %vm405_vm1, %v499_v23 }
  0xbc   : > { %513 = vst.msk [vmem:[#allocation3 + $0x1b8] sm:$0xff] %vm405_vm1, %v500_v24 }
  0xbd   : > { %518 = vst.msk [vmem:[#allocation3 + $0x1c0] sm:$0xff] %vm414_vm2, %v497_v21 }
  0xbe   : > { %519 = vst.msk [vmem:[#allocation3 + $0x1c8] sm:$0xff] %vm414_vm2, %v498_v22 }
  0xbf   : > { %520 = vst.msk [vmem:[#allocation3 + $0x1d0] sm:$0xff] %vm414_vm2, %v499_v23 }
  0xc0   : > { %521 = vst.msk [vmem:[#allocation3 + $0x1d8] sm:$0xff] %vm414_vm2, %v500_v24 }
  0xc1   : > { %526 = vst.msk [vmem:[#allocation3 + $0x1e0] sm:$0xff] %vm423_vm3, %v497_v21 }
  0xc2   : > { %527 = vst.msk [vmem:[#allocation3 + $0x1e8] sm:$0xff] %vm423_vm3, %v498_v22 }
  0xc3   : > { %528 = vst.msk [vmem:[#allocation3 + $0x1f0] sm:$0xff] %vm423_vm3, %v499_v23 }
  0xc4   : > { %529 = vst.msk [vmem:[#allocation3 + $0x1f8] sm:$0xff] %vm423_vm3, %v500_v24 }
  0xc5 PF: > { %v6111_v25 = vld [vmem:[#allocation3 + $0x78] sm:$0xff]  ;;  %v6113_v26 = vld [vmem:[#allocation3 + $0x70] sm:$0xff]  ;;  %v6117_v27 = vld [vmem:[#allocation3 + $0x68] sm:$0xff]  ;;  %s4904_s23 = sshll.u32 %s5794_s18, 6  ;;  %s4748_s12 = sshll.u32 %s5980_s6, 4  ;;  %s4749_s12 = int_to_ptr.vmem [resolvable:$true] %s4748_s12 }
  0xc6   : > { %556 = vmatpush.msra.mxu0 %v6111_v25  ;;  %588 = vmatpush.msra.mxu1 %v6111_v25  ;;  %v6123_v28 = vld [vmem:[#allocation3 + $0x60] sm:$0xff]  ;;  %v6128_v29 = vld [vmem:[#allocation3 + $0x58] sm:$0xff]  ;;  %v6135_v30 = vld [vmem:[#allocation3 + $0x50] sm:$0xff]  ;;  %s4747_s11 = scalar_lea.hbm %s9771_s4, %s4904_s23  ;;  %s4734_s18 = scalar_lea.sflag [#allocation6], %s5969_s8 }
  0xc7   : > { %617 = vmatpush.msra.mxu2 %v6111_v25  ;;  %649 = vmatpush.msra.mxu3 %v6111_v25  ;;  %v6141_v31 = vld [vmem:[#allocation3 + $0x48] sm:$0xff]  ;;  %v6147_v32 = vld [vmem:[#allocation3 + $0x40] sm:$0xff]  ;;  %v6153_v33 = vld [vmem:[#allocation3 + $0x38] sm:$0xff]  ;;  %s4750_s13 = sshll.u32 %s4747_s11, 4  ;;  %s5732_s29 = scalar_lea.hbm %s9771_s4, 256  ;;  %s4751_s13 = int_to_ptr.hbm [resolvable:$true] %s4750_s13 }
  0xc8   : > { %557 = vmatpush.msra.mxu0 %v6113_v26  ;;  %589 = vmatpush.msra.mxu1 %v6113_v26  ;;  %v6159_v34 = vld [vmem:[#allocation3 + $0x30] sm:$0xff]  ;;  %v6165_v35 = vld [vmem:[#allocation3 + $0x28] sm:$0xff]  ;;  %v6171_v36 = vld [vmem:[#allocation3 + $0x20] sm:$0xff]  ;;  %s5726_s14 = sshra.s32 %s4751_s13, 4  ;;  %s5727_s14 = int_to_ptr.hbm [resolvable:$true] %s5726_s14 }
  0xc9   : > { %618 = vmatpush.msra.mxu2 %v6113_v26  ;;  %650 = vmatpush.msra.mxu3 %v6113_v26  ;;  %v6177_v37 = vld [vmem:[#allocation3 + $0x18] sm:$0xff]  ;;  %v6183_v38 = vld [vmem:[#allocation3 + $0x10] sm:$0xff]  ;;  %v6189_v39 = vld [vmem:[#allocation3 + $0x8] sm:$0xff]  ;;  %s5728_s21 = scalar_lea.hbm %s5727_s14, 64  ;;  %p5733_p10 = scmp.lt.s32.totalorder %s5727_s14, %s9771_s4 }
  0xca   : > { %558 = vmatpush.msra.mxu0 %v6117_v27  ;;  %590 = vmatpush.msra.mxu1 %v6117_v27  ;;  %v6195_v40 = vld [vmem:[#allocation3] sm:$0xff]  ;;  %v6200_v41 = vld [vmem:[#allocation2 + $0x30] sm:$0xff]  ;;  %p5729_p4 = scmp.ne.s32.totalorder %s5727_s14, %s5728_s21  ;;  %p5734_p11 = scmp.lt.s32.totalorder %s5732_s29, %s5728_s21 }
  0xcb   : > { %619 = vmatpush.msra.mxu2 %v6117_v27  ;;  %651 = vmatpush.msra.mxu3 %v6117_v27  ;;  %v6217_v42 = vld [vmem:[#allocation2] sm:$0xff] }
  0xcc   : > { %559 = vmatpush.msra.mxu0 %v6123_v28  ;;  %591 = vmatpush.msra.mxu1 %v6123_v28  ;;  %v6293_v43 = vld [vmem:[#allocation9] ss:$0 sm:$0xff]  ;;  %v6296_v44 = vld [vmem:[%s5973_s27] sm:$0x1]  ;;  %p5730_p8 = pnand %p5729_p4, %p5930_p0  ;;  %p5735_p12 = por %p5734_p11, %p5733_p10 }
  0xcd   : > { %620 = vmatpush.msra.mxu2 %v6123_v28  ;;  %652 = vmatpush.msra.mxu3 %v6123_v28  ;;  %v548_v47 = vmul.f32 0.0625, %v6296_v44  ;;  %v549_v5 = vmul.f32 0.125, %v6296_v44 }
  0xce   : > { %560 = vmatpush.msra.mxu0 %v6128_v29  ;;  %592 = vmatpush.msra.mxu1 %v6128_v29  ;;  %p5731_p9 = pneg %p5730_p8 }
  0xcf   : > { %621 = vmatpush.msra.mxu2 %v6128_v29  ;;  %653 = vmatpush.msra.mxu3 %v6128_v29  ;;  %v6300_v48 = vperm.slane %v548_v47, 0  ;;  %v6353_v7 = vperm.slane %v549_v5, 0 }
  0xd0   : > { %561 = vmatpush.msra.mxu0 %v6135_v30  ;;  %593 = vmatpush.msra.mxu1 %v6135_v30  ;;  %p5736_p13 = pnand %p5735_p12, %p5731_p9 }
  0xd1   : > { %622 = vmatpush.msra.mxu2 %v6135_v30  ;;  %654 = vmatpush.msra.mxu3 %v6135_v30 }
  0xd2   : > { %562 = vmatpush.msra.mxu0 %v6141_v31  ;;  %594 = vmatpush.msra.mxu1 %v6141_v31 }
  0xd3   : > { %623 = vmatpush.msra.mxu2 %v6141_v31  ;;  %655 = vmatpush.msra.mxu3 %v6141_v31 }
  0xd4   : > { %563 = vmatpush.msra.mxu0 %v6147_v32  ;;  %595 = vmatpush.msra.mxu1 %v6147_v32 }
  0xd5   : > { %624 = vmatpush.msra.mxu2 %v6147_v32  ;;  %656 = vmatpush.msra.mxu3 %v6147_v32 }
  0xd6   : > { %564 = vmatpush.msra.mxu0 %v6153_v33  ;;  %596 = vmatpush.msra.mxu1 %v6153_v33 }
  0xd7   : > { %625 = vmatpush.msra.mxu2 %v6153_v33  ;;  %657 = vmatpush.msra.mxu3 %v6153_v33 }
  0xd8   : > { %565 = vmatpush.msra.mxu0 %v6159_v34  ;;  %597 = vmatpush.msra.mxu1 %v6159_v34 }
  0xd9   : > { %626 = vmatpush.msra.mxu2 %v6159_v34  ;;  %658 = vmatpush.msra.mxu3 %v6159_v34 }
  0xda   : > { %566 = vmatpush.msra.mxu0 %v6165_v35  ;;  %598 = vmatpush.msra.mxu1 %v6165_v35 }
  0xdb   : > { %627 = vmatpush.msra.mxu2 %v6165_v35  ;;  %659 = vmatpush.msra.mxu3 %v6165_v35 }
  0xdc   : > { %567 = vmatpush.msra.mxu0 %v6171_v36  ;;  %599 = vmatpush.msra.mxu1 %v6171_v36 }
  0xdd   : > { %628 = vmatpush.msra.mxu2 %v6171_v36  ;;  %660 = vmatpush.msra.mxu3 %v6171_v36 }
  0xde   : > { %568 = vmatpush.msra.mxu0 %v6177_v37  ;;  %600 = vmatpush.msra.mxu1 %v6177_v37 }
  0xdf   : > { %629 = vmatpush.msra.mxu2 %v6177_v37  ;;  %661 = vmatpush.msra.mxu3 %v6177_v37 }
  0xe0   : > { %569 = vmatpush.msra.mxu0 %v6183_v38  ;;  %601 = vmatpush.msra.mxu1 %v6183_v38 }
  0xe1   : > { %630 = vmatpush.msra.mxu2 %v6183_v38  ;;  %662 = vmatpush.msra.mxu3 %v6183_v38 }
  0xe2   : > { %570 = vmatpush.msra.mxu0 %v6189_v39  ;;  %602 = vmatpush.msra.mxu1 %v6189_v39 }
  0xe3   : > { %631 = vmatpush.msra.mxu2 %v6189_v39  ;;  %663 = vmatpush.msra.mxu3 %v6189_v39 }
  0xe4   : > { %571 = vmatpush.msra.mxu0 %v6195_v40  ;;  %603 = vmatpush.msra.mxu1 %v6195_v40 }
  0xe5   : > { %572 = vmatmul.f32.vlgmr.msra.gmra.mxu0 %v6200_v41  ;;  %632 = vmatpush.msra.mxu2 %v6195_v40 }
  0xe6   : > { %664 = vmatpush.msra.mxu3 %v6195_v40  ;;  %691 = vmatpush.msrb.mxu0 %v6111_v25 }
  0xe7   : > { %720 = vmatpush.msrb.mxu1 %v6111_v25  ;;  %749 = vmatpush.msrb.mxu2 %v6111_v25 }
  0xe8   : > { %692 = vmatpush.msrb.mxu0 %v6113_v26  ;;  %778 = vmatpush.msrb.mxu3 %v6111_v25 }
  0xe9   : > { %721 = vmatpush.msrb.mxu1 %v6113_v26  ;;  %750 = vmatpush.msrb.mxu2 %v6113_v26 }
  0xea   : > { %693 = vmatpush.msrb.mxu0 %v6117_v27  ;;  %779 = vmatpush.msrb.mxu3 %v6113_v26 }
  0xeb   : > { %722 = vmatpush.msrb.mxu1 %v6117_v27  ;;  %751 = vmatpush.msrb.mxu2 %v6117_v27 }
  0xec   : > { %694 = vmatpush.msrb.mxu0 %v6123_v28  ;;  %780 = vmatpush.msrb.mxu3 %v6117_v27 }
  0xed   : > { %575 = vmatmul.f32.gmra.mxu0 %v6217_v42  ;;  %723 = vmatpush.msrb.mxu1 %v6123_v28 }
  0xee   : > { %695 = vmatpush.msrb.mxu0 %v6128_v29  ;;  %752 = vmatpush.msrb.mxu2 %v6123_v28 }
  0xef   : > { %724 = vmatpush.msrb.mxu1 %v6128_v29  ;;  %781 = vmatpush.msrb.mxu3 %v6123_v28 }
  0xf0   : > { %696 = vmatpush.msrb.mxu0 %v6135_v30  ;;  %753 = vmatpush.msrb.mxu2 %v6128_v29 }
  0xf1   : > { %725 = vmatpush.msrb.mxu1 %v6135_v30  ;;  %782 = vmatpush.msrb.mxu3 %v6128_v29 }
  0xf2   : > { %697 = vmatpush.msrb.mxu0 %v6141_v31  ;;  %754 = vmatpush.msrb.mxu2 %v6135_v30 }
  0xf3   : > { %726 = vmatpush.msrb.mxu1 %v6141_v31  ;;  %783 = vmatpush.msrb.mxu3 %v6135_v30 }
  0xf4   : > { %698 = vmatpush.msrb.mxu0 %v6147_v32  ;;  %755 = vmatpush.msrb.mxu2 %v6141_v31 }
  0xf5   : > { %727 = vmatpush.msrb.mxu1 %v6147_v32  ;;  %784 = vmatpush.msrb.mxu3 %v6141_v31 }
  0xf6   : > { %699 = vmatpush.msrb.mxu0 %v6153_v33  ;;  %756 = vmatpush.msrb.mxu2 %v6147_v32 }
  0xf7   : > { %728 = vmatpush.msrb.mxu1 %v6153_v33  ;;  %785 = vmatpush.msrb.mxu3 %v6147_v32 }
  0xf8   : > { %700 = vmatpush.msrb.mxu0 %v6159_v34  ;;  %757 = vmatpush.msrb.mxu2 %v6153_v33 }
  0xf9   : > { %729 = vmatpush.msrb.mxu1 %v6159_v34  ;;  %786 = vmatpush.msrb.mxu3 %v6153_v33 }
  0xfa   : > { %701 = vmatpush.msrb.mxu0 %v6165_v35  ;;  %758 = vmatpush.msrb.mxu2 %v6159_v34 }
  0xfb   : > { %730 = vmatpush.msrb.mxu1 %v6165_v35  ;;  %787 = vmatpush.msrb.mxu3 %v6159_v34 }
  0xfc   : > { %702 = vmatpush.msrb.mxu0 %v6171_v36  ;;  %759 = vmatpush.msrb.mxu2 %v6165_v35 }
  0xfd   : > { %731 = vmatpush.msrb.mxu1 %v6171_v36  ;;  %788 = vmatpush.msrb.mxu3 %v6165_v35 }
  0xfe   : > { %703 = vmatpush.msrb.mxu0 %v6177_v37  ;;  %760 = vmatpush.msrb.mxu2 %v6171_v36 }
  0xff   : > { %732 = vmatpush.msrb.mxu1 %v6177_v37  ;;  %789 = vmatpush.msrb.mxu3 %v6171_v36 }
 0x100   : > { %704 = vmatpush.msrb.mxu0 %v6183_v38  ;;  %761 = vmatpush.msrb.mxu2 %v6177_v37 }
 0x101   : > { %733 = vmatpush.msrb.mxu1 %v6183_v38  ;;  %790 = vmatpush.msrb.mxu3 %v6177_v37 }
 0x102   : > { %705 = vmatpush.msrb.mxu0 %v6189_v39  ;;  %762 = vmatpush.msrb.mxu2 %v6183_v38 }
 0x103   : > { %734 = vmatpush.msrb.mxu1 %v6189_v39  ;;  %791 = vmatpush.msrb.mxu3 %v6183_v38 }
 0x104   : > { %706 = vmatpush.msrb.mxu0 %v6195_v40  ;;  %763 = vmatpush.msrb.mxu2 %v6189_v39 }
 0x105   : > { %735 = vmatpush.msrb.mxu1 %v6195_v40  ;;  %792 = vmatpush.msrb.mxu3 %v6189_v39 }
 0x106   : > { %764 = vmatpush.msrb.mxu2 %v6195_v40  ;;  %817 = vmatpush.msra.mxu0 %v6111_v25 }
 0x107   : > { %793 = vmatpush.msrb.mxu3 %v6195_v40 }
 0x108   : > { %818 = vmatpush.msra.mxu0 %v6113_v26 }
 0x10a   : > { %819 = vmatpush.msra.mxu0 %v6117_v27 }
 0x10c   : > { %820 = vmatpush.msra.mxu0 %v6123_v28 }
 0x10e   : > { %821 = vmatpush.msra.mxu0 %v6128_v29 }
 0x110   : > { %822 = vmatpush.msra.mxu0 %v6135_v30 }
 0x112   : > { %823 = vmatpush.msra.mxu0 %v6141_v31 }
 0x114   : > { %824 = vmatpush.msra.mxu0 %v6147_v32 }
 0x116   : > { %825 = vmatpush.msra.mxu0 %v6153_v33 }
 0x118   : > { %826 = vmatpush.msra.mxu0 %v6159_v34 }
 0x11a   : > { %827 = vmatpush.msra.mxu0 %v6165_v35 }
 0x11c   : > { %828 = vmatpush.msra.mxu0 %v6171_v36 }
 0x11e   : > { %829 = vmatpush.msra.mxu0 %v6177_v37 }
 0x120   : > { %830 = vmatpush.msra.mxu0 %v6183_v38 }
 0x122   : > { %831 = vmatpush.msra.mxu0 %v6189_v39 }
 0x124   : > { %832 = vmatpush.msra.mxu0 %v6195_v40 }
 0x162   : > { %v573_v45 = vpop.f32.mrf.mxu0 }
 0x163   : > { %v574_v46 = vadd.f32 %v6293_v43, %v573_v45  ;;  %v550_v45 = vmul.f32 0.020833334, %v6296_v44 }
 0x165   : > { %5009 = vtanh.f32 %v574_v46  ;;  %v6380_v46 = vperm.slane %v550_v45, 0 }
 0x16a   : > { %v576_v49 = vpop.f32.mrf.mxu0 }
 0x16b   : > { %v6302_v50 = vpop.eup %5009  ;;  %v577_v51 = vadd.f32 %v6293_v43, %v576_v49 }
 0x16c   : > { %v584_v52 = vmul.f32 %v6302_v50, %v6300_v48 }
 0x16d   : > { %5011 = vtanh.f32 %v577_v51 }
 0x16e   : > { %v586_v53 = vadd.f32 %v584_v52, %v6200_v41 }
 0x170   : > { %604 = vmatmul.f32.vlgmr.msra.gmra.mxu1 %v586_v53 }
 0x171   : > { %846 = vmatpush.msra.mxu1 %v6111_v25 }
 0x173   : > { %v6309_v54 = vpop.eup %5011  ;;  %847 = vmatpush.msra.mxu1 %v6113_v26 }
 0x174   : > { %v585_v55 = vmul.f32 %v6309_v54, %v6300_v48 }
 0x175   : > { %848 = vmatpush.msra.mxu1 %v6117_v27 }
 0x176   : > { %v587_v56 = vadd.f32 %v585_v55, %v6217_v42 }
 0x177   : > { %849 = vmatpush.msra.mxu1 %v6123_v28 }
 0x178   : > { %607 = vmatmul.f32.gmra.mxu1 %v587_v56 }
 0x179   : > { %850 = vmatpush.msra.mxu1 %v6128_v29 }
 0x17b   : > { %851 = vmatpush.msra.mxu1 %v6135_v30 }
 0x17d   : > { %852 = vmatpush.msra.mxu1 %v6141_v31 }
 0x17f   : > { %853 = vmatpush.msra.mxu1 %v6147_v32 }
 0x181   : > { %854 = vmatpush.msra.mxu1 %v6153_v33 }
 0x183   : > { %855 = vmatpush.msra.mxu1 %v6159_v34 }
 0x185   : > { %856 = vmatpush.msra.mxu1 %v6165_v35 }
 0x187   : > { %857 = vmatpush.msra.mxu1 %v6171_v36 }
 0x189   : > { %858 = vmatpush.msra.mxu1 %v6177_v37 }
 0x18b   : > { %859 = vmatpush.msra.mxu1 %v6183_v38 }
 0x18d   : > { %860 = vmatpush.msra.mxu1 %v6189_v39 }
 0x18f   : > { %861 = vmatpush.msra.mxu1 %v6195_v40 }
 0x1ed   : > { %v605_v57 = vpop.f32.mrf.mxu1 }
 0x1ee   : > { %v606_v58 = vadd.f32 %v6293_v43, %v605_v57 }
 0x1f0   : > { %5013 = vtanh.f32 %v606_v58 }
 0x1f5   : > { %v608_v59 = vpop.f32.mrf.mxu1 }
 0x1f6   : > { %v5014_v60 = vpop.eup %5013  ;;  %v609_v61 = vadd.f32 %v6293_v43, %v608_v59 }
 0x1f7   : > { %v613_v62 = vmul.f32 %v5014_v60, %v6300_v48  ;;  %v674_v6 = vmul.f32 2.0, %v5014_v60 }
 0x1f8   : > { %5015 = vtanh.f32 %v609_v61 }
 0x1f9   : > { %v615_v63 = vadd.f32 %v613_v62, %v6200_v41  ;;  %v676_v11 = vadd.f32 %v6302_v50, %v674_v6 }
 0x1fb   : > { %633 = vmatmul.f32.vlgmr.msra.gmra.mxu2 %v615_v63 }
 0x1fc   : > { %875 = vmatpush.msra.mxu2 %v6111_v25 }
 0x1fe   : > { %v5016_v0 = vpop.eup %5015  ;;  %876 = vmatpush.msra.mxu2 %v6113_v26 }
 0x1ff   : > { %v614_v1 = vmul.f32 %v5016_v0, %v6300_v48  ;;  %v675_v16 = vmul.f32 2.0, %v5016_v0 }
 0x200   : > { %877 = vmatpush.msra.mxu2 %v6117_v27 }
 0x201   : > { %v616_v2 = vadd.f32 %v614_v1, %v6217_v42  ;;  %v677_v18 = vadd.f32 %v6309_v54, %v675_v16 }
 0x202   : > { %878 = vmatpush.msra.mxu2 %v6123_v28 }
 0x203   : > { %636 = vmatmul.f32.gmra.mxu2 %v616_v2 }
 0x204   : > { %879 = vmatpush.msra.mxu2 %v6128_v29 }
 0x206   : > { %880 = vmatpush.msra.mxu2 %v6135_v30 }
 0x208   : > { %881 = vmatpush.msra.mxu2 %v6141_v31 }
 0x20a   : > { %882 = vmatpush.msra.mxu2 %v6147_v32 }
 0x20c   : > { %883 = vmatpush.msra.mxu2 %v6153_v33 }
 0x20e   : > { %884 = vmatpush.msra.mxu2 %v6159_v34 }
 0x210   : > { %885 = vmatpush.msra.mxu2 %v6165_v35 }
 0x212   : > { %886 = vmatpush.msra.mxu2 %v6171_v36 }
 0x214   : > { %887 = vmatpush.msra.mxu2 %v6177_v37 }
 0x216   : > { %888 = vmatpush.msra.mxu2 %v6183_v38 }
 0x218   : > { %889 = vmatpush.msra.mxu2 %v6189_v39 }
 0x21a   : > { %890 = vmatpush.msra.mxu2 %v6195_v40 }
 0x27e   : > { %v634_v3 = vpop.f32.mrf.mxu2 }
 0x27f   : > { %v635_v4 = vadd.f32 %v6293_v43, %v634_v3 }
 0x281   : > { %5017 = vtanh.f32 %v635_v4 }
 0x286   : > { %v637_v8 = vpop.f32.mrf.mxu2 }
 0x287   : > { %v5018_v9 = vpop.eup %5017  ;;  %v638_v10 = vadd.f32 %v6293_v43, %v637_v8 }
 0x288   : > { %v678_v12 = vmul.f32 2.0, %v5018_v9  ;;  %v645_v13 = vmul.f32 %v5018_v9, %v6353_v7 }
 0x289   : > { %5019 = vtanh.f32 %v638_v10 }
 0x28a   : > { %v647_v14 = vadd.f32 %v645_v13, %v6200_v41  ;;  %v680_v15 = vadd.f32 %v678_v12, %v676_v11 }
 0x28c   : > { %665 = vmatmul.f32.vlgmr.msra.gmra.mxu3 %v647_v14 }
 0x28d   : > { %904 = vmatpush.msra.mxu3 %v6111_v25 }
 0x28f   : > { %v5020_v17 = vpop.eup %5019  ;;  %905 = vmatpush.msra.mxu3 %v6113_v26 }
 0x290   : > { %v679_v19 = vmul.f32 2.0, %v5020_v17  ;;  %v646_v20 = vmul.f32 %v5020_v17, %v6353_v7 }
 0x291   : > { %906 = vmatpush.msra.mxu3 %v6117_v27 }
 0x292   : > { %v648_v21 = vadd.f32 %v646_v20, %v6217_v42  ;;  %v681_v22 = vadd.f32 %v679_v19, %v677_v18 }
 0x293   : > { %907 = vmatpush.msra.mxu3 %v6123_v28 }
 0x294   : > { %668 = vmatmul.f32.gmra.mxu3 %v648_v21 }
 0x295   : > { %908 = vmatpush.msra.mxu3 %v6128_v29 }
 0x297   : > { %909 = vmatpush.msra.mxu3 %v6135_v30 }
 0x299   : > { %910 = vmatpush.msra.mxu3 %v6141_v31 }
 0x29b   : > { %911 = vmatpush.msra.mxu3 %v6147_v32 }
 0x29d   : > { %912 = vmatpush.msra.mxu3 %v6153_v33 }
 0x29f   : > { %913 = vmatpush.msra.mxu3 %v6159_v34 }
 0x2a1   : > { %914 = vmatpush.msra.mxu3 %v6165_v35 }
 0x2a3   : > { %915 = vmatpush.msra.mxu3 %v6171_v36 }
 0x2a5   : > { %916 = vmatpush.msra.mxu3 %v6177_v37 }
 0x2a7   : > { %917 = vmatpush.msra.mxu3 %v6183_v38 }
 0x2a9   : > { %918 = vmatpush.msra.mxu3 %v6189_v39 }
 0x2ab   : > { %919 = vmatpush.msra.mxu3 %v6195_v40 }
 0x30f   : > { %v666_v23 = vpop.f32.mrf.mxu3 }
 0x310   : > { %v667_v24 = vadd.f32 %v6293_v43, %v666_v23 }
 0x312   : > { %5021 = vtanh.f32 %v667_v24 }
 0x317   : > { %v669_v47 = vpop.f32.mrf.mxu3 }
 0x318   : > { %v5022_v49 = vpop.eup %5021  ;;  %v670_v50 = vadd.f32 %v6293_v43, %v669_v47 }
 0x319   : > { %v682_v51 = vadd.f32 %v5022_v49, %v680_v15 }
 0x31a   : > { %5023 = vtanh.f32 %v670_v50 }
 0x31b   : > { %v687_v52 = vmul.f32 %v6380_v46, %v682_v51 }
 0x31d   : > { %v6385_v53 = vadd.f32 %v687_v52, %v6200_v41 }
 0x31f   : > { %707 = vmatmul.f32.vlgmr.msrb.gmra.mxu0 %v6385_v53 }
 0x320   : > { %v5024_v54 = vpop.eup %5023  ;;  %943 = vmatpush.msrb.mxu0 %v6111_v25 }
 0x321   : > { %v683_v55 = vadd.f32 %v5024_v54, %v681_v22 }
 0x322   : > { %944 = vmatpush.msrb.mxu0 %v6113_v26 }
 0x323   : > { %v688_v44 = vmul.f32 %v6380_v46, %v683_v55 }
 0x324   : > { %945 = vmatpush.msrb.mxu0 %v6117_v27 }
 0x325   : > { %v6393_v56 = vadd.f32 %v688_v44, %v6217_v42 }
 0x326   : > { %946 = vmatpush.msrb.mxu0 %v6123_v28 }
 0x327   : > { %710 = vmatmul.f32.gmra.mxu0 %v6393_v56 }
 0x328   : > { %947 = vmatpush.msrb.mxu0 %v6128_v29 }
 0x32a   : > { %948 = vmatpush.msrb.mxu0 %v6135_v30 }
 0x32c   : > { %949 = vmatpush.msrb.mxu0 %v6141_v31 }
 0x32e   : > { %950 = vmatpush.msrb.mxu0 %v6147_v32 }
 0x330   : > { %951 = vmatpush.msrb.mxu0 %v6153_v33 }
 0x332   : > { %952 = vmatpush.msrb.mxu0 %v6159_v34 }
 0x334   : > { %953 = vmatpush.msrb.mxu0 %v6165_v35 }
 0x336   : > { %954 = vmatpush.msrb.mxu0 %v6171_v36 }
 0x338   : > { %955 = vmatpush.msrb.mxu0 %v6177_v37 }
 0x33a   : > { %956 = vmatpush.msrb.mxu0 %v6183_v38 }
 0x33c   : > { %957 = vmatpush.msrb.mxu0 %v6189_v39 }
 0x33e   : > { %958 = vmatpush.msrb.mxu0 %v6195_v40 }
 0x39c   : > { %v708_v41 = vpop.f32.mrf.mxu0 }
 0x39d   : > { %v709_v42 = vadd.f32 %v6293_v43, %v708_v41 }
 0x39f   : > { %5025 = vtanh.f32 %v709_v42 }
 0x3a4   : > { %v711_v57 = vpop.f32.mrf.mxu0 }
 0x3a5   : > { %v6410_v58 = vpop.eup %5025  ;;  %v712_v59 = vadd.f32 %v6293_v43, %v711_v57 }
 0x3a6   : > { %v716_v60 = vmul.f32 %v6410_v58, %v6300_v48 }
 0x3a7   : > { %5027 = vtanh.f32 %v712_v59 }
 0x3a8   : > { %v718_v61 = vadd.f32 %v716_v60, %v6385_v53 }
 0x3aa   : > { %736 = vmatmul.f32.vlgmr.msrb.gmra.mxu1 %v718_v61 }
 0x3ab   : > { %972 = vmatpush.msrb.mxu1 %v6111_v25 }
 0x3ad   : > { %v6417_v62 = vpop.eup %5027  ;;  %973 = vmatpush.msrb.mxu1 %v6113_v26 }
 0x3ae   : > { %v717_v63 = vmul.f32 %v6417_v62, %v6300_v48 }
 0x3af   : > { %974 = vmatpush.msrb.mxu1 %v6117_v27 }
 0x3b0   : > { %v719_v0 = vadd.f32 %v717_v63, %v6393_v56 }
 0x3b1   : > { %975 = vmatpush.msrb.mxu1 %v6123_v28 }
 0x3b2   : > { %739 = vmatmul.f32.gmra.mxu1 %v719_v0 }
 0x3b3   : > { %976 = vmatpush.msrb.mxu1 %v6128_v29 }
 0x3b5   : > { %977 = vmatpush.msrb.mxu1 %v6135_v30 }
 0x3b7   : > { %978 = vmatpush.msrb.mxu1 %v6141_v31 }
 0x3b9   : > { %979 = vmatpush.msrb.mxu1 %v6147_v32 }
 0x3bb   : > { %980 = vmatpush.msrb.mxu1 %v6153_v33 }
 0x3bd   : > { %981 = vmatpush.msrb.mxu1 %v6159_v34 }
 0x3bf   : > { %982 = vmatpush.msrb.mxu1 %v6165_v35 }
 0x3c1   : > { %983 = vmatpush.msrb.mxu1 %v6171_v36 }
 0x3c3   : > { %984 = vmatpush.msrb.mxu1 %v6177_v37 }
 0x3c5   : > { %985 = vmatpush.msrb.mxu1 %v6183_v38 }
 0x3c7   : > { %986 = vmatpush.msrb.mxu1 %v6189_v39 }
 0x3c9   : > { %987 = vmatpush.msrb.mxu1 %v6195_v40 }
 0x427   : > { %v737_v1 = vpop.f32.mrf.mxu1 }
 0x428   : > { %v738_v2 = vadd.f32 %v6293_v43, %v737_v1 }
 0x42a   : > { %5029 = vtanh.f32 %v738_v2 }
 0x42f   : > { %v740_v3 = vpop.f32.mrf.mxu1 }
 0x430   : > { %v5030_v4 = vpop.eup %5029  ;;  %v741_v5 = vadd.f32 %v6293_v43, %v740_v3 }
 0x431   : > { %v745_v6 = vmul.f32 %v5030_v4, %v6300_v48  ;;  %v803_v14 = vmul.f32 2.0, %v5030_v4 }
 0x432   : > { %5031 = vtanh.f32 %v741_v5 }
 0x433   : > { %v747_v8 = vadd.f32 %v745_v6, %v6385_v53  ;;  %v805_v18 = vadd.f32 %v6410_v58, %v803_v14 }
 0x435   : > { %765 = vmatmul.f32.vlgmr.msrb.gmra.mxu2 %v747_v8 }
 0x436   : > { %1001 = vmatpush.msrb.mxu2 %v6111_v25 }
 0x438   : > { %v5032_v9 = vpop.eup %5031  ;;  %1002 = vmatpush.msrb.mxu2 %v6113_v26 }
 0x439   : > { %v746_v10 = vmul.f32 %v5032_v9, %v6300_v48  ;;  %v804_v23 = vmul.f32 2.0, %v5032_v9 }
 0x43a   : > { %1003 = vmatpush.msrb.mxu2 %v6117_v27 }
 0x43b   : > { %v748_v11 = vadd.f32 %v746_v10, %v6393_v56  ;;  %v806_v45 = vadd.f32 %v6417_v62, %v804_v23 }
 0x43c   : > { %1004 = vmatpush.msrb.mxu2 %v6123_v28 }
 0x43d   : > { %768 = vmatmul.f32.gmra.mxu2 %v748_v11 }
 0x43e   : > { %1005 = vmatpush.msrb.mxu2 %v6128_v29 }
 0x440   : > { %1006 = vmatpush.msrb.mxu2 %v6135_v30 }
 0x442   : > { %1007 = vmatpush.msrb.mxu2 %v6141_v31 }
 0x444   : > { %1008 = vmatpush.msrb.mxu2 %v6147_v32 }
 0x446   : > { %1009 = vmatpush.msrb.mxu2 %v6153_v33 }
 0x448   : > { %1010 = vmatpush.msrb.mxu2 %v6159_v34 }
 0x44a   : > { %1011 = vmatpush.msrb.mxu2 %v6165_v35 }
 0x44c   : > { %1012 = vmatpush.msrb.mxu2 %v6171_v36 }
 0x44e   : > { %1013 = vmatpush.msrb.mxu2 %v6177_v37 }
 0x450   : > { %1014 = vmatpush.msrb.mxu2 %v6183_v38 }
 0x452   : > { %1015 = vmatpush.msrb.mxu2 %v6189_v39 }
 0x454   : > { %1016 = vmatpush.msrb.mxu2 %v6195_v40 }
 0x4b8   : > { %v766_v12 = vpop.f32.mrf.mxu2 }
 0x4b9   : > { %v767_v13 = vadd.f32 %v6293_v43, %v766_v12 }
 0x4bb   : > { %5033 = vtanh.f32 %v767_v13 }
 0x4c0   : > { %v769_v15 = vpop.f32.mrf.mxu2 }
 0x4c1   : > { %v5034_v16 = vpop.eup %5033  ;;  %v770_v17 = vadd.f32 %v6293_v43, %v769_v15 }
 0x4c2   : > { %v807_v19 = vmul.f32 2.0, %v5034_v16  ;;  %v774_v20 = vmul.f32 %v5034_v16, %v6353_v7 }
 0x4c3   : > { %5035 = vtanh.f32 %v770_v17 }
 0x4c4   : > { %v776_v21 = vadd.f32 %v774_v20, %v6385_v53  ;;  %v809_v22 = vadd.f32 %v807_v19, %v805_v18 }
 0x4c6   : > { %794 = vmatmul.f32.vlgmr.msrb.gmra.mxu3 %v776_v21 }
 0x4c7   : > { %1030 = vmatpush.msrb.mxu3 %v6111_v25 }
 0x4c9   : > { %v5036_v24 = vpop.eup %5035  ;;  %1031 = vmatpush.msrb.mxu3 %v6113_v26 }
 0x4ca   : > { %v808_v47 = vmul.f32 2.0, %v5036_v24  ;;  %v775_v49 = vmul.f32 %v5036_v24, %v6353_v7 }
 0x4cb   : > { %1032 = vmatpush.msrb.mxu3 %v6117_v27 }
 0x4cc   : > { %v777_v50 = vadd.f32 %v775_v49, %v6393_v56  ;;  %v810_v51 = vadd.f32 %v808_v47, %v806_v45 }
 0x4cd   : > { %1033 = vmatpush.msrb.mxu3 %v6123_v28 }
 0x4ce   : > { %797 = vmatmul.f32.gmra.mxu3 %v777_v50 }
 0x4cf   : > { %1034 = vmatpush.msrb.mxu3 %v6128_v29 }
 0x4d1   : > { %1035 = vmatpush.msrb.mxu3 %v6135_v30 }
 0x4d3   : > { %1036 = vmatpush.msrb.mxu3 %v6141_v31 }
 0x4d5   : > { %1037 = vmatpush.msrb.mxu3 %v6147_v32 }
 0x4d7   : > { %1038 = vmatpush.msrb.mxu3 %v6153_v33 }
 0x4d9   : > { %1039 = vmatpush.msrb.mxu3 %v6159_v34 }
 0x4db   : > { %1040 = vmatpush.msrb.mxu3 %v6165_v35 }
 0x4dd   : > { %1041 = vmatpush.msrb.mxu3 %v6171_v36 }
 0x4df   : > { %1042 = vmatpush.msrb.mxu3 %v6177_v37 }
 0x4e1   : > { %1043 = vmatpush.msrb.mxu3 %v6183_v38 }
 0x4e3   : > { %1044 = vmatpush.msrb.mxu3 %v6189_v39 }
 0x4e5   : > { %1045 = vmatpush.msrb.mxu3 %v6195_v40 }
 0x549   : > { %v795_v52 = vpop.f32.mrf.mxu3 }
 0x54a   : > { %v796_v54 = vadd.f32 %v6293_v43, %v795_v52 }
 0x54c   : > { %5037 = vtanh.f32 %v796_v54 }
 0x551   : > { %v798_v55 = vpop.f32.mrf.mxu3 }
 0x552   : > { %v5038_v44 = vpop.eup %5037  ;;  %v799_v41 = vadd.f32 %v6293_v43, %v798_v55 }
 0x553   : > { %v811_v42 = vadd.f32 %v5038_v44, %v809_v22  ;;  %v6572_v44 = vld [vmem:[#allocation3 + $0x68] sm:$0xff] }
 0x554   : > { %5039 = vtanh.f32 %v799_v41 }
 0x555   : > { %v813_v57 = vmul.f32 %v811_v42, %v6380_v46 }
 0x557   : > { %v6487_v58 = vadd.f32 %v813_v57, %v6385_v53  ;;  %v6596_v57 = vld [vmem:[#allocation3 + $0x78] sm:$0xff] }
 0x559   : > { %833 = vmatmul.f32.vlgmr.msra.gmra.mxu0 %v6487_v58 }
 0x55a   : > { %v5040_v59 = vpop.eup %5039  ;;  %1069 = vmatpush.msra.mxu0 %v6111_v25 }
 0x55b   : > { %v812_v60 = vadd.f32 %v5040_v59, %v810_v51  ;;  %v6567_v51 = vld [vmem:[#allocation3 + $0x70] sm:$0xff] }
 0x55c   : > { %1070 = vmatpush.msra.mxu0 %v6113_v26 }
 0x55d   : > { %v814_v61 = vmul.f32 %v812_v60, %v6380_v46 }
 0x55e   : > { %1071 = vmatpush.msra.mxu0 %v6117_v27 }
 0x55f   : > { %v6495_v62 = vadd.f32 %v814_v61, %v6393_v56 }
 0x560   : > { %1072 = vmatpush.msra.mxu0 %v6123_v28 }
 0x561   : > { %836 = vmatmul.f32.gmra.mxu0 %v6495_v62 }
 0x562   : > { %1073 = vmatpush.msra.mxu0 %v6128_v29 }
 0x564   : > { %1074 = vmatpush.msra.mxu0 %v6135_v30 }
 0x566   : > { %1075 = vmatpush.msra.mxu0 %v6141_v31 }
 0x568   : > { %1076 = vmatpush.msra.mxu0 %v6147_v32 }
 0x56a   : > { %1077 = vmatpush.msra.mxu0 %v6153_v33 }
 0x56c   : > { %1078 = vmatpush.msra.mxu0 %v6159_v34 }
 0x56e   : > { %1079 = vmatpush.msra.mxu0 %v6165_v35 }
 0x570   : > { %1080 = vmatpush.msra.mxu0 %v6171_v36 }
 0x572   : > { %1081 = vmatpush.msra.mxu0 %v6177_v37 }
 0x574   : > { %1082 = vmatpush.msra.mxu0 %v6183_v38 }
 0x576   : > { %1083 = vmatpush.msra.mxu0 %v6189_v39 }
 0x578   : > { %1084 = vmatpush.msra.mxu0 %v6195_v40 }
 0x5d6   : > { %v834_v53 = vpop.f32.mrf.mxu0 }
 0x5d7   : > { %v835_v56 = vadd.f32 %v6293_v43, %v834_v53  ;;  %v6605_v53 = vld [vmem:[#allocation3 + $0x60] sm:$0xff] }
 0x5d9   : > { %5041 = vtanh.f32 %v835_v56  ;;  %v6612_v56 = vld [vmem:[#allocation3 + $0x50] sm:$0xff] }
 0x5de   : > { %v837_v63 = vpop.f32.mrf.mxu0 }
 0x5df   : > { %v6512_v0 = vpop.eup %5041  ;;  %v838_v1 = vadd.f32 %v6293_v43, %v837_v63  ;;  %v6615_v63 = vld [vmem:[#allocation3 + $0x48] sm:$0xff] }
 0x5e0   : > { %v842_v2 = vmul.f32 %v6512_v0, %v6300_v48 }
 0x5e1   : > { %5043 = vtanh.f32 %v838_v1  ;;  %v6624_v1 = vld [vmem:[#allocation3 + $0x30] sm:$0xff] }
 0x5e2   : > { %v844_v3 = vadd.f32 %v842_v2, %v6487_v58  ;;  %v6627_v2 = vld [vmem:[#allocation3 + $0x28] sm:$0xff] }
 0x5e4   : > { %862 = vmatmul.f32.vlgmr.msra.gmra.mxu1 %v844_v3 }
 0x5e5   : > { %1098 = vmatpush.msra.mxu1 %v6111_v25 }
 0x5e7   : > { %v6519_v4 = vpop.eup %5043  ;;  %1099 = vmatpush.msra.mxu1 %v6113_v26 }
 0x5e8   : > { %v843_v5 = vmul.f32 %v6519_v4, %v6300_v48 }
 0x5e9   : > { %1100 = vmatpush.msra.mxu1 %v6117_v27 }
 0x5ea   : > { %v845_v6 = vadd.f32 %v843_v5, %v6495_v62 }
 0x5eb   : > { %1101 = vmatpush.msra.mxu1 %v6123_v28 }
 0x5ec   : > { %865 = vmatmul.f32.gmra.mxu1 %v845_v6 }
 0x5ed   : > { %1102 = vmatpush.msra.mxu1 %v6128_v29 }
 0x5ef   : > { %1103 = vmatpush.msra.mxu1 %v6135_v30 }
 0x5f1   : > { %1104 = vmatpush.msra.mxu1 %v6141_v31 }
 0x5f3   : > { %1105 = vmatpush.msra.mxu1 %v6147_v32 }
 0x5f5   : > { %1106 = vmatpush.msra.mxu1 %v6153_v33 }
 0x5f7   : > { %1107 = vmatpush.msra.mxu1 %v6159_v34 }
 0x5f9   : > { %1108 = vmatpush.msra.mxu1 %v6165_v35 }
 0x5fb   : > { %1109 = vmatpush.msra.mxu1 %v6171_v36 }
 0x5fd   : > { %1110 = vmatpush.msra.mxu1 %v6177_v37 }
 0x5ff   : > { %1111 = vmatpush.msra.mxu1 %v6183_v38 }
 0x601   : > { %1112 = vmatpush.msra.mxu1 %v6189_v39 }
 0x603   : > { %1113 = vmatpush.msra.mxu1 %v6195_v40 }
 0x661   : > { %v863_v8 = vpop.f32.mrf.mxu1 }
 0x662   : > { %v864_v9 = vadd.f32 %v6293_v43, %v863_v8 }
 0x664   : > { %5045 = vtanh.f32 %v864_v9  ;;  %v6658_v9 = vld [vmem:[#allocation3 + $0x20] sm:$0xff] }
 0x669   : > { %v866_v10 = vpop.f32.mrf.mxu1 }
 0x66a   : > { %v5046_v11 = vpop.eup %5045  ;;  %v867_v12 = vadd.f32 %v6293_v43, %v866_v10  ;;  %v6661_v10 = vld [vmem:[#allocation3 + $0x18] sm:$0xff] }
 0x66b   : > { %v871_v13 = vmul.f32 %v5046_v11, %v6300_v48  ;;  %v929_v18 = vmul.f32 2.0, %v5046_v11  ;;  %v6664_v11 = vld [vmem:[#allocation3 + $0x10] sm:$0xff] }
 0x66c   : > { %5047 = vtanh.f32 %v867_v12  ;;  %v6667_v12 = vld [vmem:[#allocation3 + $0x8] sm:$0xff] }
 0x66d   : > { %v873_v14 = vadd.f32 %v871_v13, %v6487_v58  ;;  %v931_v22 = vadd.f32 %v6512_v0, %v929_v18  ;;  %v6621_v0 = vld [vmem:[#allocation3 + $0x38] sm:$0xff]  ;;  %v6670_v13 = vld [vmem:[#allocation3] sm:$0xff] }
 0x66f   : > { %891 = vmatmul.f32.vlgmr.msra.gmra.mxu2 %v873_v14 }
 0x670   : > { %1127 = vmatpush.msra.mxu2 %v6111_v25 }
 0x672   : > { %v5048_v15 = vpop.eup %5047  ;;  %1128 = vmatpush.msra.mxu2 %v6113_v26 }
 0x673   : > { %v872_v16 = vmul.f32 %v5048_v15, %v6300_v48  ;;  %v930_v49 = vmul.f32 2.0, %v5048_v15 }
 0x674   : > { %1129 = vmatpush.msra.mxu2 %v6117_v27 }
 0x675   : > { %v874_v17 = vadd.f32 %v872_v16, %v6495_v62  ;;  %v932_v52 = vadd.f32 %v6519_v4, %v930_v49 }
 0x676   : > { %1130 = vmatpush.msra.mxu2 %v6123_v28 }
 0x677   : > { %894 = vmatmul.f32.gmra.mxu2 %v874_v17 }
 0x678   : > { %1131 = vmatpush.msra.mxu2 %v6128_v29 }
 0x67a   : > { %1132 = vmatpush.msra.mxu2 %v6135_v30 }
 0x67c   : > { %1133 = vmatpush.msra.mxu2 %v6141_v31 }
 0x67e   : > { %1134 = vmatpush.msra.mxu2 %v6147_v32 }
 0x680   : > { %1135 = vmatpush.msra.mxu2 %v6153_v33 }
 0x682   : > { %1136 = vmatpush.msra.mxu2 %v6159_v34 }
 0x684   : > { %1137 = vmatpush.msra.mxu2 %v6165_v35 }
 0x686   : > { %1138 = vmatpush.msra.mxu2 %v6171_v36 }
 0x688   : > { %1139 = vmatpush.msra.mxu2 %v6177_v37 }
 0x68a   : > { %1140 = vmatpush.msra.mxu2 %v6183_v38 }
 0x68c   : > { %1141 = vmatpush.msra.mxu2 %v6189_v39 }
 0x68e   : > { %1142 = vmatpush.msra.mxu2 %v6195_v40 }
 0x6f2   : > { %v892_v26 = vpop.f32.mrf.mxu2 }
 0x6f3   : > { %v893_v27 = vadd.f32 %v6293_v43, %v892_v26 }
 0x6f5   : > { %5049 = vtanh.f32 %v893_v27 }
 0x6fa   : > { %v895_v19 = vpop.f32.mrf.mxu2 }
 0x6fb   : > { %v5050_v20 = vpop.eup %5049  ;;  %v896_v21 = vadd.f32 %v6293_v43, %v895_v19 }
 0x6fc   : > { %v900_v23 = vmul.f32 %v5050_v20, %v6353_v7  ;;  %v933_v24 = vmul.f32 2.0, %v5050_v20 }
 0x6fd   : > { %5051 = vtanh.f32 %v896_v21 }
 0x6fe   : > { %v902_v45 = vadd.f32 %v900_v23, %v6487_v58  ;;  %v935_v47 = vadd.f32 %v933_v24, %v931_v22 }
 0x700   : > { %920 = vmatmul.f32.vlgmr.msra.gmra.mxu3 %v902_v45 }
 0x701   : > { %1156 = vmatpush.msra.mxu3 %v6111_v25 }
 0x703   : > { %v5052_v50 = vpop.eup %5051  ;;  %1157 = vmatpush.msra.mxu3 %v6567_v51 }
 0x704   : > { %v934_v54 = vmul.f32 2.0, %v5052_v50  ;;  %v901_v55 = vmul.f32 %v5052_v50, %v6353_v7 }
 0x705   : > { %1158 = vmatpush.msra.mxu3 %v6572_v44 }
 0x706   : > { %v903_v41 = vadd.f32 %v901_v55, %v6495_v62  ;;  %v936_v42 = vadd.f32 %v934_v54, %v932_v52 }
 0x707   : > { %1159 = vmatpush.msra.mxu3 %v6123_v28 }
 0x708   : > { %923 = vmatmul.f32.gmra.mxu3 %v903_v41 }
 0x709   : > { %1160 = vmatpush.msra.mxu3 %v6128_v29 }
 0x70b   : > { %1161 = vmatpush.msra.mxu3 %v6135_v30 }
 0x70d   : > { %1162 = vmatpush.msra.mxu3 %v6141_v31 }
 0x70f   : > { %1163 = vmatpush.msra.mxu3 %v6147_v32 }
 0x711   : > { %1164 = vmatpush.msra.mxu3 %v6153_v33 }
 0x713   : > { %1165 = vmatpush.msra.mxu3 %v6159_v34 }
 0x715   : > { %1166 = vmatpush.msra.mxu3 %v6165_v35 }
 0x717   : > { %1167 = vmatpush.msra.mxu3 %v6171_v36 }
 0x719   : > { %1168 = vmatpush.msra.mxu3 %v6177_v37 }
 0x71b   : > { %1169 = vmatpush.msra.mxu3 %v6183_v38 }
 0x71d   : > { %1170 = vmatpush.msra.mxu3 %v6189_v39 }
 0x71f   : > { %1171 = vmatpush.msra.mxu3 %v6195_v40 }
 0x783   : > { %v921_v25 = vpop.f32.mrf.mxu3 }
 0x784   : > { %v922_v28 = vadd.f32 %v6293_v43, %v921_v25 }
 0x786   : > { %5053 = vtanh.f32 %v922_v28 }
 0x78b   : > { %v924_v29 = vpop.f32.mrf.mxu3 }
 0x78c   : > { %v5054_v30 = vpop.eup %5053  ;;  %v925_v31 = vadd.f32 %v6293_v43, %v924_v29 }
 0x78d   : > { %v937_v32 = vadd.f32 %v5054_v30, %v935_v47 }
 0x78e   : > { %5055 = vtanh.f32 %v925_v31 }
 0x78f   : > { %v939_v33 = vmul.f32 %v937_v32, %v6380_v46 }
 0x791   : > { %v6593_v34 = vadd.f32 %v939_v33, %v6487_v58  ;;  %v6609_v58 = vld [vmem:[#allocation3 + $0x58] sm:$0xff] }
 0x793   : > { %959 = vmatmul.f32.vlgmr.msrb.gmra.mxu0 %v6593_v34 }
 0x794   : > { %v5056_v35 = vpop.eup %5055  ;;  %1195 = vmatpush.msrb.mxu0 %v6596_v57 }
 0x795   : > { %v938_v59 = vadd.f32 %v5056_v35, %v936_v42 }
 0x796   : > { %1196 = vmatpush.msrb.mxu0 %v6567_v51 }
 0x797   : > { %v940_v60 = vmul.f32 %v938_v59, %v6380_v46 }
 0x798   : > { %1197 = vmatpush.msrb.mxu0 %v6572_v44 }
 0x799   : > { %v6603_v61 = vadd.f32 %v940_v60, %v6495_v62  ;;  %v6618_v62 = vld [vmem:[#allocation3 + $0x40] sm:$0xff] }
 0x79a   : > { %1198 = vmatpush.msrb.mxu0 %v6605_v53 }
 0x79b   : > { %962 = vmatmul.f32.gmra.mxu0 %v6603_v61 }
 0x79c   : > { %1199 = vmatpush.msrb.mxu0 %v6609_v58 }
 0x79e   : > { %1200 = vmatpush.msrb.mxu0 %v6612_v56 }
 0x7a0   : > { %1201 = vmatpush.msrb.mxu0 %v6615_v63 }
 0x7a2   : > { %1202 = vmatpush.msrb.mxu0 %v6618_v62 }
 0x7a4   : > { %1203 = vmatpush.msrb.mxu0 %v6621_v0 }
 0x7a6   : > { %1204 = vmatpush.msrb.mxu0 %v6624_v1 }
 0x7a8   : > { %1205 = vmatpush.msrb.mxu0 %v6627_v2 }
 0x7aa   : > { %1206 = vmatpush.msrb.mxu0 %v6171_v36 }
 0x7ac   : > { %1207 = vmatpush.msrb.mxu0 %v6177_v37 }
 0x7ae   : > { %1208 = vmatpush.msrb.mxu0 %v6183_v38 }
 0x7b0   : > { %1209 = vmatpush.msrb.mxu0 %v6189_v39 }
 0x7b2   : > { %1210 = vmatpush.msrb.mxu0 %v6195_v40 }
 0x810   : > { %v960_v3 = vpop.f32.mrf.mxu0 }
 0x811   : > { %v961_v4 = vadd.f32 %v6293_v43, %v960_v3 }
 0x813   : > { %5057 = vtanh.f32 %v961_v4 }
 0x818   : > { %v963_v5 = vpop.f32.mrf.mxu0 }
 0x819   : > { %v6636_v6 = vpop.eup %5057  ;;  %v964_v8 = vadd.f32 %v6293_v43, %v963_v5 }
 0x81a   : > { %v968_v36 = vmul.f32 %v6636_v6, %v6300_v48 }
 0x81b   : > { %5059 = vtanh.f32 %v964_v8 }
 0x81c   : > { %v970_v37 = vadd.f32 %v968_v36, %v6593_v34 }
 0x81e   : > { %988 = vmatmul.f32.vlgmr.msrb.gmra.mxu1 %v970_v37 }
 0x81f   : > { %1224 = vmatpush.msrb.mxu1 %v6596_v57 }
 0x821   : > { %v6643_v38 = vpop.eup %5059  ;;  %1225 = vmatpush.msrb.mxu1 %v6567_v51 }
 0x822   : > { %v969_v39 = vmul.f32 %v6643_v38, %v6300_v48 }
 0x823   : > { %1226 = vmatpush.msrb.mxu1 %v6572_v44 }
 0x824   : > { %v971_v40 = vadd.f32 %v969_v39, %v6603_v61 }
 0x825   : > { %1227 = vmatpush.msrb.mxu1 %v6605_v53 }
 0x826   : > { %991 = vmatmul.f32.gmra.mxu1 %v971_v40 }
 0x827   : > { %1228 = vmatpush.msrb.mxu1 %v6609_v58 }
 0x829   : > { %1229 = vmatpush.msrb.mxu1 %v6612_v56 }
 0x82b   : > { %1230 = vmatpush.msrb.mxu1 %v6615_v63 }
 0x82d   : > { %1231 = vmatpush.msrb.mxu1 %v6618_v62 }
 0x82f   : > { %1232 = vmatpush.msrb.mxu1 %v6621_v0 }
 0x831   : > { %1233 = vmatpush.msrb.mxu1 %v6624_v1 }
 0x833   : > { %1234 = vmatpush.msrb.mxu1 %v6627_v2 }
 0x835   : > { %1235 = vmatpush.msrb.mxu1 %v6658_v9 }
 0x837   : > { %1236 = vmatpush.msrb.mxu1 %v6661_v10 }
 0x839   : > { %1237 = vmatpush.msrb.mxu1 %v6664_v11 }
 0x83b   : > { %1238 = vmatpush.msrb.mxu1 %v6667_v12 }
 0x83d   : > { %1239 = vmatpush.msrb.mxu1 %v6670_v13 }
 0x89b   : > { %v989_v14 = vpop.f32.mrf.mxu1 }
 0x89c   : > { %v990_v15 = vadd.f32 %v6293_v43, %v989_v14 }
 0x89e   : > { %5061 = vtanh.f32 %v990_v15 }
 0x8a3   : > { %v992_v16 = vpop.f32.mrf.mxu1 }
 0x8a4   : > { %v5062_v17 = vpop.eup %5061  ;;  %v993_v26 = vadd.f32 %v6293_v43, %v992_v16 }
 0x8a5   : > { %v997_v27 = vmul.f32 %v5062_v17, %v6300_v48  ;;  %v1055_v24 = vmul.f32 2.0, %v5062_v17 }
 0x8a6   : > { %5063 = vtanh.f32 %v993_v26 }
 0x8a7   : > { %v999_v18 = vadd.f32 %v997_v27, %v6593_v34  ;;  %v1057_v50 = vadd.f32 %v6636_v6, %v1055_v24 }
 0x8a9   : > { %1017 = vmatmul.f32.vlgmr.msrb.gmra.mxu2 %v999_v18 }
 0x8aa   : > { %1253 = vmatpush.msrb.mxu2 %v6596_v57 }
 0x8ac   : > { %v5064_v19 = vpop.eup %5063  ;;  %1254 = vmatpush.msrb.mxu2 %v6567_v51 }
 0x8ad   : > { %v998_v20 = vmul.f32 %v5064_v19, %v6300_v48  ;;  %v1056_v42 = vmul.f32 2.0, %v5064_v19 }
 0x8ae   : > { %1255 = vmatpush.msrb.mxu2 %v6572_v44 }
 0x8af   : > { %v1000_v21 = vadd.f32 %v998_v20, %v6603_v61  ;;  %v1058_v28 = vadd.f32 %v6643_v38, %v1056_v42 }
 0x8b0   : > { %1256 = vmatpush.msrb.mxu2 %v6605_v53 }
 0x8b1   : > { %1020 = vmatmul.f32.gmra.mxu2 %v1000_v21 }
 0x8b2   : > { %1257 = vmatpush.msrb.mxu2 %v6609_v58 }
 0x8b4   : > { %1258 = vmatpush.msrb.mxu2 %v6612_v56 }
 0x8b6   : > { %1259 = vmatpush.msrb.mxu2 %v6615_v63 }
 0x8b8   : > { %1260 = vmatpush.msrb.mxu2 %v6618_v62 }
 0x8ba   : > { %1261 = vmatpush.msrb.mxu2 %v6621_v0 }
 0x8bc   : > { %1262 = vmatpush.msrb.mxu2 %v6624_v1 }
 0x8be   : > { %1263 = vmatpush.msrb.mxu2 %v6627_v2 }
 0x8c0   : > { %1264 = vmatpush.msrb.mxu2 %v6658_v9 }
 0x8c2   : > { %1265 = vmatpush.msrb.mxu2 %v6661_v10 }
 0x8c4   : > { %1266 = vmatpush.msrb.mxu2 %v6664_v11 }
 0x8c6   : > { %1267 = vmatpush.msrb.mxu2 %v6667_v12 }
 0x8c8   : > { %1268 = vmatpush.msrb.mxu2 %v6670_v13 }
 0x92c   : > { %v1018_v22 = vpop.f32.mrf.mxu2 }
 0x92d   : > { %v1019_v23 = vadd.f32 %v6293_v43, %v1018_v22 }
 0x92f   : > { %5065 = vtanh.f32 %v1019_v23 }
 0x934   : > { %v1021_v45 = vpop.f32.mrf.mxu2 }
 0x935   : > { %v5066_v47 = vpop.eup %5065  ;;  %v1022_v49 = vadd.f32 %v6293_v43, %v1021_v45 }
 0x936   : > { %v1026_v52 = vmul.f32 %v5066_v47, %v6353_v7  ;;  %v1059_v54 = vmul.f32 2.0, %v5066_v47 }
 0x937   : > { %5067 = vtanh.f32 %v1022_v49 }
 0x938   : > { %v1028_v55 = vadd.f32 %v1026_v52, %v6593_v34  ;;  %v1061_v41 = vadd.f32 %v1059_v54, %v1057_v50 }
 0x93a   : > { %1046 = vmatmul.f32.vlgmr.msrb.gmra.mxu3 %v1028_v55 }
 0x93b   : > { %1282 = vmatpush.msrb.mxu3 %v6596_v57 }
 0x93d   : > { %v5068_v25 = vpop.eup %5067  ;;  %1283 = vmatpush.msrb.mxu3 %v6567_v51 }
 0x93e   : > { %v1060_v29 = vmul.f32 2.0, %v5068_v25  ;;  %v1027_v30 = vmul.f32 %v5068_v25, %v6353_v7 }
 0x93f   : > { %1284 = vmatpush.msrb.mxu3 %v6572_v44 }
 0x940   : > { %v1029_v31 = vadd.f32 %v1027_v30, %v6603_v61  ;;  %v1062_v32 = vadd.f32 %v1060_v29, %v1058_v28 }
 0x941   : > { %1285 = vmatpush.msrb.mxu3 %v6605_v53 }
 0x942   : > { %1049 = vmatmul.f32.gmra.mxu3 %v1029_v31 }
 0x943   : > { %1286 = vmatpush.msrb.mxu3 %v6609_v58 }
 0x945   : > { %1287 = vmatpush.msrb.mxu3 %v6612_v56 }
 0x947   : > { %1288 = vmatpush.msrb.mxu3 %v6615_v63 }
 0x949   : > { %1289 = vmatpush.msrb.mxu3 %v6618_v62 }
 0x94b   : > { %1290 = vmatpush.msrb.mxu3 %v6621_v0 }
 0x94d   : > { %1291 = vmatpush.msrb.mxu3 %v6624_v1 }
 0x94f   : > { %1292 = vmatpush.msrb.mxu3 %v6627_v2 }
 0x951   : > { %1293 = vmatpush.msrb.mxu3 %v6658_v9 }
 0x953   : > { %1294 = vmatpush.msrb.mxu3 %v6661_v10 }
 0x955   : > { %1295 = vmatpush.msrb.mxu3 %v6664_v11 }
 0x957   : > { %1296 = vmatpush.msrb.mxu3 %v6667_v12 }
 0x959   : > { %1297 = vmatpush.msrb.mxu3 %v6670_v13 }
 0x9bd   : > { %v1047_v33 = vpop.f32.mrf.mxu3 }
 0x9be   : > { %v1048_v35 = vadd.f32 %v6293_v43, %v1047_v33 }
 0x9c0   : > { %5069 = vtanh.f32 %v1048_v35 }
 0x9c5   : > { %v1050_v59 = vpop.f32.mrf.mxu3 }
 0x9c6   : > { %v5070_v60 = vpop.eup %5069  ;;  %v1051_v3 = vadd.f32 %v6293_v43, %v1050_v59 }
 0x9c7   : > { %v1063_v4 = vadd.f32 %v5070_v60, %v1061_v41 }
 0x9c8   : > { %5071 = vtanh.f32 %v1051_v3 }
 0x9c9   : > { %v1065_v5 = vmul.f32 %v1063_v4, %v6380_v46 }
 0x9cb   : > { %v6723_v6 = vadd.f32 %v1065_v5, %v6593_v34 }
 0x9cd   : > { %1085 = vmatmul.f32.vlgmr.msra.gmra.mxu0 %v6723_v6 }
 0x9ce   : > { %v5072_v8 = vpop.eup %5071  ;;  %1321 = vmatpush.msra.mxu0 %v6596_v57 }
 0x9cf   : > { %v1064_v36 = vadd.f32 %v5072_v8, %v1062_v32 }
 0x9d0   : > { %1322 = vmatpush.msra.mxu0 %v6567_v51 }
 0x9d1   : > { %v1066_v37 = vmul.f32 %v1064_v36, %v6380_v46 }
 0x9d2   : > { %1323 = vmatpush.msra.mxu0 %v6572_v44 }
 0x9d3   : > { %v6731_v43 = vadd.f32 %v1066_v37, %v6603_v61  ;;  %v6747_v61 = vld [vmem:[#allocation9] ss:$0 sm:$0xff] }
 0x9d4   : > { %1324 = vmatpush.msra.mxu0 %v6605_v53 }
 0x9d5   : > { %1088 = vmatmul.f32.gmra.mxu0 %v6731_v43 }
 0x9d6   : > { %1325 = vmatpush.msra.mxu0 %v6609_v58 }
 0x9d8   : > { %1326 = vmatpush.msra.mxu0 %v6612_v56 }
 0x9da   : > { %1327 = vmatpush.msra.mxu0 %v6615_v63 }
 0x9dc   : > { %1328 = vmatpush.msra.mxu0 %v6618_v62 }
 0x9de   : > { %1329 = vmatpush.msra.mxu0 %v6621_v0 }
 0x9e0   : > { %1330 = vmatpush.msra.mxu0 %v6624_v1 }
 0x9e2   : > { %1331 = vmatpush.msra.mxu0 %v6627_v2 }
 0x9e4   : > { %1332 = vmatpush.msra.mxu0 %v6658_v9 }
 0x9e6   : > { %1333 = vmatpush.msra.mxu0 %v6661_v10 }
 0x9e8   : > { %1334 = vmatpush.msra.mxu0 %v6664_v11 }
 0x9ea   : > { %1335 = vmatpush.msra.mxu0 %v6667_v12 }
 0x9ec   : > { %1336 = vmatpush.msra.mxu0 %v6670_v13 }
 0xa4a   : > { %v1086_v34 = vpop.f32.mrf.mxu0 }
 0xa4b   : > { %v1087_v38 = vadd.f32 %v6747_v61, %v1086_v34 }
 0xa4d   : > { %5073 = vtanh.f32 %v1087_v38 }
 0xa52   : > { %v1089_v39 = vpop.f32.mrf.mxu0 }
 0xa53   : > { %v6750_v40 = vpop.eup %5073  ;;  %v1090_v14 = vadd.f32 %v6747_v61, %v1089_v39 }
 0xa54   : > { %v1094_v15 = vmul.f32 %v6750_v40, %v6300_v48 }
 0xa55   : > { %5075 = vtanh.f32 %v1090_v14 }
 0xa56   : > { %v1096_v16 = vadd.f32 %v1094_v15, %v6723_v6 }
 0xa58   : > { %1114 = vmatmul.f32.vlgmr.msra.gmra.mxu1 %v1096_v16 }
 0xa59   : > { %1350 = vmatpush.msra.mxu1 %v6596_v57 }
 0xa5b   : > { %v6757_v17 = vpop.eup %5075  ;;  %1351 = vmatpush.msra.mxu1 %v6567_v51 }
 0xa5c   : > { %v1095_v26 = vmul.f32 %v6757_v17, %v6300_v48 }
 0xa5d   : > { %1352 = vmatpush.msra.mxu1 %v6572_v44 }
 0xa5e   : > { %v1097_v27 = vadd.f32 %v1095_v26, %v6731_v43 }
 0xa5f   : > { %1353 = vmatpush.msra.mxu1 %v6605_v53 }
 0xa60   : > { %1117 = vmatmul.f32.gmra.mxu1 %v1097_v27 }
 0xa61   : > { %1354 = vmatpush.msra.mxu1 %v6609_v58 }
 0xa63   : > { %1355 = vmatpush.msra.mxu1 %v6612_v56 }
 0xa65   : > { %1356 = vmatpush.msra.mxu1 %v6615_v63 }
 0xa67   : > { %1357 = vmatpush.msra.mxu1 %v6618_v62 }
 0xa69   : > { %1358 = vmatpush.msra.mxu1 %v6621_v0 }
 0xa6b   : > { %1359 = vmatpush.msra.mxu1 %v6624_v1 }
 0xa6d   : > { %1360 = vmatpush.msra.mxu1 %v6627_v2 }
 0xa6f   : > { %1361 = vmatpush.msra.mxu1 %v6658_v9 }
 0xa71   : > { %1362 = vmatpush.msra.mxu1 %v6661_v10 }
 0xa73   : > { %1363 = vmatpush.msra.mxu1 %v6664_v11 }
 0xa75   : > { %1364 = vmatpush.msra.mxu1 %v6667_v12 }
 0xa77   : > { %1365 = vmatpush.msra.mxu1 %v6670_v13 }
 0xad5   : > { %v1115_v18 = vpop.f32.mrf.mxu1 }
 0xad6   : > { %v1116_v19 = vadd.f32 %v6747_v61, %v1115_v18 }
 0xad8   : > { %5077 = vtanh.f32 %v1116_v19 }
 0xadd   : > { %v1118_v20 = vpop.f32.mrf.mxu1 }
 0xade   : > { %v5078_v21 = vpop.eup %5077  ;;  %v1119_v22 = vadd.f32 %v6747_v61, %v1118_v20 }
 0xadf   : > { %v1123_v23 = vmul.f32 %v5078_v21, %v6300_v48  ;;  %v1181_v54 = vmul.f32 2.0, %v5078_v21 }
 0xae0   : > { %5079 = vtanh.f32 %v1119_v22 }
 0xae1   : > { %v1125_v24 = vadd.f32 %v1123_v23, %v6723_v6  ;;  %v1183_v25 = vadd.f32 %v6750_v40, %v1181_v54 }
 0xae3   : > { %1143 = vmatmul.f32.vlgmr.msra.gmra.mxu2 %v1125_v24 }
 0xae4   : > { %1379 = vmatpush.msra.mxu2 %v6596_v57 }
 0xae6   : > { %v5080_v45 = vpop.eup %5079  ;;  %1380 = vmatpush.msra.mxu2 %v6567_v51 }
 0xae7   : > { %v1124_v47 = vmul.f32 %v5080_v45, %v6300_v48  ;;  %v1182_v32 = vmul.f32 2.0, %v5080_v45 }
 0xae8   : > { %1381 = vmatpush.msra.mxu2 %v6572_v44 }
 0xae9   : > { %v1126_v49 = vadd.f32 %v1124_v47, %v6731_v43  ;;  %v1184_v35 = vadd.f32 %v6757_v17, %v1182_v32 }
 0xaea   : > { %1382 = vmatpush.msra.mxu2 %v6605_v53 }
 0xaeb   : > { %1146 = vmatmul.f32.gmra.mxu2 %v1126_v49 }
 0xaec   : > { %1383 = vmatpush.msra.mxu2 %v6609_v58 }
 0xaee   : > { %1384 = vmatpush.msra.mxu2 %v6612_v56 }
 0xaf0   : > { %1385 = vmatpush.msra.mxu2 %v6615_v63 }
 0xaf2   : > { %1386 = vmatpush.msra.mxu2 %v6618_v62 }
 0xaf4   : > { %1387 = vmatpush.msra.mxu2 %v6621_v0 }
 0xaf6   : > { %1388 = vmatpush.msra.mxu2 %v6624_v1 }
 0xaf8   : > { %1389 = vmatpush.msra.mxu2 %v6627_v2 }
 0xafa   : > { %1390 = vmatpush.msra.mxu2 %v6658_v9 }
 0xafc   : > { %1391 = vmatpush.msra.mxu2 %v6661_v10 }
 0xafe   : > { %1392 = vmatpush.msra.mxu2 %v6664_v11 }
 0xb00   : > { %1393 = vmatpush.msra.mxu2 %v6667_v12 }
 0xb02   : > { %1394 = vmatpush.msra.mxu2 %v6670_v13 }
 0xb66   : > { %v1144_v50 = vpop.f32.mrf.mxu2 }
 0xb67   : > { %v1145_v52 = vadd.f32 %v6747_v61, %v1144_v50 }
 0xb69   : > { %5081 = vtanh.f32 %v1145_v52 }
 0xb6e   : > { %v1147_v55 = vpop.f32.mrf.mxu2 }
 0xb6f   : > { %v5082_v41 = vpop.eup %5081  ;;  %v1148_v42 = vadd.f32 %v6747_v61, %v1147_v55 }
 0xb70   : > { %v1152_v28 = vmul.f32 %v5082_v41, %v6353_v7  ;;  %v1185_v29 = vmul.f32 2.0, %v5082_v41 }
 0xb71   : > { %5083 = vtanh.f32 %v1148_v42 }
 0xb72   : > { %v1154_v30 = vadd.f32 %v1152_v28, %v6723_v6  ;;  %v1187_v31 = vadd.f32 %v1185_v29, %v1183_v25 }
 0xb74   : > { %1172 = vmatmul.f32.vlgmr.msra.gmra.mxu3 %v1154_v30 }
 0xb75   : > { %1408 = vmatpush.msra.mxu3 %v6596_v57 }
 0xb77   : > { %v5084_v33 = vpop.eup %5083  ;;  %1409 = vmatpush.msra.mxu3 %v6567_v51 }
 0xb78   : > { %v1186_v59 = vmul.f32 2.0, %v5084_v33  ;;  %v1153_v60 = vmul.f32 %v5084_v33, %v6353_v7 }
 0xb79   : > { %1410 = vmatpush.msra.mxu3 %v6572_v44 }
 0xb7a   : > { %v1155_v3 = vadd.f32 %v1153_v60, %v6731_v43  ;;  %v1188_v4 = vadd.f32 %v1186_v59, %v1184_v35 }
 0xb7b   : > { %1411 = vmatpush.msra.mxu3 %v6605_v53 }
 0xb7c   : > { %1175 = vmatmul.f32.gmra.mxu3 %v1155_v3 }
 0xb7d   : > { %1412 = vmatpush.msra.mxu3 %v6609_v58 }
 0xb7f   : > { %1413 = vmatpush.msra.mxu3 %v6612_v56 }
 0xb81   : > { %1414 = vmatpush.msra.mxu3 %v6615_v63 }
 0xb83   : > { %1415 = vmatpush.msra.mxu3 %v6618_v62 }
 0xb85   : > { %1416 = vmatpush.msra.mxu3 %v6621_v0 }
 0xb87   : > { %1417 = vmatpush.msra.mxu3 %v6624_v1 }
 0xb89   : > { %1418 = vmatpush.msra.mxu3 %v6627_v2 }
 0xb8b   : > { %1419 = vmatpush.msra.mxu3 %v6658_v9 }
 0xb8d   : > { %1420 = vmatpush.msra.mxu3 %v6661_v10 }
 0xb8f   : > { %1421 = vmatpush.msra.mxu3 %v6664_v11 }
 0xb91   : > { %1422 = vmatpush.msra.mxu3 %v6667_v12 }
 0xb93   : > { %1423 = vmatpush.msra.mxu3 %v6670_v13 }
 0xbf7   : > { %v1173_v5 = vpop.f32.mrf.mxu3 }
 0xbf8   : > { %v1174_v8 = vadd.f32 %v6747_v61, %v1173_v5 }
 0xbfa   : > { %5085 = vtanh.f32 %v1174_v8 }
 0xbff   : > { %v1176_v36 = vpop.f32.mrf.mxu3 }
 0xc00   : > { %v5086_v37 = vpop.eup %5085  ;;  %v1177_v34 = vadd.f32 %v6747_v61, %v1176_v36 }
 0xc01   : > { %v1189_v38 = vadd.f32 %v5086_v37, %v1187_v31 }
 0xc02   : > { %5087 = vtanh.f32 %v1177_v34 }
 0xc03   : > { %v1191_v39 = vmul.f32 %v1189_v38, %v6380_v46 }
 0xc05   : > { %v6827_v40 = vadd.f32 %v1191_v39, %v6723_v6 }
 0xc07   : > { %1211 = vmatmul.f32.vlgmr.msrb.gmra.mxu0 %v6827_v40 }
 0xc08   : > { %v5088_v14 = vpop.eup %5087  ;;  %1447 = vmatpush.msrb.mxu0 %v6596_v57 }
 0xc09   : > { %v1190_v15 = vadd.f32 %v5088_v14, %v1188_v4 }
 0xc0a   : > { %1448 = vmatpush.msrb.mxu0 %v6567_v51 }
 0xc0b   : > { %v1192_v16 = vmul.f32 %v1190_v15, %v6380_v46 }
 0xc0c   : > { %1449 = vmatpush.msrb.mxu0 %v6572_v44 }
 0xc0d   : > { %v6835_v17 = vadd.f32 %v1192_v16, %v6731_v43 }
 0xc0e   : > { %1450 = vmatpush.msrb.mxu0 %v6605_v53 }
 0xc0f   : > { %1214 = vmatmul.f32.gmra.mxu0 %v6835_v17 }
 0xc10   : > { %1451 = vmatpush.msrb.mxu0 %v6609_v58 }
 0xc12   : > { %1452 = vmatpush.msrb.mxu0 %v6612_v56 }
 0xc14   : > { %1453 = vmatpush.msrb.mxu0 %v6615_v63 }
 0xc16   : > { %1454 = vmatpush.msrb.mxu0 %v6618_v62 }
 0xc18   : > { %1455 = vmatpush.msrb.mxu0 %v6621_v0 }
 0xc1a   : > { %1456 = vmatpush.msrb.mxu0 %v6624_v1 }
 0xc1c   : > { %1457 = vmatpush.msrb.mxu0 %v6627_v2 }
 0xc1e   : > { %1458 = vmatpush.msrb.mxu0 %v6658_v9 }
 0xc20   : > { %1459 = vmatpush.msrb.mxu0 %v6661_v10 }
 0xc22   : > { %1460 = vmatpush.msrb.mxu0 %v6664_v11 }
 0xc24   : > { %1461 = vmatpush.msrb.mxu0 %v6667_v12 }
 0xc26   : > { %1462 = vmatpush.msrb.mxu0 %v6670_v13 }
 0xc84   : > { %v1212_v6 = vpop.f32.mrf.mxu0 }
 0xc85   : > { %v1213_v43 = vadd.f32 %v6747_v61, %v1212_v6 }
 0xc87   : > { %5089 = vtanh.f32 %v1213_v43 }
 0xc8c   : > { %v1215_v26 = vpop.f32.mrf.mxu0 }
 0xc8d   : > { %v6852_v27 = vpop.eup %5089  ;;  %v1216_v18 = vadd.f32 %v6747_v61, %v1215_v26 }
 0xc8e   : > { %v1220_v19 = vmul.f32 %v6852_v27, %v6300_v48 }
 0xc8f   : > { %5091 = vtanh.f32 %v1216_v18 }
 0xc90   : > { %v1222_v20 = vadd.f32 %v1220_v19, %v6827_v40 }
 0xc92   : > { %1240 = vmatmul.f32.vlgmr.msrb.gmra.mxu1 %v1222_v20 }
 0xc93   : > { %1476 = vmatpush.msrb.mxu1 %v6596_v57 }
 0xc95   : > { %v6859_v21 = vpop.eup %5091  ;;  %1477 = vmatpush.msrb.mxu1 %v6567_v51 }
 0xc96   : > { %v1221_v22 = vmul.f32 %v6859_v21, %v6300_v48 }
 0xc97   : > { %1478 = vmatpush.msrb.mxu1 %v6572_v44 }
 0xc98   : > { %v1223_v23 = vadd.f32 %v1221_v22, %v6835_v17 }
 0xc99   : > { %1479 = vmatpush.msrb.mxu1 %v6605_v53 }
 0xc9a   : > { %1243 = vmatmul.f32.gmra.mxu1 %v1223_v23 }
 0xc9b   : > { %1480 = vmatpush.msrb.mxu1 %v6609_v58 }
 0xc9d   : > { %1481 = vmatpush.msrb.mxu1 %v6612_v56 }
 0xc9f   : > { %1482 = vmatpush.msrb.mxu1 %v6615_v63 }
 0xca1   : > { %1483 = vmatpush.msrb.mxu1 %v6618_v62 }
 0xca3   : > { %1484 = vmatpush.msrb.mxu1 %v6621_v0 }
 0xca5   : > { %1485 = vmatpush.msrb.mxu1 %v6624_v1 }
 0xca7   : > { %1486 = vmatpush.msrb.mxu1 %v6627_v2 }
 0xca9   : > { %1487 = vmatpush.msrb.mxu1 %v6658_v9 }
 0xcab   : > { %1488 = vmatpush.msrb.mxu1 %v6661_v10 }
 0xcad   : > { %1489 = vmatpush.msrb.mxu1 %v6664_v11 }
 0xcaf   : > { %1490 = vmatpush.msrb.mxu1 %v6667_v12 }
 0xcb1   : > { %1491 = vmatpush.msrb.mxu1 %v6670_v13 }
 0xd0f   : > { %v1241_v24 = vpop.f32.mrf.mxu1 }
 0xd10   : > { %v1242_v45 = vadd.f32 %v6747_v61, %v1241_v24 }
 0xd12   : > { %5093 = vtanh.f32 %v1242_v45 }
 0xd17   : > { %v1244_v47 = vpop.f32.mrf.mxu1 }
 0xd18   : > { %v5094_v49 = vpop.eup %5093  ;;  %v1245_v50 = vadd.f32 %v6747_v61, %v1244_v47 }
 0xd19   : > { %v1249_v52 = vmul.f32 %v5094_v49, %v6300_v48  ;;  %v1307_v29 = vmul.f32 2.0, %v5094_v49 }
 0xd1a   : > { %5095 = vtanh.f32 %v1245_v50 }
 0xd1b   : > { %v1251_v54 = vadd.f32 %v1249_v52, %v6827_v40  ;;  %v1309_v33 = vadd.f32 %v6852_v27, %v1307_v29 }
 0xd1d   : > { %1269 = vmatmul.f32.vlgmr.msrb.gmra.mxu2 %v1251_v54 }
 0xd1e   : > { %1505 = vmatpush.msrb.mxu2 %v6596_v57 }
 0xd20   : > { %v5096_v55 = vpop.eup %5095  ;;  %1506 = vmatpush.msrb.mxu2 %v6567_v51 }
 0xd21   : > { %v1250_v41 = vmul.f32 %v5096_v55, %v6300_v48  ;;  %v1308_v4 = vmul.f32 2.0, %v5096_v55 }
 0xd22   : > { %1507 = vmatpush.msrb.mxu2 %v6572_v44 }
 0xd23   : > { %v1252_v42 = vadd.f32 %v1250_v41, %v6835_v17  ;;  %v1310_v8 = vadd.f32 %v6859_v21, %v1308_v4  ;;  %v6975_v4 = vld [vmem:[#allocation3 + $0xe0] sm:$0xff] }
 0xd24   : > { %1508 = vmatpush.msrb.mxu2 %v6605_v53 }
 0xd25   : > { %1272 = vmatmul.f32.gmra.mxu2 %v1252_v42 }
 0xd26   : > { %1509 = vmatpush.msrb.mxu2 %v6609_v58 }
 0xd28   : > { %1510 = vmatpush.msrb.mxu2 %v6612_v56 }
 0xd2a   : > { %1511 = vmatpush.msrb.mxu2 %v6615_v63 }
 0xd2c   : > { %1512 = vmatpush.msrb.mxu2 %v6618_v62 }
 0xd2e   : > { %1513 = vmatpush.msrb.mxu2 %v6621_v0 }
 0xd30   : > { %1514 = vmatpush.msrb.mxu2 %v6624_v1 }
 0xd32   : > { %1515 = vmatpush.msrb.mxu2 %v6627_v2 }
 0xd34   : > { %1516 = vmatpush.msrb.mxu2 %v6658_v9 }
 0xd36   : > { %1517 = vmatpush.msrb.mxu2 %v6661_v10 }
 0xd38   : > { %1518 = vmatpush.msrb.mxu2 %v6664_v11 }
 0xd3a   : > { %1519 = vmatpush.msrb.mxu2 %v6667_v12 }
 0xd3c   : > { %1520 = vmatpush.msrb.mxu2 %v6670_v13 }
 0xda0   : > { %v1270_v25 = vpop.f32.mrf.mxu2 }
 0xda1   : > { %v1271_v28 = vadd.f32 %v6747_v61, %v1270_v25 }
 0xda3   : > { %5097 = vtanh.f32 %v1271_v28 }
 0xda8   : > { %v1273_v30 = vpop.f32.mrf.mxu2 }
 0xda9   : > { %v5098_v31 = vpop.eup %5097  ;;  %v1274_v32 = vadd.f32 %v6747_v61, %v1273_v30 }
 0xdaa   : > { %v1278_v35 = vmul.f32 %v5098_v31, %v6353_v7  ;;  %v1311_v59 = vmul.f32 2.0, %v5098_v31 }
 0xdab   : > { %5099 = vtanh.f32 %v1274_v32 }
 0xdac   : > { %v1280_v60 = vadd.f32 %v1278_v35, %v6827_v40  ;;  %v1313_v3 = vadd.f32 %v1311_v59, %v1309_v33  ;;  %v6959_v59 = vld [vmem:[#allocation3 + $0xf8] sm:$0xff] }
 0xdae   : > { %1298 = vmatmul.f32.vlgmr.msrb.gmra.mxu3 %v1280_v60  ;;  %v6963_v60 = vld [vmem:[#allocation3 + $0xf0] sm:$0xff] }
 0xdaf   : > { %1534 = vmatpush.msrb.mxu3 %v6596_v57 }
 0xdb1   : > { %v5100_v5 = vpop.eup %5099  ;;  %1535 = vmatpush.msrb.mxu3 %v6567_v51 }
 0xdb2   : > { %v1312_v36 = vmul.f32 2.0, %v5100_v5  ;;  %v1279_v37 = vmul.f32 %v5100_v5, %v6353_v7  ;;  %v6981_v5 = vld [vmem:[#allocation3 + $0xd8] sm:$0xff] }
 0xdb3   : > { %1536 = vmatpush.msrb.mxu3 %v6572_v44 }
 0xdb4   : > { %v1281_v34 = vadd.f32 %v1279_v37, %v6835_v17  ;;  %v1314_v38 = vadd.f32 %v1312_v36, %v1310_v8  ;;  %v6987_v8 = vld [vmem:[#allocation3 + $0xd0] sm:$0xff]  ;;  %v6993_v36 = vld [vmem:[#allocation3 + $0xc8] sm:$0xff]  ;;  %v6999_v37 = vld [vmem:[#allocation3 + $0xc0] sm:$0xff] }
 0xdb5   : > { %1537 = vmatpush.msrb.mxu3 %v6605_v53 }
 0xdb6   : > { %1301 = vmatmul.f32.gmra.mxu3 %v1281_v34  ;;  %v7005_v34 = vld [vmem:[#allocation3 + $0xb8] sm:$0xff] }
 0xdb7   : > { %1538 = vmatpush.msrb.mxu3 %v6609_v58 }
 0xdb9   : > { %1539 = vmatpush.msrb.mxu3 %v6612_v56 }
 0xdbb   : > { %1540 = vmatpush.msrb.mxu3 %v6615_v63 }
 0xdbd   : > { %1541 = vmatpush.msrb.mxu3 %v6618_v62 }
 0xdbf   : > { %1542 = vmatpush.msrb.mxu3 %v6621_v0 }
 0xdc1   : > { %1543 = vmatpush.msrb.mxu3 %v6624_v1 }
 0xdc3   : > { %1544 = vmatpush.msrb.mxu3 %v6627_v2 }
 0xdc5   : > { %1545 = vmatpush.msrb.mxu3 %v6658_v9 }
 0xdc7   : > { %1546 = vmatpush.msrb.mxu3 %v6661_v10 }
 0xdc9   : > { %1547 = vmatpush.msrb.mxu3 %v6664_v11 }
 0xdcb   : > { %1548 = vmatpush.msrb.mxu3 %v6667_v12 }
 0xdcd   : > { %1549 = vmatpush.msrb.mxu3 %v6670_v13 }
 0xe31   : > { %v1299_v51 = vpop.f32.mrf.mxu3 }
 0xe32   : > { %v1300_v44 = vadd.f32 %v6747_v61, %v1299_v51  ;;  %v7017_v51 = vld [vmem:[#allocation3 + $0xa8] sm:$0xff] }
 0xe34   : > { %5101 = vtanh.f32 %v1300_v44  ;;  %v7019_v44 = vld [vmem:[#allocation3 + $0xa0] sm:$0xff] }
 0xe39   : > { %v1302_v57 = vpop.f32.mrf.mxu3 }
 0xe3a   : > { %v5102_v53 = vpop.eup %5101  ;;  %v1303_v58 = vadd.f32 %v6747_v61, %v1302_v57  ;;  %v7029_v57 = vld [vmem:[#allocation3 + $0x98] sm:$0xff] }
 0xe3b   : > { %v1315_v56 = vadd.f32 %v5102_v53, %v1313_v3  ;;  %v6969_v3 = vld [vmem:[#allocation3 + $0xe8] sm:$0xff]  ;;  %v7031_v53 = vld [vmem:[#allocation3 + $0x90] sm:$0xff] }
 0xe3c   : > { %5103 = vtanh.f32 %v1303_v58  ;;  %v7037_v58 = vld [vmem:[#allocation3 + $0x88] sm:$0xff] }
 0xe3d   : > { %v1317_v63 = vmul.f32 %v1315_v56, %v6380_v46  ;;  %v7043_v56 = vld [vmem:[#allocation3 + $0x80] sm:$0xff] }
 0xe3f   : > { %v6929_v62 = vadd.f32 %v1317_v63, %v6827_v40 }
 0xe41   : > { %1337 = vmatmul.f32.vlgmr.msra.gmra.mxu0 %v6929_v62 }
 0xe42   : > { %v5104_v0 = vpop.eup %5103  ;;  %1607 = vmatpush.msra.mxu0 %v6959_v59 }
 0xe43   : > { %v1316_v1 = vadd.f32 %v5104_v0, %v1314_v38  ;;  %v7011_v38 = vld [vmem:[#allocation3 + $0xb0] sm:$0xff] }
 0xe44   : > { %1608 = vmatpush.msra.mxu0 %v6963_v60 }
 0xe45   : > { %v1318_v2 = vmul.f32 %v1316_v1, %v6380_v46 }
 0xe46   : > { %1609 = vmatpush.msra.mxu0 %v6969_v3 }
 0xe47   : > { %v6934_v9 = vadd.f32 %v1318_v2, %v6835_v17 }
 0xe48   : > { %1610 = vmatpush.msra.mxu0 %v6975_v4 }
 0xe49   : > { %1340 = vmatmul.f32.gmra.mxu0 %v6934_v9 }
 0xe4a   : > { %1611 = vmatpush.msra.mxu0 %v6981_v5 }
 0xe4c   : > { %1612 = vmatpush.msra.mxu0 %v6987_v8 }
 0xe4e   : > { %1613 = vmatpush.msra.mxu0 %v6993_v36 }
 0xe50   : > { %1614 = vmatpush.msra.mxu0 %v6999_v37 }
 0xe52   : > { %1615 = vmatpush.msra.mxu0 %v7005_v34 }
 0xe54   : > { %1616 = vmatpush.msra.mxu0 %v7011_v38 }
 0xe56   : > { %1617 = vmatpush.msra.mxu0 %v7017_v51 }
 0xe58   : > { %1618 = vmatpush.msra.mxu0 %v7019_v44 }
 0xe5a   : > { %1619 = vmatpush.msra.mxu0 %v7029_v57 }
 0xe5c   : > { %1620 = vmatpush.msra.mxu0 %v7031_v53 }
 0xe5e   : > { %1621 = vmatpush.msra.mxu0 %v7037_v58 }
 0xe60   : > { %1622 = vmatpush.msra.mxu0 %v7043_v56 }
 0xebe   : > { %v1338_v10 = vpop.f32.mrf.mxu0 }
 0xebf   : > { %v1339_v11 = vadd.f32 %v6747_v61, %v1338_v10 }
 0xec1   : > { %5105 = vtanh.f32 %v1339_v11 }
 0xec6   : > { %v1341_v12 = vpop.f32.mrf.mxu0 }
 0xec7   : > { %v5106_v13 = vpop.eup %5105  ;;  %v1342_v39 = vadd.f32 %v6747_v61, %v1341_v12 }
 0xec8   : > { %v1346_v40 = vmul.f32 %v5106_v13, %v6300_v48 }
 0xec9   : > { %5107 = vtanh.f32 %v1342_v39 }
 0xeca   : > { %v1348_v14 = vadd.f32 %v1346_v40, %v6929_v62 }
 0xecc   : > { %1366 = vmatmul.f32.vlgmr.msra.gmra.mxu1 %v1348_v14 }
 0xecd   : > { %1639 = vmatpush.msra.mxu1 %v6959_v59 }
 0xecf   : > { %v5108_v15 = vpop.eup %5107  ;;  %1640 = vmatpush.msra.mxu1 %v6963_v60 }
 0xed0   : > { %v1347_v16 = vmul.f32 %v5108_v15, %v6300_v48 }
 0xed1   : > { %1641 = vmatpush.msra.mxu1 %v6969_v3 }
 0xed2   : > { %v1349_v17 = vadd.f32 %v1347_v16, %v6934_v9 }
 0xed3   : > { %1642 = vmatpush.msra.mxu1 %v6975_v4 }
 0xed4   : > { %1369 = vmatmul.f32.gmra.mxu1 %v1349_v17 }
 0xed5   : > { %1643 = vmatpush.msra.mxu1 %v6981_v5 }
 0xed7   : > { %1644 = vmatpush.msra.mxu1 %v6987_v8 }
 0xed9   : > { %1645 = vmatpush.msra.mxu1 %v6993_v36 }
 0xedb   : > { %1646 = vmatpush.msra.mxu1 %v6999_v37 }
 0xedd   : > { %1647 = vmatpush.msra.mxu1 %v7005_v34 }
 0xedf   : > { %1648 = vmatpush.msra.mxu1 %v7011_v38 }
 0xee1   : > { %1649 = vmatpush.msra.mxu1 %v7017_v51 }
 0xee3   : > { %1650 = vmatpush.msra.mxu1 %v7019_v44 }
 0xee5   : > { %1651 = vmatpush.msra.mxu1 %v7029_v57 }
 0xee7   : > { %1652 = vmatpush.msra.mxu1 %v7031_v53 }
 0xee9   : > { %1653 = vmatpush.msra.mxu1 %v7037_v58 }
 0xeeb   : > { %1654 = vmatpush.msra.mxu1 %v7043_v56 }
 0xf49   : > { %v1367_v6 = vpop.f32.mrf.mxu1 }
 0xf4a   : > { %v1368_v43 = vadd.f32 %v6747_v61, %v1367_v6 }
 0xf4c   : > { %5109 = vtanh.f32 %v1368_v43 }
 0xf51   : > { %v1370_v26 = vpop.f32.mrf.mxu1 }
 0xf52   : > { %v5110_v27 = vpop.eup %5109  ;;  %v1371_v18 = vadd.f32 %v6747_v61, %v1370_v26 }
 0xf53   : > { %v1375_v19 = vmul.f32 %v5110_v27, %v6300_v48  ;;  %v1433_v47 = vmul.f32 2.0, %v5110_v27 }
 0xf54   : > { %5111 = vtanh.f32 %v1371_v18 }
 0xf55   : > { %v1377_v20 = vadd.f32 %v1375_v19, %v6929_v62  ;;  %v1435_v54 = vadd.f32 %v5106_v13, %v1433_v47  ;;  %v7114_v19 = vld [vmem:[#allocation9 + $0x1] ss:$0 sm:$0xff] }
 0xf57   : > { %1395 = vmatmul.f32.vlgmr.msra.gmra.mxu2 %v1377_v20  ;;  %v7117_v20 = vld [vmem:[%s5973_s27 + $0x1] sm:$0x1] }
 0xf58   : > { %1668 = vmatpush.msra.mxu2 %v6959_v59 }
 0xf5a   : > { %v5112_v21 = vpop.eup %5111  ;;  %1669 = vmatpush.msra.mxu2 %v6963_v60 }
 0xf5b   : > { %v1376_v22 = vmul.f32 %v5112_v21, %v6300_v48  ;;  %v1434_v28 = vmul.f32 2.0, %v5112_v21 }
 0xf5c   : > { %1670 = vmatpush.msra.mxu2 %v6969_v3 }
 0xf5d   : > { %v1378_v23 = vadd.f32 %v1376_v22, %v6934_v9  ;;  %v1436_v30 = vadd.f32 %v5108_v15, %v1434_v28 }
 0xf5e   : > { %1671 = vmatpush.msra.mxu2 %v6975_v4 }
 0xf5f   : > { %1398 = vmatmul.f32.gmra.mxu2 %v1378_v23 }
 0xf60   : > { %1672 = vmatpush.msra.mxu2 %v6981_v5 }
 0xf62   : > { %1673 = vmatpush.msra.mxu2 %v6987_v8 }
 0xf64   : > { %1674 = vmatpush.msra.mxu2 %v6993_v36 }
 0xf66   : > { %1675 = vmatpush.msra.mxu2 %v6999_v37 }
 0xf68   : > { %1676 = vmatpush.msra.mxu2 %v7005_v34 }
 0xf6a   : > { %1677 = vmatpush.msra.mxu2 %v7011_v38 }
 0xf6c   : > { %1678 = vmatpush.msra.mxu2 %v7017_v51 }
 0xf6e   : > { %1679 = vmatpush.msra.mxu2 %v7019_v44 }
 0xf70   : > { %1680 = vmatpush.msra.mxu2 %v7029_v57 }
 0xf72   : > { %1681 = vmatpush.msra.mxu2 %v7031_v53 }
 0xf74   : > { %1682 = vmatpush.msra.mxu2 %v7037_v58 }
 0xf76   : > { %1683 = vmatpush.msra.mxu2 %v7043_v56 }
 0xfda   : > { %v1396_v24 = vpop.f32.mrf.mxu2 }
 0xfdb   : > { %v1397_v45 = vadd.f32 %v6747_v61, %v1396_v24  ;;  %v1598_v24 = vmul.f32 0.0625, %v7117_v20 }
 0xfdd   : > { %5113 = vtanh.f32 %v1397_v45 }
 0xfe2   : > { %v1399_v49 = vpop.f32.mrf.mxu2 }
 0xfe3   : > { %v5114_v50 = vpop.eup %5113  ;;  %v1400_v52 = vadd.f32 %v6747_v61, %v1399_v49  ;;  %v7130_v49 = vperm.slane %v1598_v24, 0 }
 0xfe4   : > { %v1404_v55 = vmul.f32 %v5114_v50, %v6353_v7  ;;  %v1437_v41 = vmul.f32 2.0, %v5114_v50 }
 0xfe5   : > { %5115 = vtanh.f32 %v1400_v52 }
 0xfe6   : > { %v1406_v42 = vadd.f32 %v1404_v55, %v6929_v62  ;;  %v6953_v25 = vadd.f32 %v1437_v41, %v1435_v54 }
 0xfe8   : > { %1424 = vmatmul.f32.vlgmr.msra.gmra.mxu3 %v1406_v42 }
 0xfe9   : > { %1700 = vmatpush.msra.mxu3 %v6959_v59 }
 0xfeb   : > { %v5116_v29 = vpop.eup %5115  ;;  %1701 = vmatpush.msra.mxu3 %v6963_v60 }
 0xfec   : > { %v1438_v31 = vmul.f32 2.0, %v5116_v29  ;;  %v1405_v32 = vmul.f32 %v5116_v29, %v6353_v7 }
 0xfed   : > { %1702 = vmatpush.msra.mxu3 %v6969_v3 }
 0xfee   : > { %v1407_v33 = vadd.f32 %v1405_v32, %v6934_v9  ;;  %v6957_v35 = vadd.f32 %v1438_v31, %v1436_v30 }
 0xfef   : > { %1703 = vmatpush.msra.mxu3 %v6975_v4 }
 0xff0   : > { %1427 = vmatmul.f32.gmra.mxu3 %v1407_v33 }
 0xff1   : > { %1704 = vmatpush.msra.mxu3 %v6981_v5 }
 0xff3   : > { %1705 = vmatpush.msra.mxu3 %v6987_v8 }
 0xff5   : > { %1706 = vmatpush.msra.mxu3 %v6993_v36 }
 0xff7   : > { %1707 = vmatpush.msra.mxu3 %v6999_v37 }
 0xff9   : > { %1708 = vmatpush.msra.mxu3 %v7005_v34 }
 0xffb   : > { %1709 = vmatpush.msra.mxu3 %v7011_v38 }
 0xffd   : > { %1710 = vmatpush.msra.mxu3 %v7017_v51 }
 0xfff   : > { %1711 = vmatpush.msra.mxu3 %v7019_v44 }
0x1001   : > { %1712 = vmatpush.msra.mxu3 %v7029_v57 }
0x1003   : > { %1713 = vmatpush.msra.mxu3 %v7031_v53 }
0x1005   : > { %1714 = vmatpush.msra.mxu3 %v7037_v58 }
0x1007   : > { %1715 = vmatpush.msra.mxu3 %v7043_v56 }
0x106b   : > { %v1425_v63 = vpop.f32.mrf.mxu3 }
0x106c   : > { %v1426_v0 = vadd.f32 %v6747_v61, %v1425_v63 }
0x106e   : > { %5117 = vtanh.f32 %v1426_v0 }
0x1073   : > { %v1428_v1 = vpop.f32.mrf.mxu3 }
0x1074   : > { %v5118_v2 = vpop.eup %5117  ;;  %v1429_v10 = vadd.f32 %v6747_v61, %v1428_v1 }
0x1075   : > { %v1441_v11 = vadd.f32 %v5118_v2, %v6953_v25 }
0x1076   : > { %5119 = vtanh.f32 %v1429_v10 }
0x1077   : > { %v1443_v12 = vmul.f32 %v1441_v11, %v6380_v46 }
0x1079   : > { %v7060_v13 = vadd.f32 %v1443_v12, %v6929_v62  ;;  %v7075_v62 = vld [vmem:[#allocation2 + $0x18] sm:$0xff] }
0x107b   : > { %1463 = vmatmul.f32.vlgmr.msrb.gmra.mxu0 %v7060_v13 }
0x107c   : > { %v5120_v39 = vpop.eup %5119  ;;  %1742 = vmatpush.msrb.mxu0 %v6959_v59 }
0x107d   : > { %v1442_v40 = vadd.f32 %v5120_v39, %v6957_v35 }
0x107e   : > { %1743 = vmatpush.msrb.mxu0 %v6963_v60 }
0x107f   : > { %v1444_v14 = vmul.f32 %v1442_v40, %v6380_v46 }
0x1080   : > { %1744 = vmatpush.msrb.mxu0 %v6969_v3 }
0x1081   : > { %v7069_v15 = vadd.f32 %v1444_v14, %v6934_v9  ;;  %v7082_v9 = vld [vmem:[#allocation2 + $0x10] sm:$0xff] }
0x1082   : > { %1745 = vmatpush.msrb.mxu0 %v6975_v4 }
0x1083   : > { %1466 = vmatmul.f32.gmra.mxu0 %v7069_v15 }
0x1084   : > { %1746 = vmatpush.msrb.mxu0 %v6981_v5 }
0x1086   : > { %1747 = vmatpush.msrb.mxu0 %v6987_v8 }
0x1088   : > { %1748 = vmatpush.msrb.mxu0 %v6993_v36 }
0x108a   : > { %1749 = vmatpush.msrb.mxu0 %v6999_v37 }
0x108b   : > { %1623 = vmatmul.f32.vlgmr.msra.gmra.mxu0 %v7075_v62 }
0x108c   : > { %1750 = vmatpush.msrb.mxu0 %v7005_v34 }
0x108e   : > { %1751 = vmatpush.msrb.mxu0 %v7011_v38 }
0x1090   : > { %1752 = vmatpush.msrb.mxu0 %v7017_v51 }
0x1092   : > { %1753 = vmatpush.msrb.mxu0 %v7019_v44 }
0x1093   : > { %1626 = vmatmul.f32.gmra.mxu0 %v7082_v9 }
0x1094   : > { %1754 = vmatpush.msrb.mxu0 %v7029_v57 }
0x1096   : > { %1755 = vmatpush.msrb.mxu0 %v7031_v53 }
0x1098   : > { %1756 = vmatpush.msrb.mxu0 %v7037_v58 }
0x109a   : > { %1757 = vmatpush.msrb.mxu0 %v7043_v56 }
0x109c   : > { %1868 = vmatpush.msra.mxu0 %v6959_v59 }
0x109e   : > { %1869 = vmatpush.msra.mxu0 %v6963_v60 }
0x10a0   : > { %1870 = vmatpush.msra.mxu0 %v6969_v3 }
0x10a2   : > { %1871 = vmatpush.msra.mxu0 %v6975_v4 }
0x10a4   : > { %1872 = vmatpush.msra.mxu0 %v6981_v5 }
0x10a6   : > { %1873 = vmatpush.msra.mxu0 %v6987_v8 }
0x10a8   : > { %1874 = vmatpush.msra.mxu0 %v6993_v36 }
0x10aa   : > { %1875 = vmatpush.msra.mxu0 %v6999_v37 }
0x10ac   : > { %1876 = vmatpush.msra.mxu0 %v7005_v34 }
0x10ae   : > { %1877 = vmatpush.msra.mxu0 %v7011_v38 }
0x10b0   : > { %1878 = vmatpush.msra.mxu0 %v7017_v51 }
0x10b2   : > { %1879 = vmatpush.msra.mxu0 %v7019_v44 }
0x10b4   : > { %1880 = vmatpush.msra.mxu0 %v7029_v57 }
0x10b6   : > { %1881 = vmatpush.msra.mxu0 %v7031_v53 }
0x10b8   : > { %1882 = vmatpush.msra.mxu0 %v7037_v58 }
0x10ba   : > { %1883 = vmatpush.msra.mxu0 %v7043_v56 }
0x10f8   : > { %v1464_v16 = vpop.f32.mrf.mxu0 }
0x10f9   : > { %v1465_v17 = vadd.f32 %v6747_v61, %v1464_v16 }
0x10fb   : > { %5121 = vtanh.f32 %v1465_v17 }
0x1100   : > { %v1467_v6 = vpop.f32.mrf.mxu0 }
0x1101   : > { %v7108_v43 = vpop.eup %5121  ;;  %v1468_v26 = vadd.f32 %v6747_v61, %v1467_v6 }
0x1102   : > { %v1472_v27 = vmul.f32 %v7108_v43, %v6300_v48 }
0x1103   : > { %5123 = vtanh.f32 %v1468_v26  ;;  %v7221_v26 = vld [vmem:[#allocation9] ss:$0 sm:$0xff] }
0x1104   : > { %v1474_v18 = vadd.f32 %v1472_v27, %v7060_v13 }
0x1106   : > { %1492 = vmatmul.f32.vlgmr.msrb.gmra.mxu1 %v1474_v18 }
0x1107   : > { %1771 = vmatpush.msrb.mxu1 %v6959_v59 }
0x1108   : > { %v1624_v21 = vpop.f32.mrf.mxu0 }
0x1109   : > { %v7120_v22 = vpop.eup %5123  ;;  %v1625_v23 = vadd.f32 %v7114_v19, %v1624_v21  ;;  %1772 = vmatpush.msrb.mxu1 %v6963_v60 }
0x110a   : > { %v1473_v45 = vmul.f32 %v7120_v22, %v6300_v48 }
0x110b   : > { %5125 = vtanh.f32 %v1625_v23  ;;  %1773 = vmatpush.msrb.mxu1 %v6969_v3 }
0x110c   : > { %v1475_v47 = vadd.f32 %v1473_v45, %v7069_v15 }
0x110d   : > { %1774 = vmatpush.msrb.mxu1 %v6975_v4 }
0x110e   : > { %1495 = vmatmul.f32.gmra.mxu1 %v1475_v47 }
0x110f   : > { %1775 = vmatpush.msrb.mxu1 %v6981_v5 }
0x1110   : > { %v1627_v50 = vpop.f32.mrf.mxu0 }
0x1111   : > { %v7133_v52 = vpop.eup %5125  ;;  %v1628_v54 = vadd.f32 %v7114_v19, %v1627_v50  ;;  %1776 = vmatpush.msrb.mxu1 %v6987_v8 }
0x1112   : > { %v1635_v55 = vmul.f32 %v7133_v52, %v7130_v49 }
0x1113   : > { %5127 = vtanh.f32 %v1628_v54  ;;  %1777 = vmatpush.msrb.mxu1 %v6993_v36 }
0x1114   : > { %v1637_v41 = vadd.f32 %v1635_v55, %v7075_v62 }
0x1115   : > { %1778 = vmatpush.msrb.mxu1 %v6999_v37 }
0x1116   : > { %1655 = vmatmul.f32.vlgmr.msra.gmra.mxu1 %v1637_v41 }
0x1117   : > { %1779 = vmatpush.msrb.mxu1 %v7005_v34 }
0x1119   : > { %v7143_v42 = vpop.eup %5127  ;;  %1780 = vmatpush.msrb.mxu1 %v7011_v38 }
0x111a   : > { %v1636_v25 = vmul.f32 %v7143_v42, %v7130_v49 }
0x111b   : > { %1781 = vmatpush.msrb.mxu1 %v7017_v51 }
0x111c   : > { %v1638_v28 = vadd.f32 %v1636_v25, %v7082_v9 }
0x111d   : > { %1782 = vmatpush.msrb.mxu1 %v7019_v44 }
0x111e   : > { %1658 = vmatmul.f32.gmra.mxu1 %v1638_v28 }
0x111f   : > { %1783 = vmatpush.msrb.mxu1 %v7029_v57 }
0x1121   : > { %1784 = vmatpush.msrb.mxu1 %v7031_v53 }
0x1123   : > { %1785 = vmatpush.msrb.mxu1 %v7037_v58 }
0x1125   : > { %1786 = vmatpush.msrb.mxu1 %v7043_v56 }
0x1127   : > { %1897 = vmatpush.msra.mxu1 %v6959_v59 }
0x1129   : > { %1898 = vmatpush.msra.mxu1 %v6963_v60 }
0x112b   : > { %1899 = vmatpush.msra.mxu1 %v6969_v3 }
0x112d   : > { %1900 = vmatpush.msra.mxu1 %v6975_v4 }
0x112f   : > { %1901 = vmatpush.msra.mxu1 %v6981_v5 }
0x1131   : > { %1902 = vmatpush.msra.mxu1 %v6987_v8 }
0x1133   : > { %1903 = vmatpush.msra.mxu1 %v6993_v36 }
0x1135   : > { %1904 = vmatpush.msra.mxu1 %v6999_v37 }
0x1137   : > { %1905 = vmatpush.msra.mxu1 %v7005_v34 }
0x1139   : > { %1906 = vmatpush.msra.mxu1 %v7011_v38 }
0x113b   : > { %1907 = vmatpush.msra.mxu1 %v7017_v51 }
0x113d   : > { %1908 = vmatpush.msra.mxu1 %v7019_v44 }
0x113f   : > { %1909 = vmatpush.msra.mxu1 %v7029_v57 }
0x1141   : > { %1910 = vmatpush.msra.mxu1 %v7031_v53 }
0x1143   : > { %1911 = vmatpush.msra.mxu1 %v7037_v58 }
0x1145   : > { %1912 = vmatpush.msra.mxu1 %v7043_v56 }
0x1183   : > { %v1493_v29 = vpop.f32.mrf.mxu1 }
0x1184   : > { %v1494_v30 = vadd.f32 %v6747_v61, %v1493_v29 }
0x1186   : > { %5129 = vtanh.f32 %v1494_v30 }
0x118b   : > { %v1496_v31 = vpop.f32.mrf.mxu1 }
0x118c   : > { %v5130_v32 = vpop.eup %5129  ;;  %v1497_v33 = vadd.f32 %v6747_v61, %v1496_v31  ;;  %v1599_v31 = vmul.f32 0.125, %v7117_v20 }
0x118d   : > { %v1501_v35 = vmul.f32 %v5130_v32, %v6300_v48  ;;  %v1559_v18 = vmul.f32 2.0, %v5130_v32 }
0x118e   : > { %5131 = vtanh.f32 %v1497_v33 }
0x118f   : > { %v1503_v63 = vadd.f32 %v1501_v35, %v7060_v13  ;;  %v1561_v45 = vadd.f32 %v7108_v43, %v1559_v18 }
0x1191   : > { %1521 = vmatmul.f32.vlgmr.msrb.gmra.mxu2 %v1503_v63 }
0x1192   : > { %1800 = vmatpush.msrb.mxu2 %v6959_v59 }
0x1193   : > { %v1656_v0 = vpop.f32.mrf.mxu1 }
0x1194   : > { %v5132_v1 = vpop.eup %5131  ;;  %v1657_v2 = vadd.f32 %v7114_v19, %v1656_v0  ;;  %1801 = vmatpush.msrb.mxu2 %v6963_v60  ;;  %v7242_v0 = vperm.slane %v1599_v31, 0 }
0x1195   : > { %v1502_v10 = vmul.f32 %v5132_v1, %v6300_v48  ;;  %v1560_v41 = vmul.f32 2.0, %v5132_v1 }
0x1196   : > { %5133 = vtanh.f32 %v1657_v2  ;;  %1802 = vmatpush.msrb.mxu2 %v6969_v3 }
0x1197   : > { %v1504_v61 = vadd.f32 %v1502_v10, %v7069_v15  ;;  %v1562_v43 = vadd.f32 %v7120_v22, %v1560_v41 }
0x1198   : > { %1803 = vmatpush.msrb.mxu2 %v6975_v4 }
0x1199   : > { %1524 = vmatmul.f32.gmra.mxu2 %v1504_v61 }
0x119a   : > { %1804 = vmatpush.msrb.mxu2 %v6981_v5 }
0x119b   : > { %v1659_v11 = vpop.f32.mrf.mxu1 }
0x119c   : > { %v7183_v12 = vpop.eup %5133  ;;  %v1660_v39 = vadd.f32 %v7114_v19, %v1659_v11  ;;  %1805 = vmatpush.msrb.mxu2 %v6987_v8 }
0x119d   : > { %v1664_v48 = vmul.f32 %v7183_v12, %v7130_v49  ;;  %v1725_v63 = vmul.f32 2.0, %v7183_v12 }
0x119e   : > { %5135 = vtanh.f32 %v1660_v39  ;;  %1806 = vmatpush.msrb.mxu2 %v6993_v36 }
0x119f   : > { %v1666_v40 = vadd.f32 %v1664_v48, %v7075_v62  ;;  %v1727_v2 = vadd.f32 %v7133_v52, %v1725_v63 }
0x11a0   : > { %1807 = vmatpush.msrb.mxu2 %v6999_v37 }
0x11a1   : > { %1684 = vmatmul.f32.vlgmr.msra.gmra.mxu2 %v1666_v40 }
0x11a2   : > { %1808 = vmatpush.msrb.mxu2 %v7005_v34 }
0x11a4   : > { %v7193_v14 = vpop.eup %5135  ;;  %1809 = vmatpush.msrb.mxu2 %v7011_v38 }
0x11a5   : > { %v1665_v16 = vmul.f32 %v7193_v14, %v7130_v49  ;;  %v1726_v39 = vmul.f32 2.0, %v7193_v14 }
0x11a6   : > { %1810 = vmatpush.msrb.mxu2 %v7017_v51 }
0x11a7   : > { %v1667_v17 = vadd.f32 %v1665_v16, %v7082_v9  ;;  %v1728_v52 = vadd.f32 %v7143_v42, %v1726_v39 }
0x11a8   : > { %1811 = vmatpush.msrb.mxu2 %v7019_v44 }
0x11a9   : > { %1687 = vmatmul.f32.gmra.mxu2 %v1667_v17 }
0x11aa   : > { %1812 = vmatpush.msrb.mxu2 %v7029_v57 }
0x11ac   : > { %1813 = vmatpush.msrb.mxu2 %v7031_v53 }
0x11ae   : > { %1814 = vmatpush.msrb.mxu2 %v7037_v58 }
0x11b0   : > { %1815 = vmatpush.msrb.mxu2 %v7043_v56 }
0x11b2   : > { %1926 = vmatpush.msra.mxu2 %v6959_v59 }
0x11b4   : > { %1927 = vmatpush.msra.mxu2 %v6963_v60 }
0x11b6   : > { %1928 = vmatpush.msra.mxu2 %v6969_v3 }
0x11b8   : > { %1929 = vmatpush.msra.mxu2 %v6975_v4 }
0x11ba   : > { %1930 = vmatpush.msra.mxu2 %v6981_v5 }
0x11bc   : > { %1931 = vmatpush.msra.mxu2 %v6987_v8 }
0x11be   : > { %1932 = vmatpush.msra.mxu2 %v6993_v36 }
0x11c0   : > { %1933 = vmatpush.msra.mxu2 %v6999_v37 }
0x11c2   : > { %1934 = vmatpush.msra.mxu2 %v7005_v34 }
0x11c4   : > { %1935 = vmatpush.msra.mxu2 %v7011_v38 }
0x11c6   : > { %1936 = vmatpush.msra.mxu2 %v7017_v51 }
0x11c8   : > { %1937 = vmatpush.msra.mxu2 %v7019_v44 }
0x11ca   : > { %1938 = vmatpush.msra.mxu2 %v7029_v57 }
0x11cc   : > { %1939 = vmatpush.msra.mxu2 %v7031_v53 }
0x11ce   : > { %1940 = vmatpush.msra.mxu2 %v7037_v58 }
0x11d0   : > { %1941 = vmatpush.msra.mxu2 %v7043_v56 }
0x1214   : > { %v1522_v6 = vpop.f32.mrf.mxu2 }
0x1215   : > { %v1523_v27 = vadd.f32 %v7221_v26, %v1522_v6 }
0x1217   : > { %5137 = vtanh.f32 %v1523_v27 }
0x121c   : > { %v1525_v21 = vpop.f32.mrf.mxu2 }
0x121d   : > { %v5138_v23 = vpop.eup %5137  ;;  %v1526_v24 = vadd.f32 %v7221_v26, %v1525_v21 }
0x121e   : > { %v1530_v47 = vmul.f32 %v5138_v23, %v6353_v7  ;;  %v1563_v50 = vmul.f32 2.0, %v5138_v23 }
0x121f   : > { %5139 = vtanh.f32 %v1526_v24 }
0x1220   : > { %v1532_v54 = vadd.f32 %v1530_v47, %v7060_v13  ;;  %v7228_v55 = vadd.f32 %v1563_v50, %v1561_v45 }
0x1222   : > { %1550 = vmatmul.f32.vlgmr.msrb.gmra.mxu3 %v1532_v54 }
0x1223   : > { %1829 = vmatpush.msrb.mxu3 %v6959_v59 }
0x1224   : > { %v1685_v25 = vpop.f32.mrf.mxu2 }
0x1225   : > { %v5140_v28 = vpop.eup %5139  ;;  %v1686_v29 = vadd.f32 %v7114_v19, %v1685_v25  ;;  %1830 = vmatpush.msrb.mxu3 %v6963_v60 }
0x1226   : > { %v1564_v30 = vmul.f32 2.0, %v5140_v28  ;;  %v1531_v32 = vmul.f32 %v5140_v28, %v6353_v7 }
0x1227   : > { %5141 = vtanh.f32 %v1686_v29  ;;  %1831 = vmatpush.msrb.mxu3 %v6969_v3 }
0x1228   : > { %v1533_v33 = vadd.f32 %v1531_v32, %v7069_v15  ;;  %v7238_v35 = vadd.f32 %v1564_v30, %v1562_v43 }
0x1229   : > { %1832 = vmatpush.msrb.mxu3 %v6975_v4 }
0x122a   : > { %1553 = vmatmul.f32.gmra.mxu3 %v1533_v33 }
0x122b   : > { %1833 = vmatpush.msrb.mxu3 %v6981_v5 }
0x122c   : > { %v1688_v22 = vpop.f32.mrf.mxu2 }
0x122d   : > { %v5142_v1 = vpop.eup %5141  ;;  %v1689_v7 = vadd.f32 %v7114_v19, %v1688_v22  ;;  %1834 = vmatpush.msrb.mxu3 %v6987_v8 }
0x122e   : > { %v1696_v10 = vmul.f32 %v5142_v1, %v7242_v0  ;;  %v1729_v61 = vmul.f32 2.0, %v5142_v1 }
0x122f   : > { %5143 = vtanh.f32 %v1689_v7  ;;  %1835 = vmatpush.msrb.mxu3 %v6993_v36 }
0x1230   : > { %v1698_v11 = vadd.f32 %v1696_v10, %v7075_v62  ;;  %v1731_v12 = vadd.f32 %v1729_v61, %v1727_v2 }
0x1231   : > { %1836 = vmatpush.msrb.mxu3 %v6999_v37 }
0x1232   : > { %1716 = vmatmul.f32.vlgmr.msra.gmra.mxu3 %v1698_v11 }
0x1233   : > { %1837 = vmatpush.msrb.mxu3 %v7005_v34 }
0x1235   : > { %v5144_v48 = vpop.eup %5143  ;;  %1838 = vmatpush.msrb.mxu3 %v7011_v38 }
0x1236   : > { %v1730_v40 = vmul.f32 2.0, %v5144_v48  ;;  %v1697_v16 = vmul.f32 %v5144_v48, %v7242_v0 }
0x1237   : > { %1839 = vmatpush.msrb.mxu3 %v7017_v51 }
0x1238   : > { %v1699_v17 = vadd.f32 %v1697_v16, %v7082_v9  ;;  %v1732_v6 = vadd.f32 %v1730_v40, %v1728_v52 }
0x1239   : > { %1840 = vmatpush.msrb.mxu3 %v7019_v44 }
0x123a   : > { %1719 = vmatmul.f32.gmra.mxu3 %v1699_v17 }
0x123b   : > { %1841 = vmatpush.msrb.mxu3 %v7029_v57 }
0x123d   : > { %1842 = vmatpush.msrb.mxu3 %v7031_v53 }
0x123f   : > { %1843 = vmatpush.msrb.mxu3 %v7037_v58 }
0x1241   : > { %1844 = vmatpush.msrb.mxu3 %v7043_v56 }
0x1243   : > { %1955 = vmatpush.msra.mxu3 %v6959_v59 }
0x1245   : > { %1956 = vmatpush.msra.mxu3 %v6963_v60 }
0x1247   : > { %1957 = vmatpush.msra.mxu3 %v6969_v3 }
0x1249   : > { %1958 = vmatpush.msra.mxu3 %v6975_v4 }
0x124b   : > { %1959 = vmatpush.msra.mxu3 %v6981_v5 }
0x124d   : > { %1960 = vmatpush.msra.mxu3 %v6987_v8 }
0x124f   : > { %1961 = vmatpush.msra.mxu3 %v6993_v36 }
0x1251   : > { %1962 = vmatpush.msra.mxu3 %v6999_v37 }
0x1253   : > { %1963 = vmatpush.msra.mxu3 %v7005_v34 }
0x1255   : > { %1964 = vmatpush.msra.mxu3 %v7011_v38 }
0x1257   : > { %1965 = vmatpush.msra.mxu3 %v7017_v51 }
0x1259   : > { %1966 = vmatpush.msra.mxu3 %v7019_v44 }
0x125b   : > { %1967 = vmatpush.msra.mxu3 %v7029_v57 }
0x125d   : > { %1968 = vmatpush.msra.mxu3 %v7031_v53 }
0x125f   : > { %1969 = vmatpush.msra.mxu3 %v7037_v58 }
0x1261   : > { %1970 = vmatpush.msra.mxu3 %v7043_v56 }
0x12a5   : > { %v1551_v42 = vpop.f32.mrf.mxu3 }
0x12a6   : > { %v1552_v14 = vadd.f32 %v7221_v26, %v1551_v42 }
0x12a8   : > { %5145 = vtanh.f32 %v1552_v14 }
0x12ad   : > { %v1554_v27 = vpop.f32.mrf.mxu3 }
0x12ae   : > { %v5146_v18 = vpop.eup %5145  ;;  %v1555_v21 = vadd.f32 %v7221_v26, %v1554_v27  ;;  %v1600_v26 = vmul.f32 0.020833334, %v7117_v20 }
0x12af   : > { %v1567_v23 = vadd.f32 %v5146_v18, %v7228_v55 }
0x12b0   : > { %5147 = vtanh.f32 %v1555_v21  ;;  %v7291_v28 = vperm.slane %v1600_v26, 0 }
0x12b1   : > { %v1569_v24 = vmul.f32 %v1567_v23, %v6380_v46 }
0x12b3   : > { %v1571_v45 = vadd.f32 %v1569_v24, %v7060_v13 }
0x12b5   : > { %1573 = vst [vmem:[#allocation2 + $0x30] sm:$0xff] %v1571_v45  ;;  %v1717_v47 = vpop.f32.mrf.mxu3 }
0x12b6   : > { %v5148_v50 = vpop.eup %5147  ;;  %1575 = vst [vmem:[%s5980_s6] sm:$0xff] %v1571_v45  ;;  %v1718_v54 = vadd.f32 %v7114_v19, %v1717_v47 }
0x12b7   : > { %v1568_v41 = vadd.f32 %v5148_v50, %v7238_v35 }
0x12b8   : > { %5149 = vtanh.f32 %v1718_v54 }
0x12b9   : > { %v1570_v25 = vmul.f32 %v1568_v41, %v6380_v46 }
0x12bb   : > { %v1572_v55 = vadd.f32 %v1570_v25, %v7069_v15 }
0x12bd   : > { %1574 = vst [vmem:[#allocation2] sm:$0xff] %v1572_v55  ;;  %v1720_v29 = vpop.f32.mrf.mxu3 }
0x12be   : > { %v5150_v13 = vpop.eup %5149  ;;  %1576 = vst [vmem:[%s5980_s6 + $0x8] sm:$0xff] %v1572_v55  ;;  %v1721_v43 = vadd.f32 %v7114_v19, %v1720_v29 }
0x12bf   : > { %v1733_v30 = vadd.f32 %v5150_v13, %v1731_v12 }
0x12c0   : > { %5151 = vtanh.f32 %v1721_v43 }
0x12c1   : > { %v1738_v31 = vmul.f32 %v7291_v28, %v1733_v30 }
0x12c3   : > { %v7297_v32 = vadd.f32 %v1738_v31, %v7075_v62 }
0x12c5   : > { %1758 = vmatmul.f32.vlgmr.msrb.gmra.mxu0 %v7297_v32 }
0x12c6   : > { %v5152_v46 = vpop.eup %5151  ;;  %1994 = vmatpush.msrb.mxu0 %v6959_v59 }
0x12c7   : > { %v1734_v15 = vadd.f32 %v5152_v46, %v1732_v6 }
0x12c8   : > { %1995 = vmatpush.msrb.mxu0 %v6963_v60 }
0x12c9   : > { %v1739_v20 = vmul.f32 %v7291_v28, %v1734_v15 }
0x12ca   : > { %1996 = vmatpush.msrb.mxu0 %v6969_v3 }
0x12cb   : > { %v7305_v33 = vadd.f32 %v1739_v20, %v7082_v9 }
0x12cc   : > { %1997 = vmatpush.msrb.mxu0 %v6975_v4 }
0x12cd   : > { %1761 = vmatmul.f32.gmra.mxu0 %v7305_v33 }
0x12ce   : > { %1998 = vmatpush.msrb.mxu0 %v6981_v5 }
0x12d0   : > { %1999 = vmatpush.msrb.mxu0 %v6987_v8 }
0x12d2   : > { %2000 = vmatpush.msrb.mxu0 %v6993_v36 }
0x12d4   : > { %2001 = vmatpush.msrb.mxu0 %v6999_v37 }
0x12d6   : > { %2002 = vmatpush.msrb.mxu0 %v7005_v34 }
0x12d8   : > { %2003 = vmatpush.msrb.mxu0 %v7011_v38 }
0x12da   : > { %2004 = vmatpush.msrb.mxu0 %v7017_v51 }
0x12dc   : > { %2005 = vmatpush.msrb.mxu0 %v7019_v44 }
0x12de   : > { %2006 = vmatpush.msrb.mxu0 %v7029_v57 }
0x12e0   : > { %2007 = vmatpush.msrb.mxu0 %v7031_v53 }
0x12e2   : > { %2008 = vmatpush.msrb.mxu0 %v7037_v58 }
0x12e4   : > { %2009 = vmatpush.msrb.mxu0 %v7043_v56 }
0x1342   : > { %v1759_v62 = vpop.f32.mrf.mxu0 }
0x1343   : > { %v1760_v9 = vadd.f32 %v7114_v19, %v1759_v62 }
0x1345   : > { %5153 = vtanh.f32 %v1760_v9 }
0x134a   : > { %v1762_v35 = vpop.f32.mrf.mxu0 }
0x134b   : > { %v7322_v63 = vpop.eup %5153  ;;  %v1763_v22 = vadd.f32 %v7114_v19, %v1762_v35 }
0x134c   : > { %v1767_v1 = vmul.f32 %v7322_v63, %v7130_v49 }
0x134d   : > { %5155 = vtanh.f32 %v1763_v22 }
0x134e   : > { %v1769_v7 = vadd.f32 %v1767_v1, %v7297_v32 }
0x1350   : > { %1787 = vmatmul.f32.vlgmr.msrb.gmra.mxu1 %v1769_v7 }
0x1351   : > { %2023 = vmatpush.msrb.mxu1 %v6959_v59 }
0x1353   : > { %v7329_v2 = vpop.eup %5155  ;;  %2024 = vmatpush.msrb.mxu1 %v6963_v60 }
0x1354   : > { %v1768_v10 = vmul.f32 %v7329_v2, %v7130_v49 }
0x1355   : > { %2025 = vmatpush.msrb.mxu1 %v6969_v3 }
0x1356   : > { %v1770_v61 = vadd.f32 %v1768_v10, %v7305_v33 }
0x1357   : > { %2026 = vmatpush.msrb.mxu1 %v6975_v4 }
0x1358   : > { %1790 = vmatmul.f32.gmra.mxu1 %v1770_v61  ;;  %v7435_v61 = vld [vmem:[#allocation3 + $0xf0] sm:$0xff] }
0x1359   : > { %2027 = vmatpush.msrb.mxu1 %v6981_v5 }
0x135b   : > { %2028 = vmatpush.msrb.mxu1 %v6987_v8 }
0x135d   : > { %2029 = vmatpush.msrb.mxu1 %v6993_v36 }
0x135f   : > { %2030 = vmatpush.msrb.mxu1 %v6999_v37 }
0x1361   : > { %2031 = vmatpush.msrb.mxu1 %v7005_v34 }
0x1363   : > { %2032 = vmatpush.msrb.mxu1 %v7011_v38 }
0x1365   : > { %2033 = vmatpush.msrb.mxu1 %v7017_v51 }
0x1367   : > { %2034 = vmatpush.msrb.mxu1 %v7019_v44 }
0x1369   : > { %2035 = vmatpush.msrb.mxu1 %v7029_v57 }
0x136b   : > { %2036 = vmatpush.msrb.mxu1 %v7031_v53 }
0x136d   : > { %2037 = vmatpush.msrb.mxu1 %v7037_v58 }
0x136f   : > { %2038 = vmatpush.msrb.mxu1 %v7043_v56 }
0x13cd   : > { %v1788_v11 = vpop.f32.mrf.mxu1 }
0x13ce   : > { %v1789_v12 = vadd.f32 %v7114_v19, %v1788_v11 }
0x13d0   : > { %5157 = vtanh.f32 %v1789_v12  ;;  %v7440_v12 = vld [vmem:[#allocation3 + $0xe8] sm:$0xff] }
0x13d5   : > { %v1791_v39 = vpop.f32.mrf.mxu1 }
0x13d6   : > { %v5158_v48 = vpop.eup %5157  ;;  %v1792_v52 = vadd.f32 %v7114_v19, %v1791_v39 }
0x13d7   : > { %v1796_v40 = vmul.f32 %v5158_v48, %v7130_v49  ;;  %v1854_v18 = vmul.f32 2.0, %v5158_v48  ;;  %v7444_v48 = vld [vmem:[#allocation3 + $0xe0] sm:$0xff] }
0x13d8   : > { %5159 = vtanh.f32 %v1792_v52  ;;  %v7447_v52 = vld [vmem:[#allocation3 + $0xd8] sm:$0xff] }
0x13d9   : > { %v1798_v16 = vadd.f32 %v1796_v40, %v7297_v32  ;;  %v1856_v45 = vadd.f32 %v7322_v63, %v1854_v18  ;;  %v7450_v40 = vld [vmem:[#allocation3 + $0xd0] sm:$0xff]  ;;  %v7487_v18 = vld [vmem:[#allocation3 + $0xa8] sm:$0xff] }
0x13db   : > { %1816 = vmatmul.f32.vlgmr.msrb.gmra.mxu2 %v1798_v16 }
0x13dc   : > { %2052 = vmatpush.msrb.mxu2 %v6959_v59 }
0x13de   : > { %v5160_v17 = vpop.eup %5159  ;;  %2053 = vmatpush.msrb.mxu2 %v6963_v60 }
0x13df   : > { %v1797_v6 = vmul.f32 %v5160_v17, %v7130_v49  ;;  %v1855_v25 = vmul.f32 2.0, %v5160_v17 }
0x13e0   : > { %2054 = vmatpush.msrb.mxu2 %v6969_v3 }
0x13e1   : > { %v1799_v42 = vadd.f32 %v1797_v6, %v7305_v33  ;;  %v1857_v55 = vadd.f32 %v7329_v2, %v1855_v25  ;;  %v7475_v6 = vld [vmem:[#allocation3 + $0xc8] sm:$0xff] }
0x13e2   : > { %2055 = vmatpush.msrb.mxu2 %v6975_v4 }
0x13e3   : > { %1819 = vmatmul.f32.gmra.mxu2 %v1799_v42  ;;  %v7478_v42 = vld [vmem:[#allocation3 + $0xc0] sm:$0xff] }
0x13e4   : > { %2056 = vmatpush.msrb.mxu2 %v6981_v5 }
0x13e6   : > { %2057 = vmatpush.msrb.mxu2 %v6987_v8 }
0x13e8   : > { %2058 = vmatpush.msrb.mxu2 %v6993_v36 }
0x13ea   : > { %2059 = vmatpush.msrb.mxu2 %v6999_v37 }
0x13ec   : > { %2060 = vmatpush.msrb.mxu2 %v7005_v34 }
0x13ee   : > { %2061 = vmatpush.msrb.mxu2 %v7011_v38 }
0x13f0   : > { %2062 = vmatpush.msrb.mxu2 %v7017_v51 }
0x13f2   : > { %2063 = vmatpush.msrb.mxu2 %v7019_v44 }
0x13f4   : > { %2064 = vmatpush.msrb.mxu2 %v7029_v57 }
0x13f6   : > { %2065 = vmatpush.msrb.mxu2 %v7031_v53 }
0x13f8   : > { %2066 = vmatpush.msrb.mxu2 %v7037_v58 }
0x13fa   : > { %2067 = vmatpush.msrb.mxu2 %v7043_v56 }
0x145e   : > { %v1817_v14 = vpop.f32.mrf.mxu2 }
0x145f   : > { %v1818_v27 = vadd.f32 %v7114_v19, %v1817_v14  ;;  %v7481_v14 = vld [vmem:[#allocation3 + $0xb8] sm:$0xff] }
0x1461   : > { %5161 = vtanh.f32 %v1818_v27  ;;  %v7484_v27 = vld [vmem:[#allocation3 + $0xb0] sm:$0xff] }
0x1466   : > { %v1820_v21 = vpop.f32.mrf.mxu2 }
0x1467   : > { %v5162_v23 = vpop.eup %5161  ;;  %v1821_v24 = vadd.f32 %v7114_v19, %v1820_v21  ;;  %v7490_v21 = vld [vmem:[#allocation3 + $0xa0] sm:$0xff] }
0x1468   : > { %v1825_v47 = vmul.f32 %v5162_v23, %v7242_v0  ;;  %v1858_v50 = vmul.f32 2.0, %v5162_v23  ;;  %v7493_v23 = vld [vmem:[#allocation3 + $0x98] sm:$0xff] }
0x1469   : > { %5163 = vtanh.f32 %v1821_v24  ;;  %v7496_v24 = vld [vmem:[#allocation3 + $0x90] sm:$0xff] }
0x146a   : > { %v1827_v54 = vadd.f32 %v1825_v47, %v7297_v32  ;;  %v1860_v41 = vadd.f32 %v1858_v50, %v1856_v45 }
0x146c   : > { %1845 = vmatmul.f32.vlgmr.msrb.gmra.mxu3 %v1827_v54 }
0x146d   : > { %2081 = vmatpush.msrb.mxu3 %v6959_v59 }
0x146f   : > { %v5164_v26 = vpop.eup %5163  ;;  %2082 = vmatpush.msrb.mxu3 %v6963_v60 }
0x1470   : > { %v1859_v29 = vmul.f32 2.0, %v5164_v26  ;;  %v1826_v13 = vmul.f32 %v5164_v26, %v7242_v0 }
0x1471   : > { %2083 = vmatpush.msrb.mxu3 %v6969_v3 }
0x1472   : > { %v1828_v43 = vadd.f32 %v1826_v13, %v7305_v33  ;;  %v1861_v30 = vadd.f32 %v1859_v29, %v1857_v55 }
0x1473   : > { %2084 = vmatpush.msrb.mxu3 %v6975_v4 }
0x1474   : > { %1848 = vmatmul.f32.gmra.mxu3 %v1828_v43 }
0x1475   : > { %2085 = vmatpush.msrb.mxu3 %v6981_v5 }
0x1477   : > { %2086 = vmatpush.msrb.mxu3 %v6987_v8 }
0x1479   : > { %2087 = vmatpush.msrb.mxu3 %v6993_v36 }
0x147b   : > { %2088 = vmatpush.msrb.mxu3 %v6999_v37 }
0x147d   : > { %2089 = vmatpush.msrb.mxu3 %v7005_v34 }
0x147f   : > { %2090 = vmatpush.msrb.mxu3 %v7011_v38 }
0x1481   : > { %2091 = vmatpush.msrb.mxu3 %v7017_v51 }
0x1483   : > { %2092 = vmatpush.msrb.mxu3 %v7019_v44 }
0x1485   : > { %2093 = vmatpush.msrb.mxu3 %v7029_v57 }
0x1487   : > { %2094 = vmatpush.msrb.mxu3 %v7031_v53 }
0x1489   : > { %2095 = vmatpush.msrb.mxu3 %v7037_v58 }
0x148b   : > { %2096 = vmatpush.msrb.mxu3 %v7043_v56 }
0x14ef   : > { %v1846_v31 = vpop.f32.mrf.mxu3 }
0x14f0   : > { %v1847_v46 = vadd.f32 %v7114_v19, %v1846_v31 }
0x14f2   : > { %5165 = vtanh.f32 %v1847_v46 }
0x14f7   : > { %v1849_v15 = vpop.f32.mrf.mxu3 }
0x14f8   : > { %v5166_v20 = vpop.eup %5165  ;;  %v1850_v62 = vadd.f32 %v7114_v19, %v1849_v15 }
0x14f9   : > { %v1862_v9 = vadd.f32 %v5166_v20, %v1860_v41 }
0x14fa   : > { %5167 = vtanh.f32 %v1850_v62  ;;  %v7523_v62 = vld [vmem:[#allocation3 + $0x88] sm:$0xff] }
0x14fb   : > { %v1864_v35 = vmul.f32 %v1862_v9, %v7291_v28  ;;  %v7526_v9 = vld [vmem:[#allocation3 + $0x80] sm:$0xff] }
0x14fd   : > { %v7399_v63 = vadd.f32 %v1864_v35, %v7297_v32 }
0x14ff   : > { %1884 = vmatmul.f32.vlgmr.msra.gmra.mxu0 %v7399_v63 }
0x1500   : > { %v5168_v22 = vpop.eup %5167  ;;  %2120 = vmatpush.msra.mxu0 %v6959_v59 }
0x1501   : > { %v1863_v1 = vadd.f32 %v5168_v22, %v1861_v30 }
0x1502   : > { %2121 = vmatpush.msra.mxu0 %v6963_v60 }
0x1503   : > { %v1865_v7 = vmul.f32 %v1863_v1, %v7291_v28 }
0x1504   : > { %2122 = vmatpush.msra.mxu0 %v6969_v3 }
0x1505   : > { %v7407_v2 = vadd.f32 %v1865_v7, %v7305_v33  ;;  %v7430_v33 = vld [vmem:[#allocation3 + $0xf8] sm:$0xff] }
0x1506   : > { %2123 = vmatpush.msra.mxu0 %v6975_v4 }
0x1507   : > { %1887 = vmatmul.f32.gmra.mxu0 %v7407_v2 }
0x1508   : > { %2124 = vmatpush.msra.mxu0 %v6981_v5 }
0x150a   : > { %2125 = vmatpush.msra.mxu0 %v6987_v8 }
0x150c   : > { %2126 = vmatpush.msra.mxu0 %v6993_v36 }
0x150e   : > { %2127 = vmatpush.msra.mxu0 %v6999_v37 }
0x1510   : > { %2128 = vmatpush.msra.mxu0 %v7005_v34 }
0x1512   : > { %2129 = vmatpush.msra.mxu0 %v7011_v38 }
0x1514   : > { %2130 = vmatpush.msra.mxu0 %v7017_v51 }
0x1516   : > { %2131 = vmatpush.msra.mxu0 %v7019_v44 }
0x1518   : > { %2132 = vmatpush.msra.mxu0 %v7029_v57 }
0x151a   : > { %2133 = vmatpush.msra.mxu0 %v7031_v53 }
0x151c   : > { %2134 = vmatpush.msra.mxu0 %v7037_v58 }
0x151e   : > { %2135 = vmatpush.msra.mxu0 %v7043_v56 }
0x157c   : > { %v1885_v59 = vpop.f32.mrf.mxu0 }
0x157d   : > { %v1886_v60 = vadd.f32 %v7114_v19, %v1885_v59 }
0x157f   : > { %5169 = vtanh.f32 %v1886_v60 }
0x1584   : > { %v1888_v3 = vpop.f32.mrf.mxu0 }
0x1585   : > { %v7424_v4 = vpop.eup %5169  ;;  %v1889_v5 = vadd.f32 %v7114_v19, %v1888_v3 }
0x1586   : > { %v1893_v8 = vmul.f32 %v7424_v4, %v7130_v49 }
0x1587   : > { %5171 = vtanh.f32 %v1889_v5 }
0x1588   : > { %v1895_v32 = vadd.f32 %v1893_v8, %v7399_v63 }
0x158a   : > { %1913 = vmatmul.f32.vlgmr.msra.gmra.mxu1 %v1895_v32 }
0x158b   : > { %2149 = vmatpush.msra.mxu1 %v7430_v33 }
0x158d   : > { %v7433_v10 = vpop.eup %5171  ;;  %2150 = vmatpush.msra.mxu1 %v7435_v61 }
0x158e   : > { %v1894_v11 = vmul.f32 %v7433_v10, %v7130_v49 }
0x158f   : > { %2151 = vmatpush.msra.mxu1 %v7440_v12 }
0x1590   : > { %v1896_v39 = vadd.f32 %v1894_v11, %v7407_v2 }
0x1591   : > { %2152 = vmatpush.msra.mxu1 %v7444_v48 }
0x1592   : > { %1916 = vmatmul.f32.gmra.mxu1 %v1896_v39 }
0x1593   : > { %2153 = vmatpush.msra.mxu1 %v7447_v52 }
0x1595   : > { %2154 = vmatpush.msra.mxu1 %v7450_v40 }
0x1597   : > { %2155 = vmatpush.msra.mxu1 %v6993_v36 }
0x1599   : > { %2156 = vmatpush.msra.mxu1 %v6999_v37 }
0x159b   : > { %2157 = vmatpush.msra.mxu1 %v7005_v34 }
0x159d   : > { %2158 = vmatpush.msra.mxu1 %v7011_v38 }
0x159f   : > { %2159 = vmatpush.msra.mxu1 %v7017_v51 }
0x15a1   : > { %2160 = vmatpush.msra.mxu1 %v7019_v44 }
0x15a3   : > { %2161 = vmatpush.msra.mxu1 %v7029_v57 }
0x15a5   : > { %2162 = vmatpush.msra.mxu1 %v7031_v53 }
0x15a7   : > { %2163 = vmatpush.msra.mxu1 %v7037_v58 }
0x15a9   : > { %2164 = vmatpush.msra.mxu1 %v7043_v56 }
0x1607   : > { %v1914_v16 = vpop.f32.mrf.mxu1 }
0x1608   : > { %v1915_v36 = vadd.f32 %v7114_v19, %v1914_v16 }
0x160a   : > { %5173 = vtanh.f32 %v1915_v36 }
0x160f   : > { %v1917_v37 = vpop.f32.mrf.mxu1 }
0x1610   : > { %v5174_v34 = vpop.eup %5173  ;;  %v1918_v38 = vadd.f32 %v7114_v19, %v1917_v37 }
0x1611   : > { %v1922_v51 = vmul.f32 %v5174_v34, %v7130_v49  ;;  %v1980_v50 = vmul.f32 2.0, %v5174_v34 }
0x1612   : > { %5175 = vtanh.f32 %v1918_v38 }
0x1613   : > { %v1924_v44 = vadd.f32 %v1922_v51, %v7399_v63  ;;  %v1982_v26 = vadd.f32 %v7424_v4, %v1980_v50 }
0x1615   : > { %1942 = vmatmul.f32.vlgmr.msra.gmra.mxu2 %v1924_v44  ;;  %v7585_v44 = vld [vmem:[#allocation9 + $0x1] ss:$0 sm:$0xff] }
0x1616   : > { %2178 = vmatpush.msra.mxu2 %v7430_v33 }
0x1618   : > { %v5176_v57 = vpop.eup %5175  ;;  %2179 = vmatpush.msra.mxu2 %v7435_v61 }
0x1619   : > { %v1923_v53 = vmul.f32 %v5176_v57, %v7130_v49  ;;  %v1981_v43 = vmul.f32 2.0, %v5176_v57 }
0x161a   : > { %2180 = vmatpush.msra.mxu2 %v7440_v12 }
0x161b   : > { %v1925_v17 = vadd.f32 %v1923_v53, %v7407_v2  ;;  %v1983_v30 = vadd.f32 %v7433_v10, %v1981_v43 }
0x161c   : > { %2181 = vmatpush.msra.mxu2 %v7444_v48 }
0x161d   : > { %1945 = vmatmul.f32.gmra.mxu2 %v1925_v17 }
0x161e   : > { %2182 = vmatpush.msra.mxu2 %v7447_v52 }
0x1620   : > { %2183 = vmatpush.msra.mxu2 %v7450_v40 }
0x1622   : > { %2184 = vmatpush.msra.mxu2 %v7475_v6 }
0x1624   : > { %2185 = vmatpush.msra.mxu2 %v7478_v42 }
0x1626   : > { %2186 = vmatpush.msra.mxu2 %v7481_v14 }
0x1628   : > { %2187 = vmatpush.msra.mxu2 %v7484_v27 }
0x162a   : > { %2188 = vmatpush.msra.mxu2 %v7487_v18 }
0x162c   : > { %2189 = vmatpush.msra.mxu2 %v7490_v21 }
0x162e   : > { %2190 = vmatpush.msra.mxu2 %v7493_v23 }
0x1630   : > { %2191 = vmatpush.msra.mxu2 %v7496_v24 }
0x1632   : > { %2192 = vmatpush.msra.mxu2 %v7037_v58 }
0x1634   : > { %2193 = vmatpush.msra.mxu2 %v7043_v56 }
0x1698   : > { %v1943_v45 = vpop.f32.mrf.mxu2 }
0x1699   : > { %v1944_v47 = vadd.f32 %v7114_v19, %v1943_v45 }
0x169b   : > { %5177 = vtanh.f32 %v1944_v47 }
0x16a0   : > { %v1946_v54 = vpop.f32.mrf.mxu2 }
0x16a1   : > { %v5178_v41 = vpop.eup %5177  ;;  %v1947_v25 = vadd.f32 %v7114_v19, %v1946_v54 }
0x16a2   : > { %v1951_v55 = vmul.f32 %v5178_v41, %v7242_v0  ;;  %v1984_v29 = vmul.f32 2.0, %v5178_v41 }
0x16a3   : > { %5179 = vtanh.f32 %v1947_v25 }
0x16a4   : > { %v1953_v13 = vadd.f32 %v1951_v55, %v7399_v63  ;;  %v1986_v58 = vadd.f32 %v1984_v29, %v1982_v26 }
0x16a6   : > { %1971 = vmatmul.f32.vlgmr.msra.gmra.mxu3 %v1953_v13 }
0x16a7   : > { %2207 = vmatpush.msra.mxu3 %v7430_v33 }
0x16a9   : > { %v5180_v56 = vpop.eup %5179  ;;  %2208 = vmatpush.msra.mxu3 %v7435_v61 }
0x16aa   : > { %v1985_v31 = vmul.f32 2.0, %v5180_v56  ;;  %v1952_v46 = vmul.f32 %v5180_v56, %v7242_v0 }
0x16ab   : > { %2209 = vmatpush.msra.mxu3 %v7440_v12 }
0x16ac   : > { %v1954_v15 = vadd.f32 %v1952_v46, %v7407_v2  ;;  %v1987_v20 = vadd.f32 %v1985_v31, %v1983_v30 }
0x16ad   : > { %2210 = vmatpush.msra.mxu3 %v7444_v48 }
0x16ae   : > { %1974 = vmatmul.f32.gmra.mxu3 %v1954_v15 }
0x16af   : > { %2211 = vmatpush.msra.mxu3 %v7447_v52 }
0x16b1   : > { %2212 = vmatpush.msra.mxu3 %v7450_v40 }
0x16b3   : > { %2213 = vmatpush.msra.mxu3 %v7475_v6 }
0x16b5   : > { %2214 = vmatpush.msra.mxu3 %v7478_v42 }
0x16b7   : > { %2215 = vmatpush.msra.mxu3 %v7481_v14 }
0x16b9   : > { %2216 = vmatpush.msra.mxu3 %v7484_v27 }
0x16bb   : > { %2217 = vmatpush.msra.mxu3 %v7487_v18 }
0x16bd   : > { %2218 = vmatpush.msra.mxu3 %v7490_v21 }
0x16bf   : > { %2219 = vmatpush.msra.mxu3 %v7493_v23 }
0x16c1   : > { %2220 = vmatpush.msra.mxu3 %v7496_v24 }
0x16c3   : > { %2221 = vmatpush.msra.mxu3 %v7523_v62 }
0x16c5   : > { %2222 = vmatpush.msra.mxu3 %v7526_v9 }
0x1729   : > { %v1972_v35 = vpop.f32.mrf.mxu3 }
0x172a   : > { %v1973_v22 = vadd.f32 %v7114_v19, %v1972_v35 }
0x172c   : > { %5181 = vtanh.f32 %v1973_v22 }
0x1731   : > { %v1975_v1 = vpop.f32.mrf.mxu3 }
0x1732   : > { %v5182_v7 = vpop.eup %5181  ;;  %v1976_v59 = vadd.f32 %v7114_v19, %v1975_v1 }
0x1733   : > { %v1988_v60 = vadd.f32 %v5182_v7, %v1986_v58 }
0x1734   : > { %5183 = vtanh.f32 %v1976_v59 }
0x1735   : > { %v1990_v3 = vmul.f32 %v1988_v60, %v7291_v28 }
0x1737   : > { %v7533_v4 = vadd.f32 %v1990_v3, %v7399_v63 }
0x1739   : > { %2010 = vmatmul.f32.vlgmr.msrb.gmra.mxu0 %v7533_v4 }
0x173a   : > { %v5184_v5 = vpop.eup %5183  ;;  %2246 = vmatpush.msrb.mxu0 %v7430_v33 }
0x173b   : > { %v1989_v8 = vadd.f32 %v5184_v5, %v1987_v20 }
0x173c   : > { %2247 = vmatpush.msrb.mxu0 %v7435_v61 }
0x173d   : > { %v1991_v32 = vmul.f32 %v1989_v8, %v7291_v28 }
0x173e   : > { %2248 = vmatpush.msrb.mxu0 %v7440_v12 }
0x173f   : > { %v7541_v10 = vadd.f32 %v1991_v32, %v7407_v2 }
0x1740   : > { %2249 = vmatpush.msrb.mxu0 %v7444_v48 }
0x1741   : > { %2013 = vmatmul.f32.gmra.mxu0 %v7541_v10 }
0x1742   : > { %2250 = vmatpush.msrb.mxu0 %v7447_v52 }
0x1744   : > { %2251 = vmatpush.msrb.mxu0 %v7450_v40 }
0x1746   : > { %2252 = vmatpush.msrb.mxu0 %v7475_v6 }
0x1748   : > { %2253 = vmatpush.msrb.mxu0 %v7478_v42 }
0x174a   : > { %2254 = vmatpush.msrb.mxu0 %v7481_v14 }
0x174c   : > { %2255 = vmatpush.msrb.mxu0 %v7484_v27 }
0x174e   : > { %2256 = vmatpush.msrb.mxu0 %v7487_v18 }
0x1750   : > { %2257 = vmatpush.msrb.mxu0 %v7490_v21 }
0x1752   : > { %2258 = vmatpush.msrb.mxu0 %v7493_v23 }
0x1754   : > { %2259 = vmatpush.msrb.mxu0 %v7496_v24 }
0x1756   : > { %2260 = vmatpush.msrb.mxu0 %v7523_v62 }
0x1758   : > { %2261 = vmatpush.msrb.mxu0 %v7526_v9 }
0x17b6   : > { %v2011_v63 = vpop.f32.mrf.mxu0 }
0x17b7   : > { %v2012_v2 = vadd.f32 %v7114_v19, %v2011_v63 }
0x17b9   : > { %5185 = vtanh.f32 %v2012_v2 }
0x17be   : > { %v2014_v11 = vpop.f32.mrf.mxu0 }
0x17bf   : > { %v7558_v39 = vpop.eup %5185  ;;  %v2015_v16 = vadd.f32 %v7114_v19, %v2014_v11 }
0x17c0   : > { %v2019_v36 = vmul.f32 %v7558_v39, %v7130_v49 }
0x17c1   : > { %5187 = vtanh.f32 %v2015_v16 }
0x17c2   : > { %v2021_v37 = vadd.f32 %v2019_v36, %v7533_v4 }
0x17c4   : > { %2039 = vmatmul.f32.vlgmr.msrb.gmra.mxu1 %v2021_v37 }
0x17c5   : > { %2275 = vmatpush.msrb.mxu1 %v7430_v33 }
0x17c7   : > { %v7565_v34 = vpop.eup %5187  ;;  %2276 = vmatpush.msrb.mxu1 %v7435_v61 }
0x17c8   : > { %v2020_v38 = vmul.f32 %v7565_v34, %v7130_v49 }
0x17c9   : > { %2277 = vmatpush.msrb.mxu1 %v7440_v12 }
0x17ca   : > { %v2022_v19 = vadd.f32 %v2020_v38, %v7541_v10 }
0x17cb   : > { %2278 = vmatpush.msrb.mxu1 %v7444_v48 }
0x17cc   : > { %2042 = vmatmul.f32.gmra.mxu1 %v2022_v19 }
0x17cd   : > { %2279 = vmatpush.msrb.mxu1 %v7447_v52 }
0x17cf   : > { %2280 = vmatpush.msrb.mxu1 %v7450_v40 }
0x17d1   : > { %2281 = vmatpush.msrb.mxu1 %v7475_v6 }
0x17d3   : > { %2282 = vmatpush.msrb.mxu1 %v7478_v42 }
0x17d5   : > { %2283 = vmatpush.msrb.mxu1 %v7481_v14 }
0x17d7   : > { %2284 = vmatpush.msrb.mxu1 %v7484_v27 }
0x17d9   : > { %2285 = vmatpush.msrb.mxu1 %v7487_v18 }
0x17db   : > { %2286 = vmatpush.msrb.mxu1 %v7490_v21 }
0x17dd   : > { %2287 = vmatpush.msrb.mxu1 %v7493_v23 }
0x17df   : > { %2288 = vmatpush.msrb.mxu1 %v7496_v24 }
0x17e1   : > { %2289 = vmatpush.msrb.mxu1 %v7523_v62 }
0x17e3   : > { %2290 = vmatpush.msrb.mxu1 %v7526_v9 }
0x1841   : > { %v2040_v51 = vpop.f32.mrf.mxu1 }
0x1842   : > { %v2041_v57 = vadd.f32 %v7585_v44, %v2040_v51 }
0x1844   : > { %5189 = vtanh.f32 %v2041_v57 }
0x1849   : > { %v2043_v53 = vpop.f32.mrf.mxu1 }
0x184a   : > { %v5190_v17 = vpop.eup %5189  ;;  %v2044_v45 = vadd.f32 %v7585_v44, %v2043_v53 }
0x184b   : > { %v2048_v47 = vmul.f32 %v5190_v17, %v7130_v49  ;;  %v2106_v29 = vmul.f32 2.0, %v5190_v17 }
0x184c   : > { %5191 = vtanh.f32 %v2044_v45 }
0x184d   : > { %v2050_v50 = vadd.f32 %v2048_v47, %v7533_v4  ;;  %v2108_v56 = vadd.f32 %v7558_v39, %v2106_v29 }
0x184f   : > { %2068 = vmatmul.f32.vlgmr.msrb.gmra.mxu2 %v2050_v50 }
0x1850   : > { %2304 = vmatpush.msrb.mxu2 %v7430_v33 }
0x1852   : > { %v5192_v54 = vpop.eup %5191  ;;  %2305 = vmatpush.msrb.mxu2 %v7435_v61 }
0x1853   : > { %v2049_v41 = vmul.f32 %v5192_v54, %v7130_v49  ;;  %v2107_v20 = vmul.f32 2.0, %v5192_v54 }
0x1854   : > { %2306 = vmatpush.msrb.mxu2 %v7440_v12 }
0x1855   : > { %v2051_v25 = vadd.f32 %v2049_v41, %v7541_v10  ;;  %v2109_v22 = vadd.f32 %v7565_v34, %v2107_v20 }
0x1856   : > { %2307 = vmatpush.msrb.mxu2 %v7444_v48 }
0x1857   : > { %2071 = vmatmul.f32.gmra.mxu2 %v2051_v25 }
0x1858   : > { %2308 = vmatpush.msrb.mxu2 %v7447_v52 }
0x185a   : > { %2309 = vmatpush.msrb.mxu2 %v7450_v40 }
0x185c   : > { %2310 = vmatpush.msrb.mxu2 %v7475_v6 }
0x185e   : > { %2311 = vmatpush.msrb.mxu2 %v7478_v42 }
0x1860   : > { %2312 = vmatpush.msrb.mxu2 %v7481_v14 }
0x1862   : > { %2313 = vmatpush.msrb.mxu2 %v7484_v27 }
0x1864   : > { %2314 = vmatpush.msrb.mxu2 %v7487_v18 }
0x1866   : > { %2315 = vmatpush.msrb.mxu2 %v7490_v21 }
0x1868   : > { %2316 = vmatpush.msrb.mxu2 %v7493_v23 }
0x186a   : > { %2317 = vmatpush.msrb.mxu2 %v7496_v24 }
0x186c   : > { %2318 = vmatpush.msrb.mxu2 %v7523_v62 }
0x186e   : > { %2319 = vmatpush.msrb.mxu2 %v7526_v9 }
0x18d2   : > { %v2069_v26 = vpop.f32.mrf.mxu2 }
0x18d3   : > { %v2070_v55 = vadd.f32 %v7585_v44, %v2069_v26 }
0x18d5   : > { %5193 = vtanh.f32 %v2070_v55 }
0x18da   : > { %v2072_v13 = vpop.f32.mrf.mxu2 }
0x18db   : > { %v5194_v58 = vpop.eup %5193  ;;  %v2073_v43 = vadd.f32 %v7585_v44, %v2072_v13 }
0x18dc   : > { %v2077_v30 = vmul.f32 %v5194_v58, %v7242_v0  ;;  %v2110_v31 = vmul.f32 2.0, %v5194_v58 }
0x18dd   : > { %5195 = vtanh.f32 %v2073_v43 }
0x18de   : > { %v2079_v46 = vadd.f32 %v2077_v30, %v7533_v4  ;;  %v2112_v15 = vadd.f32 %v2110_v31, %v2108_v56 }
0x18e0   : > { %2097 = vmatmul.f32.vlgmr.msrb.gmra.mxu3 %v2079_v46 }
0x18e1   : > { %2333 = vmatpush.msrb.mxu3 %v7430_v33 }
0x18e3   : > { %v5196_v35 = vpop.eup %5195  ;;  %2334 = vmatpush.msrb.mxu3 %v7435_v61 }
0x18e4   : > { %v2111_v1 = vmul.f32 2.0, %v5196_v35  ;;  %v2078_v7 = vmul.f32 %v5196_v35, %v7242_v0 }
0x18e5   : > { %2335 = vmatpush.msrb.mxu3 %v7440_v12 }
0x18e6   : > { %v2080_v59 = vadd.f32 %v2078_v7, %v7541_v10  ;;  %v2113_v60 = vadd.f32 %v2111_v1, %v2109_v22 }
0x18e7   : > { %2336 = vmatpush.msrb.mxu3 %v7444_v48 }
0x18e8   : > { %2100 = vmatmul.f32.gmra.mxu3 %v2080_v59 }
0x18e9   : > { %2337 = vmatpush.msrb.mxu3 %v7447_v52 }
0x18eb   : > { %2338 = vmatpush.msrb.mxu3 %v7450_v40 }
0x18ed   : > { %2339 = vmatpush.msrb.mxu3 %v7475_v6 }
0x18ef   : > { %2340 = vmatpush.msrb.mxu3 %v7478_v42 }
0x18f1   : > { %2341 = vmatpush.msrb.mxu3 %v7481_v14 }
0x18f3   : > { %2342 = vmatpush.msrb.mxu3 %v7484_v27 }
0x18f5   : > { %2343 = vmatpush.msrb.mxu3 %v7487_v18 }
0x18f7   : > { %2344 = vmatpush.msrb.mxu3 %v7490_v21 }
0x18f9   : > { %2345 = vmatpush.msrb.mxu3 %v7493_v23 }
0x18fb   : > { %2346 = vmatpush.msrb.mxu3 %v7496_v24 }
0x18fd   : > { %2347 = vmatpush.msrb.mxu3 %v7523_v62 }
0x18ff   : > { %2348 = vmatpush.msrb.mxu3 %v7526_v9 }
0x1963   : > { %v2098_v3 = vpop.f32.mrf.mxu3 }
0x1964   : > { %v2099_v5 = vadd.f32 %v7585_v44, %v2098_v3 }
0x1966   : > { %5197 = vtanh.f32 %v2099_v5 }
0x196b   : > { %v2101_v8 = vpop.f32.mrf.mxu3 }
0x196c   : > { %v5198_v32 = vpop.eup %5197  ;;  %v2102_v63 = vadd.f32 %v7585_v44, %v2101_v8 }
0x196d   : > { %v2114_v2 = vadd.f32 %v5198_v32, %v2112_v15 }
0x196e   : > { %5199 = vtanh.f32 %v2102_v63 }
0x196f   : > { %v2116_v11 = vmul.f32 %v2114_v2, %v7291_v28 }
0x1971   : > { %v7637_v39 = vadd.f32 %v2116_v11, %v7533_v4 }
0x1973   : > { %2136 = vmatmul.f32.vlgmr.msra.gmra.mxu0 %v7637_v39 }
0x1974   : > { %v5200_v16 = vpop.eup %5199  ;;  %2372 = vmatpush.msra.mxu0 %v7430_v33 }
0x1975   : > { %v2115_v36 = vadd.f32 %v5200_v16, %v2113_v60 }
0x1976   : > { %2373 = vmatpush.msra.mxu0 %v7435_v61 }
0x1977   : > { %v2117_v37 = vmul.f32 %v2115_v36, %v7291_v28 }
0x1978   : > { %2374 = vmatpush.msra.mxu0 %v7440_v12 }
0x1979   : > { %v7645_v34 = vadd.f32 %v2117_v37, %v7541_v10 }
0x197a   : > { %2375 = vmatpush.msra.mxu0 %v7444_v48 }
0x197b   : > { %2139 = vmatmul.f32.gmra.mxu0 %v7645_v34 }
0x197c   : > { %2376 = vmatpush.msra.mxu0 %v7447_v52 }
0x197e   : > { %2377 = vmatpush.msra.mxu0 %v7450_v40 }
0x1980   : > { %2378 = vmatpush.msra.mxu0 %v7475_v6 }
0x1982   : > { %2379 = vmatpush.msra.mxu0 %v7478_v42 }
0x1984   : > { %2380 = vmatpush.msra.mxu0 %v7481_v14 }
0x1986   : > { %2381 = vmatpush.msra.mxu0 %v7484_v27 }
0x1988   : > { %2382 = vmatpush.msra.mxu0 %v7487_v18 }
0x198a   : > { %2383 = vmatpush.msra.mxu0 %v7490_v21 }
0x198c   : > { %2384 = vmatpush.msra.mxu0 %v7493_v23 }
0x198e   : > { %2385 = vmatpush.msra.mxu0 %v7496_v24 }
0x1990   : > { %2386 = vmatpush.msra.mxu0 %v7523_v62 }
0x1992   : > { %2387 = vmatpush.msra.mxu0 %v7526_v9 }
0x19f0   : > { %v2137_v4 = vpop.f32.mrf.mxu0 }
0x19f1   : > { %v2138_v10 = vadd.f32 %v7585_v44, %v2137_v4 }
0x19f3   : > { %5201 = vtanh.f32 %v2138_v10 }
0x19f8   : > { %v2140_v38 = vpop.f32.mrf.mxu0 }
0x19f9   : > { %v7662_v19 = vpop.eup %5201  ;;  %v2141_v51 = vadd.f32 %v7585_v44, %v2140_v38 }
0x19fa   : > { %v2145_v57 = vmul.f32 %v7662_v19, %v7130_v49 }
0x19fb   : > { %5203 = vtanh.f32 %v2141_v51 }
0x19fc   : > { %v2147_v53 = vadd.f32 %v2145_v57, %v7637_v39 }
0x19fe   : > { %2165 = vmatmul.f32.vlgmr.msra.gmra.mxu1 %v2147_v53 }
0x19ff   : > { %2401 = vmatpush.msra.mxu1 %v7430_v33 }
0x1a01   : > { %v7669_v17 = vpop.eup %5203  ;;  %2402 = vmatpush.msra.mxu1 %v7435_v61 }
0x1a02   : > { %v2146_v45 = vmul.f32 %v7669_v17, %v7130_v49 }
0x1a03   : > { %2403 = vmatpush.msra.mxu1 %v7440_v12 }
0x1a04   : > { %v2148_v47 = vadd.f32 %v2146_v45, %v7645_v34 }
0x1a05   : > { %2404 = vmatpush.msra.mxu1 %v7444_v48 }
0x1a06   : > { %2168 = vmatmul.f32.gmra.mxu1 %v2148_v47 }
0x1a07   : > { %2405 = vmatpush.msra.mxu1 %v7447_v52 }
0x1a09   : > { %2406 = vmatpush.msra.mxu1 %v7450_v40 }
0x1a0b   : > { %2407 = vmatpush.msra.mxu1 %v7475_v6 }
0x1a0d   : > { %2408 = vmatpush.msra.mxu1 %v7478_v42 }
0x1a0f   : > { %2409 = vmatpush.msra.mxu1 %v7481_v14 }
0x1a11   : > { %2410 = vmatpush.msra.mxu1 %v7484_v27 }
0x1a13   : > { %2411 = vmatpush.msra.mxu1 %v7487_v18 }
0x1a15   : > { %2412 = vmatpush.msra.mxu1 %v7490_v21 }
0x1a17   : > { %2413 = vmatpush.msra.mxu1 %v7493_v23 }
0x1a19   : > { %2414 = vmatpush.msra.mxu1 %v7496_v24 }
0x1a1b   : > { %2415 = vmatpush.msra.mxu1 %v7523_v62 }
0x1a1d   : > { %2416 = vmatpush.msra.mxu1 %v7526_v9 }
0x1a7b   : > { %v2166_v50 = vpop.f32.mrf.mxu1 }
0x1a7c   : > { %v2167_v54 = vadd.f32 %v7585_v44, %v2166_v50 }
0x1a7e   : > { %5205 = vtanh.f32 %v2167_v54 }
0x1a83   : > { %v2169_v41 = vpop.f32.mrf.mxu1 }
0x1a84   : > { %v5206_v25 = vpop.eup %5205  ;;  %v2170_v26 = vadd.f32 %v7585_v44, %v2169_v41 }
0x1a85   : > { %v2174_v55 = vmul.f32 %v5206_v25, %v7130_v49  ;;  %v2232_v31 = vmul.f32 2.0, %v5206_v25 }
0x1a86   : > { %5207 = vtanh.f32 %v2170_v26 }
0x1a87   : > { %v2176_v29 = vadd.f32 %v2174_v55, %v7637_v39  ;;  %v2234_v35 = vadd.f32 %v7662_v19, %v2232_v31 }
0x1a89   : > { %2194 = vmatmul.f32.vlgmr.msra.gmra.mxu2 %v2176_v29 }
0x1a8a   : > { %2430 = vmatpush.msra.mxu2 %v7430_v33 }
0x1a8c   : > { %v5208_v13 = vpop.eup %5207  ;;  %2431 = vmatpush.msra.mxu2 %v7435_v61 }
0x1a8d   : > { %v2175_v58 = vmul.f32 %v5208_v13, %v7130_v49  ;;  %v2233_v60 = vmul.f32 2.0, %v5208_v13 }
0x1a8e   : > { %2432 = vmatpush.msra.mxu2 %v7440_v12 }
0x1a8f   : > { %v2177_v43 = vadd.f32 %v2175_v58, %v7645_v34  ;;  %v2235_v5 = vadd.f32 %v7669_v17, %v2233_v60 }
0x1a90   : > { %2433 = vmatpush.msra.mxu2 %v7444_v48 }
0x1a91   : > { %2197 = vmatmul.f32.gmra.mxu2 %v2177_v43 }
0x1a92   : > { %2434 = vmatpush.msra.mxu2 %v7447_v52 }
0x1a94   : > { %2435 = vmatpush.msra.mxu2 %v7450_v40 }
0x1a96   : > { %2436 = vmatpush.msra.mxu2 %v7475_v6 }
0x1a98   : > { %2437 = vmatpush.msra.mxu2 %v7478_v42 }
0x1a9a   : > { %2438 = vmatpush.msra.mxu2 %v7481_v14 }
0x1a9c   : > { %2439 = vmatpush.msra.mxu2 %v7484_v27 }
0x1a9e   : > { %2440 = vmatpush.msra.mxu2 %v7487_v18 }
0x1aa0   : > { %2441 = vmatpush.msra.mxu2 %v7490_v21 }
0x1aa2   : > { %2442 = vmatpush.msra.mxu2 %v7493_v23 }
0x1aa4   : > { %2443 = vmatpush.msra.mxu2 %v7496_v24 }
0x1aa6   : > { %2444 = vmatpush.msra.mxu2 %v7523_v62 }
0x1aa8   : > { %2445 = vmatpush.msra.mxu2 %v7526_v9 }
0x1b0c   : > { %v2195_v56 = vpop.f32.mrf.mxu2 }
0x1b0d   : > { %v2196_v30 = vadd.f32 %v7585_v44, %v2195_v56 }
0x1b0f   : > { %5209 = vtanh.f32 %v2196_v30 }
0x1b14   : > { %v2198_v46 = vpop.f32.mrf.mxu2 }
0x1b15   : > { %v5210_v15 = vpop.eup %5209  ;;  %v2199_v20 = vadd.f32 %v7585_v44, %v2198_v46 }
0x1b16   : > { %v2203_v22 = vmul.f32 %v5210_v15, %v7242_v0  ;;  %v2236_v1 = vmul.f32 2.0, %v5210_v15 }
0x1b17   : > { %5211 = vtanh.f32 %v2199_v20 }
0x1b18   : > { %v2205_v7 = vadd.f32 %v2203_v22, %v7637_v39  ;;  %v2238_v59 = vadd.f32 %v2236_v1, %v2234_v35 }
0x1b1a   : > { %2223 = vmatmul.f32.vlgmr.msra.gmra.mxu3 %v2205_v7 }
0x1b1b   : > { %2459 = vmatpush.msra.mxu3 %v7430_v33 }
0x1b1d   : > { %v5212_v3 = vpop.eup %5211  ;;  %2460 = vmatpush.msra.mxu3 %v7435_v61 }
0x1b1e   : > { %v2237_v8 = vmul.f32 2.0, %v5212_v3  ;;  %v2204_v32 = vmul.f32 %v5212_v3, %v7242_v0 }
0x1b1f   : > { %2461 = vmatpush.msra.mxu3 %v7440_v12 }
0x1b20   : > { %v2206_v63 = vadd.f32 %v2204_v32, %v7645_v34  ;;  %v2239_v2 = vadd.f32 %v2237_v8, %v2235_v5 }
0x1b21   : > { %2462 = vmatpush.msra.mxu3 %v7444_v48 }
0x1b22   : > { %2226 = vmatmul.f32.gmra.mxu3 %v2206_v63 }
0x1b23   : > { %2463 = vmatpush.msra.mxu3 %v7447_v52 }
0x1b25   : > { %2464 = vmatpush.msra.mxu3 %v7450_v40 }
0x1b27   : > { %2465 = vmatpush.msra.mxu3 %v7475_v6 }
0x1b29   : > { %2466 = vmatpush.msra.mxu3 %v7478_v42 }
0x1b2b   : > { %2467 = vmatpush.msra.mxu3 %v7481_v14 }
0x1b2d   : > { %2468 = vmatpush.msra.mxu3 %v7484_v27 }
0x1b2f   : > { %2469 = vmatpush.msra.mxu3 %v7487_v18 }
0x1b31   : > { %2470 = vmatpush.msra.mxu3 %v7490_v21 }
0x1b33   : > { %2471 = vmatpush.msra.mxu3 %v7493_v23 }
0x1b35   : > { %2472 = vmatpush.msra.mxu3 %v7496_v24 }
0x1b37   : > { %2473 = vmatpush.msra.mxu3 %v7523_v62 }
0x1b39   : > { %2474 = vmatpush.msra.mxu3 %v7526_v9 }
0x1b9d   : > { %v2224_v11 = vpop.f32.mrf.mxu3 }
0x1b9e   : > { %v2225_v16 = vadd.f32 %v7585_v44, %v2224_v11 }
0x1ba0   : > { %5213 = vtanh.f32 %v2225_v16 }
0x1ba5   : > { %v2227_v36 = vpop.f32.mrf.mxu3 }
0x1ba6   : > { %v5214_v37 = vpop.eup %5213  ;;  %v2228_v4 = vadd.f32 %v7585_v44, %v2227_v36 }
0x1ba7   : > { %v2240_v10 = vadd.f32 %v5214_v37, %v2238_v59 }
0x1ba8   : > { %5215 = vtanh.f32 %v2228_v4 }
0x1ba9   : > { %v2242_v38 = vmul.f32 %v2240_v10, %v7291_v28 }
0x1bab   : > { %v7739_v19 = vadd.f32 %v2242_v38, %v7637_v39 }
0x1bad   : > { %2262 = vmatmul.f32.vlgmr.msrb.gmra.mxu0 %v7739_v19 }
0x1bae   : > { %v5216_v51 = vpop.eup %5215  ;;  %2498 = vmatpush.msrb.mxu0 %v7430_v33 }
0x1baf   : > { %v2241_v57 = vadd.f32 %v5216_v51, %v2239_v2 }
0x1bb0   : > { %2499 = vmatpush.msrb.mxu0 %v7435_v61 }
0x1bb1   : > { %v2243_v53 = vmul.f32 %v2241_v57, %v7291_v28 }
0x1bb2   : > { %2500 = vmatpush.msrb.mxu0 %v7440_v12 }
0x1bb3   : > { %v7747_v17 = vadd.f32 %v2243_v53, %v7645_v34 }
0x1bb4   : > { %2501 = vmatpush.msrb.mxu0 %v7444_v48 }
0x1bb5   : > { %2265 = vmatmul.f32.gmra.mxu0 %v7747_v17 }
0x1bb6   : > { %2502 = vmatpush.msrb.mxu0 %v7447_v52 }
0x1bb8   : > { %2503 = vmatpush.msrb.mxu0 %v7450_v40 }
0x1bba   : > { %2504 = vmatpush.msrb.mxu0 %v7475_v6 }
0x1bbc   : > { %2505 = vmatpush.msrb.mxu0 %v7478_v42 }
0x1bbe   : > { %2506 = vmatpush.msrb.mxu0 %v7481_v14 }
0x1bc0   : > { %2507 = vmatpush.msrb.mxu0 %v7484_v27 }
0x1bc2   : > { %2508 = vmatpush.msrb.mxu0 %v7487_v18 }
0x1bc4   : > { %2509 = vmatpush.msrb.mxu0 %v7490_v21 }
0x1bc6   : > { %2510 = vmatpush.msrb.mxu0 %v7493_v23 }
0x1bc8   : > { %2511 = vmatpush.msrb.mxu0 %v7496_v24 }
0x1bca   : > { %2512 = vmatpush.msrb.mxu0 %v7523_v62 }
0x1bcc   : > { %2513 = vmatpush.msrb.mxu0 %v7526_v9 }
0x1c2a   : > { %v2263_v39 = vpop.f32.mrf.mxu0 }
0x1c2b   : > { %v2264_v34 = vadd.f32 %v7585_v44, %v2263_v39 }
0x1c2d   : > { %5217 = vtanh.f32 %v2264_v34 }
0x1c32   : > { %v2266_v45 = vpop.f32.mrf.mxu0 }
0x1c33   : > { %v7764_v47 = vpop.eup %5217  ;;  %v2267_v50 = vadd.f32 %v7585_v44, %v2266_v45 }
0x1c34   : > { %v2271_v54 = vmul.f32 %v7764_v47, %v7130_v49 }
0x1c35   : > { %5219 = vtanh.f32 %v2267_v50 }
0x1c36   : > { %v2273_v41 = vadd.f32 %v2271_v54, %v7739_v19 }
0x1c38   : > { %2291 = vmatmul.f32.vlgmr.msrb.gmra.mxu1 %v2273_v41 }
0x1c39   : > { %2527 = vmatpush.msrb.mxu1 %v7430_v33 }
0x1c3b   : > { %v7771_v25 = vpop.eup %5219  ;;  %2528 = vmatpush.msrb.mxu1 %v7435_v61 }
0x1c3c   : > { %v2272_v26 = vmul.f32 %v7771_v25, %v7130_v49 }
0x1c3d   : > { %2529 = vmatpush.msrb.mxu1 %v7440_v12 }
0x1c3e   : > { %v2274_v55 = vadd.f32 %v2272_v26, %v7747_v17 }
0x1c3f   : > { %2530 = vmatpush.msrb.mxu1 %v7444_v48 }
0x1c40   : > { %2294 = vmatmul.f32.gmra.mxu1 %v2274_v55 }
0x1c41   : > { %2531 = vmatpush.msrb.mxu1 %v7447_v52 }
0x1c43   : > { %2532 = vmatpush.msrb.mxu1 %v7450_v40 }
0x1c45   : > { %2533 = vmatpush.msrb.mxu1 %v7475_v6 }
0x1c47   : > { %2534 = vmatpush.msrb.mxu1 %v7478_v42 }
0x1c49   : > { %2535 = vmatpush.msrb.mxu1 %v7481_v14 }
0x1c4b   : > { %2536 = vmatpush.msrb.mxu1 %v7484_v27 }
0x1c4d   : > { %2537 = vmatpush.msrb.mxu1 %v7487_v18 }
0x1c4f   : > { %2538 = vmatpush.msrb.mxu1 %v7490_v21 }
0x1c51   : > { %2539 = vmatpush.msrb.mxu1 %v7493_v23 }
0x1c53   : > { %2540 = vmatpush.msrb.mxu1 %v7496_v24 }
0x1c55   : > { %2541 = vmatpush.msrb.mxu1 %v7523_v62 }
0x1c57   : > { %2542 = vmatpush.msrb.mxu1 %v7526_v9 }
0x1cb5   : > { %v2292_v29 = vpop.f32.mrf.mxu1 }
0x1cb6   : > { %v2293_v13 = vadd.f32 %v7585_v44, %v2292_v29 }
0x1cb8   : > { %5221 = vtanh.f32 %v2293_v13 }
0x1cbd   : > { %v2295_v58 = vpop.f32.mrf.mxu1 }
0x1cbe   : > { %v5222_v43 = vpop.eup %5221  ;;  %v2296_v56 = vadd.f32 %v7585_v44, %v2295_v58 }
0x1cbf   : > { %v2300_v30 = vmul.f32 %v5222_v43, %v7130_v49  ;;  %v2358_v1 = vmul.f32 2.0, %v5222_v43 }
0x1cc0   : > { %5223 = vtanh.f32 %v2296_v56 }
0x1cc1   : > { %v2302_v31 = vadd.f32 %v2300_v30, %v7739_v19  ;;  %v2360_v3 = vadd.f32 %v7764_v47, %v2358_v1 }
0x1cc3   : > { %2320 = vmatmul.f32.vlgmr.msrb.gmra.mxu2 %v2302_v31 }
0x1cc4   : > { %2556 = vmatpush.msrb.mxu2 %v7430_v33 }
0x1cc6   : > { %v5224_v46 = vpop.eup %5223  ;;  %2557 = vmatpush.msrb.mxu2 %v7435_v61 }
0x1cc7   : > { %v2301_v15 = vmul.f32 %v5224_v46, %v7130_v49  ;;  %v2359_v2 = vmul.f32 2.0, %v5224_v46 }
0x1cc8   : > { %2558 = vmatpush.msrb.mxu2 %v7440_v12 }
0x1cc9   : > { %v2303_v20 = vadd.f32 %v2301_v15, %v7747_v17  ;;  %v2361_v16 = vadd.f32 %v7771_v25, %v2359_v2  ;;  %v7887_v2 = vld [vmem:[#allocation3 + $0x160] sm:$0xff] }
0x1cca   : > { %2559 = vmatpush.msrb.mxu2 %v7444_v48 }
0x1ccb   : > { %2323 = vmatmul.f32.gmra.mxu2 %v2303_v20 }
0x1ccc   : > { %2560 = vmatpush.msrb.mxu2 %v7447_v52 }
0x1cce   : > { %2561 = vmatpush.msrb.mxu2 %v7450_v40 }
0x1cd0   : > { %2562 = vmatpush.msrb.mxu2 %v7475_v6 }
0x1cd2   : > { %2563 = vmatpush.msrb.mxu2 %v7478_v42 }
0x1cd4   : > { %2564 = vmatpush.msrb.mxu2 %v7481_v14 }
0x1cd6   : > { %2565 = vmatpush.msrb.mxu2 %v7484_v27 }
0x1cd8   : > { %2566 = vmatpush.msrb.mxu2 %v7487_v18 }
0x1cda   : > { %2567 = vmatpush.msrb.mxu2 %v7490_v21 }
0x1cdc   : > { %2568 = vmatpush.msrb.mxu2 %v7493_v23 }
0x1cde   : > { %2569 = vmatpush.msrb.mxu2 %v7496_v24 }
0x1ce0   : > { %2570 = vmatpush.msrb.mxu2 %v7523_v62 }
0x1ce2   : > { %2571 = vmatpush.msrb.mxu2 %v7526_v9 }
0x1d46   : > { %v2321_v35 = vpop.f32.mrf.mxu2 }
0x1d47   : > { %v2322_v22 = vadd.f32 %v7585_v44, %v2321_v35 }
0x1d49   : > { %5225 = vtanh.f32 %v2322_v22 }
0x1d4e   : > { %v2324_v7 = vpop.f32.mrf.mxu2 }
0x1d4f   : > { %v5226_v59 = vpop.eup %5225  ;;  %v2325_v60 = vadd.f32 %v7585_v44, %v2324_v7 }
0x1d50   : > { %v2329_v5 = vmul.f32 %v5226_v59, %v7242_v0  ;;  %v2362_v8 = vmul.f32 2.0, %v5226_v59 }
0x1d51   : > { %5227 = vtanh.f32 %v2325_v60 }
0x1d52   : > { %v2331_v32 = vadd.f32 %v2329_v5, %v7739_v19  ;;  %v2364_v63 = vadd.f32 %v2362_v8, %v2360_v3  ;;  %v7871_v8 = vld [vmem:[#allocation3 + $0x178] sm:$0xff] }
0x1d54   : > { %2349 = vmatmul.f32.vlgmr.msrb.gmra.mxu3 %v2331_v32  ;;  %v7875_v32 = vld [vmem:[#allocation3 + $0x170] sm:$0xff] }
0x1d55   : > { %2585 = vmatpush.msrb.mxu3 %v7430_v33 }
0x1d57   : > { %v5228_v11 = vpop.eup %5227  ;;  %2586 = vmatpush.msrb.mxu3 %v7435_v61 }
0x1d58   : > { %v2363_v36 = vmul.f32 2.0, %v5228_v11  ;;  %v2330_v37 = vmul.f32 %v5228_v11, %v7242_v0  ;;  %v7893_v11 = vld [vmem:[#allocation3 + $0x158] sm:$0xff] }
0x1d59   : > { %2587 = vmatpush.msrb.mxu3 %v7440_v12 }
0x1d5a   : > { %v2332_v4 = vadd.f32 %v2330_v37, %v7747_v17  ;;  %v2365_v10 = vadd.f32 %v2363_v36, %v2361_v16  ;;  %v7899_v16 = vld [vmem:[#allocation3 + $0x150] sm:$0xff]  ;;  %v7905_v36 = vld [vmem:[#allocation3 + $0x148] sm:$0xff]  ;;  %v7911_v37 = vld [vmem:[#allocation3 + $0x140] sm:$0xff] }
0x1d5b   : > { %2588 = vmatpush.msrb.mxu3 %v7444_v48 }
0x1d5c   : > { %2352 = vmatmul.f32.gmra.mxu3 %v2332_v4  ;;  %v7917_v4 = vld [vmem:[#allocation3 + $0x138] sm:$0xff] }
0x1d5d   : > { %2589 = vmatpush.msrb.mxu3 %v7447_v52 }
0x1d5f   : > { %2590 = vmatpush.msrb.mxu3 %v7450_v40 }
0x1d61   : > { %2591 = vmatpush.msrb.mxu3 %v7475_v6 }
0x1d63   : > { %2592 = vmatpush.msrb.mxu3 %v7478_v42 }
0x1d65   : > { %2593 = vmatpush.msrb.mxu3 %v7481_v14 }
0x1d67   : > { %2594 = vmatpush.msrb.mxu3 %v7484_v27 }
0x1d69   : > { %2595 = vmatpush.msrb.mxu3 %v7487_v18 }
0x1d6b   : > { %2596 = vmatpush.msrb.mxu3 %v7490_v21 }
0x1d6d   : > { %2597 = vmatpush.msrb.mxu3 %v7493_v23 }
0x1d6f   : > { %2598 = vmatpush.msrb.mxu3 %v7496_v24 }
0x1d71   : > { %2599 = vmatpush.msrb.mxu3 %v7523_v62 }
0x1d73   : > { %2600 = vmatpush.msrb.mxu3 %v7526_v9 }
0x1dd7   : > { %v2350_v33 = vpop.f32.mrf.mxu3 }
0x1dd8   : > { %v2351_v61 = vadd.f32 %v7585_v44, %v2350_v33  ;;  %v7928_v33 = vld [vmem:[#allocation3 + $0x128] sm:$0xff] }
0x1dda   : > { %5229 = vtanh.f32 %v2351_v61  ;;  %v7931_v61 = vld [vmem:[#allocation3 + $0x120] sm:$0xff] }
0x1ddf   : > { %v2353_v12 = vpop.f32.mrf.mxu3 }
0x1de0   : > { %v5230_v48 = vpop.eup %5229  ;;  %v2354_v52 = vadd.f32 %v7585_v44, %v2353_v12  ;;  %v7940_v12 = vld [vmem:[#allocation3 + $0x118] sm:$0xff] }
0x1de1   : > { %v2366_v40 = vadd.f32 %v5230_v48, %v2364_v63  ;;  %v7881_v63 = vld [vmem:[#allocation3 + $0x168] sm:$0xff]  ;;  %v7943_v48 = vld [vmem:[#allocation3 + $0x110] sm:$0xff] }
0x1de2   : > { %5231 = vtanh.f32 %v2354_v52  ;;  %v7949_v52 = vld [vmem:[#allocation3 + $0x108] sm:$0xff] }
0x1de3   : > { %v2368_v6 = vmul.f32 %v2366_v40, %v7291_v28  ;;  %v7955_v40 = vld [vmem:[#allocation3 + $0x100] sm:$0xff] }
0x1de5   : > { %v7841_v42 = vadd.f32 %v2368_v6, %v7739_v19 }
0x1de7   : > { %2388 = vmatmul.f32.vlgmr.msra.gmra.mxu0 %v7841_v42 }
0x1de8   : > { %v5232_v14 = vpop.eup %5231  ;;  %2659 = vmatpush.msra.mxu0 %v7871_v8 }
0x1de9   : > { %v2367_v27 = vadd.f32 %v5232_v14, %v2365_v10  ;;  %v7923_v10 = vld [vmem:[#allocation3 + $0x130] sm:$0xff] }
0x1dea   : > { %2660 = vmatpush.msra.mxu0 %v7875_v32 }
0x1deb   : > { %v2369_v18 = vmul.f32 %v2367_v27, %v7291_v28 }
0x1dec   : > { %2661 = vmatpush.msra.mxu0 %v7881_v63 }
0x1ded   : > { %v7846_v21 = vadd.f32 %v2369_v18, %v7747_v17 }
0x1dee   : > { %2662 = vmatpush.msra.mxu0 %v7887_v2 }
0x1def   : > { %2391 = vmatmul.f32.gmra.mxu0 %v7846_v21 }
0x1df0   : > { %2663 = vmatpush.msra.mxu0 %v7893_v11 }
0x1df2   : > { %2664 = vmatpush.msra.mxu0 %v7899_v16 }
0x1df4   : > { %2665 = vmatpush.msra.mxu0 %v7905_v36 }
0x1df6   : > { %2666 = vmatpush.msra.mxu0 %v7911_v37 }
0x1df8   : > { %2667 = vmatpush.msra.mxu0 %v7917_v4 }
0x1dfa   : > { %2668 = vmatpush.msra.mxu0 %v7923_v10 }
0x1dfc   : > { %2669 = vmatpush.msra.mxu0 %v7928_v33 }
0x1dfe   : > { %2670 = vmatpush.msra.mxu0 %v7931_v61 }
0x1e00   : > { %2671 = vmatpush.msra.mxu0 %v7940_v12 }
0x1e02   : > { %2672 = vmatpush.msra.mxu0 %v7943_v48 }
0x1e04   : > { %2673 = vmatpush.msra.mxu0 %v7949_v52 }
0x1e06   : > { %2674 = vmatpush.msra.mxu0 %v7955_v40 }
0x1e64   : > { %v2389_v23 = vpop.f32.mrf.mxu0 }
0x1e65   : > { %v2390_v24 = vadd.f32 %v7585_v44, %v2389_v23 }
0x1e67   : > { %5233 = vtanh.f32 %v2390_v24 }
0x1e6c   : > { %v2392_v62 = vpop.f32.mrf.mxu0 }
0x1e6d   : > { %v5234_v9 = vpop.eup %5233  ;;  %v2393_v38 = vadd.f32 %v7585_v44, %v2392_v62 }
0x1e6e   : > { %v2397_v19 = vmul.f32 %v5234_v9, %v7130_v49 }
0x1e6f   : > { %5235 = vtanh.f32 %v2393_v38 }
0x1e70   : > { %v2399_v51 = vadd.f32 %v2397_v19, %v7841_v42 }
0x1e72   : > { %2417 = vmatmul.f32.vlgmr.msra.gmra.mxu1 %v2399_v51 }
0x1e73   : > { %2691 = vmatpush.msra.mxu1 %v7871_v8 }
0x1e75   : > { %v5236_v57 = vpop.eup %5235  ;;  %2692 = vmatpush.msra.mxu1 %v7875_v32 }
0x1e76   : > { %v2398_v53 = vmul.f32 %v5236_v57, %v7130_v49 }
0x1e77   : > { %2693 = vmatpush.msra.mxu1 %v7881_v63 }
0x1e78   : > { %v2400_v17 = vadd.f32 %v2398_v53, %v7846_v21  ;;  %v8019_v53 = vld [vmem:[#allocation9 + $0x1] ss:$0 sm:$0xff] }
0x1e79   : > { %2694 = vmatpush.msra.mxu1 %v7887_v2 }
0x1e7a   : > { %2420 = vmatmul.f32.gmra.mxu1 %v2400_v17 }
0x1e7b   : > { %2695 = vmatpush.msra.mxu1 %v7893_v11 }
0x1e7d   : > { %2696 = vmatpush.msra.mxu1 %v7899_v16 }
0x1e7f   : > { %2697 = vmatpush.msra.mxu1 %v7905_v36 }
0x1e81   : > { %2698 = vmatpush.msra.mxu1 %v7911_v37 }
0x1e83   : > { %2699 = vmatpush.msra.mxu1 %v7917_v4 }
0x1e85   : > { %2700 = vmatpush.msra.mxu1 %v7923_v10 }
0x1e87   : > { %2701 = vmatpush.msra.mxu1 %v7928_v33 }
0x1e89   : > { %2702 = vmatpush.msra.mxu1 %v7931_v61 }
0x1e8b   : > { %2703 = vmatpush.msra.mxu1 %v7940_v12 }
0x1e8d   : > { %2704 = vmatpush.msra.mxu1 %v7943_v48 }
0x1e8f   : > { %2705 = vmatpush.msra.mxu1 %v7949_v52 }
0x1e91   : > { %2706 = vmatpush.msra.mxu1 %v7955_v40 }
0x1eef   : > { %v2418_v39 = vpop.f32.mrf.mxu1 }
0x1ef0   : > { %v2419_v34 = vadd.f32 %v7585_v44, %v2418_v39 }
0x1ef2   : > { %5237 = vtanh.f32 %v2419_v34 }
0x1ef7   : > { %v2421_v45 = vpop.f32.mrf.mxu1 }
0x1ef8   : > { %v5238_v47 = vpop.eup %5237  ;;  %v2422_v50 = vadd.f32 %v7585_v44, %v2421_v45 }
0x1ef9   : > { %v2426_v54 = vmul.f32 %v5238_v47, %v7130_v49  ;;  %v2484_v58 = vmul.f32 2.0, %v5238_v47 }
0x1efa   : > { %5239 = vtanh.f32 %v2422_v50 }
0x1efb   : > { %v2428_v41 = vadd.f32 %v2426_v54, %v7841_v42  ;;  %v2486_v31 = vadd.f32 %v5234_v9, %v2484_v58  ;;  %v8028_v54 = vld [vmem:[#allocation9 + $0x2] ss:$0 sm:$0xff] }
0x1efd   : > { %2446 = vmatmul.f32.vlgmr.msra.gmra.mxu2 %v2428_v41  ;;  %v8031_v41 = vld [vmem:[%s5973_s27 + $0x2] sm:$0x1] }
0x1efe   : > { %2720 = vmatpush.msra.mxu2 %v7871_v8 }
0x1f00   : > { %v5240_v25 = vpop.eup %5239  ;;  %2721 = vmatpush.msra.mxu2 %v7875_v32 }
0x1f01   : > { %v2427_v26 = vmul.f32 %v5240_v25, %v7130_v49  ;;  %v2485_v22 = vmul.f32 2.0, %v5240_v25 }
0x1f02   : > { %2722 = vmatpush.msra.mxu2 %v7881_v63 }
0x1f03   : > { %v2429_v55 = vadd.f32 %v2427_v26, %v7846_v21  ;;  %v2487_v7 = vadd.f32 %v5236_v57, %v2485_v22 }
0x1f04   : > { %2723 = vmatpush.msra.mxu2 %v7887_v2 }
0x1f05   : > { %2449 = vmatmul.f32.gmra.mxu2 %v2429_v55 }
0x1f06   : > { %2724 = vmatpush.msra.mxu2 %v7893_v11 }
0x1f08   : > { %2725 = vmatpush.msra.mxu2 %v7899_v16 }
0x1f0a   : > { %2726 = vmatpush.msra.mxu2 %v7905_v36 }
0x1f0c   : > { %2727 = vmatpush.msra.mxu2 %v7911_v37 }
0x1f0e   : > { %2728 = vmatpush.msra.mxu2 %v7917_v4 }
0x1f10   : > { %2729 = vmatpush.msra.mxu2 %v7923_v10 }
0x1f12   : > { %2730 = vmatpush.msra.mxu2 %v7928_v33 }
0x1f14   : > { %2731 = vmatpush.msra.mxu2 %v7931_v61 }
0x1f16   : > { %2732 = vmatpush.msra.mxu2 %v7940_v12 }
0x1f18   : > { %2733 = vmatpush.msra.mxu2 %v7943_v48 }
0x1f1a   : > { %2734 = vmatpush.msra.mxu2 %v7949_v52 }
0x1f1c   : > { %2735 = vmatpush.msra.mxu2 %v7955_v40 }
0x1f80   : > { %v2447_v29 = vpop.f32.mrf.mxu2 }
0x1f81   : > { %v2448_v13 = vadd.f32 %v7585_v44, %v2447_v29  ;;  %v2650_v29 = vmul.f32 0.0625, %v8031_v41 }
0x1f83   : > { %5241 = vtanh.f32 %v2448_v13 }
0x1f88   : > { %v2450_v43 = vpop.f32.mrf.mxu2 }
0x1f89   : > { %v5242_v56 = vpop.eup %5241  ;;  %v2451_v30 = vadd.f32 %v7585_v44, %v2450_v43  ;;  %v8044_v43 = vperm.slane %v2650_v29, 0 }
0x1f8a   : > { %v2455_v46 = vmul.f32 %v5242_v56, %v7242_v0  ;;  %v2488_v15 = vmul.f32 2.0, %v5242_v56 }
0x1f8b   : > { %5243 = vtanh.f32 %v2451_v30 }
0x1f8c   : > { %v2457_v20 = vadd.f32 %v2455_v46, %v7841_v42  ;;  %v7865_v35 = vadd.f32 %v2488_v15, %v2486_v31 }
0x1f8e   : > { %2475 = vmatmul.f32.vlgmr.msra.gmra.mxu3 %v2457_v20 }
0x1f8f   : > { %2752 = vmatpush.msra.mxu3 %v7871_v8 }
0x1f91   : > { %v5244_v1 = vpop.eup %5243  ;;  %2753 = vmatpush.msra.mxu3 %v7875_v32 }
0x1f92   : > { %v2489_v59 = vmul.f32 2.0, %v5244_v1  ;;  %v2456_v60 = vmul.f32 %v5244_v1, %v7242_v0 }
0x1f93   : > { %2754 = vmatpush.msra.mxu3 %v7881_v63 }
0x1f94   : > { %v2458_v3 = vadd.f32 %v2456_v60, %v7846_v21  ;;  %v7869_v5 = vadd.f32 %v2489_v59, %v2487_v7 }
0x1f95   : > { %2755 = vmatpush.msra.mxu3 %v7887_v2 }
0x1f96   : > { %2478 = vmatmul.f32.gmra.mxu3 %v2458_v3 }
0x1f97   : > { %2756 = vmatpush.msra.mxu3 %v7893_v11 }
0x1f99   : > { %2757 = vmatpush.msra.mxu3 %v7899_v16 }
0x1f9b   : > { %2758 = vmatpush.msra.mxu3 %v7905_v36 }
0x1f9d   : > { %2759 = vmatpush.msra.mxu3 %v7911_v37 }
0x1f9f   : > { %2760 = vmatpush.msra.mxu3 %v7917_v4 }
0x1fa1   : > { %2761 = vmatpush.msra.mxu3 %v7923_v10 }
0x1fa3   : > { %2762 = vmatpush.msra.mxu3 %v7928_v33 }
0x1fa5   : > { %2763 = vmatpush.msra.mxu3 %v7931_v61 }
0x1fa7   : > { %2764 = vmatpush.msra.mxu3 %v7940_v12 }
0x1fa9   : > { %2765 = vmatpush.msra.mxu3 %v7943_v48 }
0x1fab   : > { %2766 = vmatpush.msra.mxu3 %v7949_v52 }
0x1fad   : > { %2767 = vmatpush.msra.mxu3 %v7955_v40 }
0x2011   : > { %v2476_v6 = vpop.f32.mrf.mxu3 }
0x2012   : > { %v2477_v14 = vadd.f32 %v7585_v44, %v2476_v6 }
0x2014   : > { %5245 = vtanh.f32 %v2477_v14 }
0x2019   : > { %v2479_v27 = vpop.f32.mrf.mxu3 }
0x201a   : > { %v5246_v18 = vpop.eup %5245  ;;  %v2480_v23 = vadd.f32 %v7585_v44, %v2479_v27 }
0x201b   : > { %v2492_v24 = vadd.f32 %v5246_v18, %v7865_v35 }
0x201c   : > { %5247 = vtanh.f32 %v2480_v23 }
0x201d   : > { %v2494_v62 = vmul.f32 %v2492_v24, %v7291_v28 }
0x201f   : > { %v7972_v9 = vadd.f32 %v2494_v62, %v7841_v42  ;;  %v7987_v42 = vld [vmem:[#allocation2 + $0x8] sm:$0xff] }
0x2021   : > { %2514 = vmatmul.f32.vlgmr.msrb.gmra.mxu0 %v7972_v9 }
0x2022   : > { %v5248_v38 = vpop.eup %5247  ;;  %2794 = vmatpush.msrb.mxu0 %v7871_v8 }
0x2023   : > { %v2493_v19 = vadd.f32 %v5248_v38, %v7869_v5 }
0x2024   : > { %2795 = vmatpush.msrb.mxu0 %v7875_v32 }
0x2025   : > { %v2495_v51 = vmul.f32 %v2493_v19, %v7291_v28 }
0x2026   : > { %2796 = vmatpush.msrb.mxu0 %v7881_v63 }
0x2027   : > { %v7981_v44 = vadd.f32 %v2495_v51, %v7846_v21  ;;  %v7994_v21 = vld [vmem:[#allocation2 + $0x20] sm:$0xff] }
0x2028   : > { %2797 = vmatpush.msrb.mxu0 %v7887_v2 }
0x2029   : > { %2517 = vmatmul.f32.gmra.mxu0 %v7981_v44 }
0x202a   : > { %2798 = vmatpush.msrb.mxu0 %v7893_v11 }
0x202c   : > { %2799 = vmatpush.msrb.mxu0 %v7899_v16 }
0x202e   : > { %2800 = vmatpush.msrb.mxu0 %v7905_v36 }
0x2030   : > { %2801 = vmatpush.msrb.mxu0 %v7911_v37 }
0x2031   : > { %2675 = vmatmul.f32.vlgmr.msra.gmra.mxu0 %v7987_v42 }
0x2032   : > { %2802 = vmatpush.msrb.mxu0 %v7917_v4 }
0x2034   : > { %2803 = vmatpush.msrb.mxu0 %v7923_v10 }
0x2036   : > { %2804 = vmatpush.msrb.mxu0 %v7928_v33 }
0x2038   : > { %2805 = vmatpush.msrb.mxu0 %v7931_v61 }
0x2039   : > { %2678 = vmatmul.f32.gmra.mxu0 %v7994_v21 }
0x203a   : > { %2806 = vmatpush.msrb.mxu0 %v7940_v12 }
0x203c   : > { %2807 = vmatpush.msrb.mxu0 %v7943_v48 }
0x203e   : > { %2808 = vmatpush.msrb.mxu0 %v7949_v52 }
0x2040   : > { %2809 = vmatpush.msrb.mxu0 %v7955_v40 }
0x2042   : > { %2920 = vmatpush.msra.mxu0 %v7871_v8 }
0x2044   : > { %2921 = vmatpush.msra.mxu0 %v7875_v32 }
0x2046   : > { %2922 = vmatpush.msra.mxu0 %v7881_v63 }
0x2048   : > { %2923 = vmatpush.msra.mxu0 %v7887_v2 }
0x204a   : > { %2924 = vmatpush.msra.mxu0 %v7893_v11 }
0x204c   : > { %2925 = vmatpush.msra.mxu0 %v7899_v16 }
0x204e   : > { %2926 = vmatpush.msra.mxu0 %v7905_v36 }
0x2050   : > { %2927 = vmatpush.msra.mxu0 %v7911_v37 }
0x2052   : > { %2928 = vmatpush.msra.mxu0 %v7917_v4 }
0x2054   : > { %2929 = vmatpush.msra.mxu0 %v7923_v10 }
0x2056   : > { %2930 = vmatpush.msra.mxu0 %v7928_v33 }
0x2058   : > { %2931 = vmatpush.msra.mxu0 %v7931_v61 }
0x205a   : > { %2932 = vmatpush.msra.mxu0 %v7940_v12 }
0x205c   : > { %2933 = vmatpush.msra.mxu0 %v7943_v48 }
0x205e   : > { %2934 = vmatpush.msra.mxu0 %v7949_v52 }
0x2060   : > { %2935 = vmatpush.msra.mxu0 %v7955_v40 }
0x209e   : > { %v2515_v57 = vpop.f32.mrf.mxu0 }
0x209f   : > { %v2516_v17 = vadd.f32 %v8019_v53, %v2515_v57 }
0x20a1   : > { %5249 = vtanh.f32 %v2516_v17 }
0x20a6   : > { %v2518_v39 = vpop.f32.mrf.mxu0 }
0x20a7   : > { %v8022_v34 = vpop.eup %5249  ;;  %v2519_v45 = vadd.f32 %v8019_v53, %v2518_v39 }
0x20a8   : > { %v2523_v47 = vmul.f32 %v8022_v34, %v7130_v49 }
0x20a9   : > { %5251 = vtanh.f32 %v2519_v45 }
0x20aa   : > { %v2525_v50 = vadd.f32 %v2523_v47, %v7972_v9 }
0x20ac   : > { %2543 = vmatmul.f32.vlgmr.msrb.gmra.mxu1 %v2525_v50 }
0x20ad   : > { %2823 = vmatpush.msrb.mxu1 %v7871_v8 }
0x20ae   : > { %v2676_v25 = vpop.f32.mrf.mxu0 }
0x20af   : > { %v8034_v26 = vpop.eup %5251  ;;  %v2677_v55 = vadd.f32 %v8028_v54, %v2676_v25  ;;  %2824 = vmatpush.msrb.mxu1 %v7875_v32 }
0x20b0   : > { %v2524_v13 = vmul.f32 %v8034_v26, %v7130_v49 }
0x20b1   : > { %5253 = vtanh.f32 %v2677_v55  ;;  %2825 = vmatpush.msrb.mxu1 %v7881_v63 }
0x20b2   : > { %v2526_v58 = vadd.f32 %v2524_v13, %v7981_v44 }
0x20b3   : > { %2826 = vmatpush.msrb.mxu1 %v7887_v2 }
0x20b4   : > { %2546 = vmatmul.f32.gmra.mxu1 %v2526_v58 }
0x20b5   : > { %2827 = vmatpush.msrb.mxu1 %v7893_v11 }
0x20b6   : > { %v2679_v56 = vpop.f32.mrf.mxu0 }
0x20b7   : > { %v8047_v30 = vpop.eup %5253  ;;  %v2680_v31 = vadd.f32 %v8028_v54, %v2679_v56  ;;  %2828 = vmatpush.msrb.mxu1 %v7899_v16 }
0x20b8   : > { %v2687_v46 = vmul.f32 %v8047_v30, %v8044_v43 }
0x20b9   : > { %5255 = vtanh.f32 %v2680_v31  ;;  %2829 = vmatpush.msrb.mxu1 %v7905_v36 }
0x20ba   : > { %v2689_v15 = vadd.f32 %v2687_v46, %v7987_v42 }
0x20bb   : > { %2830 = vmatpush.msrb.mxu1 %v7911_v37 }
0x20bc   : > { %2707 = vmatmul.f32.vlgmr.msra.gmra.mxu1 %v2689_v15 }
0x20bd   : > { %2831 = vmatpush.msrb.mxu1 %v7917_v4 }
0x20bf   : > { %v8057_v20 = vpop.eup %5255  ;;  %2832 = vmatpush.msrb.mxu1 %v7923_v10 }
0x20c0   : > { %v2688_v35 = vmul.f32 %v8057_v20, %v8044_v43 }
0x20c1   : > { %2833 = vmatpush.msrb.mxu1 %v7928_v33 }
0x20c2   : > { %v2690_v22 = vadd.f32 %v2688_v35, %v7994_v21 }
0x20c3   : > { %2834 = vmatpush.msrb.mxu1 %v7931_v61 }
0x20c4   : > { %2710 = vmatmul.f32.gmra.mxu1 %v2690_v22 }
0x20c5   : > { %2835 = vmatpush.msrb.mxu1 %v7940_v12 }
0x20c7   : > { %2836 = vmatpush.msrb.mxu1 %v7943_v48 }
0x20c9   : > { %2837 = vmatpush.msrb.mxu1 %v7949_v52 }
0x20cb   : > { %2838 = vmatpush.msrb.mxu1 %v7955_v40 }
0x20cd   : > { %2949 = vmatpush.msra.mxu1 %v7871_v8 }
0x20cf   : > { %2950 = vmatpush.msra.mxu1 %v7875_v32 }
0x20d1   : > { %2951 = vmatpush.msra.mxu1 %v7881_v63 }
0x20d3   : > { %2952 = vmatpush.msra.mxu1 %v7887_v2 }
0x20d5   : > { %2953 = vmatpush.msra.mxu1 %v7893_v11 }
0x20d7   : > { %2954 = vmatpush.msra.mxu1 %v7899_v16 }
0x20d9   : > { %2955 = vmatpush.msra.mxu1 %v7905_v36 }
0x20db   : > { %2956 = vmatpush.msra.mxu1 %v7911_v37 }
0x20dd   : > { %2957 = vmatpush.msra.mxu1 %v7917_v4 }
0x20df   : > { %2958 = vmatpush.msra.mxu1 %v7923_v10 }
0x20e1   : > { %2959 = vmatpush.msra.mxu1 %v7928_v33 }
0x20e3   : > { %2960 = vmatpush.msra.mxu1 %v7931_v61 }
0x20e5   : > { %2961 = vmatpush.msra.mxu1 %v7940_v12 }
0x20e7   : > { %2962 = vmatpush.msra.mxu1 %v7943_v48 }
0x20e9   : > { %2963 = vmatpush.msra.mxu1 %v7949_v52 }
0x20eb   : > { %2964 = vmatpush.msra.mxu1 %v7955_v40 }
0x2129   : > { %v2544_v1 = vpop.f32.mrf.mxu1 }
0x212a   : > { %v2545_v7 = vadd.f32 %v8019_v53, %v2544_v1 }
0x212c   : > { %5257 = vtanh.f32 %v2545_v7 }
0x2131   : > { %v2547_v59 = vpop.f32.mrf.mxu1 }
0x2132   : > { %v5258_v60 = vpop.eup %5257  ;;  %v2548_v3 = vadd.f32 %v8019_v53, %v2547_v59  ;;  %v2651_v59 = vmul.f32 0.125, %v8031_v41 }
0x2133   : > { %v2552_v5 = vmul.f32 %v5258_v60, %v7130_v49  ;;  %v2610_v50 = vmul.f32 2.0, %v5258_v60 }
0x2134   : > { %5259 = vtanh.f32 %v2548_v3 }
0x2135   : > { %v2554_v6 = vadd.f32 %v2552_v5, %v7972_v9  ;;  %v2612_v13 = vadd.f32 %v8022_v34, %v2610_v50 }
0x2137   : > { %2572 = vmatmul.f32.vlgmr.msrb.gmra.mxu2 %v2554_v6 }
0x2138   : > { %2852 = vmatpush.msrb.mxu2 %v7871_v8 }
0x2139   : > { %v2708_v14 = vpop.f32.mrf.mxu1 }
0x213a   : > { %v5260_v27 = vpop.eup %5259  ;;  %v2709_v18 = vadd.f32 %v8028_v54, %v2708_v14  ;;  %2853 = vmatpush.msrb.mxu2 %v7875_v32  ;;  %v8154_v14 = vperm.slane %v2651_v59, 0 }
0x213b   : > { %v2553_v23 = vmul.f32 %v5260_v27, %v7130_v49  ;;  %v2611_v15 = vmul.f32 2.0, %v5260_v27 }
0x213c   : > { %5261 = vtanh.f32 %v2709_v18  ;;  %2854 = vmatpush.msrb.mxu2 %v7881_v63 }
0x213d   : > { %v2555_v24 = vadd.f32 %v2553_v23, %v7981_v44  ;;  %v2613_v34 = vadd.f32 %v8034_v26, %v2611_v15 }
0x213e   : > { %2855 = vmatpush.msrb.mxu2 %v7887_v2 }
0x213f   : > { %2575 = vmatmul.f32.gmra.mxu2 %v2555_v24 }
0x2140   : > { %2856 = vmatpush.msrb.mxu2 %v7893_v11 }
0x2141   : > { %v2711_v62 = vpop.f32.mrf.mxu1 }
0x2142   : > { %v8097_v38 = vpop.eup %5261  ;;  %v2712_v19 = vadd.f32 %v8028_v54, %v2711_v62  ;;  %2857 = vmatpush.msrb.mxu2 %v7899_v16 }
0x2143   : > { %v2716_v49 = vmul.f32 %v8097_v38, %v8044_v43  ;;  %v2777_v6 = vmul.f32 2.0, %v8097_v38 }
0x2144   : > { %5263 = vtanh.f32 %v2712_v19  ;;  %2858 = vmatpush.msrb.mxu2 %v7905_v36 }
0x2145   : > { %v2718_v51 = vadd.f32 %v2716_v49, %v7987_v42  ;;  %v2779_v18 = vadd.f32 %v8047_v30, %v2777_v6 }
0x2146   : > { %2859 = vmatpush.msrb.mxu2 %v7911_v37 }
0x2147   : > { %2736 = vmatmul.f32.vlgmr.msra.gmra.mxu2 %v2718_v51 }
0x2148   : > { %2860 = vmatpush.msrb.mxu2 %v7917_v4 }
0x214a   : > { %v8107_v57 = vpop.eup %5263  ;;  %2861 = vmatpush.msrb.mxu2 %v7923_v10 }
0x214b   : > { %v2717_v17 = vmul.f32 %v8107_v57, %v8044_v43  ;;  %v2778_v19 = vmul.f32 2.0, %v8107_v57 }
0x214c   : > { %2862 = vmatpush.msrb.mxu2 %v7928_v33 }
0x214d   : > { %v2719_v39 = vadd.f32 %v2717_v17, %v7994_v21  ;;  %v2780_v30 = vadd.f32 %v8057_v20, %v2778_v19 }
0x214e   : > { %2863 = vmatpush.msrb.mxu2 %v7931_v61 }
0x214f   : > { %2739 = vmatmul.f32.gmra.mxu2 %v2719_v39 }
0x2150   : > { %2864 = vmatpush.msrb.mxu2 %v7940_v12 }
0x2152   : > { %2865 = vmatpush.msrb.mxu2 %v7943_v48 }
0x2154   : > { %2866 = vmatpush.msrb.mxu2 %v7949_v52 }
0x2156   : > { %2867 = vmatpush.msrb.mxu2 %v7955_v40 }
0x2158   : > { %2978 = vmatpush.msra.mxu2 %v7871_v8 }
0x215a   : > { %2979 = vmatpush.msra.mxu2 %v7875_v32 }
0x215c   : > { %2980 = vmatpush.msra.mxu2 %v7881_v63 }
0x215e   : > { %2981 = vmatpush.msra.mxu2 %v7887_v2 }
0x2160   : > { %2982 = vmatpush.msra.mxu2 %v7893_v11 }
0x2162   : > { %2983 = vmatpush.msra.mxu2 %v7899_v16 }
0x2164   : > { %2984 = vmatpush.msra.mxu2 %v7905_v36 }
0x2166   : > { %2985 = vmatpush.msra.mxu2 %v7911_v37 }
0x2168   : > { %2986 = vmatpush.msra.mxu2 %v7917_v4 }
0x216a   : > { %2987 = vmatpush.msra.mxu2 %v7923_v10 }
0x216c   : > { %2988 = vmatpush.msra.mxu2 %v7928_v33 }
0x216e   : > { %2989 = vmatpush.msra.mxu2 %v7931_v61 }
0x2170   : > { %2990 = vmatpush.msra.mxu2 %v7940_v12 }
0x2172   : > { %2991 = vmatpush.msra.mxu2 %v7943_v48 }
0x2174   : > { %2992 = vmatpush.msra.mxu2 %v7949_v52 }
0x2176   : > { %2993 = vmatpush.msra.mxu2 %v7955_v40 }
0x21ba   : > { %v2573_v45 = vpop.f32.mrf.mxu2 }
0x21bb   : > { %v2574_v47 = vadd.f32 %v8019_v53, %v2573_v45 }
0x21bd   : > { %5265 = vtanh.f32 %v2574_v47 }
0x21c2   : > { %v2576_v25 = vpop.f32.mrf.mxu2 }
0x21c3   : > { %v5266_v55 = vpop.eup %5265  ;;  %v2577_v29 = vadd.f32 %v8019_v53, %v2576_v25 }
0x21c4   : > { %v2581_v58 = vmul.f32 %v5266_v55, %v7242_v0  ;;  %v2614_v56 = vmul.f32 2.0, %v5266_v55 }
0x21c5   : > { %5267 = vtanh.f32 %v2577_v29 }
0x21c6   : > { %v2583_v31 = vadd.f32 %v2581_v58, %v7972_v9  ;;  %v8140_v46 = vadd.f32 %v2614_v56, %v2612_v13 }
0x21c8   : > { %2601 = vmatmul.f32.vlgmr.msrb.gmra.mxu3 %v2583_v31 }
0x21c9   : > { %2881 = vmatpush.msrb.mxu3 %v7871_v8 }
0x21ca   : > { %v2737_v35 = vpop.f32.mrf.mxu2 }
0x21cb   : > { %v5268_v22 = vpop.eup %5267  ;;  %v2738_v1 = vadd.f32 %v8028_v54, %v2737_v35  ;;  %2882 = vmatpush.msrb.mxu3 %v7875_v32 }
0x21cc   : > { %v2615_v7 = vmul.f32 2.0, %v5268_v22  ;;  %v2582_v60 = vmul.f32 %v5268_v22, %v7242_v0 }
0x21cd   : > { %5269 = vtanh.f32 %v2738_v1  ;;  %2883 = vmatpush.msrb.mxu3 %v7881_v63 }
0x21ce   : > { %v2584_v3 = vadd.f32 %v2582_v60, %v7981_v44  ;;  %v8150_v5 = vadd.f32 %v2615_v7, %v2613_v34 }
0x21cf   : > { %2884 = vmatpush.msrb.mxu3 %v7887_v2 }
0x21d0   : > { %2604 = vmatmul.f32.gmra.mxu3 %v2584_v3 }
0x21d1   : > { %2885 = vmatpush.msrb.mxu3 %v7893_v11 }
0x21d2   : > { %v2740_v26 = vpop.f32.mrf.mxu2 }
0x21d3   : > { %v5270_v27 = vpop.eup %5269  ;;  %v2741_v0 = vadd.f32 %v8028_v54, %v2740_v26  ;;  %2886 = vmatpush.msrb.mxu3 %v7899_v16 }
0x21d4   : > { %v2748_v23 = vmul.f32 %v5270_v27, %v8154_v14  ;;  %v2781_v24 = vmul.f32 2.0, %v5270_v27 }
0x21d5   : > { %5271 = vtanh.f32 %v2741_v0  ;;  %2887 = vmatpush.msrb.mxu3 %v7905_v36 }
0x21d6   : > { %v2750_v62 = vadd.f32 %v2748_v23, %v7987_v42  ;;  %v2783_v38 = vadd.f32 %v2781_v24, %v2779_v18 }
0x21d7   : > { %2888 = vmatpush.msrb.mxu3 %v7911_v37 }
0x21d8   : > { %2768 = vmatmul.f32.vlgmr.msra.gmra.mxu3 %v2750_v62 }
0x21d9   : > { %2889 = vmatpush.msrb.mxu3 %v7917_v4 }
0x21db   : > { %v5272_v49 = vpop.eup %5271  ;;  %2890 = vmatpush.msrb.mxu3 %v7923_v10 }
0x21dc   : > { %v2782_v51 = vmul.f32 2.0, %v5272_v49  ;;  %v2749_v17 = vmul.f32 %v5272_v49, %v8154_v14 }
0x21dd   : > { %2891 = vmatpush.msrb.mxu3 %v7928_v33 }
0x21de   : > { %v2751_v39 = vadd.f32 %v2749_v17, %v7994_v21  ;;  %v2784_v45 = vadd.f32 %v2782_v51, %v2780_v30 }
0x21df   : > { %2892 = vmatpush.msrb.mxu3 %v7931_v61 }
0x21e0   : > { %2771 = vmatmul.f32.gmra.mxu3 %v2751_v39 }
0x21e1   : > { %2893 = vmatpush.msrb.mxu3 %v7940_v12 }
0x21e3   : > { %2894 = vmatpush.msrb.mxu3 %v7943_v48 }
0x21e5   : > { %2895 = vmatpush.msrb.mxu3 %v7949_v52 }
0x21e7   : > { %2896 = vmatpush.msrb.mxu3 %v7955_v40 }
0x21e9   : > { %3007 = vmatpush.msra.mxu3 %v7871_v8 }
0x21eb   : > { %3008 = vmatpush.msra.mxu3 %v7875_v32 }
0x21ed   : > { %3009 = vmatpush.msra.mxu3 %v7881_v63 }
0x21ef   : > { %3010 = vmatpush.msra.mxu3 %v7887_v2 }
0x21f1   : > { %3011 = vmatpush.msra.mxu3 %v7893_v11 }
0x21f3   : > { %3012 = vmatpush.msra.mxu3 %v7899_v16 }
0x21f5   : > { %3013 = vmatpush.msra.mxu3 %v7905_v36 }
0x21f7   : > { %3014 = vmatpush.msra.mxu3 %v7911_v37 }
0x21f9   : > { %3015 = vmatpush.msra.mxu3 %v7917_v4 }
0x21fb   : > { %3016 = vmatpush.msra.mxu3 %v7923_v10 }
0x21fd   : > { %3017 = vmatpush.msra.mxu3 %v7928_v33 }
0x21ff   : > { %3018 = vmatpush.msra.mxu3 %v7931_v61 }
0x2201   : > { %3019 = vmatpush.msra.mxu3 %v7940_v12 }
0x2203   : > { %3020 = vmatpush.msra.mxu3 %v7943_v48 }
0x2205   : > { %3021 = vmatpush.msra.mxu3 %v7949_v52 }
0x2207   : > { %3022 = vmatpush.msra.mxu3 %v7955_v40 }
0x224b   : > { %v2602_v20 = vpop.f32.mrf.mxu3 }
0x224c   : > { %v2603_v57 = vadd.f32 %v8019_v53, %v2602_v20 }
0x224e   : > { %5273 = vtanh.f32 %v2603_v57 }
0x2253   : > { %v2605_v47 = vpop.f32.mrf.mxu3 }
0x2254   : > { %v5274_v50 = vpop.eup %5273  ;;  %v2606_v25 = vadd.f32 %v8019_v53, %v2605_v47  ;;  %v2652_v53 = vmul.f32 0.020833334, %v8031_v41 }
0x2255   : > { %v2618_v55 = vadd.f32 %v5274_v50, %v8140_v46 }
0x2256   : > { %5275 = vtanh.f32 %v2606_v25  ;;  %v8203_v22 = vperm.slane %v2652_v53, 0 }
0x2257   : > { %v2620_v29 = vmul.f32 %v2618_v55, %v7291_v28 }
0x2259   : > { %v2622_v13 = vadd.f32 %v2620_v29, %v7972_v9 }
0x225b   : > { %2624 = vst [vmem:[#allocation2 + $0x18] sm:$0xff] %v2622_v13  ;;  %v2769_v58 = vpop.f32.mrf.mxu3 }
0x225c   : > { %v5276_v56 = vpop.eup %5275  ;;  %4891 = vst [vmem:[%s5980_s6 + $0x10] sm:$0xff] %v2622_v13  ;;  %v2770_v31 = vadd.f32 %v8028_v54, %v2769_v58 }
0x225d   : > { %v2619_v15 = vadd.f32 %v5276_v56, %v8150_v5 }
0x225e   : > { %5277 = vtanh.f32 %v2770_v31 }
0x225f   : > { %v2621_v35 = vmul.f32 %v2619_v15, %v7291_v28 }
0x2261   : > { %v2623_v46 = vadd.f32 %v2621_v35, %v7981_v44 }
0x2263   : > { %2625 = vst [vmem:[#allocation2 + $0x10] sm:$0xff] %v2623_v46  ;;  %v2772_v1 = vpop.f32.mrf.mxu3 }
0x2264   : > { %v5278_v9 = vpop.eup %5277  ;;  %4892 = vst [vmem:[%s5980_s6 + $0x18] sm:$0xff] %v2623_v46  ;;  %v2773_v34 = vadd.f32 %v8028_v54, %v2772_v1 }
0x2265   : > { %v2785_v7 = vadd.f32 %v5278_v9, %v2783_v38 }
0x2266   : > { %5279 = vtanh.f32 %v2773_v34 }
0x2267   : > { %v2790_v59 = vmul.f32 %v8203_v22, %v2785_v7 }
0x2269   : > { %v8209_v60 = vadd.f32 %v2790_v59, %v7987_v42 }
0x226b   : > { %2810 = vmatmul.f32.vlgmr.msrb.gmra.mxu0 %v8209_v60 }
0x226c   : > { %v5280_v28 = vpop.eup %5279  ;;  %3046 = vmatpush.msrb.mxu0 %v7871_v8 }
0x226d   : > { %v2786_v44 = vadd.f32 %v5280_v28, %v2784_v45 }
0x226e   : > { %3047 = vmatpush.msrb.mxu0 %v7875_v32 }
0x226f   : > { %v2791_v41 = vmul.f32 %v8203_v22, %v2786_v44 }
0x2270   : > { %3048 = vmatpush.msrb.mxu0 %v7881_v63 }
0x2271   : > { %v8217_v3 = vadd.f32 %v2791_v41, %v7994_v21 }
0x2272   : > { %3049 = vmatpush.msrb.mxu0 %v7887_v2 }
0x2273   : > { %2813 = vmatmul.f32.gmra.mxu0 %v8217_v3 }
0x2274   : > { %3050 = vmatpush.msrb.mxu0 %v7893_v11 }
0x2276   : > { %3051 = vmatpush.msrb.mxu0 %v7899_v16 }
0x2278   : > { %3052 = vmatpush.msrb.mxu0 %v7905_v36 }
0x227a   : > { %3053 = vmatpush.msrb.mxu0 %v7911_v37 }
0x227c   : > { %3054 = vmatpush.msrb.mxu0 %v7917_v4 }
0x227e   : > { %3055 = vmatpush.msrb.mxu0 %v7923_v10 }
0x2280   : > { %3056 = vmatpush.msrb.mxu0 %v7928_v33 }
0x2282   : > { %3057 = vmatpush.msrb.mxu0 %v7931_v61 }
0x2284   : > { %3058 = vmatpush.msrb.mxu0 %v7940_v12 }
0x2286   : > { %3059 = vmatpush.msrb.mxu0 %v7943_v48 }
0x2288   : > { %3060 = vmatpush.msrb.mxu0 %v7949_v52 }
0x228a   : > { %3061 = vmatpush.msrb.mxu0 %v7955_v40 }
0x22e8   : > { %v2811_v42 = vpop.f32.mrf.mxu0 }
0x22e9   : > { %v2812_v21 = vadd.f32 %v8028_v54, %v2811_v42 }
0x22eb   : > { %5281 = vtanh.f32 %v2812_v21 }
0x22f0   : > { %v2814_v5 = vpop.f32.mrf.mxu0 }
0x22f1   : > { %v8234_v6 = vpop.eup %5281  ;;  %v2815_v26 = vadd.f32 %v8028_v54, %v2814_v5 }
0x22f2   : > { %v2819_v27 = vmul.f32 %v8234_v6, %v8044_v43 }
0x22f3   : > { %5283 = vtanh.f32 %v2815_v26 }
0x22f4   : > { %v2821_v0 = vadd.f32 %v2819_v27, %v8209_v60 }
0x22f6   : > { %2839 = vmatmul.f32.vlgmr.msrb.gmra.mxu1 %v2821_v0 }
0x22f7   : > { %3075 = vmatpush.msrb.mxu1 %v7871_v8 }
0x22f9   : > { %v8241_v18 = vpop.eup %5283  ;;  %3076 = vmatpush.msrb.mxu1 %v7875_v32 }
0x22fa   : > { %v2820_v23 = vmul.f32 %v8241_v18, %v8044_v43 }
0x22fb   : > { %3077 = vmatpush.msrb.mxu1 %v7881_v63 }
0x22fc   : > { %v2822_v24 = vadd.f32 %v2820_v23, %v8217_v3 }
0x22fd   : > { %3078 = vmatpush.msrb.mxu1 %v7887_v2 }
0x22fe   : > { %2842 = vmatmul.f32.gmra.mxu1 %v2822_v24  ;;  %v8347_v24 = vld [vmem:[#allocation3 + $0x170] sm:$0xff] }
0x22ff   : > { %3079 = vmatpush.msrb.mxu1 %v7893_v11 }
0x2301   : > { %3080 = vmatpush.msrb.mxu1 %v7899_v16 }
0x2303   : > { %3081 = vmatpush.msrb.mxu1 %v7905_v36 }
0x2305   : > { %3082 = vmatpush.msrb.mxu1 %v7911_v37 }
0x2307   : > { %3083 = vmatpush.msrb.mxu1 %v7917_v4 }
0x2309   : > { %3084 = vmatpush.msrb.mxu1 %v7923_v10 }
0x230b   : > { %3085 = vmatpush.msrb.mxu1 %v7928_v33 }
0x230d   : > { %3086 = vmatpush.msrb.mxu1 %v7931_v61 }
0x230f   : > { %3087 = vmatpush.msrb.mxu1 %v7940_v12 }
0x2311   : > { %3088 = vmatpush.msrb.mxu1 %v7943_v48 }
0x2313   : > { %3089 = vmatpush.msrb.mxu1 %v7949_v52 }
0x2315   : > { %3090 = vmatpush.msrb.mxu1 %v7955_v40 }
0x2373   : > { %v2840_v62 = vpop.f32.mrf.mxu1 }
0x2374   : > { %v2841_v38 = vadd.f32 %v8028_v54, %v2840_v62 }
0x2376   : > { %5285 = vtanh.f32 %v2841_v38  ;;  %v8352_v38 = vld [vmem:[#allocation3 + $0x168] sm:$0xff] }
0x237b   : > { %v2843_v19 = vpop.f32.mrf.mxu1 }
0x237c   : > { %v5286_v49 = vpop.eup %5285  ;;  %v2844_v30 = vadd.f32 %v8028_v54, %v2843_v19 }
0x237d   : > { %v2848_v51 = vmul.f32 %v5286_v49, %v8044_v43  ;;  %v2906_v50 = vmul.f32 2.0, %v5286_v49  ;;  %v8356_v49 = vld [vmem:[#allocation3 + $0x160] sm:$0xff] }
0x237e   : > { %5287 = vtanh.f32 %v2844_v30  ;;  %v8359_v30 = vld [vmem:[#allocation3 + $0x158] sm:$0xff] }
0x237f   : > { %v2850_v17 = vadd.f32 %v2848_v51, %v8209_v60  ;;  %v2908_v13 = vadd.f32 %v8234_v6, %v2906_v50  ;;  %v8362_v51 = vld [vmem:[#allocation3 + $0x150] sm:$0xff]  ;;  %v8399_v50 = vld [vmem:[#allocation3 + $0x128] sm:$0xff] }
0x2381   : > { %2868 = vmatmul.f32.vlgmr.msrb.gmra.mxu2 %v2850_v17 }
0x2382   : > { %3104 = vmatpush.msrb.mxu2 %v7871_v8 }
0x2384   : > { %v5288_v39 = vpop.eup %5287  ;;  %3105 = vmatpush.msrb.mxu2 %v7875_v32 }
0x2385   : > { %v2849_v45 = vmul.f32 %v5288_v39, %v8044_v43  ;;  %v2907_v35 = vmul.f32 2.0, %v5288_v39 }
0x2386   : > { %3106 = vmatpush.msrb.mxu2 %v7881_v63 }
0x2387   : > { %v2851_v20 = vadd.f32 %v2849_v45, %v8217_v3  ;;  %v2909_v46 = vadd.f32 %v8241_v18, %v2907_v35  ;;  %v8387_v45 = vld [vmem:[#allocation3 + $0x148] sm:$0xff] }
0x2388   : > { %3107 = vmatpush.msrb.mxu2 %v7887_v2 }
0x2389   : > { %2871 = vmatmul.f32.gmra.mxu2 %v2851_v20  ;;  %v8390_v20 = vld [vmem:[#allocation3 + $0x140] sm:$0xff] }
0x238a   : > { %3108 = vmatpush.msrb.mxu2 %v7893_v11 }
0x238c   : > { %3109 = vmatpush.msrb.mxu2 %v7899_v16 }
0x238e   : > { %3110 = vmatpush.msrb.mxu2 %v7905_v36 }
0x2390   : > { %3111 = vmatpush.msrb.mxu2 %v7911_v37 }
0x2392   : > { %3112 = vmatpush.msrb.mxu2 %v7917_v4 }
0x2394   : > { %3113 = vmatpush.msrb.mxu2 %v7923_v10 }
0x2396   : > { %3114 = vmatpush.msrb.mxu2 %v7928_v33 }
0x2398   : > { %3115 = vmatpush.msrb.mxu2 %v7931_v61 }
0x239a   : > { %3116 = vmatpush.msrb.mxu2 %v7940_v12 }
0x239c   : > { %3117 = vmatpush.msrb.mxu2 %v7943_v48 }
0x239e   : > { %3118 = vmatpush.msrb.mxu2 %v7949_v52 }
0x23a0   : > { %3119 = vmatpush.msrb.mxu2 %v7955_v40 }
0x2404   : > { %v2869_v57 = vpop.f32.mrf.mxu2 }
0x2405   : > { %v2870_v47 = vadd.f32 %v8028_v54, %v2869_v57  ;;  %v8393_v57 = vld [vmem:[#allocation3 + $0x138] sm:$0xff] }
0x2407   : > { %5289 = vtanh.f32 %v2870_v47  ;;  %v8396_v47 = vld [vmem:[#allocation3 + $0x130] sm:$0xff] }
0x240c   : > { %v2872_v25 = vpop.f32.mrf.mxu2 }
0x240d   : > { %v5290_v55 = vpop.eup %5289  ;;  %v2873_v29 = vadd.f32 %v8028_v54, %v2872_v25  ;;  %v8402_v25 = vld [vmem:[#allocation3 + $0x120] sm:$0xff] }
0x240e   : > { %v2877_v58 = vmul.f32 %v5290_v55, %v8154_v14  ;;  %v2910_v56 = vmul.f32 2.0, %v5290_v55  ;;  %v8405_v55 = vld [vmem:[#allocation3 + $0x118] sm:$0xff] }
0x240f   : > { %5291 = vtanh.f32 %v2873_v29  ;;  %v8408_v29 = vld [vmem:[#allocation3 + $0x110] sm:$0xff] }
0x2410   : > { %v2879_v31 = vadd.f32 %v2877_v58, %v8209_v60  ;;  %v2912_v15 = vadd.f32 %v2910_v56, %v2908_v13 }
0x2412   : > { %2897 = vmatmul.f32.vlgmr.msrb.gmra.mxu3 %v2879_v31 }
0x2413   : > { %3133 = vmatpush.msrb.mxu3 %v7871_v8 }
0x2415   : > { %v5292_v53 = vpop.eup %5291  ;;  %3134 = vmatpush.msrb.mxu3 %v7875_v32 }
0x2416   : > { %v2911_v1 = vmul.f32 2.0, %v5292_v53  ;;  %v2878_v9 = vmul.f32 %v5292_v53, %v8154_v14 }
0x2417   : > { %3135 = vmatpush.msrb.mxu3 %v7881_v63 }
0x2418   : > { %v2880_v34 = vadd.f32 %v2878_v9, %v8217_v3  ;;  %v2913_v7 = vadd.f32 %v2911_v1, %v2909_v46 }
0x2419   : > { %3136 = vmatpush.msrb.mxu3 %v7887_v2 }
0x241a   : > { %2900 = vmatmul.f32.gmra.mxu3 %v2880_v34 }
0x241b   : > { %3137 = vmatpush.msrb.mxu3 %v7893_v11 }
0x241d   : > { %3138 = vmatpush.msrb.mxu3 %v7899_v16 }
0x241f   : > { %3139 = vmatpush.msrb.mxu3 %v7905_v36 }
0x2421   : > { %3140 = vmatpush.msrb.mxu3 %v7911_v37 }
0x2423   : > { %3141 = vmatpush.msrb.mxu3 %v7917_v4 }
0x2425   : > { %3142 = vmatpush.msrb.mxu3 %v7923_v10 }
0x2427   : > { %3143 = vmatpush.msrb.mxu3 %v7928_v33 }
0x2429   : > { %3144 = vmatpush.msrb.mxu3 %v7931_v61 }
0x242b   : > { %3145 = vmatpush.msrb.mxu3 %v7940_v12 }
0x242d   : > { %3146 = vmatpush.msrb.mxu3 %v7943_v48 }
0x242f   : > { %3147 = vmatpush.msrb.mxu3 %v7949_v52 }
0x2431   : > { %3148 = vmatpush.msrb.mxu3 %v7955_v40 }
0x2495   : > { %v2898_v59 = vpop.f32.mrf.mxu3 }
0x2496   : > { %v2899_v28 = vadd.f32 %v8028_v54, %v2898_v59 }
0x2498   : > { %5293 = vtanh.f32 %v2899_v28 }
0x249d   : > { %v2901_v44 = vpop.f32.mrf.mxu3 }
0x249e   : > { %v5294_v41 = vpop.eup %5293  ;;  %v2902_v42 = vadd.f32 %v8028_v54, %v2901_v44 }
0x249f   : > { %v2914_v21 = vadd.f32 %v5294_v41, %v2912_v15 }
0x24a0   : > { %5295 = vtanh.f32 %v2902_v42  ;;  %v8435_v42 = vld [vmem:[#allocation3 + $0x108] sm:$0xff] }
0x24a1   : > { %v2916_v5 = vmul.f32 %v2914_v21, %v8203_v22  ;;  %v8438_v21 = vld [vmem:[#allocation3 + $0x100] sm:$0xff] }
0x24a3   : > { %v8311_v6 = vadd.f32 %v2916_v5, %v8209_v60 }
0x24a5   : > { %2936 = vmatmul.f32.vlgmr.msra.gmra.mxu0 %v8311_v6 }
0x24a6   : > { %v5296_v26 = vpop.eup %5295  ;;  %3172 = vmatpush.msra.mxu0 %v7871_v8 }
0x24a7   : > { %v2915_v27 = vadd.f32 %v5296_v26, %v2913_v7 }
0x24a8   : > { %3173 = vmatpush.msra.mxu0 %v7875_v32 }
0x24a9   : > { %v2917_v0 = vmul.f32 %v2915_v27, %v8203_v22 }
0x24aa   : > { %3174 = vmatpush.msra.mxu0 %v7881_v63 }
0x24ab   : > { %v8319_v18 = vadd.f32 %v2917_v0, %v8217_v3  ;;  %v8342_v3 = vld [vmem:[#allocation3 + $0x178] sm:$0xff] }
0x24ac   : > { %3175 = vmatpush.msra.mxu0 %v7887_v2 }
0x24ad   : > { %2939 = vmatmul.f32.gmra.mxu0 %v8319_v18 }
0x24ae   : > { %3176 = vmatpush.msra.mxu0 %v7893_v11 }
0x24b0   : > { %3177 = vmatpush.msra.mxu0 %v7899_v16 }
0x24b2   : > { %3178 = vmatpush.msra.mxu0 %v7905_v36 }
0x24b4   : > { %3179 = vmatpush.msra.mxu0 %v7911_v37 }
0x24b6   : > { %3180 = vmatpush.msra.mxu0 %v7917_v4 }
0x24b8   : > { %3181 = vmatpush.msra.mxu0 %v7923_v10 }
0x24ba   : > { %3182 = vmatpush.msra.mxu0 %v7928_v33 }
0x24bc   : > { %3183 = vmatpush.msra.mxu0 %v7931_v61 }
0x24be   : > { %3184 = vmatpush.msra.mxu0 %v7940_v12 }
0x24c0   : > { %3185 = vmatpush.msra.mxu0 %v7943_v48 }
0x24c2   : > { %3186 = vmatpush.msra.mxu0 %v7949_v52 }
0x24c4   : > { %3187 = vmatpush.msra.mxu0 %v7955_v40 }
0x2522   : > { %v2937_v8 = vpop.f32.mrf.mxu0 }
0x2523   : > { %v2938_v32 = vadd.f32 %v8028_v54, %v2937_v8 }
0x2525   : > { %5297 = vtanh.f32 %v2938_v32 }
0x252a   : > { %v2940_v63 = vpop.f32.mrf.mxu0 }
0x252b   : > { %v8336_v2 = vpop.eup %5297  ;;  %v2941_v11 = vadd.f32 %v8028_v54, %v2940_v63 }
0x252c   : > { %v2945_v16 = vmul.f32 %v8336_v2, %v8044_v43 }
0x252d   : > { %5299 = vtanh.f32 %v2941_v11 }
0x252e   : > { %v2947_v60 = vadd.f32 %v2945_v16, %v8311_v6 }
0x2530   : > { %2965 = vmatmul.f32.vlgmr.msra.gmra.mxu1 %v2947_v60 }
0x2531   : > { %3201 = vmatpush.msra.mxu1 %v8342_v3 }
0x2533   : > { %v8345_v23 = vpop.eup %5299  ;;  %3202 = vmatpush.msra.mxu1 %v8347_v24 }
0x2534   : > { %v2946_v62 = vmul.f32 %v8345_v23, %v8044_v43 }
0x2535   : > { %3203 = vmatpush.msra.mxu1 %v8352_v38 }
0x2536   : > { %v2948_v19 = vadd.f32 %v2946_v62, %v8319_v18 }
0x2537   : > { %3204 = vmatpush.msra.mxu1 %v8356_v49 }
0x2538   : > { %2968 = vmatmul.f32.gmra.mxu1 %v2948_v19 }
0x2539   : > { %3205 = vmatpush.msra.mxu1 %v8359_v30 }
0x253b   : > { %3206 = vmatpush.msra.mxu1 %v8362_v51 }
0x253d   : > { %3207 = vmatpush.msra.mxu1 %v7905_v36 }
0x253f   : > { %3208 = vmatpush.msra.mxu1 %v7911_v37 }
0x2541   : > { %3209 = vmatpush.msra.mxu1 %v7917_v4 }
0x2543   : > { %3210 = vmatpush.msra.mxu1 %v7923_v10 }
0x2545   : > { %3211 = vmatpush.msra.mxu1 %v7928_v33 }
0x2547   : > { %3212 = vmatpush.msra.mxu1 %v7931_v61 }
0x2549   : > { %3213 = vmatpush.msra.mxu1 %v7940_v12 }
0x254b   : > { %3214 = vmatpush.msra.mxu1 %v7943_v48 }
0x254d   : > { %3215 = vmatpush.msra.mxu1 %v7949_v52 }
0x254f   : > { %3216 = vmatpush.msra.mxu1 %v7955_v40 }
0x25ad   : > { %v2966_v17 = vpop.f32.mrf.mxu1 }
0x25ae   : > { %v2967_v36 = vadd.f32 %v8028_v54, %v2966_v17 }
0x25b0   : > { %5301 = vtanh.f32 %v2967_v36 }
0x25b5   : > { %v2969_v37 = vpop.f32.mrf.mxu1 }
0x25b6   : > { %v5302_v4 = vpop.eup %5301  ;;  %v2970_v10 = vadd.f32 %v8028_v54, %v2969_v37 }
0x25b7   : > { %v2974_v33 = vmul.f32 %v5302_v4, %v8044_v43  ;;  %v3032_v56 = vmul.f32 2.0, %v5302_v4 }
0x25b8   : > { %5303 = vtanh.f32 %v2970_v10 }
0x25b9   : > { %v2976_v61 = vadd.f32 %v2974_v33, %v8311_v6  ;;  %v3034_v53 = vadd.f32 %v8336_v2, %v3032_v56 }
0x25bb   : > { %2994 = vmatmul.f32.vlgmr.msra.gmra.mxu2 %v2976_v61  ;;  %v8497_v61 = vld [vmem:[#allocation9 + $0x2] ss:$0 sm:$0xff] }
0x25bc   : > { %3230 = vmatpush.msra.mxu2 %v8342_v3 }
0x25be   : > { %v5304_v12 = vpop.eup %5303  ;;  %3231 = vmatpush.msra.mxu2 %v8347_v24 }
0x25bf   : > { %v2975_v48 = vmul.f32 %v5304_v12, %v8044_v43  ;;  %v3033_v34 = vmul.f32 2.0, %v5304_v12 }
0x25c0   : > { %3232 = vmatpush.msra.mxu2 %v8352_v38 }
0x25c1   : > { %v2977_v39 = vadd.f32 %v2975_v48, %v8319_v18  ;;  %v3035_v7 = vadd.f32 %v8345_v23, %v3033_v34 }
0x25c2   : > { %3233 = vmatpush.msra.mxu2 %v8356_v49 }
0x25c3   : > { %2997 = vmatmul.f32.gmra.mxu2 %v2977_v39 }
0x25c4   : > { %3234 = vmatpush.msra.mxu2 %v8359_v30 }
0x25c6   : > { %3235 = vmatpush.msra.mxu2 %v8362_v51 }
0x25c8   : > { %3236 = vmatpush.msra.mxu2 %v8387_v45 }
0x25ca   : > { %3237 = vmatpush.msra.mxu2 %v8390_v20 }
0x25cc   : > { %3238 = vmatpush.msra.mxu2 %v8393_v57 }
0x25ce   : > { %3239 = vmatpush.msra.mxu2 %v8396_v47 }
0x25d0   : > { %3240 = vmatpush.msra.mxu2 %v8399_v50 }
0x25d2   : > { %3241 = vmatpush.msra.mxu2 %v8402_v25 }
0x25d4   : > { %3242 = vmatpush.msra.mxu2 %v8405_v55 }
0x25d6   : > { %3243 = vmatpush.msra.mxu2 %v8408_v29 }
0x25d8   : > { %3244 = vmatpush.msra.mxu2 %v7949_v52 }
0x25da   : > { %3245 = vmatpush.msra.mxu2 %v7955_v40 }
0x263e   : > { %v2995_v13 = vpop.f32.mrf.mxu2 }
0x263f   : > { %v2996_v58 = vadd.f32 %v8028_v54, %v2995_v13 }
0x2641   : > { %5305 = vtanh.f32 %v2996_v58 }
0x2646   : > { %v2998_v31 = vpop.f32.mrf.mxu2 }
0x2647   : > { %v5306_v15 = vpop.eup %5305  ;;  %v2999_v35 = vadd.f32 %v8028_v54, %v2998_v31 }
0x2648   : > { %v3003_v46 = vmul.f32 %v5306_v15, %v8154_v14  ;;  %v3036_v1 = vmul.f32 2.0, %v5306_v15 }
0x2649   : > { %5307 = vtanh.f32 %v2999_v35 }
0x264a   : > { %v3005_v9 = vadd.f32 %v3003_v46, %v8311_v6  ;;  %v3038_v52 = vadd.f32 %v3036_v1, %v3034_v53 }
0x264c   : > { %3023 = vmatmul.f32.vlgmr.msra.gmra.mxu3 %v3005_v9 }
0x264d   : > { %3259 = vmatpush.msra.mxu3 %v8342_v3 }
0x264f   : > { %v5308_v40 = vpop.eup %5307  ;;  %3260 = vmatpush.msra.mxu3 %v8347_v24 }
0x2650   : > { %v3037_v59 = vmul.f32 2.0, %v5308_v40  ;;  %v3004_v28 = vmul.f32 %v5308_v40, %v8154_v14 }
0x2651   : > { %3261 = vmatpush.msra.mxu3 %v8352_v38 }
0x2652   : > { %v3006_v44 = vadd.f32 %v3004_v28, %v8319_v18  ;;  %v3039_v41 = vadd.f32 %v3037_v59, %v3035_v7 }
0x2653   : > { %3262 = vmatpush.msra.mxu3 %v8356_v49 }
0x2654   : > { %3026 = vmatmul.f32.gmra.mxu3 %v3006_v44 }
0x2655   : > { %3263 = vmatpush.msra.mxu3 %v8359_v30 }
0x2657   : > { %3264 = vmatpush.msra.mxu3 %v8362_v51 }
0x2659   : > { %3265 = vmatpush.msra.mxu3 %v8387_v45 }
0x265b   : > { %3266 = vmatpush.msra.mxu3 %v8390_v20 }
0x265d   : > { %3267 = vmatpush.msra.mxu3 %v8393_v57 }
0x265f   : > { %3268 = vmatpush.msra.mxu3 %v8396_v47 }
0x2661   : > { %3269 = vmatpush.msra.mxu3 %v8399_v50 }
0x2663   : > { %3270 = vmatpush.msra.mxu3 %v8402_v25 }
0x2665   : > { %3271 = vmatpush.msra.mxu3 %v8405_v55 }
0x2667   : > { %3272 = vmatpush.msra.mxu3 %v8408_v29 }
0x2669   : > { %3273 = vmatpush.msra.mxu3 %v8435_v42 }
0x266b   : > { %3274 = vmatpush.msra.mxu3 %v8438_v21 }
0x26cf   : > { %v3024_v5 = vpop.f32.mrf.mxu3 }
0x26d0   : > { %v3025_v26 = vadd.f32 %v8028_v54, %v3024_v5 }
0x26d2   : > { %5309 = vtanh.f32 %v3025_v26 }
0x26d7   : > { %v3027_v27 = vpop.f32.mrf.mxu3 }
0x26d8   : > { %v5310_v0 = vpop.eup %5309  ;;  %v3028_v8 = vadd.f32 %v8028_v54, %v3027_v27 }
0x26d9   : > { %v3040_v32 = vadd.f32 %v5310_v0, %v3038_v52 }
0x26da   : > { %5311 = vtanh.f32 %v3028_v8 }
0x26db   : > { %v3042_v63 = vmul.f32 %v3040_v32, %v8203_v22 }
0x26dd   : > { %v8445_v2 = vadd.f32 %v3042_v63, %v8311_v6 }
0x26df   : > { %3062 = vmatmul.f32.vlgmr.msrb.gmra.mxu0 %v8445_v2 }
0x26e0   : > { %v5312_v11 = vpop.eup %5311  ;;  %3298 = vmatpush.msrb.mxu0 %v8342_v3 }
0x26e1   : > { %v3041_v16 = vadd.f32 %v5312_v11, %v3039_v41 }
0x26e2   : > { %3299 = vmatpush.msrb.mxu0 %v8347_v24 }
0x26e3   : > { %v3043_v60 = vmul.f32 %v3041_v16, %v8203_v22 }
0x26e4   : > { %3300 = vmatpush.msrb.mxu0 %v8352_v38 }
0x26e5   : > { %v8453_v23 = vadd.f32 %v3043_v60, %v8319_v18 }
0x26e6   : > { %3301 = vmatpush.msrb.mxu0 %v8356_v49 }
0x26e7   : > { %3065 = vmatmul.f32.gmra.mxu0 %v8453_v23 }
0x26e8   : > { %3302 = vmatpush.msrb.mxu0 %v8359_v30 }
0x26ea   : > { %3303 = vmatpush.msrb.mxu0 %v8362_v51 }
0x26ec   : > { %3304 = vmatpush.msrb.mxu0 %v8387_v45 }
0x26ee   : > { %3305 = vmatpush.msrb.mxu0 %v8390_v20 }
0x26f0   : > { %3306 = vmatpush.msrb.mxu0 %v8393_v57 }
0x26f2   : > { %3307 = vmatpush.msrb.mxu0 %v8396_v47 }
0x26f4   : > { %3308 = vmatpush.msrb.mxu0 %v8399_v50 }
0x26f6   : > { %3309 = vmatpush.msrb.mxu0 %v8402_v25 }
0x26f8   : > { %3310 = vmatpush.msrb.mxu0 %v8405_v55 }
0x26fa   : > { %3311 = vmatpush.msrb.mxu0 %v8408_v29 }
0x26fc   : > { %3312 = vmatpush.msrb.mxu0 %v8435_v42 }
0x26fe   : > { %3313 = vmatpush.msrb.mxu0 %v8438_v21 }
0x275c   : > { %v3063_v6 = vpop.f32.mrf.mxu0 }
0x275d   : > { %v3064_v18 = vadd.f32 %v8028_v54, %v3063_v6 }
0x275f   : > { %5313 = vtanh.f32 %v3064_v18 }
0x2764   : > { %v3066_v62 = vpop.f32.mrf.mxu0 }
0x2765   : > { %v8470_v19 = vpop.eup %5313  ;;  %v3067_v17 = vadd.f32 %v8028_v54, %v3066_v62 }
0x2766   : > { %v3071_v36 = vmul.f32 %v8470_v19, %v8044_v43 }
0x2767   : > { %5315 = vtanh.f32 %v3067_v17 }
0x2768   : > { %v3073_v37 = vadd.f32 %v3071_v36, %v8445_v2 }
0x276a   : > { %3091 = vmatmul.f32.vlgmr.msrb.gmra.mxu1 %v3073_v37 }
0x276b   : > { %3327 = vmatpush.msrb.mxu1 %v8342_v3 }
0x276d   : > { %v8477_v4 = vpop.eup %5315  ;;  %3328 = vmatpush.msrb.mxu1 %v8347_v24 }
0x276e   : > { %v3072_v10 = vmul.f32 %v8477_v4, %v8044_v43 }
0x276f   : > { %3329 = vmatpush.msrb.mxu1 %v8352_v38 }
0x2770   : > { %v3074_v54 = vadd.f32 %v3072_v10, %v8453_v23 }
0x2771   : > { %3330 = vmatpush.msrb.mxu1 %v8356_v49 }
0x2772   : > { %3094 = vmatmul.f32.gmra.mxu1 %v3074_v54 }
0x2773   : > { %3331 = vmatpush.msrb.mxu1 %v8359_v30 }
0x2775   : > { %3332 = vmatpush.msrb.mxu1 %v8362_v51 }
0x2777   : > { %3333 = vmatpush.msrb.mxu1 %v8387_v45 }
0x2779   : > { %3334 = vmatpush.msrb.mxu1 %v8390_v20 }
0x277b   : > { %3335 = vmatpush.msrb.mxu1 %v8393_v57 }
0x277d   : > { %3336 = vmatpush.msrb.mxu1 %v8396_v47 }
0x277f   : > { %3337 = vmatpush.msrb.mxu1 %v8399_v50 }
0x2781   : > { %3338 = vmatpush.msrb.mxu1 %v8402_v25 }
0x2783   : > { %3339 = vmatpush.msrb.mxu1 %v8405_v55 }
0x2785   : > { %3340 = vmatpush.msrb.mxu1 %v8408_v29 }
0x2787   : > { %3341 = vmatpush.msrb.mxu1 %v8435_v42 }
0x2789   : > { %3342 = vmatpush.msrb.mxu1 %v8438_v21 }
0x27e7   : > { %v3092_v33 = vpop.f32.mrf.mxu1 }
0x27e8   : > { %v3093_v12 = vadd.f32 %v8497_v61, %v3092_v33 }
0x27ea   : > { %5317 = vtanh.f32 %v3093_v12 }
0x27ef   : > { %v3095_v48 = vpop.f32.mrf.mxu1 }
0x27f0   : > { %v5318_v39 = vpop.eup %5317  ;;  %v3096_v13 = vadd.f32 %v8497_v61, %v3095_v48 }
0x27f1   : > { %v3100_v58 = vmul.f32 %v5318_v39, %v8044_v43  ;;  %v3158_v1 = vmul.f32 2.0, %v5318_v39 }
0x27f2   : > { %5319 = vtanh.f32 %v3096_v13 }
0x27f3   : > { %v3102_v56 = vadd.f32 %v3100_v58, %v8445_v2  ;;  %v3160_v40 = vadd.f32 %v8470_v19, %v3158_v1 }
0x27f5   : > { %3120 = vmatmul.f32.vlgmr.msrb.gmra.mxu2 %v3102_v56 }
0x27f6   : > { %3356 = vmatpush.msrb.mxu2 %v8342_v3 }
0x27f8   : > { %v5320_v31 = vpop.eup %5319  ;;  %3357 = vmatpush.msrb.mxu2 %v8347_v24 }
0x27f9   : > { %v3101_v15 = vmul.f32 %v5320_v31, %v8044_v43  ;;  %v3159_v41 = vmul.f32 2.0, %v5320_v31 }
0x27fa   : > { %3358 = vmatpush.msrb.mxu2 %v8352_v38 }
0x27fb   : > { %v3103_v35 = vadd.f32 %v3101_v15, %v8453_v23  ;;  %v3161_v26 = vadd.f32 %v8477_v4, %v3159_v41 }
0x27fc   : > { %3359 = vmatpush.msrb.mxu2 %v8356_v49 }
0x27fd   : > { %3123 = vmatmul.f32.gmra.mxu2 %v3103_v35 }
0x27fe   : > { %3360 = vmatpush.msrb.mxu2 %v8359_v30 }
0x2800   : > { %3361 = vmatpush.msrb.mxu2 %v8362_v51 }
0x2802   : > { %3362 = vmatpush.msrb.mxu2 %v8387_v45 }
0x2804   : > { %3363 = vmatpush.msrb.mxu2 %v8390_v20 }
0x2806   : > { %3364 = vmatpush.msrb.mxu2 %v8393_v57 }
0x2808   : > { %3365 = vmatpush.msrb.mxu2 %v8396_v47 }
0x280a   : > { %3366 = vmatpush.msrb.mxu2 %v8399_v50 }
0x280c   : > { %3367 = vmatpush.msrb.mxu2 %v8402_v25 }
0x280e   : > { %3368 = vmatpush.msrb.mxu2 %v8405_v55 }
0x2810   : > { %3369 = vmatpush.msrb.mxu2 %v8408_v29 }
0x2812   : > { %3370 = vmatpush.msrb.mxu2 %v8435_v42 }
0x2814   : > { %3371 = vmatpush.msrb.mxu2 %v8438_v21 }
0x2878   : > { %v3121_v53 = vpop.f32.mrf.mxu2 }
0x2879   : > { %v3122_v46 = vadd.f32 %v8497_v61, %v3121_v53 }
0x287b   : > { %5321 = vtanh.f32 %v3122_v46 }
0x2880   : > { %v3124_v9 = vpop.f32.mrf.mxu2 }
0x2881   : > { %v5322_v52 = vpop.eup %5321  ;;  %v3125_v34 = vadd.f32 %v8497_v61, %v3124_v9 }
0x2882   : > { %v3129_v7 = vmul.f32 %v5322_v52, %v8154_v14  ;;  %v3162_v59 = vmul.f32 2.0, %v5322_v52 }
0x2883   : > { %5323 = vtanh.f32 %v3125_v34 }
0x2884   : > { %v3131_v28 = vadd.f32 %v3129_v7, %v8445_v2  ;;  %v3164_v44 = vadd.f32 %v3162_v59, %v3160_v40 }
0x2886   : > { %3149 = vmatmul.f32.vlgmr.msrb.gmra.mxu3 %v3131_v28 }
0x2887   : > { %3385 = vmatpush.msrb.mxu3 %v8342_v3 }
0x2889   : > { %v5324_v5 = vpop.eup %5323  ;;  %3386 = vmatpush.msrb.mxu3 %v8347_v24 }
0x288a   : > { %v3163_v27 = vmul.f32 2.0, %v5324_v5  ;;  %v3130_v0 = vmul.f32 %v5324_v5, %v8154_v14 }
0x288b   : > { %3387 = vmatpush.msrb.mxu3 %v8352_v38 }
0x288c   : > { %v3132_v8 = vadd.f32 %v3130_v0, %v8453_v23  ;;  %v3165_v32 = vadd.f32 %v3163_v27, %v3161_v26 }
0x288d   : > { %3388 = vmatpush.msrb.mxu3 %v8356_v49 }
0x288e   : > { %3152 = vmatmul.f32.gmra.mxu3 %v3132_v8 }
0x288f   : > { %3389 = vmatpush.msrb.mxu3 %v8359_v30 }
0x2891   : > { %3390 = vmatpush.msrb.mxu3 %v8362_v51 }
0x2893   : > { %3391 = vmatpush.msrb.mxu3 %v8387_v45 }
0x2895   : > { %3392 = vmatpush.msrb.mxu3 %v8390_v20 }
0x2897   : > { %3393 = vmatpush.msrb.mxu3 %v8393_v57 }
0x2899   : > { %3394 = vmatpush.msrb.mxu3 %v8396_v47 }
0x289b   : > { %3395 = vmatpush.msrb.mxu3 %v8399_v50 }
0x289d   : > { %3396 = vmatpush.msrb.mxu3 %v8402_v25 }
0x289f   : > { %3397 = vmatpush.msrb.mxu3 %v8405_v55 }
0x28a1   : > { %3398 = vmatpush.msrb.mxu3 %v8408_v29 }
0x28a3   : > { %3399 = vmatpush.msrb.mxu3 %v8435_v42 }
0x28a5   : > { %3400 = vmatpush.msrb.mxu3 %v8438_v21 }
0x2909   : > { %v3150_v63 = vpop.f32.mrf.mxu3 }
0x290a   : > { %v3151_v11 = vadd.f32 %v8497_v61, %v3150_v63 }
0x290c   : > { %5325 = vtanh.f32 %v3151_v11 }
0x2911   : > { %v3153_v16 = vpop.f32.mrf.mxu3 }
0x2912   : > { %v5326_v60 = vpop.eup %5325  ;;  %v3154_v6 = vadd.f32 %v8497_v61, %v3153_v16 }
0x2913   : > { %v3166_v18 = vadd.f32 %v5326_v60, %v3164_v44 }
0x2914   : > { %5327 = vtanh.f32 %v3154_v6 }
0x2915   : > { %v3168_v62 = vmul.f32 %v3166_v18, %v8203_v22 }
0x2917   : > { %v8549_v19 = vadd.f32 %v3168_v62, %v8445_v2 }
0x2919   : > { %3188 = vmatmul.f32.vlgmr.msra.gmra.mxu0 %v8549_v19 }
0x291a   : > { %v5328_v17 = vpop.eup %5327  ;;  %3424 = vmatpush.msra.mxu0 %v8342_v3 }
0x291b   : > { %v3167_v36 = vadd.f32 %v5328_v17, %v3165_v32 }
0x291c   : > { %3425 = vmatpush.msra.mxu0 %v8347_v24 }
0x291d   : > { %v3169_v37 = vmul.f32 %v3167_v36, %v8203_v22 }
0x291e   : > { %3426 = vmatpush.msra.mxu0 %v8352_v38 }
0x291f   : > { %v8557_v4 = vadd.f32 %v3169_v37, %v8453_v23 }
0x2920   : > { %3427 = vmatpush.msra.mxu0 %v8356_v49 }
0x2921   : > { %3191 = vmatmul.f32.gmra.mxu0 %v8557_v4 }
0x2922   : > { %3428 = vmatpush.msra.mxu0 %v8359_v30 }
0x2924   : > { %3429 = vmatpush.msra.mxu0 %v8362_v51 }
0x2926   : > { %3430 = vmatpush.msra.mxu0 %v8387_v45 }
0x2928   : > { %3431 = vmatpush.msra.mxu0 %v8390_v20 }
0x292a   : > { %3432 = vmatpush.msra.mxu0 %v8393_v57 }
0x292c   : > { %3433 = vmatpush.msra.mxu0 %v8396_v47 }
0x292e   : > { %3434 = vmatpush.msra.mxu0 %v8399_v50 }
0x2930   : > { %3435 = vmatpush.msra.mxu0 %v8402_v25 }
0x2932   : > { %3436 = vmatpush.msra.mxu0 %v8405_v55 }
0x2934   : > { %3437 = vmatpush.msra.mxu0 %v8408_v29 }
0x2936   : > { %3438 = vmatpush.msra.mxu0 %v8435_v42 }
0x2938   : > { %3439 = vmatpush.msra.mxu0 %v8438_v21 }
0x2996   : > { %v3189_v2 = vpop.f32.mrf.mxu0 }
0x2997   : > { %v3190_v23 = vadd.f32 %v8497_v61, %v3189_v2 }
0x2999   : > { %5329 = vtanh.f32 %v3190_v23 }
0x299e   : > { %v3192_v10 = vpop.f32.mrf.mxu0 }
0x299f   : > { %v8574_v54 = vpop.eup %5329  ;;  %v3193_v33 = vadd.f32 %v8497_v61, %v3192_v10 }
0x29a0   : > { %v3197_v12 = vmul.f32 %v8574_v54, %v8044_v43 }
0x29a1   : > { %5331 = vtanh.f32 %v3193_v33 }
0x29a2   : > { %v3199_v48 = vadd.f32 %v3197_v12, %v8549_v19 }
0x29a4   : > { %3217 = vmatmul.f32.vlgmr.msra.gmra.mxu1 %v3199_v48 }
0x29a5   : > { %3453 = vmatpush.msra.mxu1 %v8342_v3 }
0x29a7   : > { %v8581_v39 = vpop.eup %5331  ;;  %3454 = vmatpush.msra.mxu1 %v8347_v24 }
0x29a8   : > { %v3198_v13 = vmul.f32 %v8581_v39, %v8044_v43 }
0x29a9   : > { %3455 = vmatpush.msra.mxu1 %v8352_v38 }
0x29aa   : > { %v3200_v58 = vadd.f32 %v3198_v13, %v8557_v4 }
0x29ab   : > { %3456 = vmatpush.msra.mxu1 %v8356_v49 }
0x29ac   : > { %3220 = vmatmul.f32.gmra.mxu1 %v3200_v58 }
0x29ad   : > { %3457 = vmatpush.msra.mxu1 %v8359_v30 }
0x29af   : > { %3458 = vmatpush.msra.mxu1 %v8362_v51 }
0x29b1   : > { %3459 = vmatpush.msra.mxu1 %v8387_v45 }
0x29b3   : > { %3460 = vmatpush.msra.mxu1 %v8390_v20 }
0x29b5   : > { %3461 = vmatpush.msra.mxu1 %v8393_v57 }
0x29b7   : > { %3462 = vmatpush.msra.mxu1 %v8396_v47 }
0x29b9   : > { %3463 = vmatpush.msra.mxu1 %v8399_v50 }
0x29bb   : > { %3464 = vmatpush.msra.mxu1 %v8402_v25 }
0x29bd   : > { %3465 = vmatpush.msra.mxu1 %v8405_v55 }
0x29bf   : > { %3466 = vmatpush.msra.mxu1 %v8408_v29 }
0x29c1   : > { %3467 = vmatpush.msra.mxu1 %v8435_v42 }
0x29c3   : > { %3468 = vmatpush.msra.mxu1 %v8438_v21 }
0x2a21   : > { %v3218_v56 = vpop.f32.mrf.mxu1 }
0x2a22   : > { %v3219_v31 = vadd.f32 %v8497_v61, %v3218_v56 }
0x2a24   : > { %5333 = vtanh.f32 %v3219_v31 }
0x2a29   : > { %v3221_v15 = vpop.f32.mrf.mxu1 }
0x2a2a   : > { %v5334_v35 = vpop.eup %5333  ;;  %v3222_v53 = vadd.f32 %v8497_v61, %v3221_v15 }
0x2a2b   : > { %v3226_v46 = vmul.f32 %v5334_v35, %v8044_v43  ;;  %v3284_v59 = vmul.f32 2.0, %v5334_v35 }
0x2a2c   : > { %5335 = vtanh.f32 %v3222_v53 }
0x2a2d   : > { %v3228_v1 = vadd.f32 %v3226_v46, %v8549_v19  ;;  %v3286_v5 = vadd.f32 %v8574_v54, %v3284_v59 }
0x2a2f   : > { %3246 = vmatmul.f32.vlgmr.msra.gmra.mxu2 %v3228_v1 }
0x2a30   : > { %3482 = vmatpush.msra.mxu2 %v8342_v3 }
0x2a32   : > { %v5336_v9 = vpop.eup %5335  ;;  %3483 = vmatpush.msra.mxu2 %v8347_v24 }
0x2a33   : > { %v3227_v52 = vmul.f32 %v5336_v9, %v8044_v43  ;;  %v3285_v32 = vmul.f32 2.0, %v5336_v9 }
0x2a34   : > { %3484 = vmatpush.msra.mxu2 %v8352_v38 }
0x2a35   : > { %v3229_v34 = vadd.f32 %v3227_v52, %v8557_v4  ;;  %v3287_v11 = vadd.f32 %v8581_v39, %v3285_v32 }
0x2a36   : > { %3485 = vmatpush.msra.mxu2 %v8356_v49 }
0x2a37   : > { %3249 = vmatmul.f32.gmra.mxu2 %v3229_v34 }
0x2a38   : > { %3486 = vmatpush.msra.mxu2 %v8359_v30 }
0x2a3a   : > { %3487 = vmatpush.msra.mxu2 %v8362_v51 }
0x2a3c   : > { %3488 = vmatpush.msra.mxu2 %v8387_v45 }
0x2a3e   : > { %3489 = vmatpush.msra.mxu2 %v8390_v20 }
0x2a40   : > { %3490 = vmatpush.msra.mxu2 %v8393_v57 }
0x2a42   : > { %3491 = vmatpush.msra.mxu2 %v8396_v47 }
0x2a44   : > { %3492 = vmatpush.msra.mxu2 %v8399_v50 }
0x2a46   : > { %3493 = vmatpush.msra.mxu2 %v8402_v25 }
0x2a48   : > { %3494 = vmatpush.msra.mxu2 %v8405_v55 }
0x2a4a   : > { %3495 = vmatpush.msra.mxu2 %v8408_v29 }
0x2a4c   : > { %3496 = vmatpush.msra.mxu2 %v8435_v42 }
0x2a4e   : > { %3497 = vmatpush.msra.mxu2 %v8438_v21 }
0x2ab2   : > { %v3247_v40 = vpop.f32.mrf.mxu2 }
0x2ab3   : > { %v3248_v7 = vadd.f32 %v8497_v61, %v3247_v40 }
0x2ab5   : > { %5337 = vtanh.f32 %v3248_v7 }
0x2aba   : > { %v3250_v28 = vpop.f32.mrf.mxu2 }
0x2abb   : > { %v5338_v44 = vpop.eup %5337  ;;  %v3251_v41 = vadd.f32 %v8497_v61, %v3250_v28 }
0x2abc   : > { %v3255_v26 = vmul.f32 %v5338_v44, %v8154_v14  ;;  %v3288_v27 = vmul.f32 2.0, %v5338_v44 }
0x2abd   : > { %5339 = vtanh.f32 %v3251_v41 }
0x2abe   : > { %v3257_v0 = vadd.f32 %v3255_v26, %v8549_v19  ;;  %v3290_v8 = vadd.f32 %v3288_v27, %v3286_v5 }
0x2ac0   : > { %3275 = vmatmul.f32.vlgmr.msra.gmra.mxu3 %v3257_v0 }
0x2ac1   : > { %3511 = vmatpush.msra.mxu3 %v8342_v3 }
0x2ac3   : > { %v5340_v63 = vpop.eup %5339  ;;  %3512 = vmatpush.msra.mxu3 %v8347_v24 }
0x2ac4   : > { %v3289_v16 = vmul.f32 2.0, %v5340_v63  ;;  %v3256_v60 = vmul.f32 %v5340_v63, %v8154_v14 }
0x2ac5   : > { %3513 = vmatpush.msra.mxu3 %v8352_v38 }
0x2ac6   : > { %v3258_v6 = vadd.f32 %v3256_v60, %v8557_v4  ;;  %v3291_v18 = vadd.f32 %v3289_v16, %v3287_v11 }
0x2ac7   : > { %3514 = vmatpush.msra.mxu3 %v8356_v49 }
0x2ac8   : > { %3278 = vmatmul.f32.gmra.mxu3 %v3258_v6 }
0x2ac9   : > { %3515 = vmatpush.msra.mxu3 %v8359_v30 }
0x2acb   : > { %3516 = vmatpush.msra.mxu3 %v8362_v51 }
0x2acd   : > { %3517 = vmatpush.msra.mxu3 %v8387_v45 }
0x2acf   : > { %3518 = vmatpush.msra.mxu3 %v8390_v20 }
0x2ad1   : > { %3519 = vmatpush.msra.mxu3 %v8393_v57 }
0x2ad3   : > { %3520 = vmatpush.msra.mxu3 %v8396_v47 }
0x2ad5   : > { %3521 = vmatpush.msra.mxu3 %v8399_v50 }
0x2ad7   : > { %3522 = vmatpush.msra.mxu3 %v8402_v25 }
0x2ad9   : > { %3523 = vmatpush.msra.mxu3 %v8405_v55 }
0x2adb   : > { %3524 = vmatpush.msra.mxu3 %v8408_v29 }
0x2add   : > { %3525 = vmatpush.msra.mxu3 %v8435_v42 }
0x2adf   : > { %3526 = vmatpush.msra.mxu3 %v8438_v21 }
0x2b43   : > { %v3276_v62 = vpop.f32.mrf.mxu3 }
0x2b44   : > { %v3277_v17 = vadd.f32 %v8497_v61, %v3276_v62 }
0x2b46   : > { %5341 = vtanh.f32 %v3277_v17 }
0x2b4b   : > { %v3279_v36 = vpop.f32.mrf.mxu3 }
0x2b4c   : > { %v5342_v37 = vpop.eup %5341  ;;  %v3280_v2 = vadd.f32 %v8497_v61, %v3279_v36 }
0x2b4d   : > { %v3292_v23 = vadd.f32 %v5342_v37, %v3290_v8 }
0x2b4e   : > { %5343 = vtanh.f32 %v3280_v2 }
0x2b4f   : > { %v3294_v10 = vmul.f32 %v3292_v23, %v8203_v22 }
0x2b51   : > { %v8651_v54 = vadd.f32 %v3294_v10, %v8549_v19 }
0x2b53   : > { %3314 = vmatmul.f32.vlgmr.msrb.gmra.mxu0 %v8651_v54 }
0x2b54   : > { %v5344_v33 = vpop.eup %5343  ;;  %3550 = vmatpush.msrb.mxu0 %v8342_v3 }
0x2b55   : > { %v3293_v12 = vadd.f32 %v5344_v33, %v3291_v18 }
0x2b56   : > { %3551 = vmatpush.msrb.mxu0 %v8347_v24 }
0x2b57   : > { %v3295_v48 = vmul.f32 %v3293_v12, %v8203_v22 }
0x2b58   : > { %3552 = vmatpush.msrb.mxu0 %v8352_v38 }
0x2b59   : > { %v8659_v39 = vadd.f32 %v3295_v48, %v8557_v4 }
0x2b5a   : > { %3553 = vmatpush.msrb.mxu0 %v8356_v49 }
0x2b5b   : > { %3317 = vmatmul.f32.gmra.mxu0 %v8659_v39 }
0x2b5c   : > { %3554 = vmatpush.msrb.mxu0 %v8359_v30 }
0x2b5e   : > { %3555 = vmatpush.msrb.mxu0 %v8362_v51 }
0x2b60   : > { %3556 = vmatpush.msrb.mxu0 %v8387_v45 }
0x2b62   : > { %3557 = vmatpush.msrb.mxu0 %v8390_v20 }
0x2b64   : > { %3558 = vmatpush.msrb.mxu0 %v8393_v57 }
0x2b66   : > { %3559 = vmatpush.msrb.mxu0 %v8396_v47 }
0x2b68   : > { %3560 = vmatpush.msrb.mxu0 %v8399_v50 }
0x2b6a   : > { %3561 = vmatpush.msrb.mxu0 %v8402_v25 }
0x2b6c   : > { %3562 = vmatpush.msrb.mxu0 %v8405_v55 }
0x2b6e   : > { %3563 = vmatpush.msrb.mxu0 %v8408_v29 }
0x2b70   : > { %3564 = vmatpush.msrb.mxu0 %v8435_v42 }
0x2b72   : > { %3565 = vmatpush.msrb.mxu0 %v8438_v21 }
0x2bd0   : > { %v3315_v19 = vpop.f32.mrf.mxu0 }
0x2bd1   : > { %v3316_v4 = vadd.f32 %v8497_v61, %v3315_v19 }
0x2bd3   : > { %5345 = vtanh.f32 %v3316_v4 }
0x2bd8   : > { %v3318_v13 = vpop.f32.mrf.mxu0 }
0x2bd9   : > { %v8676_v58 = vpop.eup %5345  ;;  %v3319_v56 = vadd.f32 %v8497_v61, %v3318_v13 }
0x2bda   : > { %v3323_v31 = vmul.f32 %v8676_v58, %v8044_v43 }
0x2bdb   : > { %5347 = vtanh.f32 %v3319_v56 }
0x2bdc   : > { %v3325_v15 = vadd.f32 %v3323_v31, %v8651_v54 }
0x2bde   : > { %3343 = vmatmul.f32.vlgmr.msrb.gmra.mxu1 %v3325_v15 }
0x2bdf   : > { %3579 = vmatpush.msrb.mxu1 %v8342_v3 }
0x2be1   : > { %v8683_v35 = vpop.eup %5347  ;;  %3580 = vmatpush.msrb.mxu1 %v8347_v24 }
0x2be2   : > { %v3324_v53 = vmul.f32 %v8683_v35, %v8044_v43 }
0x2be3   : > { %3581 = vmatpush.msrb.mxu1 %v8352_v38 }
0x2be4   : > { %v3326_v46 = vadd.f32 %v3324_v53, %v8659_v39 }
0x2be5   : > { %3582 = vmatpush.msrb.mxu1 %v8356_v49 }
0x2be6   : > { %3346 = vmatmul.f32.gmra.mxu1 %v3326_v46 }
0x2be7   : > { %3583 = vmatpush.msrb.mxu1 %v8359_v30 }
0x2be9   : > { %3584 = vmatpush.msrb.mxu1 %v8362_v51 }
0x2beb   : > { %3585 = vmatpush.msrb.mxu1 %v8387_v45 }
0x2bed   : > { %3586 = vmatpush.msrb.mxu1 %v8390_v20 }
0x2bef   : > { %3587 = vmatpush.msrb.mxu1 %v8393_v57 }
0x2bf1   : > { %3588 = vmatpush.msrb.mxu1 %v8396_v47 }
0x2bf3   : > { %3589 = vmatpush.msrb.mxu1 %v8399_v50 }
0x2bf5   : > { %3590 = vmatpush.msrb.mxu1 %v8402_v25 }
0x2bf7   : > { %3591 = vmatpush.msrb.mxu1 %v8405_v55 }
0x2bf9   : > { %3592 = vmatpush.msrb.mxu1 %v8408_v29 }
0x2bfb   : > { %3593 = vmatpush.msrb.mxu1 %v8435_v42 }
0x2bfd   : > { %3594 = vmatpush.msrb.mxu1 %v8438_v21 }
0x2c5b   : > { %v3344_v1 = vpop.f32.mrf.mxu1 }
0x2c5c   : > { %v3345_v9 = vadd.f32 %v8497_v61, %v3344_v1 }
0x2c5e   : > { %5349 = vtanh.f32 %v3345_v9 }
0x2c63   : > { %v3347_v52 = vpop.f32.mrf.mxu1 }
0x2c64   : > { %v5350_v34 = vpop.eup %5349  ;;  %v3348_v40 = vadd.f32 %v8497_v61, %v3347_v52 }
0x2c65   : > { %v3352_v7 = vmul.f32 %v5350_v34, %v8044_v43  ;;  %v3410_v27 = vmul.f32 2.0, %v5350_v34 }
0x2c66   : > { %5351 = vtanh.f32 %v3348_v40 }
0x2c67   : > { %v3354_v59 = vadd.f32 %v3352_v7, %v8651_v54  ;;  %v3412_v63 = vadd.f32 %v8676_v58, %v3410_v27 }
0x2c69   : > { %3372 = vmatmul.f32.vlgmr.msrb.gmra.mxu2 %v3354_v59 }
0x2c6a   : > { %3608 = vmatpush.msrb.mxu2 %v8342_v3 }
0x2c6c   : > { %v5352_v28 = vpop.eup %5351  ;;  %3609 = vmatpush.msrb.mxu2 %v8347_v24 }
0x2c6d   : > { %v3353_v44 = vmul.f32 %v5352_v28, %v8044_v43  ;;  %v3411_v18 = vmul.f32 2.0, %v5352_v28 }
0x2c6e   : > { %3610 = vmatpush.msrb.mxu2 %v8352_v38 }
0x2c6f   : > { %v3355_v41 = vadd.f32 %v3353_v44, %v8659_v39  ;;  %v3413_v17 = vadd.f32 %v8683_v35, %v3411_v18  ;;  %v8799_v18 = vld [vmem:[#allocation3 + $0x1e0] sm:$0xff] }
0x2c70   : > { %3611 = vmatpush.msrb.mxu2 %v8356_v49 }
0x2c71   : > { %3375 = vmatmul.f32.gmra.mxu2 %v3355_v41 }
0x2c72   : > { %3612 = vmatpush.msrb.mxu2 %v8359_v30 }
0x2c74   : > { %3613 = vmatpush.msrb.mxu2 %v8362_v51 }
0x2c76   : > { %3614 = vmatpush.msrb.mxu2 %v8387_v45 }
0x2c78   : > { %3615 = vmatpush.msrb.mxu2 %v8390_v20 }
0x2c7a   : > { %3616 = vmatpush.msrb.mxu2 %v8393_v57 }
0x2c7c   : > { %3617 = vmatpush.msrb.mxu2 %v8396_v47 }
0x2c7e   : > { %3618 = vmatpush.msrb.mxu2 %v8399_v50 }
0x2c80   : > { %3619 = vmatpush.msrb.mxu2 %v8402_v25 }
0x2c82   : > { %3620 = vmatpush.msrb.mxu2 %v8405_v55 }
0x2c84   : > { %3621 = vmatpush.msrb.mxu2 %v8408_v29 }
0x2c86   : > { %3622 = vmatpush.msrb.mxu2 %v8435_v42 }
0x2c88   : > { %3623 = vmatpush.msrb.mxu2 %v8438_v21 }
0x2cec   : > { %v3373_v5 = vpop.f32.mrf.mxu2 }
0x2ced   : > { %v3374_v26 = vadd.f32 %v8497_v61, %v3373_v5 }
0x2cef   : > { %5353 = vtanh.f32 %v3374_v26 }
0x2cf4   : > { %v3376_v0 = vpop.f32.mrf.mxu2 }
0x2cf5   : > { %v5354_v8 = vpop.eup %5353  ;;  %v3377_v32 = vadd.f32 %v8497_v61, %v3376_v0 }
0x2cf6   : > { %v3381_v11 = vmul.f32 %v5354_v8, %v8154_v14  ;;  %v3414_v16 = vmul.f32 2.0, %v5354_v8 }
0x2cf7   : > { %5355 = vtanh.f32 %v3377_v32 }
0x2cf8   : > { %v3383_v60 = vadd.f32 %v3381_v11, %v8651_v54  ;;  %v3416_v6 = vadd.f32 %v3414_v16, %v3412_v63  ;;  %v8783_v16 = vld [vmem:[#allocation3 + $0x1f8] sm:$0xff] }
0x2cfa   : > { %3401 = vmatmul.f32.vlgmr.msrb.gmra.mxu3 %v3383_v60  ;;  %v8787_v60 = vld [vmem:[#allocation3 + $0x1f0] sm:$0xff] }
0x2cfb   : > { %3637 = vmatpush.msrb.mxu3 %v8342_v3 }
0x2cfd   : > { %v5356_v62 = vpop.eup %5355  ;;  %3638 = vmatpush.msrb.mxu3 %v8347_v24 }
0x2cfe   : > { %v3415_v36 = vmul.f32 2.0, %v5356_v62  ;;  %v3382_v37 = vmul.f32 %v5356_v62, %v8154_v14  ;;  %v8805_v62 = vld [vmem:[#allocation3 + $0x1d8] sm:$0xff] }
0x2cff   : > { %3639 = vmatpush.msrb.mxu3 %v8352_v38 }
0x2d00   : > { %v3384_v2 = vadd.f32 %v3382_v37, %v8659_v39  ;;  %v3417_v23 = vadd.f32 %v3415_v36, %v3413_v17  ;;  %v8811_v17 = vld [vmem:[#allocation3 + $0x1d0] sm:$0xff]  ;;  %v8817_v36 = vld [vmem:[#allocation3 + $0x1c8] sm:$0xff]  ;;  %v8823_v37 = vld [vmem:[#allocation3 + $0x1c0] sm:$0xff] }
0x2d01   : > { %3640 = vmatpush.msrb.mxu3 %v8356_v49 }
0x2d02   : > { %3404 = vmatmul.f32.gmra.mxu3 %v3384_v2  ;;  %v8829_v2 = vld [vmem:[#allocation3 + $0x1b8] sm:$0xff] }
0x2d03   : > { %3641 = vmatpush.msrb.mxu3 %v8359_v30 }
0x2d05   : > { %3642 = vmatpush.msrb.mxu3 %v8362_v51 }
0x2d07   : > { %3643 = vmatpush.msrb.mxu3 %v8387_v45 }
0x2d09   : > { %3644 = vmatpush.msrb.mxu3 %v8390_v20 }
0x2d0b   : > { %3645 = vmatpush.msrb.mxu3 %v8393_v57 }
0x2d0d   : > { %3646 = vmatpush.msrb.mxu3 %v8396_v47 }
0x2d0f   : > { %3647 = vmatpush.msrb.mxu3 %v8399_v50 }
0x2d11   : > { %3648 = vmatpush.msrb.mxu3 %v8402_v25 }
0x2d13   : > { %3649 = vmatpush.msrb.mxu3 %v8405_v55 }
0x2d15   : > { %3650 = vmatpush.msrb.mxu3 %v8408_v29 }
0x2d17   : > { %3651 = vmatpush.msrb.mxu3 %v8435_v42 }
0x2d19   : > { %3652 = vmatpush.msrb.mxu3 %v8438_v21 }
0x2d7d   : > { %v3402_v3 = vpop.f32.mrf.mxu3 }
0x2d7e   : > { %v3403_v24 = vadd.f32 %v8497_v61, %v3402_v3  ;;  %v8840_v3 = vld [vmem:[#allocation3 + $0x1a8] sm:$0xff] }
0x2d80   : > { %5357 = vtanh.f32 %v3403_v24  ;;  %v8843_v24 = vld [vmem:[#allocation3 + $0x1a0] sm:$0xff] }
0x2d85   : > { %v3405_v38 = vpop.f32.mrf.mxu3 }
0x2d86   : > { %v5358_v49 = vpop.eup %5357  ;;  %v3406_v30 = vadd.f32 %v8497_v61, %v3405_v38  ;;  %v8852_v38 = vld [vmem:[#allocation3 + $0x198] sm:$0xff] }
0x2d87   : > { %v3418_v51 = vadd.f32 %v5358_v49, %v3416_v6  ;;  %v8793_v6 = vld [vmem:[#allocation3 + $0x1e8] sm:$0xff]  ;;  %v8855_v49 = vld [vmem:[#allocation3 + $0x190] sm:$0xff] }
0x2d88   : > { %5359 = vtanh.f32 %v3406_v30  ;;  %v8861_v30 = vld [vmem:[#allocation3 + $0x188] sm:$0xff] }
0x2d89   : > { %v3420_v45 = vmul.f32 %v3418_v51, %v8203_v22  ;;  %v8867_v51 = vld [vmem:[#allocation3 + $0x180] sm:$0xff] }
0x2d8b   : > { %v8753_v20 = vadd.f32 %v3420_v45, %v8651_v54 }
0x2d8d   : > { %3440 = vmatmul.f32.vlgmr.msra.gmra.mxu0 %v8753_v20 }
0x2d8e   : > { %v5360_v57 = vpop.eup %5359  ;;  %3711 = vmatpush.msra.mxu0 %v8783_v16 }
0x2d8f   : > { %v3419_v47 = vadd.f32 %v5360_v57, %v3417_v23  ;;  %v8835_v23 = vld [vmem:[#allocation3 + $0x1b0] sm:$0xff] }
0x2d90   : > { %3712 = vmatpush.msra.mxu0 %v8787_v60 }
0x2d91   : > { %v3421_v50 = vmul.f32 %v3419_v47, %v8203_v22 }
0x2d92   : > { %3713 = vmatpush.msra.mxu0 %v8793_v6 }
0x2d93   : > { %v8758_v25 = vadd.f32 %v3421_v50, %v8659_v39 }
0x2d94   : > { %3714 = vmatpush.msra.mxu0 %v8799_v18 }
0x2d95   : > { %3443 = vmatmul.f32.gmra.mxu0 %v8758_v25 }
0x2d96   : > { %3715 = vmatpush.msra.mxu0 %v8805_v62 }
0x2d98   : > { %3716 = vmatpush.msra.mxu0 %v8811_v17 }
0x2d9a   : > { %3717 = vmatpush.msra.mxu0 %v8817_v36 }
0x2d9c   : > { %3718 = vmatpush.msra.mxu0 %v8823_v37 }
0x2d9e   : > { %3719 = vmatpush.msra.mxu0 %v8829_v2 }
0x2da0   : > { %3720 = vmatpush.msra.mxu0 %v8835_v23 }
0x2da2   : > { %3721 = vmatpush.msra.mxu0 %v8840_v3 }
0x2da4   : > { %3722 = vmatpush.msra.mxu0 %v8843_v24 }
0x2da6   : > { %3723 = vmatpush.msra.mxu0 %v8852_v38 }
0x2da8   : > { %3724 = vmatpush.msra.mxu0 %v8855_v49 }
0x2daa   : > { %3725 = vmatpush.msra.mxu0 %v8861_v30 }
0x2dac   : > { %3726 = vmatpush.msra.mxu0 %v8867_v51 }
0x2e0a   : > { %v3441_v55 = vpop.f32.mrf.mxu0 }
0x2e0b   : > { %v3442_v29 = vadd.f32 %v8497_v61, %v3441_v55 }
0x2e0d   : > { %5361 = vtanh.f32 %v3442_v29 }
0x2e12   : > { %v3444_v42 = vpop.f32.mrf.mxu0 }
0x2e13   : > { %v5362_v21 = vpop.eup %5361  ;;  %v3445_v10 = vadd.f32 %v8497_v61, %v3444_v42 }
0x2e14   : > { %v3449_v54 = vmul.f32 %v5362_v21, %v8044_v43 }
0x2e15   : > { %5363 = vtanh.f32 %v3445_v10 }
0x2e16   : > { %v3451_v33 = vadd.f32 %v3449_v54, %v8753_v20 }
0x2e18   : > { %3469 = vmatmul.f32.vlgmr.msra.gmra.mxu1 %v3451_v33 }
0x2e19   : > { %3743 = vmatpush.msra.mxu1 %v8783_v16 }
0x2e1b   : > { %v5364_v12 = vpop.eup %5363  ;;  %3744 = vmatpush.msra.mxu1 %v8787_v60 }
0x2e1c   : > { %v3450_v48 = vmul.f32 %v5364_v12, %v8044_v43 }
0x2e1d   : > { %3745 = vmatpush.msra.mxu1 %v8793_v6 }
0x2e1e   : > { %v3452_v39 = vadd.f32 %v3450_v48, %v8758_v25  ;;  %v8931_v48 = vld [vmem:[#allocation9 + $0x2] ss:$0 sm:$0xff] }
0x2e1f   : > { %3746 = vmatpush.msra.mxu1 %v8799_v18 }
0x2e20   : > { %3472 = vmatmul.f32.gmra.mxu1 %v3452_v39 }
0x2e21   : > { %3747 = vmatpush.msra.mxu1 %v8805_v62 }
0x2e23   : > { %3748 = vmatpush.msra.mxu1 %v8811_v17 }
0x2e25   : > { %3749 = vmatpush.msra.mxu1 %v8817_v36 }
0x2e27   : > { %3750 = vmatpush.msra.mxu1 %v8823_v37 }
0x2e29   : > { %3751 = vmatpush.msra.mxu1 %v8829_v2 }
0x2e2b   : > { %3752 = vmatpush.msra.mxu1 %v8835_v23 }
0x2e2d   : > { %3753 = vmatpush.msra.mxu1 %v8840_v3 }
0x2e2f   : > { %3754 = vmatpush.msra.mxu1 %v8843_v24 }
0x2e31   : > { %3755 = vmatpush.msra.mxu1 %v8852_v38 }
0x2e33   : > { %3756 = vmatpush.msra.mxu1 %v8855_v49 }
0x2e35   : > { %3757 = vmatpush.msra.mxu1 %v8861_v30 }
0x2e37   : > { %3758 = vmatpush.msra.mxu1 %v8867_v51 }
0x2e95   : > { %v3470_v19 = vpop.f32.mrf.mxu1 }
0x2e96   : > { %v3471_v4 = vadd.f32 %v8497_v61, %v3470_v19 }
0x2e98   : > { %5365 = vtanh.f32 %v3471_v4 }
0x2e9d   : > { %v3473_v13 = vpop.f32.mrf.mxu1 }
0x2e9e   : > { %v5366_v58 = vpop.eup %5365  ;;  %v3474_v56 = vadd.f32 %v8497_v61, %v3473_v13 }
0x2e9f   : > { %v3478_v31 = vmul.f32 %v5366_v58, %v8044_v43  ;;  %v3536_v52 = vmul.f32 2.0, %v5366_v58 }
0x2ea0   : > { %5367 = vtanh.f32 %v3474_v56 }
0x2ea1   : > { %v3480_v15 = vadd.f32 %v3478_v31, %v8753_v20  ;;  %v3538_v59 = vadd.f32 %v5362_v21, %v3536_v52  ;;  %v8940_v31 = vld [vmem:[#allocation9 + $0x3] ss:$0 sm:$0xff] }
0x2ea3   : > { %3498 = vmatmul.f32.vlgmr.msra.gmra.mxu2 %v3480_v15  ;;  %v8943_v15 = vld [vmem:[%s5973_s27 + $0x3] sm:$0x1] }
0x2ea4   : > { %3772 = vmatpush.msra.mxu2 %v8783_v16 }
0x2ea6   : > { %v5368_v35 = vpop.eup %5367  ;;  %3773 = vmatpush.msra.mxu2 %v8787_v60 }
0x2ea7   : > { %v3479_v53 = vmul.f32 %v5368_v35, %v8044_v43  ;;  %v3537_v26 = vmul.f32 2.0, %v5368_v35 }
0x2ea8   : > { %3774 = vmatpush.msra.mxu2 %v8793_v6 }
0x2ea9   : > { %v3481_v46 = vadd.f32 %v3479_v53, %v8758_v25  ;;  %v3539_v0 = vadd.f32 %v5364_v12, %v3537_v26 }
0x2eaa   : > { %3775 = vmatpush.msra.mxu2 %v8799_v18 }
0x2eab   : > { %3501 = vmatmul.f32.gmra.mxu2 %v3481_v46 }
0x2eac   : > { %3776 = vmatpush.msra.mxu2 %v8805_v62 }
0x2eae   : > { %3777 = vmatpush.msra.mxu2 %v8811_v17 }
0x2eb0   : > { %3778 = vmatpush.msra.mxu2 %v8817_v36 }
0x2eb2   : > { %3779 = vmatpush.msra.mxu2 %v8823_v37 }
0x2eb4   : > { %3780 = vmatpush.msra.mxu2 %v8829_v2 }
0x2eb6   : > { %3781 = vmatpush.msra.mxu2 %v8835_v23 }
0x2eb8   : > { %3782 = vmatpush.msra.mxu2 %v8840_v3 }
0x2eba   : > { %3783 = vmatpush.msra.mxu2 %v8843_v24 }
0x2ebc   : > { %3784 = vmatpush.msra.mxu2 %v8852_v38 }
0x2ebe   : > { %3785 = vmatpush.msra.mxu2 %v8855_v49 }
0x2ec0   : > { %3786 = vmatpush.msra.mxu2 %v8861_v30 }
0x2ec2   : > { %3787 = vmatpush.msra.mxu2 %v8867_v51 }
0x2f26   : > { %v3499_v1 = vpop.f32.mrf.mxu2 }
0x2f27   : > { %v3500_v9 = vadd.f32 %v8497_v61, %v3499_v1  ;;  %v3702_v1 = vmul.f32 0.0625, %v8943_v15 }
0x2f29   : > { %5369 = vtanh.f32 %v3500_v9 }
0x2f2e   : > { %v3502_v34 = vpop.f32.mrf.mxu2 }
0x2f2f   : > { %v5370_v40 = vpop.eup %5369  ;;  %v3503_v7 = vadd.f32 %v8497_v61, %v3502_v34  ;;  %v8956_v34 = vperm.slane %v3702_v1, 0 }
0x2f30   : > { %v3507_v28 = vmul.f32 %v5370_v40, %v8154_v14  ;;  %v3540_v44 = vmul.f32 2.0, %v5370_v40 }
0x2f31   : > { %5371 = vtanh.f32 %v3503_v7 }
0x2f32   : > { %v3509_v41 = vadd.f32 %v3507_v28, %v8753_v20  ;;  %v8777_v5 = vadd.f32 %v3540_v44, %v3538_v59 }
0x2f34   : > { %3527 = vmatmul.f32.vlgmr.msra.gmra.mxu3 %v3509_v41 }
0x2f35   : > { %3804 = vmatpush.msra.mxu3 %v8783_v16 }
0x2f37   : > { %v5372_v27 = vpop.eup %5371  ;;  %3805 = vmatpush.msra.mxu3 %v8787_v60 }
0x2f38   : > { %v3541_v8 = vmul.f32 2.0, %v5372_v27  ;;  %v3508_v32 = vmul.f32 %v5372_v27, %v8154_v14 }
0x2f39   : > { %3806 = vmatpush.msra.mxu3 %v8793_v6 }
0x2f3a   : > { %v3510_v63 = vadd.f32 %v3508_v32, %v8758_v25  ;;  %v8781_v11 = vadd.f32 %v3541_v8, %v3539_v0 }
0x2f3b   : > { %3807 = vmatpush.msra.mxu3 %v8799_v18 }
0x2f3c   : > { %3530 = vmatmul.f32.gmra.mxu3 %v3510_v63 }
0x2f3d   : > { %3808 = vmatpush.msra.mxu3 %v8805_v62 }
0x2f3f   : > { %3809 = vmatpush.msra.mxu3 %v8811_v17 }
0x2f41   : > { %3810 = vmatpush.msra.mxu3 %v8817_v36 }
0x2f43   : > { %3811 = vmatpush.msra.mxu3 %v8823_v37 }
0x2f45   : > { %3812 = vmatpush.msra.mxu3 %v8829_v2 }
0x2f47   : > { %3813 = vmatpush.msra.mxu3 %v8835_v23 }
0x2f49   : > { %3814 = vmatpush.msra.mxu3 %v8840_v3 }
0x2f4b   : > { %3815 = vmatpush.msra.mxu3 %v8843_v24 }
0x2f4d   : > { %3816 = vmatpush.msra.mxu3 %v8852_v38 }
0x2f4f   : > { %3817 = vmatpush.msra.mxu3 %v8855_v49 }
0x2f51   : > { %3818 = vmatpush.msra.mxu3 %v8861_v30 }
0x2f53   : > { %3819 = vmatpush.msra.mxu3 %v8867_v51 }
0x2fb7   : > { %v3528_v45 = vpop.f32.mrf.mxu3 }
0x2fb8   : > { %v3529_v57 = vadd.f32 %v8497_v61, %v3528_v45 }
0x2fba   : > { %5373 = vtanh.f32 %v3529_v57 }
0x2fbf   : > { %v3531_v47 = vpop.f32.mrf.mxu3 }
0x2fc0   : > { %v5374_v50 = vpop.eup %5373  ;;  %v3532_v55 = vadd.f32 %v8497_v61, %v3531_v47 }
0x2fc1   : > { %v3544_v29 = vadd.f32 %v5374_v50, %v8777_v5 }
0x2fc2   : > { %5375 = vtanh.f32 %v3532_v55 }
0x2fc3   : > { %v3546_v42 = vmul.f32 %v3544_v29, %v8203_v22 }
0x2fc5   : > { %v8884_v21 = vadd.f32 %v3546_v42, %v8753_v20  ;;  %v8899_v20 = vld [vmem:[#allocation2 + $0x28] sm:$0xff] }
0x2fc7   : > { %3566 = vmatmul.f32.vlgmr.msrb.gmra.mxu0 %v8884_v21 }
0x2fc8   : > { %v5376_v10 = vpop.eup %5375  ;;  %3846 = vmatpush.msrb.mxu0 %v8783_v16 }
0x2fc9   : > { %v3545_v54 = vadd.f32 %v5376_v10, %v8781_v11 }
0x2fca   : > { %3847 = vmatpush.msrb.mxu0 %v8787_v60 }
0x2fcb   : > { %v3547_v33 = vmul.f32 %v3545_v54, %v8203_v22 }
0x2fcc   : > { %3848 = vmatpush.msrb.mxu0 %v8793_v6 }
0x2fcd   : > { %v8893_v61 = vadd.f32 %v3547_v33, %v8758_v25  ;;  %v8906_v25 = vld [vmem:[#allocation2 + $0x38] sm:$0xff] }
0x2fce   : > { %3849 = vmatpush.msrb.mxu0 %v8799_v18 }
0x2fcf   : > { %3569 = vmatmul.f32.gmra.mxu0 %v8893_v61 }
0x2fd0   : > { %3850 = vmatpush.msrb.mxu0 %v8805_v62 }
0x2fd2   : > { %3851 = vmatpush.msrb.mxu0 %v8811_v17 }
0x2fd4   : > { %3852 = vmatpush.msrb.mxu0 %v8817_v36 }
0x2fd6   : > { %3853 = vmatpush.msrb.mxu0 %v8823_v37 }
0x2fd7   : > { %3727 = vmatmul.f32.vlgmr.msra.gmra.mxu0 %v8899_v20 }
0x2fd8   : > { %3854 = vmatpush.msrb.mxu0 %v8829_v2 }
0x2fda   : > { %3855 = vmatpush.msrb.mxu0 %v8835_v23 }
0x2fdc   : > { %3856 = vmatpush.msrb.mxu0 %v8840_v3 }
0x2fde   : > { %3857 = vmatpush.msrb.mxu0 %v8843_v24 }
0x2fdf   : > { %3730 = vmatmul.f32.gmra.mxu0 %v8906_v25 }
0x2fe0   : > { %3858 = vmatpush.msrb.mxu0 %v8852_v38 }
0x2fe2   : > { %3859 = vmatpush.msrb.mxu0 %v8855_v49 }
0x2fe4   : > { %3860 = vmatpush.msrb.mxu0 %v8861_v30 }
0x2fe6   : > { %3861 = vmatpush.msrb.mxu0 %v8867_v51 }
0x2fe8   : > { %3972 = vmatpush.msra.mxu0 %v8783_v16 }
0x2fea   : > { %3973 = vmatpush.msra.mxu0 %v8787_v60 }
0x2fec   : > { %3974 = vmatpush.msra.mxu0 %v8793_v6 }
0x2fee   : > { %3975 = vmatpush.msra.mxu0 %v8799_v18 }
0x2ff0   : > { %3976 = vmatpush.msra.mxu0 %v8805_v62 }
0x2ff2   : > { %3977 = vmatpush.msra.mxu0 %v8811_v17 }
0x2ff4   : > { %3978 = vmatpush.msra.mxu0 %v8817_v36 }
0x2ff6   : > { %3979 = vmatpush.msra.mxu0 %v8823_v37 }
0x2ff8   : > { %3980 = vmatpush.msra.mxu0 %v8829_v2 }
0x2ffa   : > { %3981 = vmatpush.msra.mxu0 %v8835_v23 }
0x2ffc   : > { %3982 = vmatpush.msra.mxu0 %v8840_v3 }
0x2ffe   : > { %3983 = vmatpush.msra.mxu0 %v8843_v24 }
0x3000   : > { %3984 = vmatpush.msra.mxu0 %v8852_v38 }
0x3002   : > { %3985 = vmatpush.msra.mxu0 %v8855_v49 }
0x3004   : > { %3986 = vmatpush.msra.mxu0 %v8861_v30 }
0x3006   : > { %3987 = vmatpush.msra.mxu0 %v8867_v51 }
0x3044   : > { %v3567_v12 = vpop.f32.mrf.mxu0 }
0x3045   : > { %v3568_v39 = vadd.f32 %v8931_v48, %v3567_v12 }
0x3047   : > { %5377 = vtanh.f32 %v3568_v39 }
0x304c   : > { %v3570_v19 = vpop.f32.mrf.mxu0 }
0x304d   : > { %v8934_v4 = vpop.eup %5377  ;;  %v3571_v13 = vadd.f32 %v8931_v48, %v3570_v19 }
0x304e   : > { %v3575_v58 = vmul.f32 %v8934_v4, %v8044_v43 }
0x304f   : > { %5379 = vtanh.f32 %v3571_v13 }
0x3050   : > { %v3577_v56 = vadd.f32 %v3575_v58, %v8884_v21 }
0x3052   : > { %3595 = vmatmul.f32.vlgmr.msrb.gmra.mxu1 %v3577_v56 }
0x3053   : > { %3875 = vmatpush.msrb.mxu1 %v8783_v16 }
0x3054   : > { %v3728_v35 = vpop.f32.mrf.mxu0 }
0x3055   : > { %v8946_v53 = vpop.eup %5379  ;;  %v3729_v46 = vadd.f32 %v8940_v31, %v3728_v35  ;;  %3876 = vmatpush.msrb.mxu1 %v8787_v60 }
0x3056   : > { %v3576_v9 = vmul.f32 %v8946_v53, %v8044_v43 }
0x3057   : > { %5381 = vtanh.f32 %v3729_v46  ;;  %3877 = vmatpush.msrb.mxu1 %v8793_v6 }
0x3058   : > { %v3578_v52 = vadd.f32 %v3576_v9, %v8893_v61 }
0x3059   : > { %3878 = vmatpush.msrb.mxu1 %v8799_v18 }
0x305a   : > { %3598 = vmatmul.f32.gmra.mxu1 %v3578_v52 }
0x305b   : > { %3879 = vmatpush.msrb.mxu1 %v8805_v62 }
0x305c   : > { %v3731_v40 = vpop.f32.mrf.mxu0 }
0x305d   : > { %v8959_v7 = vpop.eup %5381  ;;  %v3732_v59 = vadd.f32 %v8940_v31, %v3731_v40  ;;  %3880 = vmatpush.msrb.mxu1 %v8811_v17 }
0x305e   : > { %v3739_v28 = vmul.f32 %v8959_v7, %v8956_v34 }
0x305f   : > { %5383 = vtanh.f32 %v3732_v59  ;;  %3881 = vmatpush.msrb.mxu1 %v8817_v36 }
0x3060   : > { %v3741_v44 = vadd.f32 %v3739_v28, %v8899_v20 }
0x3061   : > { %3882 = vmatpush.msrb.mxu1 %v8823_v37 }
0x3062   : > { %3759 = vmatmul.f32.vlgmr.msra.gmra.mxu1 %v3741_v44 }
0x3063   : > { %3883 = vmatpush.msrb.mxu1 %v8829_v2 }
0x3065   : > { %v8969_v41 = vpop.eup %5383  ;;  %3884 = vmatpush.msrb.mxu1 %v8835_v23 }
0x3066   : > { %v3740_v5 = vmul.f32 %v8969_v41, %v8956_v34 }
0x3067   : > { %3885 = vmatpush.msrb.mxu1 %v8840_v3 }
0x3068   : > { %v3742_v26 = vadd.f32 %v3740_v5, %v8906_v25 }
0x3069   : > { %3886 = vmatpush.msrb.mxu1 %v8843_v24 }
0x306a   : > { %3762 = vmatmul.f32.gmra.mxu1 %v3742_v26 }
0x306b   : > { %3887 = vmatpush.msrb.mxu1 %v8852_v38 }
0x306d   : > { %3888 = vmatpush.msrb.mxu1 %v8855_v49 }
0x306f   : > { %3889 = vmatpush.msrb.mxu1 %v8861_v30 }
0x3071   : > { %3890 = vmatpush.msrb.mxu1 %v8867_v51 }
0x3073   : > { %4001 = vmatpush.msra.mxu1 %v8783_v16 }
0x3075   : > { %4002 = vmatpush.msra.mxu1 %v8787_v60 }
0x3077   : > { %4003 = vmatpush.msra.mxu1 %v8793_v6 }
0x3079   : > { %4004 = vmatpush.msra.mxu1 %v8799_v18 }
0x307b   : > { %4005 = vmatpush.msra.mxu1 %v8805_v62 }
0x307d   : > { %4006 = vmatpush.msra.mxu1 %v8811_v17 }
0x307f   : > { %4007 = vmatpush.msra.mxu1 %v8817_v36 }
0x3081   : > { %4008 = vmatpush.msra.mxu1 %v8823_v37 }
0x3083   : > { %4009 = vmatpush.msra.mxu1 %v8829_v2 }
0x3085   : > { %4010 = vmatpush.msra.mxu1 %v8835_v23 }
0x3087   : > { %4011 = vmatpush.msra.mxu1 %v8840_v3 }
0x3089   : > { %4012 = vmatpush.msra.mxu1 %v8843_v24 }
0x308b   : > { %4013 = vmatpush.msra.mxu1 %v8852_v38 }
0x308d   : > { %4014 = vmatpush.msra.mxu1 %v8855_v49 }
0x308f   : > { %4015 = vmatpush.msra.mxu1 %v8861_v30 }
0x3091   : > { %4016 = vmatpush.msra.mxu1 %v8867_v51 }
0x30cf   : > { %v3596_v27 = vpop.f32.mrf.mxu1 }
0x30d0   : > { %v3597_v0 = vadd.f32 %v8931_v48, %v3596_v27 }
0x30d2   : > { %5385 = vtanh.f32 %v3597_v0 }
0x30d7   : > { %v3599_v8 = vpop.f32.mrf.mxu1 }
0x30d8   : > { %v5386_v32 = vpop.eup %5385  ;;  %v3600_v63 = vadd.f32 %v8931_v48, %v3599_v8  ;;  %v3703_v8 = vmul.f32 0.125, %v8943_v15 }
0x30d9   : > { %v3604_v11 = vmul.f32 %v5386_v32, %v8044_v43  ;;  %v3662_v56 = vmul.f32 2.0, %v5386_v32 }
0x30da   : > { %5387 = vtanh.f32 %v3600_v63 }
0x30db   : > { %v3606_v45 = vadd.f32 %v3604_v11, %v8884_v21  ;;  %v3664_v9 = vadd.f32 %v8934_v4, %v3662_v56 }
0x30dd   : > { %3624 = vmatmul.f32.vlgmr.msrb.gmra.mxu2 %v3606_v45 }
0x30de   : > { %3904 = vmatpush.msrb.mxu2 %v8783_v16 }
0x30df   : > { %v3760_v57 = vpop.f32.mrf.mxu1 }
0x30e0   : > { %v5388_v47 = vpop.eup %5387  ;;  %v3761_v50 = vadd.f32 %v8940_v31, %v3760_v57  ;;  %3905 = vmatpush.msrb.mxu2 %v8787_v60  ;;  %v9066_v57 = vperm.slane %v3703_v8, 0 }
0x30e1   : > { %v3605_v55 = vmul.f32 %v5388_v47, %v8044_v43  ;;  %v3663_v44 = vmul.f32 2.0, %v5388_v47 }
0x30e2   : > { %5389 = vtanh.f32 %v3761_v50  ;;  %3906 = vmatpush.msrb.mxu2 %v8793_v6 }
0x30e3   : > { %v3607_v29 = vadd.f32 %v3605_v55, %v8893_v61  ;;  %v3665_v4 = vadd.f32 %v8946_v53, %v3663_v44 }
0x30e4   : > { %3907 = vmatpush.msrb.mxu2 %v8799_v18 }
0x30e5   : > { %3627 = vmatmul.f32.gmra.mxu2 %v3607_v29 }
0x30e6   : > { %3908 = vmatpush.msrb.mxu2 %v8805_v62 }
0x30e7   : > { %v3763_v42 = vpop.f32.mrf.mxu1 }
0x30e8   : > { %v9009_v10 = vpop.eup %5389  ;;  %v3764_v54 = vadd.f32 %v8940_v31, %v3763_v42  ;;  %3909 = vmatpush.msrb.mxu2 %v8811_v17 }
0x30e9   : > { %v3768_v43 = vmul.f32 %v9009_v10, %v8956_v34  ;;  %v3829_v45 = vmul.f32 2.0, %v9009_v10 }
0x30ea   : > { %5391 = vtanh.f32 %v3764_v54  ;;  %3910 = vmatpush.msrb.mxu2 %v8817_v36 }
0x30eb   : > { %v3770_v33 = vadd.f32 %v3768_v43, %v8899_v20  ;;  %v3831_v50 = vadd.f32 %v8959_v7, %v3829_v45 }
0x30ec   : > { %3911 = vmatpush.msrb.mxu2 %v8823_v37 }
0x30ed   : > { %3788 = vmatmul.f32.vlgmr.msra.gmra.mxu2 %v3770_v33 }
0x30ee   : > { %3912 = vmatpush.msrb.mxu2 %v8829_v2 }
0x30f0   : > { %v9019_v12 = vpop.eup %5391  ;;  %3913 = vmatpush.msrb.mxu2 %v8835_v23 }
0x30f1   : > { %v3769_v39 = vmul.f32 %v9019_v12, %v8956_v34  ;;  %v3830_v54 = vmul.f32 2.0, %v9019_v12 }
0x30f2   : > { %3914 = vmatpush.msrb.mxu2 %v8840_v3 }
0x30f3   : > { %v3771_v19 = vadd.f32 %v3769_v39, %v8906_v25  ;;  %v3832_v7 = vadd.f32 %v8969_v41, %v3830_v54 }
0x30f4   : > { %3915 = vmatpush.msrb.mxu2 %v8843_v24 }
0x30f5   : > { %3791 = vmatmul.f32.gmra.mxu2 %v3771_v19 }
0x30f6   : > { %3916 = vmatpush.msrb.mxu2 %v8852_v38 }
0x30f8   : > { %3917 = vmatpush.msrb.mxu2 %v8855_v49 }
0x30fa   : > { %3918 = vmatpush.msrb.mxu2 %v8861_v30 }
0x30fc   : > { %3919 = vmatpush.msrb.mxu2 %v8867_v51 }
0x30fe   : > { %4030 = vmatpush.msra.mxu2 %v8783_v16 }
0x3100   : > { %4031 = vmatpush.msra.mxu2 %v8787_v60 }
0x3102   : > { %4032 = vmatpush.msra.mxu2 %v8793_v6 }
0x3104   : > { %4033 = vmatpush.msra.mxu2 %v8799_v18 }
0x3106   : > { %4034 = vmatpush.msra.mxu2 %v8805_v62 }
0x3108   : > { %4035 = vmatpush.msra.mxu2 %v8811_v17 }
0x310a   : > { %4036 = vmatpush.msra.mxu2 %v8817_v36 }
0x310c   : > { %4037 = vmatpush.msra.mxu2 %v8823_v37 }
0x310e   : > { %4038 = vmatpush.msra.mxu2 %v8829_v2 }
0x3110   : > { %4039 = vmatpush.msra.mxu2 %v8835_v23 }
0x3112   : > { %4040 = vmatpush.msra.mxu2 %v8840_v3 }
0x3114   : > { %4041 = vmatpush.msra.mxu2 %v8843_v24 }
0x3116   : > { %4042 = vmatpush.msra.mxu2 %v8852_v38 }
0x3118   : > { %4043 = vmatpush.msra.mxu2 %v8855_v49 }
0x311a   : > { %4044 = vmatpush.msra.mxu2 %v8861_v30 }
0x311c   : > { %4045 = vmatpush.msra.mxu2 %v8867_v51 }
0x3160   : > { %v3625_v13 = vpop.f32.mrf.mxu2 }
0x3161   : > { %v3626_v58 = vadd.f32 %v8931_v48, %v3625_v13 }
0x3163   : > { %5393 = vtanh.f32 %v3626_v58 }
0x3168   : > { %v3628_v35 = vpop.f32.mrf.mxu2 }
0x3169   : > { %v5394_v46 = vpop.eup %5393  ;;  %v3629_v1 = vadd.f32 %v8931_v48, %v3628_v35 }
0x316a   : > { %v3633_v52 = vmul.f32 %v5394_v46, %v8154_v14  ;;  %v3666_v40 = vmul.f32 2.0, %v5394_v46 }
0x316b   : > { %5395 = vtanh.f32 %v3629_v1 }
0x316c   : > { %v3635_v59 = vadd.f32 %v3633_v52, %v8884_v21  ;;  %v9052_v28 = vadd.f32 %v3666_v40, %v3664_v9 }
0x316e   : > { %3653 = vmatmul.f32.vlgmr.msrb.gmra.mxu3 %v3635_v59 }
0x316f   : > { %3933 = vmatpush.msrb.mxu3 %v8783_v16 }
0x3170   : > { %v3789_v5 = vpop.f32.mrf.mxu2 }
0x3171   : > { %v5396_v26 = vpop.eup %5395  ;;  %v3790_v27 = vadd.f32 %v8940_v31, %v3789_v5  ;;  %3934 = vmatpush.msrb.mxu3 %v8787_v60 }
0x3172   : > { %v3667_v0 = vmul.f32 2.0, %v5396_v26  ;;  %v3634_v32 = vmul.f32 %v5396_v26, %v8154_v14 }
0x3173   : > { %5397 = vtanh.f32 %v3790_v27  ;;  %3935 = vmatpush.msrb.mxu3 %v8793_v6 }
0x3174   : > { %v3636_v63 = vadd.f32 %v3634_v32, %v8893_v61  ;;  %v9062_v11 = vadd.f32 %v3667_v0, %v3665_v4 }
0x3175   : > { %3936 = vmatpush.msrb.mxu3 %v8799_v18 }
0x3176   : > { %3656 = vmatmul.f32.gmra.mxu3 %v3636_v63 }
0x3177   : > { %3937 = vmatpush.msrb.mxu3 %v8805_v62 }
0x3178   : > { %v3792_v53 = vpop.f32.mrf.mxu2 }
0x3179   : > { %v5398_v47 = vpop.eup %5397  ;;  %v3793_v14 = vadd.f32 %v8940_v31, %v3792_v53  ;;  %3938 = vmatpush.msrb.mxu3 %v8811_v17 }
0x317a   : > { %v3800_v55 = vmul.f32 %v5398_v47, %v9066_v57  ;;  %v3833_v29 = vmul.f32 2.0, %v5398_v47 }
0x317b   : > { %5399 = vtanh.f32 %v3793_v14  ;;  %3939 = vmatpush.msrb.mxu3 %v8817_v36 }
0x317c   : > { %v3802_v42 = vadd.f32 %v3800_v55, %v8899_v20  ;;  %v3835_v10 = vadd.f32 %v3833_v29, %v3831_v50 }
0x317d   : > { %3940 = vmatpush.msrb.mxu3 %v8823_v37 }
0x317e   : > { %3820 = vmatmul.f32.vlgmr.msra.gmra.mxu3 %v3802_v42 }
0x317f   : > { %3941 = vmatpush.msrb.mxu3 %v8829_v2 }
0x3181   : > { %v5400_v43 = vpop.eup %5399  ;;  %3942 = vmatpush.msrb.mxu3 %v8835_v23 }
0x3182   : > { %v3834_v33 = vmul.f32 2.0, %v5400_v43  ;;  %v3801_v39 = vmul.f32 %v5400_v43, %v9066_v57 }
0x3183   : > { %3943 = vmatpush.msrb.mxu3 %v8840_v3 }
0x3184   : > { %v3803_v19 = vadd.f32 %v3801_v39, %v8906_v25  ;;  %v3836_v13 = vadd.f32 %v3834_v33, %v3832_v7 }
0x3185   : > { %3944 = vmatpush.msrb.mxu3 %v8843_v24 }
0x3186   : > { %3823 = vmatmul.f32.gmra.mxu3 %v3803_v19 }
0x3187   : > { %3945 = vmatpush.msrb.mxu3 %v8852_v38 }
0x3189   : > { %3946 = vmatpush.msrb.mxu3 %v8855_v49 }
0x318b   : > { %3947 = vmatpush.msrb.mxu3 %v8861_v30 }
0x318d   : > { %3948 = vmatpush.msrb.mxu3 %v8867_v51 }
0x318f   : > { %4059 = vmatpush.msra.mxu3 %v8783_v16 }
0x3191   : > { %4060 = vmatpush.msra.mxu3 %v8787_v60 }
0x3193   : > { %4061 = vmatpush.msra.mxu3 %v8793_v6 }
0x3195   : > { %4062 = vmatpush.msra.mxu3 %v8799_v18 }
0x3197   : > { %4063 = vmatpush.msra.mxu3 %v8805_v62 }
0x3199   : > { %4064 = vmatpush.msra.mxu3 %v8811_v17 }
0x319b   : > { %4065 = vmatpush.msra.mxu3 %v8817_v36 }
0x319d   : > { %4066 = vmatpush.msra.mxu3 %v8823_v37 }
0x319f   : > { %4067 = vmatpush.msra.mxu3 %v8829_v2 }
0x31a1   : > { %4068 = vmatpush.msra.mxu3 %v8835_v23 }
0x31a3   : > { %4069 = vmatpush.msra.mxu3 %v8840_v3 }
0x31a5   : > { %4070 = vmatpush.msra.mxu3 %v8843_v24 }
0x31a7   : > { %4071 = vmatpush.msra.mxu3 %v8852_v38 }
0x31a9   : > { %4072 = vmatpush.msra.mxu3 %v8855_v49 }
0x31ab   : > { %4073 = vmatpush.msra.mxu3 %v8861_v30 }
0x31ad   : > { %4074 = vmatpush.msra.mxu3 %v8867_v51 }
0x31f1   : > { %v3654_v41 = vpop.f32.mrf.mxu3 }
0x31f2   : > { %v3655_v12 = vadd.f32 %v8931_v48, %v3654_v41 }
0x31f4   : > { %5401 = vtanh.f32 %v3655_v12 }
0x31f9   : > { %v3657_v58 = vpop.f32.mrf.mxu3 }
0x31fa   : > { %v5402_v56 = vpop.eup %5401  ;;  %v3658_v35 = vadd.f32 %v8931_v48, %v3657_v58  ;;  %v3704_v48 = vmul.f32 0.020833334, %v8943_v15 }
0x31fb   : > { %v3670_v46 = vadd.f32 %v5402_v56, %v9052_v28 }
0x31fc   : > { %5403 = vtanh.f32 %v3658_v35  ;;  %v9115_v26 = vperm.slane %v3704_v48, 0 }
0x31fd   : > { %v3672_v1 = vmul.f32 %v3670_v46, %v8203_v22 }
0x31ff   : > { %v3674_v9 = vadd.f32 %v3672_v1, %v8884_v21 }
0x3201   : > { %3676 = vst [vmem:[#allocation2 + $0x8] sm:$0xff] %v3674_v9  ;;  %v3821_v52 = vpop.f32.mrf.mxu3 }
0x3202   : > { %v5404_v40 = vpop.eup %5403  ;;  %4894 = vst [vmem:[%s5980_s6 + $0x20] sm:$0xff] %v3674_v9  ;;  %v3822_v59 = vadd.f32 %v8940_v31, %v3821_v52 }
0x3203   : > { %v3671_v44 = vadd.f32 %v5404_v40, %v9062_v11 }
0x3204   : > { %5405 = vtanh.f32 %v3822_v59 }
0x3205   : > { %v3673_v5 = vmul.f32 %v3671_v44, %v8203_v22 }
0x3207   : > { %v3675_v28 = vadd.f32 %v3673_v5, %v8893_v61 }
0x3209   : > { %3677 = vst [vmem:[#allocation2 + $0x20] sm:$0xff] %v3675_v28  ;;  %v3824_v27 = vpop.f32.mrf.mxu3 }
0x320a   : > { %v5406_v21 = vpop.eup %5405  ;;  %4895 = vst [vmem:[%s5980_s6 + $0x28] sm:$0xff] %v3675_v28  ;;  %v3825_v4 = vadd.f32 %v8940_v31, %v3824_v27 }
0x320b   : > { %v3837_v0 = vadd.f32 %v5406_v21, %v3835_v10 }
0x320c   : > { %5407 = vtanh.f32 %v3825_v4 }
0x320d   : > { %v3842_v8 = vmul.f32 %v9115_v26, %v3837_v0 }
0x320f   : > { %v9121_v32 = vadd.f32 %v3842_v8, %v8899_v20 }
0x3211   : > { %3862 = vmatmul.f32.vlgmr.msrb.gmra.mxu0 %v9121_v32 }
0x3212   : > { %v5408_v22 = vpop.eup %5407  ;;  %4098 = vmatpush.msrb.mxu0 %v8783_v16 }
0x3213   : > { %v3838_v61 = vadd.f32 %v5408_v22, %v3836_v13 }
0x3214   : > { %4099 = vmatpush.msrb.mxu0 %v8787_v60 }
0x3215   : > { %v3843_v15 = vmul.f32 %v9115_v26, %v3838_v61 }
0x3216   : > { %4100 = vmatpush.msrb.mxu0 %v8793_v6 }
0x3217   : > { %v9129_v63 = vadd.f32 %v3843_v15, %v8906_v25 }
0x3218   : > { %4101 = vmatpush.msrb.mxu0 %v8799_v18 }
0x3219   : > { %3865 = vmatmul.f32.gmra.mxu0 %v9129_v63 }
0x321a   : > { %4102 = vmatpush.msrb.mxu0 %v8805_v62 }
0x321c   : > { %4103 = vmatpush.msrb.mxu0 %v8811_v17 }
0x321e   : > { %4104 = vmatpush.msrb.mxu0 %v8817_v36 }
0x3220   : > { %4105 = vmatpush.msrb.mxu0 %v8823_v37 }
0x3222   : > { %4106 = vmatpush.msrb.mxu0 %v8829_v2 }
0x3224   : > { %4107 = vmatpush.msrb.mxu0 %v8835_v23 }
0x3226   : > { %4108 = vmatpush.msrb.mxu0 %v8840_v3 }
0x3228   : > { %4109 = vmatpush.msrb.mxu0 %v8843_v24 }
0x322a   : > { %4110 = vmatpush.msrb.mxu0 %v8852_v38 }
0x322c   : > { %4111 = vmatpush.msrb.mxu0 %v8855_v49 }
0x322e   : > { %4112 = vmatpush.msrb.mxu0 %v8861_v30 }
0x3230   : > { %4113 = vmatpush.msrb.mxu0 %v8867_v51 }
0x328e   : > { %v3863_v20 = vpop.f32.mrf.mxu0 }
0x328f   : > { %v3864_v25 = vadd.f32 %v8940_v31, %v3863_v20 }
0x3291   : > { %5409 = vtanh.f32 %v3864_v25 }
0x3296   : > { %v3866_v11 = vpop.f32.mrf.mxu0 }
0x3297   : > { %v9146_v45 = vpop.eup %5409  ;;  %v3867_v53 = vadd.f32 %v8940_v31, %v3866_v11 }
0x3298   : > { %v3871_v47 = vmul.f32 %v9146_v45, %v8956_v34 }
0x3299   : > { %5411 = vtanh.f32 %v3867_v53 }
0x329a   : > { %v3873_v14 = vadd.f32 %v3871_v47, %v9121_v32 }
0x329c   : > { %3891 = vmatmul.f32.vlgmr.msrb.gmra.mxu1 %v3873_v14 }
0x329d   : > { %4127 = vmatpush.msrb.mxu1 %v8783_v16 }
0x329f   : > { %v9153_v50 = vpop.eup %5411  ;;  %4128 = vmatpush.msrb.mxu1 %v8787_v60 }
0x32a0   : > { %v3872_v55 = vmul.f32 %v9153_v50, %v8956_v34 }
0x32a1   : > { %4129 = vmatpush.msrb.mxu1 %v8793_v6 }
0x32a2   : > { %v3874_v29 = vadd.f32 %v3872_v55, %v9129_v63 }
0x32a3   : > { %4130 = vmatpush.msrb.mxu1 %v8799_v18 }
0x32a4   : > { %3894 = vmatmul.f32.gmra.mxu1 %v3874_v29  ;;  %v9259_v29 = vld [vmem:[#allocation3 + $0x1f0] sm:$0xff] }
0x32a5   : > { %4131 = vmatpush.msrb.mxu1 %v8805_v62 }
0x32a7   : > { %4132 = vmatpush.msrb.mxu1 %v8811_v17 }
0x32a9   : > { %4133 = vmatpush.msrb.mxu1 %v8817_v36 }
0x32ab   : > { %4134 = vmatpush.msrb.mxu1 %v8823_v37 }
0x32ad   : > { %4135 = vmatpush.msrb.mxu1 %v8829_v2 }
0x32af   : > { %4136 = vmatpush.msrb.mxu1 %v8835_v23 }
0x32b1   : > { %4137 = vmatpush.msrb.mxu1 %v8840_v3 }
0x32b3   : > { %4138 = vmatpush.msrb.mxu1 %v8843_v24 }
0x32b5   : > { %4139 = vmatpush.msrb.mxu1 %v8852_v38 }
0x32b7   : > { %4140 = vmatpush.msrb.mxu1 %v8855_v49 }
0x32b9   : > { %4141 = vmatpush.msrb.mxu1 %v8861_v30 }
0x32bb   : > { %4142 = vmatpush.msrb.mxu1 %v8867_v51 }
0x3319   : > { %v3892_v42 = vpop.f32.mrf.mxu1 }
0x331a   : > { %v3893_v10 = vadd.f32 %v8940_v31, %v3892_v42 }
0x331c   : > { %5413 = vtanh.f32 %v3893_v10  ;;  %v9264_v10 = vld [vmem:[#allocation3 + $0x1e8] sm:$0xff] }
0x3321   : > { %v3895_v54 = vpop.f32.mrf.mxu1 }
0x3322   : > { %v5414_v43 = vpop.eup %5413  ;;  %v3896_v7 = vadd.f32 %v8940_v31, %v3895_v54 }
0x3323   : > { %v3900_v33 = vmul.f32 %v5414_v43, %v8956_v34  ;;  %v3958_v56 = vmul.f32 2.0, %v5414_v43  ;;  %v9268_v43 = vld [vmem:[#allocation3 + $0x1e0] sm:$0xff] }
0x3324   : > { %5415 = vtanh.f32 %v3896_v7  ;;  %v9271_v7 = vld [vmem:[#allocation3 + $0x1d8] sm:$0xff] }
0x3325   : > { %v3902_v39 = vadd.f32 %v3900_v33, %v9121_v32  ;;  %v3960_v9 = vadd.f32 %v9146_v45, %v3958_v56  ;;  %v9274_v33 = vld [vmem:[#allocation3 + $0x1d0] sm:$0xff]  ;;  %v9311_v56 = vld [vmem:[#allocation3 + $0x1a8] sm:$0xff] }
0x3327   : > { %3920 = vmatmul.f32.vlgmr.msrb.gmra.mxu2 %v3902_v39 }
0x3328   : > { %4156 = vmatpush.msrb.mxu2 %v8783_v16 }
0x332a   : > { %v5416_v19 = vpop.eup %5415  ;;  %4157 = vmatpush.msrb.mxu2 %v8787_v60 }
0x332b   : > { %v3901_v13 = vmul.f32 %v5416_v19, %v8956_v34  ;;  %v3959_v5 = vmul.f32 2.0, %v5416_v19 }
0x332c   : > { %4158 = vmatpush.msrb.mxu2 %v8793_v6 }
0x332d   : > { %v3903_v41 = vadd.f32 %v3901_v13, %v9129_v63  ;;  %v3961_v28 = vadd.f32 %v9153_v50, %v3959_v5  ;;  %v9299_v13 = vld [vmem:[#allocation3 + $0x1c8] sm:$0xff] }
0x332e   : > { %4159 = vmatpush.msrb.mxu2 %v8799_v18 }
0x332f   : > { %3923 = vmatmul.f32.gmra.mxu2 %v3903_v41  ;;  %v9302_v41 = vld [vmem:[#allocation3 + $0x1c0] sm:$0xff] }
0x3330   : > { %4160 = vmatpush.msrb.mxu2 %v8805_v62 }
0x3332   : > { %4161 = vmatpush.msrb.mxu2 %v8811_v17 }
0x3334   : > { %4162 = vmatpush.msrb.mxu2 %v8817_v36 }
0x3336   : > { %4163 = vmatpush.msrb.mxu2 %v8823_v37 }
0x3338   : > { %4164 = vmatpush.msrb.mxu2 %v8829_v2 }
0x333a   : > { %4165 = vmatpush.msrb.mxu2 %v8835_v23 }
0x333c   : > { %4166 = vmatpush.msrb.mxu2 %v8840_v3 }
0x333e   : > { %4167 = vmatpush.msrb.mxu2 %v8843_v24 }
0x3340   : > { %4168 = vmatpush.msrb.mxu2 %v8852_v38 }
0x3342   : > { %4169 = vmatpush.msrb.mxu2 %v8855_v49 }
0x3344   : > { %4170 = vmatpush.msrb.mxu2 %v8861_v30 }
0x3346   : > { %4171 = vmatpush.msrb.mxu2 %v8867_v51 }
0x33aa   : > { %v3921_v12 = vpop.f32.mrf.mxu2 }
0x33ab   : > { %v3922_v58 = vadd.f32 %v8940_v31, %v3921_v12  ;;  %v9305_v12 = vld [vmem:[#allocation3 + $0x1b8] sm:$0xff] }
0x33ad   : > { %5417 = vtanh.f32 %v3922_v58  ;;  %v9308_v58 = vld [vmem:[#allocation3 + $0x1b0] sm:$0xff] }
0x33b2   : > { %v3924_v35 = vpop.f32.mrf.mxu2 }
0x33b3   : > { %v5418_v46 = vpop.eup %5417  ;;  %v3925_v1 = vadd.f32 %v8940_v31, %v3924_v35  ;;  %v9314_v35 = vld [vmem:[#allocation3 + $0x1a0] sm:$0xff] }
0x33b4   : > { %v3929_v52 = vmul.f32 %v5418_v46, %v9066_v57  ;;  %v3962_v40 = vmul.f32 2.0, %v5418_v46  ;;  %v9317_v46 = vld [vmem:[#allocation3 + $0x198] sm:$0xff] }
0x33b5   : > { %5419 = vtanh.f32 %v3925_v1  ;;  %v9320_v1 = vld [vmem:[#allocation3 + $0x190] sm:$0xff] }
0x33b6   : > { %v3931_v59 = vadd.f32 %v3929_v52, %v9121_v32  ;;  %v3964_v44 = vadd.f32 %v3962_v40, %v3960_v9 }
0x33b8   : > { %3949 = vmatmul.f32.vlgmr.msrb.gmra.mxu3 %v3931_v59 }
0x33b9   : > { %4185 = vmatpush.msrb.mxu3 %v8783_v16 }
0x33bb   : > { %v5420_v48 = vpop.eup %5419  ;;  %4186 = vmatpush.msrb.mxu3 %v8787_v60 }
0x33bc   : > { %v3963_v27 = vmul.f32 2.0, %v5420_v48  ;;  %v3930_v21 = vmul.f32 %v5420_v48, %v9066_v57 }
0x33bd   : > { %4187 = vmatpush.msrb.mxu3 %v8793_v6 }
0x33be   : > { %v3932_v4 = vadd.f32 %v3930_v21, %v9129_v63  ;;  %v3965_v0 = vadd.f32 %v3963_v27, %v3961_v28 }
0x33bf   : > { %4188 = vmatpush.msrb.mxu3 %v8799_v18 }
0x33c0   : > { %3952 = vmatmul.f32.gmra.mxu3 %v3932_v4 }
0x33c1   : > { %4189 = vmatpush.msrb.mxu3 %v8805_v62 }
0x33c3   : > { %4190 = vmatpush.msrb.mxu3 %v8811_v17 }
0x33c5   : > { %4191 = vmatpush.msrb.mxu3 %v8817_v36 }
0x33c7   : > { %4192 = vmatpush.msrb.mxu3 %v8823_v37 }
0x33c9   : > { %4193 = vmatpush.msrb.mxu3 %v8829_v2 }
0x33cb   : > { %4194 = vmatpush.msrb.mxu3 %v8835_v23 }
0x33cd   : > { %4195 = vmatpush.msrb.mxu3 %v8840_v3 }
0x33cf   : > { %4196 = vmatpush.msrb.mxu3 %v8843_v24 }
0x33d1   : > { %4197 = vmatpush.msrb.mxu3 %v8852_v38 }
0x33d3   : > { %4198 = vmatpush.msrb.mxu3 %v8855_v49 }
0x33d5   : > { %4199 = vmatpush.msrb.mxu3 %v8861_v30 }
0x33d7   : > { %4200 = vmatpush.msrb.mxu3 %v8867_v51 }
0x343b   : > { %v3950_v8 = vpop.f32.mrf.mxu3 }
0x343c   : > { %v3951_v22 = vadd.f32 %v8940_v31, %v3950_v8 }
0x343e   : > { %5421 = vtanh.f32 %v3951_v22 }
0x3443   : > { %v3953_v61 = vpop.f32.mrf.mxu3 }
0x3444   : > { %v5422_v15 = vpop.eup %5421  ;;  %v3954_v20 = vadd.f32 %v8940_v31, %v3953_v61 }
0x3445   : > { %v3966_v25 = vadd.f32 %v5422_v15, %v3964_v44 }
0x3446   : > { %5423 = vtanh.f32 %v3954_v20  ;;  %v9347_v20 = vld [vmem:[#allocation3 + $0x188] sm:$0xff] }
0x3447   : > { %v3968_v11 = vmul.f32 %v3966_v25, %v9115_v26  ;;  %v9350_v25 = vld [vmem:[#allocation3 + $0x180] sm:$0xff] }
0x3449   : > { %v9223_v45 = vadd.f32 %v3968_v11, %v9121_v32 }
0x344b   : > { %3988 = vmatmul.f32.vlgmr.msra.gmra.mxu0 %v9223_v45 }
0x344c   : > { %v5424_v53 = vpop.eup %5423  ;;  %4224 = vmatpush.msra.mxu0 %v8783_v16 }
0x344d   : > { %v3967_v47 = vadd.f32 %v5424_v53, %v3965_v0 }
0x344e   : > { %4225 = vmatpush.msra.mxu0 %v8787_v60 }
0x344f   : > { %v3969_v14 = vmul.f32 %v3967_v47, %v9115_v26 }
0x3450   : > { %4226 = vmatpush.msra.mxu0 %v8793_v6 }
0x3451   : > { %v9231_v50 = vadd.f32 %v3969_v14, %v9129_v63  ;;  %v9254_v63 = vld [vmem:[#allocation3 + $0x1f8] sm:$0xff] }
0x3452   : > { %4227 = vmatpush.msra.mxu0 %v8799_v18 }
0x3453   : > { %3991 = vmatmul.f32.gmra.mxu0 %v9231_v50 }
0x3454   : > { %4228 = vmatpush.msra.mxu0 %v8805_v62 }
0x3456   : > { %4229 = vmatpush.msra.mxu0 %v8811_v17 }
0x3458   : > { %4230 = vmatpush.msra.mxu0 %v8817_v36 }
0x345a   : > { %4231 = vmatpush.msra.mxu0 %v8823_v37 }
0x345c   : > { %4232 = vmatpush.msra.mxu0 %v8829_v2 }
0x345e   : > { %4233 = vmatpush.msra.mxu0 %v8835_v23 }
0x3460   : > { %4234 = vmatpush.msra.mxu0 %v8840_v3 }
0x3462   : > { %4235 = vmatpush.msra.mxu0 %v8843_v24 }
0x3464   : > { %4236 = vmatpush.msra.mxu0 %v8852_v38 }
0x3466   : > { %4237 = vmatpush.msra.mxu0 %v8855_v49 }
0x3468   : > { %4238 = vmatpush.msra.mxu0 %v8861_v30 }
0x346a   : > { %4239 = vmatpush.msra.mxu0 %v8867_v51 }
0x34c8   : > { %v3989_v16 = vpop.f32.mrf.mxu0 }
0x34c9   : > { %v3990_v60 = vadd.f32 %v8940_v31, %v3989_v16 }
0x34cb   : > { %5425 = vtanh.f32 %v3990_v60 }
0x34d0   : > { %v3992_v6 = vpop.f32.mrf.mxu0 }
0x34d1   : > { %v9248_v18 = vpop.eup %5425  ;;  %v3993_v62 = vadd.f32 %v8940_v31, %v3992_v6 }
0x34d2   : > { %v3997_v17 = vmul.f32 %v9248_v18, %v8956_v34 }
0x34d3   : > { %5427 = vtanh.f32 %v3993_v62 }
0x34d4   : > { %v3999_v32 = vadd.f32 %v3997_v17, %v9223_v45 }
0x34d6   : > { %4017 = vmatmul.f32.vlgmr.msra.gmra.mxu1 %v3999_v32 }
0x34d7   : > { %4253 = vmatpush.msra.mxu1 %v9254_v63 }
0x34d9   : > { %v9257_v55 = vpop.eup %5427  ;;  %4254 = vmatpush.msra.mxu1 %v9259_v29 }
0x34da   : > { %v3998_v42 = vmul.f32 %v9257_v55, %v8956_v34 }
0x34db   : > { %4255 = vmatpush.msra.mxu1 %v9264_v10 }
0x34dc   : > { %v4000_v54 = vadd.f32 %v3998_v42, %v9231_v50 }
0x34dd   : > { %4256 = vmatpush.msra.mxu1 %v9268_v43 }
0x34de   : > { %4020 = vmatmul.f32.gmra.mxu1 %v4000_v54 }
0x34df   : > { %4257 = vmatpush.msra.mxu1 %v9271_v7 }
0x34e1   : > { %4258 = vmatpush.msra.mxu1 %v9274_v33 }
0x34e3   : > { %4259 = vmatpush.msra.mxu1 %v8817_v36 }
0x34e5   : > { %4260 = vmatpush.msra.mxu1 %v8823_v37 }
0x34e7   : > { %4261 = vmatpush.msra.mxu1 %v8829_v2 }
0x34e9   : > { %4262 = vmatpush.msra.mxu1 %v8835_v23 }
0x34eb   : > { %4263 = vmatpush.msra.mxu1 %v8840_v3 }
0x34ed   : > { %4264 = vmatpush.msra.mxu1 %v8843_v24 }
0x34ef   : > { %4265 = vmatpush.msra.mxu1 %v8852_v38 }
0x34f1   : > { %4266 = vmatpush.msra.mxu1 %v8855_v49 }
0x34f3   : > { %4267 = vmatpush.msra.mxu1 %v8861_v30 }
0x34f5   : > { %4268 = vmatpush.msra.mxu1 %v8867_v51 }
0x3553   : > { %v4018_v39 = vpop.f32.mrf.mxu1 }
0x3554   : > { %v4019_v36 = vadd.f32 %v8940_v31, %v4018_v39 }
0x3556   : > { %5429 = vtanh.f32 %v4019_v36 }
0x355b   : > { %v4021_v37 = vpop.f32.mrf.mxu1 }
0x355c   : > { %v5430_v2 = vpop.eup %5429  ;;  %v4022_v23 = vadd.f32 %v8940_v31, %v4021_v37 }
0x355d   : > { %v4026_v3 = vmul.f32 %v5430_v2, %v8956_v34  ;;  %v4084_v40 = vmul.f32 2.0, %v5430_v2 }
0x355e   : > { %5431 = vtanh.f32 %v4022_v23 }
0x355f   : > { %v4028_v24 = vadd.f32 %v4026_v3, %v9223_v45  ;;  %v4086_v48 = vadd.f32 %v9248_v18, %v4084_v40 }
0x3561   : > { %4046 = vmatmul.f32.vlgmr.msra.gmra.mxu2 %v4028_v24  ;;  %v9409_v24 = vld [vmem:[#allocation9 + $0x3] ss:$0 sm:$0xff] }
0x3562   : > { %4282 = vmatpush.msra.mxu2 %v9254_v63 }
0x3564   : > { %v5432_v38 = vpop.eup %5431  ;;  %4283 = vmatpush.msra.mxu2 %v9259_v29 }
0x3565   : > { %v4027_v49 = vmul.f32 %v5432_v38, %v8956_v34  ;;  %v4085_v4 = vmul.f32 2.0, %v5432_v38 }
0x3566   : > { %4284 = vmatpush.msra.mxu2 %v9264_v10 }
0x3567   : > { %v4029_v19 = vadd.f32 %v4027_v49, %v9231_v50  ;;  %v4087_v0 = vadd.f32 %v9257_v55, %v4085_v4 }
0x3568   : > { %4285 = vmatpush.msra.mxu2 %v9268_v43 }
0x3569   : > { %4049 = vmatmul.f32.gmra.mxu2 %v4029_v19 }
0x356a   : > { %4286 = vmatpush.msra.mxu2 %v9271_v7 }
0x356c   : > { %4287 = vmatpush.msra.mxu2 %v9274_v33 }
0x356e   : > { %4288 = vmatpush.msra.mxu2 %v9299_v13 }
0x3570   : > { %4289 = vmatpush.msra.mxu2 %v9302_v41 }
0x3572   : > { %4290 = vmatpush.msra.mxu2 %v9305_v12 }
0x3574   : > { %4291 = vmatpush.msra.mxu2 %v9308_v58 }
0x3576   : > { %4292 = vmatpush.msra.mxu2 %v9311_v56 }
0x3578   : > { %4293 = vmatpush.msra.mxu2 %v9314_v35 }
0x357a   : > { %4294 = vmatpush.msra.mxu2 %v9317_v46 }
0x357c   : > { %4295 = vmatpush.msra.mxu2 %v9320_v1 }
0x357e   : > { %4296 = vmatpush.msra.mxu2 %v8861_v30 }
0x3580   : > { %4297 = vmatpush.msra.mxu2 %v8867_v51 }
0x35e4   : > { %v4047_v9 = vpop.f32.mrf.mxu2 }
0x35e5   : > { %v4048_v52 = vadd.f32 %v8940_v31, %v4047_v9 }
0x35e7   : > { %5433 = vtanh.f32 %v4048_v52 }
0x35ec   : > { %v4050_v59 = vpop.f32.mrf.mxu2 }
0x35ed   : > { %v5434_v44 = vpop.eup %5433  ;;  %v4051_v5 = vadd.f32 %v8940_v31, %v4050_v59 }
0x35ee   : > { %v4055_v28 = vmul.f32 %v5434_v44, %v9066_v57  ;;  %v4088_v27 = vmul.f32 2.0, %v5434_v44 }
0x35ef   : > { %5435 = vtanh.f32 %v4051_v5 }
0x35f0   : > { %v4057_v21 = vadd.f32 %v4055_v28, %v9223_v45  ;;  %v4090_v30 = vadd.f32 %v4088_v27, %v4086_v48 }
0x35f2   : > { %4075 = vmatmul.f32.vlgmr.msra.gmra.mxu3 %v4057_v21 }
0x35f3   : > { %4311 = vmatpush.msra.mxu3 %v9254_v63 }
0x35f5   : > { %v5436_v51 = vpop.eup %5435  ;;  %4312 = vmatpush.msra.mxu3 %v9259_v29 }
0x35f6   : > { %v4089_v8 = vmul.f32 2.0, %v5436_v51  ;;  %v4056_v22 = vmul.f32 %v5436_v51, %v9066_v57 }
0x35f7   : > { %4313 = vmatpush.msra.mxu3 %v9264_v10 }
0x35f8   : > { %v4058_v61 = vadd.f32 %v4056_v22, %v9231_v50  ;;  %v4091_v15 = vadd.f32 %v4089_v8, %v4087_v0 }
0x35f9   : > { %4314 = vmatpush.msra.mxu3 %v9268_v43 }
0x35fa   : > { %4078 = vmatmul.f32.gmra.mxu3 %v4058_v61 }
0x35fb   : > { %4315 = vmatpush.msra.mxu3 %v9271_v7 }
0x35fd   : > { %4316 = vmatpush.msra.mxu3 %v9274_v33 }
0x35ff   : > { %4317 = vmatpush.msra.mxu3 %v9299_v13 }
0x3601   : > { %4318 = vmatpush.msra.mxu3 %v9302_v41 }
0x3603   : > { %4319 = vmatpush.msra.mxu3 %v9305_v12 }
0x3605   : > { %4320 = vmatpush.msra.mxu3 %v9308_v58 }
0x3607   : > { %4321 = vmatpush.msra.mxu3 %v9311_v56 }
0x3609   : > { %4322 = vmatpush.msra.mxu3 %v9314_v35 }
0x360b   : > { %4323 = vmatpush.msra.mxu3 %v9317_v46 }
0x360d   : > { %4324 = vmatpush.msra.mxu3 %v9320_v1 }
0x360f   : > { %4325 = vmatpush.msra.mxu3 %v9347_v20 }
0x3611   : > { %4326 = vmatpush.msra.mxu3 %v9350_v25 }
0x3675   : > { %v4076_v11 = vpop.f32.mrf.mxu3 }
0x3676   : > { %v4077_v53 = vadd.f32 %v8940_v31, %v4076_v11 }
0x3678   : > { %5437 = vtanh.f32 %v4077_v53 }
0x367d   : > { %v4079_v47 = vpop.f32.mrf.mxu3 }
0x367e   : > { %v5438_v14 = vpop.eup %5437  ;;  %v4080_v16 = vadd.f32 %v8940_v31, %v4079_v47 }
0x367f   : > { %v4092_v60 = vadd.f32 %v5438_v14, %v4090_v30 }
0x3680   : > { %5439 = vtanh.f32 %v4080_v16 }
0x3681   : > { %v4094_v6 = vmul.f32 %v4092_v60, %v9115_v26 }
0x3683   : > { %v9357_v18 = vadd.f32 %v4094_v6, %v9223_v45 }
0x3685   : > { %4114 = vmatmul.f32.vlgmr.msrb.gmra.mxu0 %v9357_v18 }
0x3686   : > { %v5440_v62 = vpop.eup %5439  ;;  %4350 = vmatpush.msrb.mxu0 %v9254_v63 }
0x3687   : > { %v4093_v17 = vadd.f32 %v5440_v62, %v4091_v15 }
0x3688   : > { %4351 = vmatpush.msrb.mxu0 %v9259_v29 }
0x3689   : > { %v4095_v32 = vmul.f32 %v4093_v17, %v9115_v26 }
0x368a   : > { %4352 = vmatpush.msrb.mxu0 %v9264_v10 }
0x368b   : > { %v9365_v55 = vadd.f32 %v4095_v32, %v9231_v50 }
0x368c   : > { %4353 = vmatpush.msrb.mxu0 %v9268_v43 }
0x368d   : > { %4117 = vmatmul.f32.gmra.mxu0 %v9365_v55 }
0x368e   : > { %4354 = vmatpush.msrb.mxu0 %v9271_v7 }
0x3690   : > { %4355 = vmatpush.msrb.mxu0 %v9274_v33 }
0x3692   : > { %4356 = vmatpush.msrb.mxu0 %v9299_v13 }
0x3694   : > { %4357 = vmatpush.msrb.mxu0 %v9302_v41 }
0x3696   : > { %4358 = vmatpush.msrb.mxu0 %v9305_v12 }
0x3698   : > { %4359 = vmatpush.msrb.mxu0 %v9308_v58 }
0x369a   : > { %4360 = vmatpush.msrb.mxu0 %v9311_v56 }
0x369c   : > { %4361 = vmatpush.msrb.mxu0 %v9314_v35 }
0x369e   : > { %4362 = vmatpush.msrb.mxu0 %v9317_v46 }
0x36a0   : > { %4363 = vmatpush.msrb.mxu0 %v9320_v1 }
0x36a2   : > { %4364 = vmatpush.msrb.mxu0 %v9347_v20 }
0x36a4   : > { %4365 = vmatpush.msrb.mxu0 %v9350_v25 }
0x3702   : > { %v4115_v45 = vpop.f32.mrf.mxu0 }
0x3703   : > { %v4116_v50 = vadd.f32 %v8940_v31, %v4115_v45 }
0x3705   : > { %5441 = vtanh.f32 %v4116_v50 }
0x370a   : > { %v4118_v42 = vpop.f32.mrf.mxu0 }
0x370b   : > { %v9382_v54 = vpop.eup %5441  ;;  %v4119_v39 = vadd.f32 %v8940_v31, %v4118_v42 }
0x370c   : > { %v4123_v36 = vmul.f32 %v9382_v54, %v8956_v34 }
0x370d   : > { %5443 = vtanh.f32 %v4119_v39 }
0x370e   : > { %v4125_v37 = vadd.f32 %v4123_v36, %v9357_v18 }
0x3710   : > { %4143 = vmatmul.f32.vlgmr.msrb.gmra.mxu1 %v4125_v37 }
0x3711   : > { %4379 = vmatpush.msrb.mxu1 %v9254_v63 }
0x3713   : > { %v9389_v2 = vpop.eup %5443  ;;  %4380 = vmatpush.msrb.mxu1 %v9259_v29 }
0x3714   : > { %v4124_v23 = vmul.f32 %v9389_v2, %v8956_v34 }
0x3715   : > { %4381 = vmatpush.msrb.mxu1 %v9264_v10 }
0x3716   : > { %v4126_v31 = vadd.f32 %v4124_v23, %v9365_v55 }
0x3717   : > { %4382 = vmatpush.msrb.mxu1 %v9268_v43 }
0x3718   : > { %4146 = vmatmul.f32.gmra.mxu1 %v4126_v31 }
0x3719   : > { %4383 = vmatpush.msrb.mxu1 %v9271_v7 }
0x371b   : > { %4384 = vmatpush.msrb.mxu1 %v9274_v33 }
0x371d   : > { %4385 = vmatpush.msrb.mxu1 %v9299_v13 }
0x371f   : > { %4386 = vmatpush.msrb.mxu1 %v9302_v41 }
0x3721   : > { %4387 = vmatpush.msrb.mxu1 %v9305_v12 }
0x3723   : > { %4388 = vmatpush.msrb.mxu1 %v9308_v58 }
0x3725   : > { %4389 = vmatpush.msrb.mxu1 %v9311_v56 }
0x3727   : > { %4390 = vmatpush.msrb.mxu1 %v9314_v35 }
0x3729   : > { %4391 = vmatpush.msrb.mxu1 %v9317_v46 }
0x372b   : > { %4392 = vmatpush.msrb.mxu1 %v9320_v1 }
0x372d   : > { %4393 = vmatpush.msrb.mxu1 %v9347_v20 }
0x372f   : > { %4394 = vmatpush.msrb.mxu1 %v9350_v25 }
0x378d   : > { %v4144_v3 = vpop.f32.mrf.mxu1 }
0x378e   : > { %v4145_v38 = vadd.f32 %v9409_v24, %v4144_v3 }
0x3790   : > { %5445 = vtanh.f32 %v4145_v38 }
0x3795   : > { %v4147_v49 = vpop.f32.mrf.mxu1 }
0x3796   : > { %v5446_v19 = vpop.eup %5445  ;;  %v4148_v9 = vadd.f32 %v9409_v24, %v4147_v49 }
0x3797   : > { %v4152_v52 = vmul.f32 %v5446_v19, %v8956_v34  ;;  %v4210_v27 = vmul.f32 2.0, %v5446_v19 }
0x3798   : > { %5447 = vtanh.f32 %v4148_v9 }
0x3799   : > { %v4154_v40 = vadd.f32 %v4152_v52, %v9357_v18  ;;  %v4212_v51 = vadd.f32 %v9382_v54, %v4210_v27 }
0x379b   : > { %4172 = vmatmul.f32.vlgmr.msrb.gmra.mxu2 %v4154_v40 }
0x379c   : > { %4408 = vmatpush.msrb.mxu2 %v9254_v63 }
0x379e   : > { %v5448_v59 = vpop.eup %5447  ;;  %4409 = vmatpush.msrb.mxu2 %v9259_v29 }
0x379f   : > { %v4153_v44 = vmul.f32 %v5448_v59, %v8956_v34  ;;  %v4211_v15 = vmul.f32 2.0, %v5448_v59 }
0x37a0   : > { %4410 = vmatpush.msrb.mxu2 %v9264_v10 }
0x37a1   : > { %v4155_v5 = vadd.f32 %v4153_v44, %v9365_v55  ;;  %v4213_v53 = vadd.f32 %v9389_v2, %v4211_v15 }
0x37a2   : > { %4411 = vmatpush.msrb.mxu2 %v9268_v43 }
0x37a3   : > { %4175 = vmatmul.f32.gmra.mxu2 %v4155_v5 }
0x37a4   : > { %4412 = vmatpush.msrb.mxu2 %v9271_v7 }
0x37a6   : > { %4413 = vmatpush.msrb.mxu2 %v9274_v33 }
0x37a8   : > { %4414 = vmatpush.msrb.mxu2 %v9299_v13 }
0x37aa   : > { %4415 = vmatpush.msrb.mxu2 %v9302_v41 }
0x37ac   : > { %4416 = vmatpush.msrb.mxu2 %v9305_v12 }
0x37ae   : > { %4417 = vmatpush.msrb.mxu2 %v9308_v58 }
0x37b0   : > { %4418 = vmatpush.msrb.mxu2 %v9311_v56 }
0x37b2   : > { %4419 = vmatpush.msrb.mxu2 %v9314_v35 }
0x37b4   : > { %4420 = vmatpush.msrb.mxu2 %v9317_v46 }
0x37b6   : > { %4421 = vmatpush.msrb.mxu2 %v9320_v1 }
0x37b8   : > { %4422 = vmatpush.msrb.mxu2 %v9347_v20 }
0x37ba   : > { %4423 = vmatpush.msrb.mxu2 %v9350_v25 }
0x381e   : > { %v4173_v48 = vpop.f32.mrf.mxu2 }
0x381f   : > { %v4174_v28 = vadd.f32 %v9409_v24, %v4173_v48 }
0x3821   : > { %5449 = vtanh.f32 %v4174_v28 }
0x3826   : > { %v4176_v21 = vpop.f32.mrf.mxu2 }
0x3827   : > { %v5450_v30 = vpop.eup %5449  ;;  %v4177_v4 = vadd.f32 %v9409_v24, %v4176_v21 }
0x3828   : > { %v4181_v0 = vmul.f32 %v5450_v30, %v9066_v57  ;;  %v4214_v8 = vmul.f32 2.0, %v5450_v30 }
0x3829   : > { %5451 = vtanh.f32 %v4177_v4 }
0x382a   : > { %v4183_v22 = vadd.f32 %v4181_v0, %v9357_v18  ;;  %v4216_v61 = vadd.f32 %v4214_v8, %v4212_v51 }
0x382c   : > { %4201 = vmatmul.f32.vlgmr.msrb.gmra.mxu3 %v4183_v22 }
0x382d   : > { %4437 = vmatpush.msrb.mxu3 %v9254_v63 }
0x382f   : > { %v5452_v11 = vpop.eup %5451  ;;  %4438 = vmatpush.msrb.mxu3 %v9259_v29 }
0x3830   : > { %v4215_v47 = vmul.f32 2.0, %v5452_v11  ;;  %v4182_v14 = vmul.f32 %v5452_v11, %v9066_v57 }
0x3831   : > { %4439 = vmatpush.msrb.mxu3 %v9264_v10 }
0x3832   : > { %v4184_v16 = vadd.f32 %v4182_v14, %v9365_v55  ;;  %v4217_v60 = vadd.f32 %v4215_v47, %v4213_v53 }
0x3833   : > { %4440 = vmatpush.msrb.mxu3 %v9268_v43 }
0x3834   : > { %4204 = vmatmul.f32.gmra.mxu3 %v4184_v16 }
0x3835   : > { %4441 = vmatpush.msrb.mxu3 %v9271_v7 }
0x3837   : > { %4442 = vmatpush.msrb.mxu3 %v9274_v33 }
0x3839   : > { %4443 = vmatpush.msrb.mxu3 %v9299_v13 }
0x383b   : > { %4444 = vmatpush.msrb.mxu3 %v9302_v41 }
0x383d   : > { %4445 = vmatpush.msrb.mxu3 %v9305_v12 }
0x383f   : > { %4446 = vmatpush.msrb.mxu3 %v9308_v58 }
0x3841   : > { %4447 = vmatpush.msrb.mxu3 %v9311_v56 }
0x3843   : > { %4448 = vmatpush.msrb.mxu3 %v9314_v35 }
0x3845   : > { %4449 = vmatpush.msrb.mxu3 %v9317_v46 }
0x3847   : > { %4450 = vmatpush.msrb.mxu3 %v9320_v1 }
0x3849   : > { %4451 = vmatpush.msrb.mxu3 %v9347_v20 }
0x384b   : > { %4452 = vmatpush.msrb.mxu3 %v9350_v25 }
0x38af   : > { %v4202_v6 = vpop.f32.mrf.mxu3 }
0x38b0   : > { %v4203_v62 = vadd.f32 %v9409_v24, %v4202_v6 }
0x38b2   : > { %5453 = vtanh.f32 %v4203_v62 }
0x38b7   : > { %v4205_v17 = vpop.f32.mrf.mxu3 }
0x38b8   : > { %v5454_v32 = vpop.eup %5453  ;;  %v4206_v45 = vadd.f32 %v9409_v24, %v4205_v17 }
0x38b9   : > { %v4218_v50 = vadd.f32 %v5454_v32, %v4216_v61 }
0x38ba   : > { %5455 = vtanh.f32 %v4206_v45 }
0x38bb   : > { %v4220_v42 = vmul.f32 %v4218_v50, %v9115_v26 }
0x38bd   : > { %v9461_v54 = vadd.f32 %v4220_v42, %v9357_v18 }
0x38bf   : > { %4240 = vmatmul.f32.vlgmr.msra.gmra.mxu0 %v9461_v54 }
0x38c0   : > { %v5456_v39 = vpop.eup %5455  ;;  %4476 = vmatpush.msra.mxu0 %v9254_v63 }
0x38c1   : > { %v4219_v36 = vadd.f32 %v5456_v39, %v4217_v60 }
0x38c2   : > { %4477 = vmatpush.msra.mxu0 %v9259_v29 }
0x38c3   : > { %v4221_v37 = vmul.f32 %v4219_v36, %v9115_v26 }
0x38c4   : > { %4478 = vmatpush.msra.mxu0 %v9264_v10 }
0x38c5   : > { %v9469_v2 = vadd.f32 %v4221_v37, %v9365_v55 }
0x38c6   : > { %4479 = vmatpush.msra.mxu0 %v9268_v43 }
0x38c7   : > { %4243 = vmatmul.f32.gmra.mxu0 %v9469_v2 }
0x38c8   : > { %4480 = vmatpush.msra.mxu0 %v9271_v7 }
0x38ca   : > { %4481 = vmatpush.msra.mxu0 %v9274_v33 }
0x38cc   : > { %4482 = vmatpush.msra.mxu0 %v9299_v13 }
0x38ce   : > { %4483 = vmatpush.msra.mxu0 %v9302_v41 }
0x38d0   : > { %4484 = vmatpush.msra.mxu0 %v9305_v12 }
0x38d2   : > { %4485 = vmatpush.msra.mxu0 %v9308_v58 }
0x38d4   : > { %4486 = vmatpush.msra.mxu0 %v9311_v56 }
0x38d6   : > { %4487 = vmatpush.msra.mxu0 %v9314_v35 }
0x38d8   : > { %4488 = vmatpush.msra.mxu0 %v9317_v46 }
0x38da   : > { %4489 = vmatpush.msra.mxu0 %v9320_v1 }
0x38dc   : > { %4490 = vmatpush.msra.mxu0 %v9347_v20 }
0x38de   : > { %4491 = vmatpush.msra.mxu0 %v9350_v25 }
0x393c   : > { %v4241_v18 = vpop.f32.mrf.mxu0 }
0x393d   : > { %v4242_v55 = vadd.f32 %v9409_v24, %v4241_v18 }
0x393f   : > { %5457 = vtanh.f32 %v4242_v55 }
0x3944   : > { %v4244_v23 = vpop.f32.mrf.mxu0 }
0x3945   : > { %v9486_v31 = vpop.eup %5457  ;;  %v4245_v3 = vadd.f32 %v9409_v24, %v4244_v23 }
0x3946   : > { %v4249_v38 = vmul.f32 %v9486_v31, %v8956_v34 }
0x3947   : > { %5459 = vtanh.f32 %v4245_v3 }
0x3948   : > { %v4251_v49 = vadd.f32 %v4249_v38, %v9461_v54 }
0x394a   : > { %4269 = vmatmul.f32.vlgmr.msra.gmra.mxu1 %v4251_v49 }
0x394b   : > { %4505 = vmatpush.msra.mxu1 %v9254_v63 }
0x394d   : > { %v9493_v19 = vpop.eup %5459  ;;  %4506 = vmatpush.msra.mxu1 %v9259_v29 }
0x394e   : > { %v4250_v9 = vmul.f32 %v9493_v19, %v8956_v34 }
0x394f   : > { %4507 = vmatpush.msra.mxu1 %v9264_v10 }
0x3950   : > { %v4252_v52 = vadd.f32 %v4250_v9, %v9469_v2 }
0x3951   : > { %4508 = vmatpush.msra.mxu1 %v9268_v43 }
0x3952   : > { %4272 = vmatmul.f32.gmra.mxu1 %v4252_v52 }
0x3953   : > { %4509 = vmatpush.msra.mxu1 %v9271_v7 }
0x3955   : > { %4510 = vmatpush.msra.mxu1 %v9274_v33 }
0x3957   : > { %4511 = vmatpush.msra.mxu1 %v9299_v13 }
0x3959   : > { %4512 = vmatpush.msra.mxu1 %v9302_v41 }
0x395b   : > { %4513 = vmatpush.msra.mxu1 %v9305_v12 }
0x395d   : > { %4514 = vmatpush.msra.mxu1 %v9308_v58 }
0x395f   : > { %4515 = vmatpush.msra.mxu1 %v9311_v56 }
0x3961   : > { %4516 = vmatpush.msra.mxu1 %v9314_v35 }
0x3963   : > { %4517 = vmatpush.msra.mxu1 %v9317_v46 }
0x3965   : > { %4518 = vmatpush.msra.mxu1 %v9320_v1 }
0x3967   : > { %4519 = vmatpush.msra.mxu1 %v9347_v20 }
0x3969   : > { %4520 = vmatpush.msra.mxu1 %v9350_v25 }
0x39c7   : > { %v4270_v40 = vpop.f32.mrf.mxu1 }
0x39c8   : > { %v4271_v59 = vadd.f32 %v9409_v24, %v4270_v40 }
0x39ca   : > { %5461 = vtanh.f32 %v4271_v59 }
0x39cf   : > { %v4273_v44 = vpop.f32.mrf.mxu1 }
0x39d0   : > { %v5462_v5 = vpop.eup %5461  ;;  %v4274_v48 = vadd.f32 %v9409_v24, %v4273_v44 }
0x39d1   : > { %v4278_v28 = vmul.f32 %v5462_v5, %v8956_v34  ;;  %v4336_v8 = vmul.f32 2.0, %v5462_v5 }
0x39d2   : > { %5463 = vtanh.f32 %v4274_v48 }
0x39d3   : > { %v4280_v27 = vadd.f32 %v4278_v28, %v9461_v54  ;;  %v4338_v11 = vadd.f32 %v9486_v31, %v4336_v8 }
0x39d5   : > { %4298 = vmatmul.f32.vlgmr.msra.gmra.mxu2 %v4280_v27 }
0x39d6   : > { %4534 = vmatpush.msra.mxu2 %v9254_v63 }
0x39d8   : > { %v5464_v21 = vpop.eup %5463  ;;  %4535 = vmatpush.msra.mxu2 %v9259_v29 }
0x39d9   : > { %v4279_v30 = vmul.f32 %v5464_v21, %v8956_v34  ;;  %v4337_v60 = vmul.f32 2.0, %v5464_v21 }
0x39da   : > { %4536 = vmatpush.msra.mxu2 %v9264_v10 }
0x39db   : > { %v4281_v4 = vadd.f32 %v4279_v30, %v9469_v2  ;;  %v4339_v62 = vadd.f32 %v9493_v19, %v4337_v60 }
0x39dc   : > { %4537 = vmatpush.msra.mxu2 %v9268_v43 }
0x39dd   : > { %4301 = vmatmul.f32.gmra.mxu2 %v4281_v4 }
0x39de   : > { %4538 = vmatpush.msra.mxu2 %v9271_v7 }
0x39e0   : > { %4539 = vmatpush.msra.mxu2 %v9274_v33 }
0x39e2   : > { %4540 = vmatpush.msra.mxu2 %v9299_v13 }
0x39e4   : > { %4541 = vmatpush.msra.mxu2 %v9302_v41 }
0x39e6   : > { %4542 = vmatpush.msra.mxu2 %v9305_v12 }
0x39e8   : > { %4543 = vmatpush.msra.mxu2 %v9308_v58 }
0x39ea   : > { %4544 = vmatpush.msra.mxu2 %v9311_v56 }
0x39ec   : > { %4545 = vmatpush.msra.mxu2 %v9314_v35 }
0x39ee   : > { %4546 = vmatpush.msra.mxu2 %v9317_v46 }
0x39f0   : > { %4547 = vmatpush.msra.mxu2 %v9320_v1 }
0x39f2   : > { %4548 = vmatpush.msra.mxu2 %v9347_v20 }
0x39f4   : > { %4549 = vmatpush.msra.mxu2 %v9350_v25 }
0x3a58   : > { %v4299_v51 = vpop.f32.mrf.mxu2 }
0x3a59   : > { %v4300_v0 = vadd.f32 %v9409_v24, %v4299_v51 }
0x3a5b   : > { %5465 = vtanh.f32 %v4300_v0 }
0x3a60   : > { %v4302_v22 = vpop.f32.mrf.mxu2 }
0x3a61   : > { %v5466_v61 = vpop.eup %5465  ;;  %v4303_v15 = vadd.f32 %v9409_v24, %v4302_v22 }
0x3a62   : > { %v4307_v53 = vmul.f32 %v5466_v61, %v9066_v57  ;;  %v4340_v47 = vmul.f32 2.0, %v5466_v61 }
0x3a63   : > { %5467 = vtanh.f32 %v4303_v15 }
0x3a64   : > { %v4309_v14 = vadd.f32 %v4307_v53, %v9461_v54  ;;  %v4342_v16 = vadd.f32 %v4340_v47, %v4338_v11 }
0x3a66   : > { %4327 = vmatmul.f32.vlgmr.msra.gmra.mxu3 %v4309_v14 }
0x3a67   : > { %4563 = vmatpush.msra.mxu3 %v9254_v63 }
0x3a69   : > { %v5468_v6 = vpop.eup %5467  ;;  %4564 = vmatpush.msra.mxu3 %v9259_v29 }
0x3a6a   : > { %v4341_v17 = vmul.f32 2.0, %v5468_v6  ;;  %v4308_v32 = vmul.f32 %v5468_v6, %v9066_v57 }
0x3a6b   : > { %4565 = vmatpush.msra.mxu3 %v9264_v10 }
0x3a6c   : > { %v4310_v45 = vadd.f32 %v4308_v32, %v9469_v2  ;;  %v4343_v50 = vadd.f32 %v4341_v17, %v4339_v62 }
0x3a6d   : > { %4566 = vmatpush.msra.mxu3 %v9268_v43 }
0x3a6e   : > { %4330 = vmatmul.f32.gmra.mxu3 %v4310_v45 }
0x3a6f   : > { %4567 = vmatpush.msra.mxu3 %v9271_v7 }
0x3a71   : > { %4568 = vmatpush.msra.mxu3 %v9274_v33 }
0x3a73   : > { %4569 = vmatpush.msra.mxu3 %v9299_v13 }
0x3a75   : > { %4570 = vmatpush.msra.mxu3 %v9302_v41 }
0x3a77   : > { %4571 = vmatpush.msra.mxu3 %v9305_v12 }
0x3a79   : > { %4572 = vmatpush.msra.mxu3 %v9308_v58 }
0x3a7b   : > { %4573 = vmatpush.msra.mxu3 %v9311_v56 }
0x3a7d   : > { %4574 = vmatpush.msra.mxu3 %v9314_v35 }
0x3a7f   : > { %4575 = vmatpush.msra.mxu3 %v9317_v46 }
0x3a81   : > { %4576 = vmatpush.msra.mxu3 %v9320_v1 }
0x3a83   : > { %4577 = vmatpush.msra.mxu3 %v9347_v20 }
0x3a85   : > { %4578 = vmatpush.msra.mxu3 %v9350_v25 }
0x3ae9   : > { %v4328_v42 = vpop.f32.mrf.mxu3 }
0x3aea   : > { %v4329_v39 = vadd.f32 %v9409_v24, %v4328_v42 }
0x3aec   : > { %5469 = vtanh.f32 %v4329_v39 }
0x3af1   : > { %v4331_v36 = vpop.f32.mrf.mxu3 }
0x3af2   : > { %v5470_v37 = vpop.eup %5469  ;;  %v4332_v18 = vadd.f32 %v9409_v24, %v4331_v36 }
0x3af3   : > { %v4344_v55 = vadd.f32 %v5470_v37, %v4342_v16 }
0x3af4   : > { %5471 = vtanh.f32 %v4332_v18 }
0x3af5   : > { %v4346_v23 = vmul.f32 %v4344_v55, %v9115_v26 }
0x3af7   : > { %v9563_v31 = vadd.f32 %v4346_v23, %v9461_v54 }
0x3af9   : > { %4366 = vmatmul.f32.vlgmr.msrb.gmra.mxu0 %v9563_v31 }
0x3afa   : > { %v5472_v3 = vpop.eup %5471  ;;  %4602 = vmatpush.msrb.mxu0 %v9254_v63 }
0x3afb   : > { %v4345_v38 = vadd.f32 %v5472_v3, %v4343_v50 }
0x3afc   : > { %4603 = vmatpush.msrb.mxu0 %v9259_v29 }
0x3afd   : > { %v4347_v49 = vmul.f32 %v4345_v38, %v9115_v26 }
0x3afe   : > { %4604 = vmatpush.msrb.mxu0 %v9264_v10 }
0x3aff   : > { %v9571_v19 = vadd.f32 %v4347_v49, %v9469_v2 }
0x3b00   : > { %4605 = vmatpush.msrb.mxu0 %v9268_v43 }
0x3b01   : > { %4369 = vmatmul.f32.gmra.mxu0 %v9571_v19 }
0x3b02   : > { %4606 = vmatpush.msrb.mxu0 %v9271_v7 }
0x3b04   : > { %4607 = vmatpush.msrb.mxu0 %v9274_v33 }
0x3b06   : > { %4608 = vmatpush.msrb.mxu0 %v9299_v13 }
0x3b08   : > { %4609 = vmatpush.msrb.mxu0 %v9302_v41 }
0x3b0a   : > { %4610 = vmatpush.msrb.mxu0 %v9305_v12 }
0x3b0c   : > { %4611 = vmatpush.msrb.mxu0 %v9308_v58 }
0x3b0e   : > { %4612 = vmatpush.msrb.mxu0 %v9311_v56 }
0x3b10   : > { %4613 = vmatpush.msrb.mxu0 %v9314_v35 }
0x3b12   : > { %4614 = vmatpush.msrb.mxu0 %v9317_v46 }
0x3b14   : > { %4615 = vmatpush.msrb.mxu0 %v9320_v1 }
0x3b16   : > { %4616 = vmatpush.msrb.mxu0 %v9347_v20 }
0x3b18   : > { %4617 = vmatpush.msrb.mxu0 %v9350_v25 }
0x3b76   : > { %v4367_v54 = vpop.f32.mrf.mxu0 }
0x3b77   : > { %v4368_v2 = vadd.f32 %v9409_v24, %v4367_v54 }
0x3b79   : > { %5473 = vtanh.f32 %v4368_v2 }
0x3b7e   : > { %v4370_v9 = vpop.f32.mrf.mxu0 }
0x3b7f   : > { %v9588_v52 = vpop.eup %5473  ;;  %v4371_v40 = vadd.f32 %v9409_v24, %v4370_v9 }
0x3b80   : > { %v4375_v59 = vmul.f32 %v9588_v52, %v8956_v34 }
0x3b81   : > { %5475 = vtanh.f32 %v4371_v40 }
0x3b82   : > { %v4377_v44 = vadd.f32 %v4375_v59, %v9563_v31 }
0x3b84   : > { %4395 = vmatmul.f32.vlgmr.msrb.gmra.mxu1 %v4377_v44 }
0x3b85   : > { %4631 = vmatpush.msrb.mxu1 %v9254_v63 }
0x3b87   : > { %v9595_v5 = vpop.eup %5475  ;;  %4632 = vmatpush.msrb.mxu1 %v9259_v29 }
0x3b88   : > { %v4376_v48 = vmul.f32 %v9595_v5, %v8956_v34 }
0x3b89   : > { %4633 = vmatpush.msrb.mxu1 %v9264_v10 }
0x3b8a   : > { %v4378_v28 = vadd.f32 %v4376_v48, %v9571_v19 }
0x3b8b   : > { %4634 = vmatpush.msrb.mxu1 %v9268_v43 }
0x3b8c   : > { %4398 = vmatmul.f32.gmra.mxu1 %v4378_v28 }
0x3b8d   : > { %4635 = vmatpush.msrb.mxu1 %v9271_v7 }
0x3b8f   : > { %4636 = vmatpush.msrb.mxu1 %v9274_v33 }
0x3b91   : > { %4637 = vmatpush.msrb.mxu1 %v9299_v13 }
0x3b93   : > { %4638 = vmatpush.msrb.mxu1 %v9302_v41 }
0x3b95   : > { %4639 = vmatpush.msrb.mxu1 %v9305_v12 }
0x3b97   : > { %4640 = vmatpush.msrb.mxu1 %v9308_v58 }
0x3b99   : > { %4641 = vmatpush.msrb.mxu1 %v9311_v56 }
0x3b9b   : > { %4642 = vmatpush.msrb.mxu1 %v9314_v35 }
0x3b9d   : > { %4643 = vmatpush.msrb.mxu1 %v9317_v46 }
0x3b9f   : > { %4644 = vmatpush.msrb.mxu1 %v9320_v1 }
0x3ba1   : > { %4645 = vmatpush.msrb.mxu1 %v9347_v20 }
0x3ba3   : > { %4646 = vmatpush.msrb.mxu1 %v9350_v25 }
0x3c01   : > { %v4396_v27 = vpop.f32.mrf.mxu1 }
0x3c02   : > { %v4397_v21 = vadd.f32 %v9409_v24, %v4396_v27 }
0x3c04   : > { %5477 = vtanh.f32 %v4397_v21 }
0x3c09   : > { %v4399_v30 = vpop.f32.mrf.mxu1 }
0x3c0a   : > { %v5478_v4 = vpop.eup %5477  ;;  %v4400_v51 = vadd.f32 %v9409_v24, %v4399_v30 }
0x3c0b   : > { %v4404_v0 = vmul.f32 %v5478_v4, %v8956_v34  ;;  %v4462_v47 = vmul.f32 2.0, %v5478_v4 }
0x3c0c   : > { %5479 = vtanh.f32 %v4400_v51 }
0x3c0d   : > { %v4406_v8 = vadd.f32 %v4404_v0, %v9563_v31  ;;  %v4464_v6 = vadd.f32 %v9588_v52, %v4462_v47 }
0x3c0f   : > { %4424 = vmatmul.f32.vlgmr.msrb.gmra.mxu2 %v4406_v8 }
0x3c10   : > { %4660 = vmatpush.msrb.mxu2 %v9254_v63 }
0x3c12   : > { %v5480_v22 = vpop.eup %5479  ;;  %4661 = vmatpush.msrb.mxu2 %v9259_v29 }
0x3c13   : > { %v4405_v61 = vmul.f32 %v5480_v22, %v8956_v34  ;;  %v4463_v50 = vmul.f32 2.0, %v5480_v22 }
0x3c14   : > { %4662 = vmatpush.msrb.mxu2 %v9264_v10 }
0x3c15   : > { %v4407_v15 = vadd.f32 %v4405_v61, %v9571_v19  ;;  %v4465_v39 = vadd.f32 %v9595_v5, %v4463_v50 }
0x3c16   : > { %4663 = vmatpush.msrb.mxu2 %v9268_v43 }
0x3c17   : > { %4427 = vmatmul.f32.gmra.mxu2 %v4407_v15 }
0x3c18   : > { %4664 = vmatpush.msrb.mxu2 %v9271_v7 }
0x3c1a   : > { %4665 = vmatpush.msrb.mxu2 %v9274_v33 }
0x3c1c   : > { %4666 = vmatpush.msrb.mxu2 %v9299_v13 }
0x3c1e   : > { %4667 = vmatpush.msrb.mxu2 %v9302_v41 }
0x3c20   : > { %4668 = vmatpush.msrb.mxu2 %v9305_v12 }
0x3c22   : > { %4669 = vmatpush.msrb.mxu2 %v9308_v58 }
0x3c24   : > { %4670 = vmatpush.msrb.mxu2 %v9311_v56 }
0x3c26   : > { %4671 = vmatpush.msrb.mxu2 %v9314_v35 }
0x3c28   : > { %4672 = vmatpush.msrb.mxu2 %v9317_v46 }
0x3c2a   : > { %4673 = vmatpush.msrb.mxu2 %v9320_v1 }
0x3c2c   : > { %4674 = vmatpush.msrb.mxu2 %v9347_v20 }
0x3c2e   : > { %4675 = vmatpush.msrb.mxu2 %v9350_v25 }
0x3c92   : > { %v4425_v11 = vpop.f32.mrf.mxu2 }
0x3c93   : > { %v4426_v53 = vadd.f32 %v9409_v24, %v4425_v11 }
0x3c95   : > { %5481 = vtanh.f32 %v4426_v53 }
0x3c9a   : > { %v4428_v14 = vpop.f32.mrf.mxu2 }
0x3c9b   : > { %v5482_v16 = vpop.eup %5481  ;;  %v4429_v60 = vadd.f32 %v9409_v24, %v4428_v14 }
0x3c9c   : > { %v4433_v62 = vmul.f32 %v5482_v16, %v9066_v57  ;;  %v4466_v17 = vmul.f32 2.0, %v5482_v16 }
0x3c9d   : > { %5483 = vtanh.f32 %v4429_v60 }
0x3c9e   : > { %v4435_v32 = vadd.f32 %v4433_v62, %v9563_v31  ;;  %v4468_v45 = vadd.f32 %v4466_v17, %v4464_v6 }
0x3ca0   : > { %4453 = vmatmul.f32.vlgmr.msrb.gmra.mxu3 %v4435_v32 }
0x3ca1   : > { %4689 = vmatpush.msrb.mxu3 %v9254_v63 }
0x3ca3   : > { %v5484_v42 = vpop.eup %5483  ;;  %4690 = vmatpush.msrb.mxu3 %v9259_v29 }
0x3ca4   : > { %v4467_v36 = vmul.f32 2.0, %v5484_v42  ;;  %v4434_v37 = vmul.f32 %v5484_v42, %v9066_v57 }
0x3ca5   : > { %4691 = vmatpush.msrb.mxu3 %v9264_v10 }
0x3ca6   : > { %v4436_v18 = vadd.f32 %v4434_v37, %v9571_v19  ;;  %v4469_v55 = vadd.f32 %v4467_v36, %v4465_v39 }
0x3ca7   : > { %4692 = vmatpush.msrb.mxu3 %v9268_v43 }
0x3ca8   : > { %4456 = vmatmul.f32.gmra.mxu3 %v4436_v18 }
0x3ca9   : > { %4693 = vmatpush.msrb.mxu3 %v9271_v7 }
0x3cab   : > { %4694 = vmatpush.msrb.mxu3 %v9274_v33 }
0x3cad   : > { %4695 = vmatpush.msrb.mxu3 %v9299_v13 }
0x3caf   : > { %4696 = vmatpush.msrb.mxu3 %v9302_v41 }
0x3cb1   : > { %4697 = vmatpush.msrb.mxu3 %v9305_v12 }
0x3cb3   : > { %4698 = vmatpush.msrb.mxu3 %v9308_v58 }
0x3cb5   : > { %4699 = vmatpush.msrb.mxu3 %v9311_v56 }
0x3cb7   : > { %4700 = vmatpush.msrb.mxu3 %v9314_v35 }
0x3cb9   : > { %4701 = vmatpush.msrb.mxu3 %v9317_v46 }
0x3cbb   : > { %4702 = vmatpush.msrb.mxu3 %v9320_v1 }
0x3cbd   : > { %4703 = vmatpush.msrb.mxu3 %v9347_v20 }
0x3cbf   : > { %4704 = vmatpush.msrb.mxu3 %v9350_v25 }
0x3d23   : > { %v4454_v63 = vpop.f32.mrf.mxu3 }
0x3d24   : > { %v4455_v29 = vadd.f32 %v9409_v24, %v4454_v63 }
0x3d26   : > { %5485 = vtanh.f32 %v4455_v29 }
0x3d2b   : > { %v4457_v10 = vpop.f32.mrf.mxu3 }
0x3d2c   : > { %v5486_v43 = vpop.eup %5485  ;;  %v4458_v7 = vadd.f32 %v9409_v24, %v4457_v10 }
0x3d2d   : > { %v4470_v33 = vadd.f32 %v5486_v43, %v4468_v45 }
0x3d2e   : > { %5487 = vtanh.f32 %v4458_v7 }
0x3d2f   : > { %v4472_v13 = vmul.f32 %v4470_v33, %v9115_v26 }
0x3d31   : > { %v9665_v41 = vadd.f32 %v4472_v13, %v9563_v31 }
0x3d33   : > { %4492 = vmatmul.f32.vlgmr.msra.gmra.mxu0 %v9665_v41 }
0x3d34   : > { %v5488_v12 = vpop.eup %5487 }
0x3d35   : > { %v4471_v58 = vadd.f32 %v5488_v12, %v4469_v55 }
0x3d37   : > { %v4473_v56 = vmul.f32 %v4471_v58, %v9115_v26 }
0x3d39   : > { %v9670_v35 = vadd.f32 %v4473_v56, %v9571_v19 }
0x3d3b   : > { %4495 = vmatmul.f32.gmra.mxu0 %v9670_v35 }
0x3db0   : > { %v4493_v46 = vpop.f32.mrf.mxu0 }
0x3db1   : > { %v4494_v1 = vadd.f32 %v9409_v24, %v4493_v46 }
0x3db3   : > { %5489 = vtanh.f32 %v4494_v1 }
0x3db8   : > { %v4496_v20 = vpop.f32.mrf.mxu0 }
0x3db9   : > { %v5490_v25 = vpop.eup %5489  ;;  %v4497_v23 = vadd.f32 %v9409_v24, %v4496_v20 }
0x3dba   : > { %v4501_v31 = vmul.f32 %v5490_v25, %v8956_v34 }
0x3dbb   : > { %5491 = vtanh.f32 %v4497_v23 }
0x3dbc   : > { %v4503_v3 = vadd.f32 %v4501_v31, %v9665_v41 }
0x3dbe   : > { %4521 = vmatmul.f32.vlgmr.msra.gmra.mxu1 %v4503_v3 }
0x3dc1   : > { %v5492_v38 = vpop.eup %5491 }
0x3dc2   : > { %v4502_v49 = vmul.f32 %v5492_v38, %v8956_v34 }
0x3dc4   : > { %v4504_v19 = vadd.f32 %v4502_v49, %v9670_v35 }
0x3dc6   : > { %4524 = vmatmul.f32.gmra.mxu1 %v4504_v19 }
0x3e3b   : > { %v4522_v54 = vpop.f32.mrf.mxu1 }
0x3e3c   : > { %v4523_v2 = vadd.f32 %v9409_v24, %v4522_v54 }
0x3e3e   : > { %5493 = vtanh.f32 %v4523_v2 }
0x3e43   : > { %v4525_v9 = vpop.f32.mrf.mxu1 }
0x3e44   : > { %v5494_v52 = vpop.eup %5493  ;;  %v4526_v40 = vadd.f32 %v9409_v24, %v4525_v9 }
0x3e45   : > { %v4530_v59 = vmul.f32 %v5494_v52, %v8956_v34  ;;  %v4588_v30 = vmul.f32 2.0, %v5494_v52 }
0x3e46   : > { %5495 = vtanh.f32 %v4526_v40 }
0x3e47   : > { %v4532_v44 = vadd.f32 %v4530_v59, %v9665_v41  ;;  %v4590_v8 = vadd.f32 %v5490_v25, %v4588_v30 }
0x3e49   : > { %4550 = vmatmul.f32.vlgmr.msra.gmra.mxu2 %v4532_v44 }
0x3e4c   : > { %v5496_v5 = vpop.eup %5495 }
0x3e4d   : > { %v4531_v48 = vmul.f32 %v5496_v5, %v8956_v34  ;;  %v4589_v53 = vmul.f32 2.0, %v5496_v5 }
0x3e4f   : > { %v4533_v28 = vadd.f32 %v4531_v48, %v9670_v35  ;;  %v4591_v14 = vadd.f32 %v5492_v38, %v4589_v53 }
0x3e51   : > { %4553 = vmatmul.f32.gmra.mxu2 %v4533_v28 }
0x3ecc   : > { %v4551_v27 = vpop.f32.mrf.mxu2 }
0x3ecd   : > { %v4552_v21 = vadd.f32 %v9409_v24, %v4551_v27 }
0x3ecf   : > { %5497 = vtanh.f32 %v4552_v21 }
0x3ed4   : > { %v4554_v4 = vpop.f32.mrf.mxu2 }
0x3ed5   : > { %v5498_v51 = vpop.eup %5497  ;;  %v4555_v0 = vadd.f32 %v9409_v24, %v4554_v4 }
0x3ed6   : > { %v4559_v22 = vmul.f32 %v5498_v51, %v9066_v57  ;;  %v4592_v61 = vmul.f32 2.0, %v5498_v51 }
0x3ed7   : > { %5499 = vtanh.f32 %v4555_v0 }
0x3ed8   : > { %v4561_v15 = vadd.f32 %v4559_v22, %v9665_v41  ;;  %v4594_v11 = vadd.f32 %v4592_v61, %v4590_v8 }
0x3eda   : > { %4579 = vmatmul.f32.vlgmr.msra.gmra.mxu3 %v4561_v15 }
0x3edd   : > { %v5500_v47 = vpop.eup %5499 }
0x3ede   : > { %v4593_v16 = vmul.f32 2.0, %v5500_v47  ;;  %v4560_v60 = vmul.f32 %v5500_v47, %v9066_v57 }
0x3ee0   : > { %v4562_v6 = vadd.f32 %v4560_v60, %v9670_v35  ;;  %v4595_v62 = vadd.f32 %v4593_v16, %v4591_v14 }
0x3ee2   : > { %4582 = vmatmul.f32.gmra.mxu3 %v4562_v6 }
0x3f5d   : > { %v4580_v17 = vpop.f32.mrf.mxu3 }
0x3f5e   : > { %v4581_v32 = vadd.f32 %v9409_v24, %v4580_v17 }
0x3f60   : > { %5501 = vtanh.f32 %v4581_v32 }
0x3f65   : > { %v4583_v45 = vpop.f32.mrf.mxu3 }
0x3f66   : > { %v5502_v50 = vpop.eup %5501  ;;  %v4584_v42 = vadd.f32 %v9409_v24, %v4583_v45 }
0x3f67   : > { %v4596_v39 = vadd.f32 %v5502_v50, %v4594_v11 }
0x3f68   : > { %5503 = vtanh.f32 %v4584_v42 }
0x3f69   : > { %v4598_v36 = vmul.f32 %v4596_v39, %v9115_v26 }
0x3f6b   : > { %v9695_v37 = vadd.f32 %v4598_v36, %v9665_v41 }
0x3f6d   : > { %4618 = vmatmul.f32.vlgmr.msrb.gmra.mxu0 %v9695_v37 }
0x3f6e   : > { %v5504_v18 = vpop.eup %5503 }
0x3f6f   : > { %v4597_v55 = vadd.f32 %v5504_v18, %v4595_v62 }
0x3f71   : > { %v4599_v63 = vmul.f32 %v4597_v55, %v9115_v26 }
0x3f73   : > { %v9700_v29 = vadd.f32 %v4599_v63, %v9670_v35 }
0x3f75   : > { %4621 = vmatmul.f32.gmra.mxu0 %v9700_v29 }
0x3fea   : > { %v4619_v10 = vpop.f32.mrf.mxu0 }
0x3feb   : > { %v4620_v43 = vadd.f32 %v9409_v24, %v4619_v10 }
0x3fed   : > { %5505 = vtanh.f32 %v4620_v43 }
0x3ff2   : > { %v4622_v7 = vpop.f32.mrf.mxu0 }
0x3ff3   : > { %v5506_v33 = vpop.eup %5505  ;;  %v4623_v13 = vadd.f32 %v9409_v24, %v4622_v7 }
0x3ff4   : > { %v4627_v41 = vmul.f32 %v5506_v33, %v8956_v34 }
0x3ff5   : > { %5507 = vtanh.f32 %v4623_v13 }
0x3ff6   : > { %v4629_v12 = vadd.f32 %v4627_v41, %v9695_v37 }
0x3ff8   : > { %4647 = vmatmul.f32.vlgmr.msrb.gmra.mxu1 %v4629_v12 }
0x3ffb   : > { %v5508_v58 = vpop.eup %5507 }
0x3ffc   : > { %v4628_v56 = vmul.f32 %v5508_v58, %v8956_v34 }
0x3ffe   : > { %v4630_v35 = vadd.f32 %v4628_v56, %v9700_v29 }
0x4000   : > { %4650 = vmatmul.f32.gmra.mxu1 %v4630_v35 }
0x4075   : > { %v4648_v46 = vpop.f32.mrf.mxu1 }
0x4076   : > { %v4649_v1 = vadd.f32 %v9409_v24, %v4648_v46 }
0x4078   : > { %5509 = vtanh.f32 %v4649_v1 }
0x407d   : > { %v4651_v20 = vpop.f32.mrf.mxu1 }
0x407e   : > { %v5510_v25 = vpop.eup %5509  ;;  %v4652_v23 = vadd.f32 %v9409_v24, %v4651_v20 }
0x407f   : > { %v4656_v31 = vmul.f32 %v5510_v25, %v8956_v34  ;;  %v4714_v9 = vmul.f32 2.0, %v5510_v25 }
0x4080   : > { %5511 = vtanh.f32 %v4652_v23 }
0x4081   : > { %v4658_v3 = vadd.f32 %v4656_v31, %v9695_v37  ;;  %v4716_v44 = vadd.f32 %v5506_v33, %v4714_v9 }
0x4083   : > { %4676 = vmatmul.f32.vlgmr.msrb.gmra.mxu2 %v4658_v3 }
0x4086   : > { %v5512_v38 = vpop.eup %5511 }
0x4087   : > { %v4657_v49 = vmul.f32 %v5512_v38, %v8956_v34  ;;  %v4715_v27 = vmul.f32 2.0, %v5512_v38 }
0x4089   : > { %v4659_v19 = vadd.f32 %v4657_v49, %v9700_v29  ;;  %v4717_v30 = vadd.f32 %v5508_v58, %v4715_v27 }
0x408b   : > { %4679 = vmatmul.f32.gmra.mxu2 %v4659_v19 }
0x4106   : > { %v4677_v54 = vpop.f32.mrf.mxu2 }
0x4107   : > { %v4678_v2 = vadd.f32 %v9409_v24, %v4677_v54 }
0x4109   : > { %5513 = vtanh.f32 %v4678_v2 }
0x410e   : > { %v4680_v52 = vpop.f32.mrf.mxu2 }
0x410f   : > { %v5514_v40 = vpop.eup %5513  ;;  %v4681_v59 = vadd.f32 %v9409_v24, %v4680_v52 }
0x4110   : > { %v4685_v5 = vmul.f32 %v5514_v40, %v9066_v57  ;;  %v4718_v48 = vmul.f32 2.0, %v5514_v40 }
0x4111   : > { %5515 = vtanh.f32 %v4681_v59 }
0x4112   : > { %v4687_v28 = vadd.f32 %v4685_v5, %v9695_v37  ;;  %v4720_v34 = vadd.f32 %v4718_v48, %v4716_v44 }
0x4114   : > { %4705 = vmatmul.f32.vlgmr.msrb.gmra.mxu3 %v4687_v28 }
0x4117   : > { %v5516_v21 = vpop.eup %5515 }
0x4118   : > { %v4719_v4 = vmul.f32 2.0, %v5516_v21  ;;  %v4686_v51 = vmul.f32 %v5516_v21, %v9066_v57 }
0x411a   : > { %v4688_v0 = vadd.f32 %v4686_v51, %v9700_v29  ;;  %v4721_v8 = vadd.f32 %v4719_v4, %v4717_v30 }
0x411c   : > { %4708 = vmatmul.f32.gmra.mxu3 %v4688_v0 }
0x4197   : > { %v4706_v22 = vpop.f32.mrf.mxu3 }
0x4198   : > { %v4707_v61 = vadd.f32 %v9409_v24, %v4706_v22 }
0x419a   : > { %5517 = vtanh.f32 %v4707_v61 }
0x419f   : > { %v4709_v15 = vpop.f32.mrf.mxu3 }
0x41a0   : > { %v5518_v11 = vpop.eup %5517  ;;  %v4710_v53 = vadd.f32 %v9409_v24, %v4709_v15 }
0x41a1   : > { %v4722_v47 = vadd.f32 %v5518_v11, %v4720_v34 }
0x41a2   : > { %5519 = vtanh.f32 %v4710_v53 }
0x41a3   : > { %v4724_v14 = vmul.f32 %v4722_v47, %v9115_v26 }
0x41a5   : > { %v4726_v57 = vadd.f32 %v4724_v14, %v9695_v37 }
0x41a7   : > { %4728 = vst [vmem:[#allocation2 + $0x28] sm:$0xff] %v4726_v57 }
0x41a8   : > { %v5520_v16 = vpop.eup %5519  ;;  %4897 = vst [vmem:[%s5980_s6 + $0x30] sm:$0xff] %v4726_v57 }
0x41a9   : > { %v4723_v60 = vadd.f32 %v5520_v16, %v4721_v8 }
0x41ab   : > { %v4725_v24 = vmul.f32 %v4723_v60, %v9115_v26 }
0x41ad   : > { %v4727_v6 = vadd.f32 %v4725_v24, %v9700_v29 }
0x41af   : > { %4729 = vst [vmem:[#allocation2 + $0x38] sm:$0xff] %v4727_v6 }
0x41b0   : > { %4898 = vst [vmem:[%s5980_s6 + $0x38] sm:$0xff] %v4727_v6 }
0x41b1   : > { %5739 = shalt.err (!%p5736_p13)
}
0x41b2   : > { %s5812_s8 = smov 128   ;;  %s5813_s1 = smov 8  }
0x41b3   : > { %4919 = dma.vmem_to_hbm [thread:$0]  (%p5930_p0), %s4749_s12, 1024, %s4751_s13, %s4734_s18, %s5812_s8, %s5812_s8, %s5813_s1  }
0x41b4 PF: > { %p4946_p3 = scmp.ge.s32.totalorder %s5802_s20, 2  ;;  %s4765_s27 = sand.u32 1, %s5782_s15  }
0x41b5   : > { %s4766_s5 = scalar_lea.sflag [#allocation6], %s4765_s27 }
0x41b6   : > { %p4936_p5 = pnand %p4946_p3, %p5888_p6 }
0x41b8   : > { %p4937_p7 = pneg %p4936_p5 }
0x41ba   : > { %5777 = dma.done.wait (%p4937_p7), %s4766_s5, 1024  }
0x41bb   : > { %5779 = vsyncadd (%p4937_p7), %s4766_s5, 4294966272  ;;  %s22_s20 = sadd.s32 1, %s5802_s20   ;;  %s9788_s15 = smov %s5786_s16 }
0x41bc   : > { %p19_p2 = scmp.ge.s32.totalorder %s22_s20, 6   ;;  %s9789_s16 = smov %s5790_s17 }
0x41bd   : > { %s9790_s17 = smov %s5946_s24  ;;  %s9791_s18 = smov %s5798_s19 }
0x41be   : > { %s9792_s19 = smov %s9794_s9  ;;  %21 = sbr.rel (!%p19_p2) target bundleno = 11 (0xb), region = 122 }
0x41c3   :  { %4772 = vsyncpa [#allocation5], 1 }
0x41c4   :  { %4774 = vsyncpa [#allocation5 + $0x1], 1 }
0x41c5   :  { %4775 = vsyncpa [#allocation8], 1 }
0x41c6   :  { %4776 = vsyncpa [#allocation11], 1 }
0x41c7   :  { %4778 = vsyncpa [#allocation11 + $0x1], 1 }
0x41c8   :  { %4779 = vsyncpa [#allocation6], 1 }
0x41c9   :  { %4781 = vsyncpa [#allocation6 + $0x1], 1 }

</bundles_post_ra>
